<compile_context>
chip_gen: v7x
topology: tpu7x:2x2x1
jax: 0.10.0
libtpu: 0.0.40
codegen_flags: <defaults>
</compile_context>

<pallas_src>
import functools

import jax
import jax.numpy as jnp
from jax.experimental import pallas as pl
from jax.experimental.pallas import tpu as pltpu

_K = 7            # AttentionGate kernel size (fixed by the reference module)
_PAD = _K // 2    # = 3


def _triplet_kernel(w_ref, b_ref, x_ref, o_ref, hw_pad, cw_pad, hc_pad, *, C, H, W):
    """Fused TripletAttention for one batch element.

    w_ref : (3, 98) f32 SMEM   folded conv weights for gates [hw, cw, hc]
                               (taps 0..48 = max-pool channel, 49..97 = mean-pool)
    b_ref : (3,)    f32 SMEM   folded BN biases for the three gates
    x_ref : (C, H, W)          input block (batch dim squeezed), native dtype
    o_ref : (C, H, W)
    hw_pad: (2, H+6, W+6) f32  VMEM scratch: zero-padded ZPool maps, hw gate
    cw_pad: (2, C+6, W+6) f32  VMEM scratch, cw gate
    hc_pad: (2, C+6, H+6) f32  VMEM scratch, hc gate
    """
    P = _PAD
    x = x_ref[...]                            # (C, H, W), native dtype
    xf = x.astype(jnp.float32)                # no-op for f32 inputs

    # Zero the padded staging buffers (borders must be 0 for the "same" conv).
    # Zeroed every step (cheap, tiny buffers) so this stays correct even if the
    # batch axis is ever sharded across TensorCores.
    hw_pad[...] = jnp.zeros_like(hw_pad)
    cw_pad[...] = jnp.zeros_like(cw_pad)
    hc_pad[...] = jnp.zeros_like(hc_pad)

    # ZPool per branch, in squeezed lane-dense 2D layouts, written into the
    # interior of the zero-padded scratch buffers.
    hw_pad[0, P:P + H, P:P + W] = jnp.max(xf, axis=0)      # (H, W)  W on lanes
    hw_pad[1, P:P + H, P:P + W] = jnp.mean(xf, axis=0)
    cw_pad[0, P:P + C, P:P + W] = jnp.max(xf, axis=1)      # (C, W)  W on lanes
    cw_pad[1, P:P + C, P:P + W] = jnp.mean(xf, axis=1)
    hc_pad[0, P:P + C, P:P + H] = jnp.max(xf, axis=2)      # (C, H)  H on lanes
    hc_pad[1, P:P + C, P:P + H] = jnp.mean(xf, axis=2)

    def gate(pad_ref, g, rows, cols, swap):
        """7x7 'same' conv (2->1 channels) + folded-BN bias + sigmoid on a 2D map."""
        acc = jnp.zeros((rows, cols), jnp.float32)
        for kj in range(_K):                               # lane-axis offset (hoisted)
            vmax = pad_ref[0, :, kj:kj + cols]             # (rows+6, cols)
            vmean = pad_ref[1, :, kj:kj + cols]
            for ki in range(_K):                           # sublane-axis offset
                # The hc gate convolves the (H, C) plane of the permuted tensor
                # while its pooled map here is laid out (C, H); swapping the
                # kernel index order is exactly equivalent.
                widx = (kj * _K + ki) if swap else (ki * _K + kj)
                acc = (acc
                       + w_ref[g, widx] * vmax[ki:ki + rows, :]
                       + w_ref[g, _K * _K + widx] * vmean[ki:ki + rows, :])
        return jax.nn.sigmoid(acc + b_ref[g])

    s_hw = gate(hw_pad, 0, H, W, swap=False)               # (H, W)
    s_cw = gate(cw_pad, 1, C, W, swap=False)               # (C, W)
    s_hc = gate(hc_pad, 2, C, H, swap=True)                # (C, H)

    # x * (s_hw + s_cw + s_hc) / 3 via pure unit-dim broadcasting; the big
    # multiply/store stays in the input dtype (bf16 fast path on v6e/v7x).
    scale = (s_hw[None, :, :] + s_cw[:, None, :] + s_hc[:, :, None]) * (1.0 / 3.0)
    o_ref[...] = (x * scale.astype(x.dtype)).astype(o_ref.dtype)


def triplet_attention(x, params):
    """x: (N, C, H, W).  params: {'hw'|'cw'|'hc': (w(1,2,7,7), gamma, beta, rmean, rvar)}."""
    N, C, H, W = x.shape
    eps = 1e-5

    # Fold eval-mode BatchNorm into the conv weights (scale) + a scalar bias.
    ws, bs = [], []
    for name in ("hw", "cw", "hc"):
        w, gamma, beta, rmean, rvar = params[name]
        s = gamma / jnp.sqrt(rvar + eps)                        # (1,)
        ws.append((w * s[:, None, None, None]).reshape(2 * _K * _K))
        bs.append((beta - rmean * s)[0])
    weights = jnp.stack(ws).astype(jnp.float32)                 # (3, 98)
    biases = jnp.stack(bs).astype(jnp.float32)                  # (3,)

    kernel = functools.partial(_triplet_kernel, C=C, H=H, W=W)
    return pl.pallas_call(
        kernel,
        out_shape=jax.ShapeDtypeStruct((N, C, H, W), x.dtype),
        grid_spec=pltpu.PrefetchScalarGridSpec(
            num_scalar_prefetch=2,          # weights, biases -> SMEM
            grid=(N,),
            in_specs=[
                pl.BlockSpec((None, C, H, W), lambda n, *_: (n, 0, 0, 0)),
            ],
            out_specs=pl.BlockSpec((None, C, H, W), lambda n, *_: (n, 0, 0, 0)),
            scratch_shapes=[
                pltpu.VMEM((2, H + 2 * _PAD, W + 2 * _PAD), jnp.float32),
                pltpu.VMEM((2, C + 2 * _PAD, W + 2 * _PAD), jnp.float32),
                pltpu.VMEM((2, C + 2 * _PAD, H + 2 * _PAD), jnp.float32),
            ]),
        compiler_params=pltpu.CompilerParams(
            dimension_semantics=("parallel",),
            vmem_limit_bytes=64 * 1024 * 1024),
    )(weights, biases, x)


# ----------------------------- test scaffolding -----------------------------

def init_params(key):
    """Deterministic synthetic parameters matching the torch module shapes."""
    params = {}
    for i, name in enumerate(("hw", "cw", "hc")):
        k = jax.random.fold_in(key, i)
        kw, kg, kb = jax.random.split(k, 3)
        w = 0.1 * jax.random.normal(kw, (1, 2, _K, _K), jnp.float32)
        gamma = 1.0 + 0.1 * jax.random.normal(kg, (1,), jnp.float32)
        beta = 0.05 * jax.random.normal(kb, (1,), jnp.float32)
        rmean = jnp.array([0.03 * (i + 1)], jnp.float32)
        rvar = jnp.array([1.0 + 0.1 * i], jnp.float32)
        params[name] = (w, gamma, beta, rmean, rvar)
    return params


def _gate_ref(y, w, gamma, beta, rmean, rvar, eps=1e-5):
    """Pure-JAX AttentionGate (eval-mode BN) for the sanity check."""
    mx = jnp.max(y, axis=1, keepdims=True)
    mn = jnp.mean(y, axis=1, keepdims=True)
    z = jnp.concatenate([mx, mn], axis=1)
    c = jax.lax.conv_general_dilated(
        z, w, (1, 1), [(_PAD, _PAD), (_PAD, _PAD)],
        dimension_numbers=("NCHW", "OIHW", "NCHW"))
    c = (c - rmean[None, :, None, None]) / jnp.sqrt(rvar + eps)[None, :, None, None]
    c = c * gamma[None, :, None, None] + beta[None, :, None, None]
    return y * jax.nn.sigmoid(c)


def _reference(x, params):
    xp1 = jnp.transpose(x, (0, 2, 1, 3))
    o11 = jnp.transpose(_gate_ref(xp1, *params["cw"]), (0, 2, 1, 3))
    xp2 = jnp.transpose(x, (0, 3, 2, 1))
    o21 = jnp.transpose(_gate_ref(xp2, *params["hc"]), (0, 3, 2, 1))
    o = _gate_ref(x, *params["hw"])
    return (1.0 / 3.0) * (o + o11 + o21)


if __name__ == "__main__":
    key = jax.random.PRNGKey(0)
    kx, kp = jax.random.split(key)

    N, C, H, W = 2, 4, 16, 16
    x = jax.random.normal(kx, (N, C, H, W), jnp.float32)
    params = init_params(kp)

    out = jax.block_until_ready(triplet_attention(x, params))
    ref = _reference(x, params)

    assert out.shape == (N, C, H, W), out.shape
    max_err = float(jnp.max(jnp.abs(out - ref)))
    assert jnp.allclose(out, ref, atol=1e-4, rtol=1e-4), max_err

    print("KERNEL_OK")
</pallas_src>

<mosaic_0001>
module attributes {stable_mosaic.version = 11 : i64} {
  func.func @_triplet_kernel(%arg0: i32, %arg1: memref<3x98xf32, #tpu.memory_space<smem>>, %arg2: memref<3xf32, #tpu.memory_space<smem>>, %arg3: memref<1x4x16x16xf32, #tpu.memory_space<vmem>>, %arg4: memref<1x4x16x16xf32, #tpu.memory_space<vmem>>, %arg5: memref<2x22x22xf32, #tpu.memory_space<vmem>>, %arg6: memref<2x10x22xf32, #tpu.memory_space<vmem>>, %arg7: memref<2x10x22xf32, #tpu.memory_space<vmem>>) attributes {dimension_semantics = [#tpu.dimension_semantics<parallel>], iteration_bounds = array<i64: 2>, scalar_prefetch = 2 : i64, scratch_operands = 3 : i64, tpu.core_type = #tpu.core_type<tc>, window_params = [{transform_indices = @transform_0, window_bounds = array<i64: 1, 4, 16, 16>}, {transform_indices = @transform_1, window_bounds = array<i64: 1, 4, 16, 16>}]} {
    %c0 = arith.constant 0 : index
    %c0_0 = arith.constant 0 : index
    %c0_1 = arith.constant 0 : index
    %c0_2 = arith.constant 0 : index
    %0 = vector.load %arg3[%c0, %c0_0, %c0_1, %c0_2] : memref<1x4x16x16xf32, #tpu.memory_space<vmem>>, vector<1x4x16x16xf32>
    %1 = vector.shape_cast %0 : vector<1x4x16x16xf32> to vector<4x16x16xf32>
    %cst = arith.constant 0.000000e+00 : f32
    %2 = vector.broadcast %cst : f32 to vector<2x22x22xf32>
    %c0_3 = arith.constant 0 : index
    %c0_4 = arith.constant 0 : index
    %c0_5 = arith.constant 0 : index
    %3 = vector.load %arg5[%c0_3, %c0_4, %c0_5] : memref<2x22x22xf32, #tpu.memory_space<vmem>>, vector<2x22x22xf32>
    tpu.vector_store %arg5[%c0_3, %c0_4, %c0_5], %2 {strides = array<i32>} : memref<2x22x22xf32, #tpu.memory_space<vmem>>, vector<2x22x22xf32>,
    %cst_6 = arith.constant 0.000000e+00 : f32
    %4 = vector.broadcast %cst_6 : f32 to vector<2x10x22xf32>
    %c0_7 = arith.constant 0 : index
    %c0_8 = arith.constant 0 : index
    %c0_9 = arith.constant 0 : index
    %5 = vector.load %arg6[%c0_7, %c0_8, %c0_9] : memref<2x10x22xf32, #tpu.memory_space<vmem>>, vector<2x10x22xf32>
    tpu.vector_store %arg6[%c0_7, %c0_8, %c0_9], %4 {strides = array<i32>} : memref<2x10x22xf32, #tpu.memory_space<vmem>>, vector<2x10x22xf32>,
    %cst_10 = arith.constant 0.000000e+00 : f32
    %6 = vector.broadcast %cst_10 : f32 to vector<2x10x22xf32>
    %c0_11 = arith.constant 0 : index
    %c0_12 = arith.constant 0 : index
    %c0_13 = arith.constant 0 : index
    %7 = vector.load %arg7[%c0_11, %c0_12, %c0_13] : memref<2x10x22xf32, #tpu.memory_space<vmem>>, vector<2x10x22xf32>
    tpu.vector_store %arg7[%c0_11, %c0_12, %c0_13], %6 {strides = array<i32>} : memref<2x10x22xf32, #tpu.memory_space<vmem>>, vector<2x10x22xf32>,
    %cst_14 = arith.constant dense<0xFF800000> : vector<16x16xf32>
    %8 = vector.multi_reduction <maximumf>, %1, %cst_14 [0] : vector<4x16x16xf32> to vector<16x16xf32>
    %c0_15 = arith.constant 0 : index
    %c3 = arith.constant 3 : index
    %c3_16 = arith.constant 3 : index
    %9 = vector.load %arg5[%c0_15, %c3, %c3_16] : memref<2x22x22xf32, #tpu.memory_space<vmem>>, vector<1x16x16xf32>
    %10 = vector.shape_cast %9 : vector<1x16x16xf32> to vector<16x16xf32>
    %11 = vector.shape_cast %8 : vector<16x16xf32> to vector<1x16x16xf32>
    tpu.vector_store %arg5[%c0_15, %c3, %c3_16], %11 {strides = array<i32>} : memref<2x22x22xf32, #tpu.memory_space<vmem>>, vector<1x16x16xf32>,
    %cst_17 = arith.constant dense<0.000000e+00> : vector<16x16xf32>
    %12 = vector.multi_reduction <add>, %1, %cst_17 [0] : vector<4x16x16xf32> to vector<16x16xf32>
    %cst_18 = arith.constant 4.000000e+00 : f32
    %13 = vector.broadcast %cst_18 : f32 to vector<16x16xf32>
    %14 = arith.divf %12, %13 : vector<16x16xf32>
    %c1 = arith.constant 1 : index
    %c3_19 = arith.constant 3 : index
    %c3_20 = arith.constant 3 : index
    %15 = vector.load %arg5[%c1, %c3_19, %c3_20] : memref<2x22x22xf32, #tpu.memory_space<vmem>>, vector<1x16x16xf32>
    %16 = vector.shape_cast %15 : vector<1x16x16xf32> to vector<16x16xf32>
    %17 = vector.shape_cast %14 : vector<16x16xf32> to vector<1x16x16xf32>
    tpu.vector_store %arg5[%c1, %c3_19, %c3_20], %17 {strides = array<i32>} : memref<2x22x22xf32, #tpu.memory_space<vmem>>, vector<1x16x16xf32>,
    %cst_21 = arith.constant dense<0xFF800000> : vector<4x16xf32>
    %18 = vector.multi_reduction <maximumf>, %1, %cst_21 [1] : vector<4x16x16xf32> to vector<4x16xf32>
    %c0_22 = arith.constant 0 : index
    %c3_23 = arith.constant 3 : index
    %c3_24 = arith.constant 3 : index
    %19 = vector.load %arg6[%c0_22, %c3_23, %c3_24] : memref<2x10x22xf32, #tpu.memory_space<vmem>>, vector<1x4x16xf32>
    %20 = vector.shape_cast %19 : vector<1x4x16xf32> to vector<4x16xf32>
    %21 = vector.shape_cast %18 : vector<4x16xf32> to vector<1x4x16xf32>
    tpu.vector_store %arg6[%c0_22, %c3_23, %c3_24], %21 {strides = array<i32>} : memref<2x10x22xf32, #tpu.memory_space<vmem>>, vector<1x4x16xf32>,
    %cst_25 = arith.constant dense<0.000000e+00> : vector<4x16xf32>
    %22 = vector.multi_reduction <add>, %1, %cst_25 [1] : vector<4x16x16xf32> to vector<4x16xf32>
    %cst_26 = arith.constant 1.600000e+01 : f32
    %23 = vector.broadcast %cst_26 : f32 to vector<4x16xf32>
    %24 = arith.divf %22, %23 : vector<4x16xf32>
    %c1_27 = arith.constant 1 : index
    %c3_28 = arith.constant 3 : index
    %c3_29 = arith.constant 3 : index
    %25 = vector.load %arg6[%c1_27, %c3_28, %c3_29] : memref<2x10x22xf32, #tpu.memory_space<vmem>>, vector<1x4x16xf32>
    %26 = vector.shape_cast %25 : vector<1x4x16xf32> to vector<4x16xf32>
    %27 = vector.shape_cast %24 : vector<4x16xf32> to vector<1x4x16xf32>
    tpu.vector_store %arg6[%c1_27, %c3_28, %c3_29], %27 {strides = array<i32>} : memref<2x10x22xf32, #tpu.memory_space<vmem>>, vector<1x4x16xf32>,
    %cst_30 = arith.constant dense<0xFF800000> : vector<4x16xf32>
    %28 = vector.multi_reduction <maximumf>, %1, %cst_30 [2] : vector<4x16x16xf32> to vector<4x16xf32>
    %c0_31 = arith.constant 0 : index
    %c3_32 = arith.constant 3 : index
    %c3_33 = arith.constant 3 : index
    %29 = vector.load %arg7[%c0_31, %c3_32, %c3_33] : memref<2x10x22xf32, #tpu.memory_space<vmem>>, vector<1x4x16xf32>
    %30 = vector.shape_cast %29 : vector<1x4x16xf32> to vector<4x16xf32>
    %31 = vector.shape_cast %28 : vector<4x16xf32> to vector<1x4x16xf32>
    tpu.vector_store %arg7[%c0_31, %c3_32, %c3_33], %31 {strides = array<i32>} : memref<2x10x22xf32, #tpu.memory_space<vmem>>, vector<1x4x16xf32>,
    %cst_34 = arith.constant dense<0.000000e+00> : vector<4x16xf32>
    %32 = vector.multi_reduction <add>, %1, %cst_34 [2] : vector<4x16x16xf32> to vector<4x16xf32>
    %cst_35 = arith.constant 1.600000e+01 : f32
    %33 = vector.broadcast %cst_35 : f32 to vector<4x16xf32>
    %34 = arith.divf %32, %33 : vector<4x16xf32>
    %c1_36 = arith.constant 1 : index
    %c3_37 = arith.constant 3 : index
    %c3_38 = arith.constant 3 : index
    %35 = vector.load %arg7[%c1_36, %c3_37, %c3_38] : memref<2x10x22xf32, #tpu.memory_space<vmem>>, vector<1x4x16xf32>
    %36 = vector.shape_cast %35 : vector<1x4x16xf32> to vector<4x16xf32>
    %37 = vector.shape_cast %34 : vector<4x16xf32> to vector<1x4x16xf32>
    tpu.vector_store %arg7[%c1_36, %c3_37, %c3_38], %37 {strides = array<i32>} : memref<2x10x22xf32, #tpu.memory_space<vmem>>, vector<1x4x16xf32>,
    %cst_39 = arith.constant 0.000000e+00 : f32
    %38 = vector.broadcast %cst_39 : f32 to vector<16x16xf32>
    %c0_40 = arith.constant 0 : index
    %c0_41 = arith.constant 0 : index
    %c0_42 = arith.constant 0 : index
    %39 = vector.load %arg5[%c0_40, %c0_41, %c0_42] : memref<2x22x22xf32, #tpu.memory_space<vmem>>, vector<1x22x16xf32>
    %40 = vector.shape_cast %39 : vector<1x22x16xf32> to vector<22x16xf32>
    %c1_43 = arith.constant 1 : index
    %c0_44 = arith.constant 0 : index
    %c0_45 = arith.constant 0 : index
    %41 = vector.load %arg5[%c1_43, %c0_44, %c0_45] : memref<2x22x22xf32, #tpu.memory_space<vmem>>, vector<1x22x16xf32>
    %42 = vector.shape_cast %41 : vector<1x22x16xf32> to vector<22x16xf32>
    %c0_46 = arith.constant 0 : index
    %c0_47 = arith.constant 0 : index
    %43 = memref.load %arg1[%c0_46, %c0_47] : memref<3x98xf32, #tpu.memory_space<smem>>
    %44 = vector.extract_strided_slice %40 {offsets = [0, 0], sizes = [16, 16], strides = [1, 1]} : vector<22x16xf32> to vector<16x16xf32>
    %45 = vector.broadcast %43 : f32 to vector<16x16xf32>
    %46 = arith.mulf %45, %44 : vector<16x16xf32>
    %47 = arith.addf %38, %46 : vector<16x16xf32>
    %c0_48 = arith.constant 0 : index
    %c49 = arith.constant 49 : index
    %48 = memref.load %arg1[%c0_48, %c49] : memref<3x98xf32, #tpu.memory_space<smem>>
    %49 = vector.extract_strided_slice %42 {offsets = [0, 0], sizes = [16, 16], strides = [1, 1]} : vector<22x16xf32> to vector<16x16xf32>
    %50 = vector.broadcast %48 : f32 to vector<16x16xf32>
    %51 = arith.mulf %50, %49 : vector<16x16xf32>
    %52 = arith.addf %47, %51 : vector<16x16xf32>
    %c0_49 = arith.constant 0 : index
    %c7 = arith.constant 7 : index
    %53 = memref.load %arg1[%c0_49, %c7] : memref<3x98xf32, #tpu.memory_space<smem>>
    %54 = vector.extract_strided_slice %40 {offsets = [1, 0], sizes = [16, 16], strides = [1, 1]} : vector<22x16xf32> to vector<16x16xf32>
    %55 = vector.broadcast %53 : f32 to vector<16x16xf32>
    %56 = arith.mulf %55, %54 : vector<16x16xf32>
    %57 = arith.addf %52, %56 : vector<16x16xf32>
    %c0_50 = arith.constant 0 : index
    %c56 = arith.constant 56 : index
    %58 = memref.load %arg1[%c0_50, %c56] : memref<3x98xf32, #tpu.memory_space<smem>>
    %59 = vector.extract_strided_slice %42 {offsets = [1, 0], sizes = [16, 16], strides = [1, 1]} : vector<22x16xf32> to vector<16x16xf32>
    %60 = vector.broadcast %58 : f32 to vector<16x16xf32>
    %61 = arith.mulf %60, %59 : vector<16x16xf32>
    %62 = arith.addf %57, %61 : vector<16x16xf32>
    %c0_51 = arith.constant 0 : index
    %c14 = arith.constant 14 : index
    %63 = memref.load %arg1[%c0_51, %c14] : memref<3x98xf32, #tpu.memory_space<smem>>
    %64 = vector.extract_strided_slice %40 {offsets = [2, 0], sizes = [16, 16], strides = [1, 1]} : vector<22x16xf32> to vector<16x16xf32>
    %65 = vector.broadcast %63 : f32 to vector<16x16xf32>
    %66 = arith.mulf %65, %64 : vector<16x16xf32>
    %67 = arith.addf %62, %66 : vector<16x16xf32>
    %c0_52 = arith.constant 0 : index
    %c63 = arith.constant 63 : index
    %68 = memref.load %arg1[%c0_52, %c63] : memref<3x98xf32, #tpu.memory_space<smem>>
    %69 = vector.extract_strided_slice %42 {offsets = [2, 0], sizes = [16, 16], strides = [1, 1]} : vector<22x16xf32> to vector<16x16xf32>
    %70 = vector.broadcast %68 : f32 to vector<16x16xf32>
    %71 = arith.mulf %70, %69 : vector<16x16xf32>
    %72 = arith.addf %67, %71 : vector<16x16xf32>
    %c0_53 = arith.constant 0 : index
    %c21 = arith.constant 21 : index
    %73 = memref.load %arg1[%c0_53, %c21] : memref<3x98xf32, #tpu.memory_space<smem>>
    %74 = vector.extract_strided_slice %40 {offsets = [3, 0], sizes = [16, 16], strides = [1, 1]} : vector<22x16xf32> to vector<16x16xf32>
    %75 = vector.broadcast %73 : f32 to vector<16x16xf32>
    %76 = arith.mulf %75, %74 : vector<16x16xf32>
    %77 = arith.addf %72, %76 : vector<16x16xf32>
    %c0_54 = arith.constant 0 : index
    %c70 = arith.constant 70 : index
    %78 = memref.load %arg1[%c0_54, %c70] : memref<3x98xf32, #tpu.memory_space<smem>>
    %79 = vector.extract_strided_slice %42 {offsets = [3, 0], sizes = [16, 16], strides = [1, 1]} : vector<22x16xf32> to vector<16x16xf32>
    %80 = vector.broadcast %78 : f32 to vector<16x16xf32>
    %81 = arith.mulf %80, %79 : vector<16x16xf32>
    %82 = arith.addf %77, %81 : vector<16x16xf32>
    %c0_55 = arith.constant 0 : index
    %c28 = arith.constant 28 : index
    %83 = memref.load %arg1[%c0_55, %c28] : memref<3x98xf32, #tpu.memory_space<smem>>
    %84 = vector.extract_strided_slice %40 {offsets = [4, 0], sizes = [16, 16], strides = [1, 1]} : vector<22x16xf32> to vector<16x16xf32>
    %85 = vector.broadcast %83 : f32 to vector<16x16xf32>
    %86 = arith.mulf %85, %84 : vector<16x16xf32>
    %87 = arith.addf %82, %86 : vector<16x16xf32>
    %c0_56 = arith.constant 0 : index
    %c77 = arith.constant 77 : index
    %88 = memref.load %arg1[%c0_56, %c77] : memref<3x98xf32, #tpu.memory_space<smem>>
    %89 = vector.extract_strided_slice %42 {offsets = [4, 0], sizes = [16, 16], strides = [1, 1]} : vector<22x16xf32> to vector<16x16xf32>
    %90 = vector.broadcast %88 : f32 to vector<16x16xf32>
    %91 = arith.mulf %90, %89 : vector<16x16xf32>
    %92 = arith.addf %87, %91 : vector<16x16xf32>
    %c0_57 = arith.constant 0 : index
    %c35 = arith.constant 35 : index
    %93 = memref.load %arg1[%c0_57, %c35] : memref<3x98xf32, #tpu.memory_space<smem>>
    %94 = vector.extract_strided_slice %40 {offsets = [5, 0], sizes = [16, 16], strides = [1, 1]} : vector<22x16xf32> to vector<16x16xf32>
    %95 = vector.broadcast %93 : f32 to vector<16x16xf32>
    %96 = arith.mulf %95, %94 : vector<16x16xf32>
    %97 = arith.addf %92, %96 : vector<16x16xf32>
    %c0_58 = arith.constant 0 : index
    %c84 = arith.constant 84 : index
    %98 = memref.load %arg1[%c0_58, %c84] : memref<3x98xf32, #tpu.memory_space<smem>>
    %99 = vector.extract_strided_slice %42 {offsets = [5, 0], sizes = [16, 16], strides = [1, 1]} : vector<22x16xf32> to vector<16x16xf32>
    %100 = vector.broadcast %98 : f32 to vector<16x16xf32>
    %101 = arith.mulf %100, %99 : vector<16x16xf32>
    %102 = arith.addf %97, %101 : vector<16x16xf32>
    %c0_59 = arith.constant 0 : index
    %c42 = arith.constant 42 : index
    %103 = memref.load %arg1[%c0_59, %c42] : memref<3x98xf32, #tpu.memory_space<smem>>
    %104 = vector.extract_strided_slice %40 {offsets = [6, 0], sizes = [16, 16], strides = [1, 1]} : vector<22x16xf32> to vector<16x16xf32>
    %105 = vector.broadcast %103 : f32 to vector<16x16xf32>
    %106 = arith.mulf %105, %104 : vector<16x16xf32>
    %107 = arith.addf %102, %106 : vector<16x16xf32>
    %c0_60 = arith.constant 0 : index
    %c91 = arith.constant 91 : index
    %108 = memref.load %arg1[%c0_60, %c91] : memref<3x98xf32, #tpu.memory_space<smem>>
    %109 = vector.extract_strided_slice %42 {offsets = [6, 0], sizes = [16, 16], strides = [1, 1]} : vector<22x16xf32> to vector<16x16xf32>
    %110 = vector.broadcast %108 : f32 to vector<16x16xf32>
    %111 = arith.mulf %110, %109 : vector<16x16xf32>
    %112 = arith.addf %107, %111 : vector<16x16xf32>
    %c0_61 = arith.constant 0 : index
    %c0_62 = arith.constant 0 : index
    %c1_63 = arith.constant 1 : index
    %113 = vector.load %arg5[%c0_61, %c0_62, %c1_63] : memref<2x22x22xf32, #tpu.memory_space<vmem>>, vector<1x22x16xf32>
    %114 = vector.shape_cast %113 : vector<1x22x16xf32> to vector<22x16xf32>
    %c1_64 = arith.constant 1 : index
    %c0_65 = arith.constant 0 : index
    %c1_66 = arith.constant 1 : index
    %115 = vector.load %arg5[%c1_64, %c0_65, %c1_66] : memref<2x22x22xf32, #tpu.memory_space<vmem>>, vector<1x22x16xf32>
    %116 = vector.shape_cast %115 : vector<1x22x16xf32> to vector<22x16xf32>
    %c0_67 = arith.constant 0 : index
    %c1_68 = arith.constant 1 : index
    %117 = memref.load %arg1[%c0_67, %c1_68] : memref<3x98xf32, #tpu.memory_space<smem>>
    %118 = vector.extract_strided_slice %114 {offsets = [0, 0], sizes = [16, 16], strides = [1, 1]} : vector<22x16xf32> to vector<16x16xf32>
    %119 = vector.broadcast %117 : f32 to vector<16x16xf32>
    %120 = arith.mulf %119, %118 : vector<16x16xf32>
    %121 = arith.addf %112, %120 : vector<16x16xf32>
    %c0_69 = arith.constant 0 : index
    %c50 = arith.constant 50 : index
    %122 = memref.load %arg1[%c0_69, %c50] : memref<3x98xf32, #tpu.memory_space<smem>>
    %123 = vector.extract_strided_slice %116 {offsets = [0, 0], sizes = [16, 16], strides = [1, 1]} : vector<22x16xf32> to vector<16x16xf32>
    %124 = vector.broadcast %122 : f32 to vector<16x16xf32>
    %125 = arith.mulf %124, %123 : vector<16x16xf32>
    %126 = arith.addf %121, %125 : vector<16x16xf32>
    %c0_70 = arith.constant 0 : index
    %c8 = arith.constant 8 : index
    %127 = memref.load %arg1[%c0_70, %c8] : memref<3x98xf32, #tpu.memory_space<smem>>
    %128 = vector.extract_strided_slice %114 {offsets = [1, 0], sizes = [16, 16], strides = [1, 1]} : vector<22x16xf32> to vector<16x16xf32>
    %129 = vector.broadcast %127 : f32 to vector<16x16xf32>
    %130 = arith.mulf %129, %128 : vector<16x16xf32>
    %131 = arith.addf %126, %130 : vector<16x16xf32>
    %c0_71 = arith.constant 0 : index
    %c57 = arith.constant 57 : index
    %132 = memref.load %arg1[%c0_71, %c57] : memref<3x98xf32, #tpu.memory_space<smem>>
    %133 = vector.extract_strided_slice %116 {offsets = [1, 0], sizes = [16, 16], strides = [1, 1]} : vector<22x16xf32> to vector<16x16xf32>
    %134 = vector.broadcast %132 : f32 to vector<16x16xf32>
    %135 = arith.mulf %134, %133 : vector<16x16xf32>
    %136 = arith.addf %131, %135 : vector<16x16xf32>
    %c0_72 = arith.constant 0 : index
    %c15 = arith.constant 15 : index
    %137 = memref.load %arg1[%c0_72, %c15] : memref<3x98xf32, #tpu.memory_space<smem>>
    %138 = vector.extract_strided_slice %114 {offsets = [2, 0], sizes = [16, 16], strides = [1, 1]} : vector<22x16xf32> to vector<16x16xf32>
    %139 = vector.broadcast %137 : f32 to vector<16x16xf32>
    %140 = arith.mulf %139, %138 : vector<16x16xf32>
    %141 = arith.addf %136, %140 : vector<16x16xf32>
    %c0_73 = arith.constant 0 : index
    %c64 = arith.constant 64 : index
    %142 = memref.load %arg1[%c0_73, %c64] : memref<3x98xf32, #tpu.memory_space<smem>>
    %143 = vector.extract_strided_slice %116 {offsets = [2, 0], sizes = [16, 16], strides = [1, 1]} : vector<22x16xf32> to vector<16x16xf32>
    %144 = vector.broadcast %142 : f32 to vector<16x16xf32>
    %145 = arith.mulf %144, %143 : vector<16x16xf32>
    %146 = arith.addf %141, %145 : vector<16x16xf32>
    %c0_74 = arith.constant 0 : index
    %c22 = arith.constant 22 : index
    %147 = memref.load %arg1[%c0_74, %c22] : memref<3x98xf32, #tpu.memory_space<smem>>
    %148 = vector.extract_strided_slice %114 {offsets = [3, 0], sizes = [16, 16], strides = [1, 1]} : vector<22x16xf32> to vector<16x16xf32>
    %149 = vector.broadcast %147 : f32 to vector<16x16xf32>
    %150 = arith.mulf %149, %148 : vector<16x16xf32>
    %151 = arith.addf %146, %150 : vector<16x16xf32>
    %c0_75 = arith.constant 0 : index
    %c71 = arith.constant 71 : index
    %152 = memref.load %arg1[%c0_75, %c71] : memref<3x98xf32, #tpu.memory_space<smem>>
    %153 = vector.extract_strided_slice %116 {offsets = [3, 0], sizes = [16, 16], strides = [1, 1]} : vector<22x16xf32> to vector<16x16xf32>
    %154 = vector.broadcast %152 : f32 to vector<16x16xf32>
    %155 = arith.mulf %154, %153 : vector<16x16xf32>
    %156 = arith.addf %151, %155 : vector<16x16xf32>
    %c0_76 = arith.constant 0 : index
    %c29 = arith.constant 29 : index
    %157 = memref.load %arg1[%c0_76, %c29] : memref<3x98xf32, #tpu.memory_space<smem>>
    %158 = vector.extract_strided_slice %114 {offsets = [4, 0], sizes = [16, 16], strides = [1, 1]} : vector<22x16xf32> to vector<16x16xf32>
    %159 = vector.broadcast %157 : f32 to vector<16x16xf32>
    %160 = arith.mulf %159, %158 : vector<16x16xf32>
    %161 = arith.addf %156, %160 : vector<16x16xf32>
    %c0_77 = arith.constant 0 : index
    %c78 = arith.constant 78 : index
    %162 = memref.load %arg1[%c0_77, %c78] : memref<3x98xf32, #tpu.memory_space<smem>>
    %163 = vector.extract_strided_slice %116 {offsets = [4, 0], sizes = [16, 16], strides = [1, 1]} : vector<22x16xf32> to vector<16x16xf32>
    %164 = vector.broadcast %162 : f32 to vector<16x16xf32>
    %165 = arith.mulf %164, %163 : vector<16x16xf32>
    %166 = arith.addf %161, %165 : vector<16x16xf32>
    %c0_78 = arith.constant 0 : index
    %c36 = arith.constant 36 : index
    %167 = memref.load %arg1[%c0_78, %c36] : memref<3x98xf32, #tpu.memory_space<smem>>
    %168 = vector.extract_strided_slice %114 {offsets = [5, 0], sizes = [16, 16], strides = [1, 1]} : vector<22x16xf32> to vector<16x16xf32>
    %169 = vector.broadcast %167 : f32 to vector<16x16xf32>
    %170 = arith.mulf %169, %168 : vector<16x16xf32>
    %171 = arith.addf %166, %170 : vector<16x16xf32>
    %c0_79 = arith.constant 0 : index
    %c85 = arith.constant 85 : index
    %172 = memref.load %arg1[%c0_79, %c85] : memref<3x98xf32, #tpu.memory_space<smem>>
    %173 = vector.extract_strided_slice %116 {offsets = [5, 0], sizes = [16, 16], strides = [1, 1]} : vector<22x16xf32> to vector<16x16xf32>
    %174 = vector.broadcast %172 : f32 to vector<16x16xf32>
    %175 = arith.mulf %174, %173 : vector<16x16xf32>
    %176 = arith.addf %171, %175 : vector<16x16xf32>
    %c0_80 = arith.constant 0 : index
    %c43 = arith.constant 43 : index
    %177 = memref.load %arg1[%c0_80, %c43] : memref<3x98xf32, #tpu.memory_space<smem>>
    %178 = vector.extract_strided_slice %114 {offsets = [6, 0], sizes = [16, 16], strides = [1, 1]} : vector<22x16xf32> to vector<16x16xf32>
    %179 = vector.broadcast %177 : f32 to vector<16x16xf32>
    %180 = arith.mulf %179, %178 : vector<16x16xf32>
    %181 = arith.addf %176, %180 : vector<16x16xf32>
    %c0_81 = arith.constant 0 : index
    %c92 = arith.constant 92 : index
    %182 = memref.load %arg1[%c0_81, %c92] : memref<3x98xf32, #tpu.memory_space<smem>>
    %183 = vector.extract_strided_slice %116 {offsets = [6, 0], sizes = [16, 16], strides = [1, 1]} : vector<22x16xf32> to vector<16x16xf32>
    %184 = vector.broadcast %182 : f32 to vector<16x16xf32>
    %185 = arith.mulf %184, %183 : vector<16x16xf32>
    %186 = arith.addf %181, %185 : vector<16x16xf32>
    %c0_82 = arith.constant 0 : index
    %c0_83 = arith.constant 0 : index
    %c2 = arith.constant 2 : index
    %187 = vector.load %arg5[%c0_82, %c0_83, %c2] : memref<2x22x22xf32, #tpu.memory_space<vmem>>, vector<1x22x16xf32>
    %188 = vector.shape_cast %187 : vector<1x22x16xf32> to vector<22x16xf32>
    %c1_84 = arith.constant 1 : index
    %c0_85 = arith.constant 0 : index
    %c2_86 = arith.constant 2 : index
    %189 = vector.load %arg5[%c1_84, %c0_85, %c2_86] : memref<2x22x22xf32, #tpu.memory_space<vmem>>, vector<1x22x16xf32>
    %190 = vector.shape_cast %189 : vector<1x22x16xf32> to vector<22x16xf32>
    %c0_87 = arith.constant 0 : index
    %c2_88 = arith.constant 2 : index
    %191 = memref.load %arg1[%c0_87, %c2_88] : memref<3x98xf32, #tpu.memory_space<smem>>
    %192 = vector.extract_strided_slice %188 {offsets = [0, 0], sizes = [16, 16], strides = [1, 1]} : vector<22x16xf32> to vector<16x16xf32>
    %193 = vector.broadcast %191 : f32 to vector<16x16xf32>
    %194 = arith.mulf %193, %192 : vector<16x16xf32>
    %195 = arith.addf %186, %194 : vector<16x16xf32>
    %c0_89 = arith.constant 0 : index
    %c51 = arith.constant 51 : index
    %196 = memref.load %arg1[%c0_89, %c51] : memref<3x98xf32, #tpu.memory_space<smem>>
    %197 = vector.extract_strided_slice %190 {offsets = [0, 0], sizes = [16, 16], strides = [1, 1]} : vector<22x16xf32> to vector<16x16xf32>
    %198 = vector.broadcast %196 : f32 to vector<16x16xf32>
    %199 = arith.mulf %198, %197 : vector<16x16xf32>
    %200 = arith.addf %195, %199 : vector<16x16xf32>
    %c0_90 = arith.constant 0 : index
    %c9 = arith.constant 9 : index
    %201 = memref.load %arg1[%c0_90, %c9] : memref<3x98xf32, #tpu.memory_space<smem>>
    %202 = vector.extract_strided_slice %188 {offsets = [1, 0], sizes = [16, 16], strides = [1, 1]} : vector<22x16xf32> to vector<16x16xf32>
    %203 = vector.broadcast %201 : f32 to vector<16x16xf32>
    %204 = arith.mulf %203, %202 : vector<16x16xf32>
    %205 = arith.addf %200, %204 : vector<16x16xf32>
    %c0_91 = arith.constant 0 : index
    %c58 = arith.constant 58 : index
    %206 = memref.load %arg1[%c0_91, %c58] : memref<3x98xf32, #tpu.memory_space<smem>>
    %207 = vector.extract_strided_slice %190 {offsets = [1, 0], sizes = [16, 16], strides = [1, 1]} : vector<22x16xf32> to vector<16x16xf32>
    %208 = vector.broadcast %206 : f32 to vector<16x16xf32>
    %209 = arith.mulf %208, %207 : vector<16x16xf32>
    %210 = arith.addf %205, %209 : vector<16x16xf32>
    %c0_92 = arith.constant 0 : index
    %c16 = arith.constant 16 : index
    %211 = memref.load %arg1[%c0_92, %c16] : memref<3x98xf32, #tpu.memory_space<smem>>
    %212 = vector.extract_strided_slice %188 {offsets = [2, 0], sizes = [16, 16], strides = [1, 1]} : vector<22x16xf32> to vector<16x16xf32>
    %213 = vector.broadcast %211 : f32 to vector<16x16xf32>
    %214 = arith.mulf %213, %212 : vector<16x16xf32>
    %215 = arith.addf %210, %214 : vector<16x16xf32>
    %c0_93 = arith.constant 0 : index
    %c65 = arith.constant 65 : index
    %216 = memref.load %arg1[%c0_93, %c65] : memref<3x98xf32, #tpu.memory_space<smem>>
    %217 = vector.extract_strided_slice %190 {offsets = [2, 0], sizes = [16, 16], strides = [1, 1]} : vector<22x16xf32> to vector<16x16xf32>
    %218 = vector.broadcast %216 : f32 to vector<16x16xf32>
    %219 = arith.mulf %218, %217 : vector<16x16xf32>
    %220 = arith.addf %215, %219 : vector<16x16xf32>
    %c0_94 = arith.constant 0 : index
    %c23 = arith.constant 23 : index
    %221 = memref.load %arg1[%c0_94, %c23] : memref<3x98xf32, #tpu.memory_space<smem>>
    %222 = vector.extract_strided_slice %188 {offsets = [3, 0], sizes = [16, 16], strides = [1, 1]} : vector<22x16xf32> to vector<16x16xf32>
    %223 = vector.broadcast %221 : f32 to vector<16x16xf32>
    %224 = arith.mulf %223, %222 : vector<16x16xf32>
    %225 = arith.addf %220, %224 : vector<16x16xf32>
    %c0_95 = arith.constant 0 : index
    %c72 = arith.constant 72 : index
    %226 = memref.load %arg1[%c0_95, %c72] : memref<3x98xf32, #tpu.memory_space<smem>>
    %227 = vector.extract_strided_slice %190 {offsets = [3, 0], sizes = [16, 16], strides = [1, 1]} : vector<22x16xf32> to vector<16x16xf32>
    %228 = vector.broadcast %226 : f32 to vector<16x16xf32>
    %229 = arith.mulf %228, %227 : vector<16x16xf32>
    %230 = arith.addf %225, %229 : vector<16x16xf32>
    %c0_96 = arith.constant 0 : index
    %c30 = arith.constant 30 : index
    %231 = memref.load %arg1[%c0_96, %c30] : memref<3x98xf32, #tpu.memory_space<smem>>
    %232 = vector.extract_strided_slice %188 {offsets = [4, 0], sizes = [16, 16], strides = [1, 1]} : vector<22x16xf32> to vector<16x16xf32>
    %233 = vector.broadcast %231 : f32 to vector<16x16xf32>
    %234 = arith.mulf %233, %232 : vector<16x16xf32>
    %235 = arith.addf %230, %234 : vector<16x16xf32>
    %c0_97 = arith.constant 0 : index
    %c79 = arith.constant 79 : index
    %236 = memref.load %arg1[%c0_97, %c79] : memref<3x98xf32, #tpu.memory_space<smem>>
    %237 = vector.extract_strided_slice %190 {offsets = [4, 0], sizes = [16, 16], strides = [1, 1]} : vector<22x16xf32> to vector<16x16xf32>
    %238 = vector.broadcast %236 : f32 to vector<16x16xf32>
    %239 = arith.mulf %238, %237 : vector<16x16xf32>
    %240 = arith.addf %235, %239 : vector<16x16xf32>
    %c0_98 = arith.constant 0 : index
    %c37 = arith.constant 37 : index
    %241 = memref.load %arg1[%c0_98, %c37] : memref<3x98xf32, #tpu.memory_space<smem>>
    %242 = vector.extract_strided_slice %188 {offsets = [5, 0], sizes = [16, 16], strides = [1, 1]} : vector<22x16xf32> to vector<16x16xf32>
    %243 = vector.broadcast %241 : f32 to vector<16x16xf32>
    %244 = arith.mulf %243, %242 : vector<16x16xf32>
    %245 = arith.addf %240, %244 : vector<16x16xf32>
    %c0_99 = arith.constant 0 : index
    %c86 = arith.constant 86 : index
    %246 = memref.load %arg1[%c0_99, %c86] : memref<3x98xf32, #tpu.memory_space<smem>>
    %247 = vector.extract_strided_slice %190 {offsets = [5, 0], sizes = [16, 16], strides = [1, 1]} : vector<22x16xf32> to vector<16x16xf32>
    %248 = vector.broadcast %246 : f32 to vector<16x16xf32>
    %249 = arith.mulf %248, %247 : vector<16x16xf32>
    %250 = arith.addf %245, %249 : vector<16x16xf32>
    %c0_100 = arith.constant 0 : index
    %c44 = arith.constant 44 : index
    %251 = memref.load %arg1[%c0_100, %c44] : memref<3x98xf32, #tpu.memory_space<smem>>
    %252 = vector.extract_strided_slice %188 {offsets = [6, 0], sizes = [16, 16], strides = [1, 1]} : vector<22x16xf32> to vector<16x16xf32>
    %253 = vector.broadcast %251 : f32 to vector<16x16xf32>
    %254 = arith.mulf %253, %252 : vector<16x16xf32>
    %255 = arith.addf %250, %254 : vector<16x16xf32>
    %c0_101 = arith.constant 0 : index
    %c93 = arith.constant 93 : index
    %256 = memref.load %arg1[%c0_101, %c93] : memref<3x98xf32, #tpu.memory_space<smem>>
    %257 = vector.extract_strided_slice %190 {offsets = [6, 0], sizes = [16, 16], strides = [1, 1]} : vector<22x16xf32> to vector<16x16xf32>
    %258 = vector.broadcast %256 : f32 to vector<16x16xf32>
    %259 = arith.mulf %258, %257 : vector<16x16xf32>
    %260 = arith.addf %255, %259 : vector<16x16xf32>
    %c0_102 = arith.constant 0 : index
    %c0_103 = arith.constant 0 : index
    %c3_104 = arith.constant 3 : index
    %261 = vector.load %arg5[%c0_102, %c0_103, %c3_104] : memref<2x22x22xf32, #tpu.memory_space<vmem>>, vector<1x22x16xf32>
    %262 = vector.shape_cast %261 : vector<1x22x16xf32> to vector<22x16xf32>
    %c1_105 = arith.constant 1 : index
    %c0_106 = arith.constant 0 : index
    %c3_107 = arith.constant 3 : index
    %263 = vector.load %arg5[%c1_105, %c0_106, %c3_107] : memref<2x22x22xf32, #tpu.memory_space<vmem>>, vector<1x22x16xf32>
    %264 = vector.shape_cast %263 : vector<1x22x16xf32> to vector<22x16xf32>
    %c0_108 = arith.constant 0 : index
    %c3_109 = arith.constant 3 : index
    %265 = memref.load %arg1[%c0_108, %c3_109] : memref<3x98xf32, #tpu.memory_space<smem>>
    %266 = vector.extract_strided_slice %262 {offsets = [0, 0], sizes = [16, 16], strides = [1, 1]} : vector<22x16xf32> to vector<16x16xf32>
    %267 = vector.broadcast %265 : f32 to vector<16x16xf32>
    %268 = arith.mulf %267, %266 : vector<16x16xf32>
    %269 = arith.addf %260, %268 : vector<16x16xf32>
    %c0_110 = arith.constant 0 : index
    %c52 = arith.constant 52 : index
    %270 = memref.load %arg1[%c0_110, %c52] : memref<3x98xf32, #tpu.memory_space<smem>>
    %271 = vector.extract_strided_slice %264 {offsets = [0, 0], sizes = [16, 16], strides = [1, 1]} : vector<22x16xf32> to vector<16x16xf32>
    %272 = vector.broadcast %270 : f32 to vector<16x16xf32>
    %273 = arith.mulf %272, %271 : vector<16x16xf32>
    %274 = arith.addf %269, %273 : vector<16x16xf32>
    %c0_111 = arith.constant 0 : index
    %c10 = arith.constant 10 : index
    %275 = memref.load %arg1[%c0_111, %c10] : memref<3x98xf32, #tpu.memory_space<smem>>
    %276 = vector.extract_strided_slice %262 {offsets = [1, 0], sizes = [16, 16], strides = [1, 1]} : vector<22x16xf32> to vector<16x16xf32>
    %277 = vector.broadcast %275 : f32 to vector<16x16xf32>
    %278 = arith.mulf %277, %276 : vector<16x16xf32>
    %279 = arith.addf %274, %278 : vector<16x16xf32>
    %c0_112 = arith.constant 0 : index
    %c59 = arith.constant 59 : index
    %280 = memref.load %arg1[%c0_112, %c59] : memref<3x98xf32, #tpu.memory_space<smem>>
    %281 = vector.extract_strided_slice %264 {offsets = [1, 0], sizes = [16, 16], strides = [1, 1]} : vector<22x16xf32> to vector<16x16xf32>
    %282 = vector.broadcast %280 : f32 to vector<16x16xf32>
    %283 = arith.mulf %282, %281 : vector<16x16xf32>
    %284 = arith.addf %279, %283 : vector<16x16xf32>
    %c0_113 = arith.constant 0 : index
    %c17 = arith.constant 17 : index
    %285 = memref.load %arg1[%c0_113, %c17] : memref<3x98xf32, #tpu.memory_space<smem>>
    %286 = vector.extract_strided_slice %262 {offsets = [2, 0], sizes = [16, 16], strides = [1, 1]} : vector<22x16xf32> to vector<16x16xf32>
    %287 = vector.broadcast %285 : f32 to vector<16x16xf32>
    %288 = arith.mulf %287, %286 : vector<16x16xf32>
    %289 = arith.addf %284, %288 : vector<16x16xf32>
    %c0_114 = arith.constant 0 : index
    %c66 = arith.constant 66 : index
    %290 = memref.load %arg1[%c0_114, %c66] : memref<3x98xf32, #tpu.memory_space<smem>>
    %291 = vector.extract_strided_slice %264 {offsets = [2, 0], sizes = [16, 16], strides = [1, 1]} : vector<22x16xf32> to vector<16x16xf32>
    %292 = vector.broadcast %290 : f32 to vector<16x16xf32>
    %293 = arith.mulf %292, %291 : vector<16x16xf32>
    %294 = arith.addf %289, %293 : vector<16x16xf32>
    %c0_115 = arith.constant 0 : index
    %c24 = arith.constant 24 : index
    %295 = memref.load %arg1[%c0_115, %c24] : memref<3x98xf32, #tpu.memory_space<smem>>
    %296 = vector.extract_strided_slice %262 {offsets = [3, 0], sizes = [16, 16], strides = [1, 1]} : vector<22x16xf32> to vector<16x16xf32>
    %297 = vector.broadcast %295 : f32 to vector<16x16xf32>
    %298 = arith.mulf %297, %296 : vector<16x16xf32>
    %299 = arith.addf %294, %298 : vector<16x16xf32>
    %c0_116 = arith.constant 0 : index
    %c73 = arith.constant 73 : index
    %300 = memref.load %arg1[%c0_116, %c73] : memref<3x98xf32, #tpu.memory_space<smem>>
    %301 = vector.extract_strided_slice %264 {offsets = [3, 0], sizes = [16, 16], strides = [1, 1]} : vector<22x16xf32> to vector<16x16xf32>
    %302 = vector.broadcast %300 : f32 to vector<16x16xf32>
    %303 = arith.mulf %302, %301 : vector<16x16xf32>
    %304 = arith.addf %299, %303 : vector<16x16xf32>
    %c0_117 = arith.constant 0 : index
    %c31 = arith.constant 31 : index
    %305 = memref.load %arg1[%c0_117, %c31] : memref<3x98xf32, #tpu.memory_space<smem>>
    %306 = vector.extract_strided_slice %262 {offsets = [4, 0], sizes = [16, 16], strides = [1, 1]} : vector<22x16xf32> to vector<16x16xf32>
    %307 = vector.broadcast %305 : f32 to vector<16x16xf32>
    %308 = arith.mulf %307, %306 : vector<16x16xf32>
    %309 = arith.addf %304, %308 : vector<16x16xf32>
    %c0_118 = arith.constant 0 : index
    %c80 = arith.constant 80 : index
    %310 = memref.load %arg1[%c0_118, %c80] : memref<3x98xf32, #tpu.memory_space<smem>>
    %311 = vector.extract_strided_slice %264 {offsets = [4, 0], sizes = [16, 16], strides = [1, 1]} : vector<22x16xf32> to vector<16x16xf32>
    %312 = vector.broadcast %310 : f32 to vector<16x16xf32>
    %313 = arith.mulf %312, %311 : vector<16x16xf32>
    %314 = arith.addf %309, %313 : vector<16x16xf32>
    %c0_119 = arith.constant 0 : index
    %c38 = arith.constant 38 : index
    %315 = memref.load %arg1[%c0_119, %c38] : memref<3x98xf32, #tpu.memory_space<smem>>
    %316 = vector.extract_strided_slice %262 {offsets = [5, 0], sizes = [16, 16], strides = [1, 1]} : vector<22x16xf32> to vector<16x16xf32>
    %317 = vector.broadcast %315 : f32 to vector<16x16xf32>
    %318 = arith.mulf %317, %316 : vector<16x16xf32>
    %319 = arith.addf %314, %318 : vector<16x16xf32>
    %c0_120 = arith.constant 0 : index
    %c87 = arith.constant 87 : index
    %320 = memref.load %arg1[%c0_120, %c87] : memref<3x98xf32, #tpu.memory_space<smem>>
    %321 = vector.extract_strided_slice %264 {offsets = [5, 0], sizes = [16, 16], strides = [1, 1]} : vector<22x16xf32> to vector<16x16xf32>
    %322 = vector.broadcast %320 : f32 to vector<16x16xf32>
    %323 = arith.mulf %322, %321 : vector<16x16xf32>
    %324 = arith.addf %319, %323 : vector<16x16xf32>
    %c0_121 = arith.constant 0 : index
    %c45 = arith.constant 45 : index
    %325 = memref.load %arg1[%c0_121, %c45] : memref<3x98xf32, #tpu.memory_space<smem>>
    %326 = vector.extract_strided_slice %262 {offsets = [6, 0], sizes = [16, 16], strides = [1, 1]} : vector<22x16xf32> to vector<16x16xf32>
    %327 = vector.broadcast %325 : f32 to vector<16x16xf32>
    %328 = arith.mulf %327, %326 : vector<16x16xf32>
    %329 = arith.addf %324, %328 : vector<16x16xf32>
    %c0_122 = arith.constant 0 : index
    %c94 = arith.constant 94 : index
    %330 = memref.load %arg1[%c0_122, %c94] : memref<3x98xf32, #tpu.memory_space<smem>>
    %331 = vector.extract_strided_slice %264 {offsets = [6, 0], sizes = [16, 16], strides = [1, 1]} : vector<22x16xf32> to vector<16x16xf32>
    %332 = vector.broadcast %330 : f32 to vector<16x16xf32>
    %333 = arith.mulf %332, %331 : vector<16x16xf32>
    %334 = arith.addf %329, %333 : vector<16x16xf32>
    %c0_123 = arith.constant 0 : index
    %c0_124 = arith.constant 0 : index
    %c4 = arith.constant 4 : index
    %335 = vector.load %arg5[%c0_123, %c0_124, %c4] : memref<2x22x22xf32, #tpu.memory_space<vmem>>, vector<1x22x16xf32>
    %336 = vector.shape_cast %335 : vector<1x22x16xf32> to vector<22x16xf32>
    %c1_125 = arith.constant 1 : index
    %c0_126 = arith.constant 0 : index
    %c4_127 = arith.constant 4 : index
    %337 = vector.load %arg5[%c1_125, %c0_126, %c4_127] : memref<2x22x22xf32, #tpu.memory_space<vmem>>, vector<1x22x16xf32>
    %338 = vector.shape_cast %337 : vector<1x22x16xf32> to vector<22x16xf32>
    %c0_128 = arith.constant 0 : index
    %c4_129 = arith.constant 4 : index
    %339 = memref.load %arg1[%c0_128, %c4_129] : memref<3x98xf32, #tpu.memory_space<smem>>
    %340 = vector.extract_strided_slice %336 {offsets = [0, 0], sizes = [16, 16], strides = [1, 1]} : vector<22x16xf32> to vector<16x16xf32>
    %341 = vector.broadcast %339 : f32 to vector<16x16xf32>
    %342 = arith.mulf %341, %340 : vector<16x16xf32>
    %343 = arith.addf %334, %342 : vector<16x16xf32>
    %c0_130 = arith.constant 0 : index
    %c53 = arith.constant 53 : index
    %344 = memref.load %arg1[%c0_130, %c53] : memref<3x98xf32, #tpu.memory_space<smem>>
    %345 = vector.extract_strided_slice %338 {offsets = [0, 0], sizes = [16, 16], strides = [1, 1]} : vector<22x16xf32> to vector<16x16xf32>
    %346 = vector.broadcast %344 : f32 to vector<16x16xf32>
    %347 = arith.mulf %346, %345 : vector<16x16xf32>
    %348 = arith.addf %343, %347 : vector<16x16xf32>
    %c0_131 = arith.constant 0 : index
    %c11 = arith.constant 11 : index
    %349 = memref.load %arg1[%c0_131, %c11] : memref<3x98xf32, #tpu.memory_space<smem>>
    %350 = vector.extract_strided_slice %336 {offsets = [1, 0], sizes = [16, 16], strides = [1, 1]} : vector<22x16xf32> to vector<16x16xf32>
    %351 = vector.broadcast %349 : f32 to vector<16x16xf32>
    %352 = arith.mulf %351, %350 : vector<16x16xf32>
    %353 = arith.addf %348, %352 : vector<16x16xf32>
    %c0_132 = arith.constant 0 : index
    %c60 = arith.constant 60 : index
    %354 = memref.load %arg1[%c0_132, %c60] : memref<3x98xf32, #tpu.memory_space<smem>>
    %355 = vector.extract_strided_slice %338 {offsets = [1, 0], sizes = [16, 16], strides = [1, 1]} : vector<22x16xf32> to vector<16x16xf32>
    %356 = vector.broadcast %354 : f32 to vector<16x16xf32>
    %357 = arith.mulf %356, %355 : vector<16x16xf32>
    %358 = arith.addf %353, %357 : vector<16x16xf32>
    %c0_133 = arith.constant 0 : index
    %c18 = arith.constant 18 : index
    %359 = memref.load %arg1[%c0_133, %c18] : memref<3x98xf32, #tpu.memory_space<smem>>
    %360 = vector.extract_strided_slice %336 {offsets = [2, 0], sizes = [16, 16], strides = [1, 1]} : vector<22x16xf32> to vector<16x16xf32>
    %361 = vector.broadcast %359 : f32 to vector<16x16xf32>
    %362 = arith.mulf %361, %360 : vector<16x16xf32>
    %363 = arith.addf %358, %362 : vector<16x16xf32>
    %c0_134 = arith.constant 0 : index
    %c67 = arith.constant 67 : index
    %364 = memref.load %arg1[%c0_134, %c67] : memref<3x98xf32, #tpu.memory_space<smem>>
    %365 = vector.extract_strided_slice %338 {offsets = [2, 0], sizes = [16, 16], strides = [1, 1]} : vector<22x16xf32> to vector<16x16xf32>
    %366 = vector.broadcast %364 : f32 to vector<16x16xf32>
    %367 = arith.mulf %366, %365 : vector<16x16xf32>
    %368 = arith.addf %363, %367 : vector<16x16xf32>
    %c0_135 = arith.constant 0 : index
    %c25 = arith.constant 25 : index
    %369 = memref.load %arg1[%c0_135, %c25] : memref<3x98xf32, #tpu.memory_space<smem>>
    %370 = vector.extract_strided_slice %336 {offsets = [3, 0], sizes = [16, 16], strides = [1, 1]} : vector<22x16xf32> to vector<16x16xf32>
    %371 = vector.broadcast %369 : f32 to vector<16x16xf32>
    %372 = arith.mulf %371, %370 : vector<16x16xf32>
    %373 = arith.addf %368, %372 : vector<16x16xf32>
    %c0_136 = arith.constant 0 : index
    %c74 = arith.constant 74 : index
    %374 = memref.load %arg1[%c0_136, %c74] : memref<3x98xf32, #tpu.memory_space<smem>>
    %375 = vector.extract_strided_slice %338 {offsets = [3, 0], sizes = [16, 16], strides = [1, 1]} : vector<22x16xf32> to vector<16x16xf32>
    %376 = vector.broadcast %374 : f32 to vector<16x16xf32>
    %377 = arith.mulf %376, %375 : vector<16x16xf32>
    %378 = arith.addf %373, %377 : vector<16x16xf32>
    %c0_137 = arith.constant 0 : index
    %c32 = arith.constant 32 : index
    %379 = memref.load %arg1[%c0_137, %c32] : memref<3x98xf32, #tpu.memory_space<smem>>
    %380 = vector.extract_strided_slice %336 {offsets = [4, 0], sizes = [16, 16], strides = [1, 1]} : vector<22x16xf32> to vector<16x16xf32>
    %381 = vector.broadcast %379 : f32 to vector<16x16xf32>
    %382 = arith.mulf %381, %380 : vector<16x16xf32>
    %383 = arith.addf %378, %382 : vector<16x16xf32>
    %c0_138 = arith.constant 0 : index
    %c81 = arith.constant 81 : index
    %384 = memref.load %arg1[%c0_138, %c81] : memref<3x98xf32, #tpu.memory_space<smem>>
    %385 = vector.extract_strided_slice %338 {offsets = [4, 0], sizes = [16, 16], strides = [1, 1]} : vector<22x16xf32> to vector<16x16xf32>
    %386 = vector.broadcast %384 : f32 to vector<16x16xf32>
    %387 = arith.mulf %386, %385 : vector<16x16xf32>
    %388 = arith.addf %383, %387 : vector<16x16xf32>
    %c0_139 = arith.constant 0 : index
    %c39 = arith.constant 39 : index
    %389 = memref.load %arg1[%c0_139, %c39] : memref<3x98xf32, #tpu.memory_space<smem>>
    %390 = vector.extract_strided_slice %336 {offsets = [5, 0], sizes = [16, 16], strides = [1, 1]} : vector<22x16xf32> to vector<16x16xf32>
    %391 = vector.broadcast %389 : f32 to vector<16x16xf32>
    %392 = arith.mulf %391, %390 : vector<16x16xf32>
    %393 = arith.addf %388, %392 : vector<16x16xf32>
    %c0_140 = arith.constant 0 : index
    %c88 = arith.constant 88 : index
    %394 = memref.load %arg1[%c0_140, %c88] : memref<3x98xf32, #tpu.memory_space<smem>>
    %395 = vector.extract_strided_slice %338 {offsets = [5, 0], sizes = [16, 16], strides = [1, 1]} : vector<22x16xf32> to vector<16x16xf32>
    %396 = vector.broadcast %394 : f32 to vector<16x16xf32>
    %397 = arith.mulf %396, %395 : vector<16x16xf32>
    %398 = arith.addf %393, %397 : vector<16x16xf32>
    %c0_141 = arith.constant 0 : index
    %c46 = arith.constant 46 : index
    %399 = memref.load %arg1[%c0_141, %c46] : memref<3x98xf32, #tpu.memory_space<smem>>
    %400 = vector.extract_strided_slice %336 {offsets = [6, 0], sizes = [16, 16], strides = [1, 1]} : vector<22x16xf32> to vector<16x16xf32>
    %401 = vector.broadcast %399 : f32 to vector<16x16xf32>
    %402 = arith.mulf %401, %400 : vector<16x16xf32>
    %403 = arith.addf %398, %402 : vector<16x16xf32>
    %c0_142 = arith.constant 0 : index
    %c95 = arith.constant 95 : index
    %404 = memref.load %arg1[%c0_142, %c95] : memref<3x98xf32, #tpu.memory_space<smem>>
    %405 = vector.extract_strided_slice %338 {offsets = [6, 0], sizes = [16, 16], strides = [1, 1]} : vector<22x16xf32> to vector<16x16xf32>
    %406 = vector.broadcast %404 : f32 to vector<16x16xf32>
    %407 = arith.mulf %406, %405 : vector<16x16xf32>
    %408 = arith.addf %403, %407 : vector<16x16xf32>
    %c0_143 = arith.constant 0 : index
    %c0_144 = arith.constant 0 : index
    %c5 = arith.constant 5 : index
    %409 = vector.load %arg5[%c0_143, %c0_144, %c5] : memref<2x22x22xf32, #tpu.memory_space<vmem>>, vector<1x22x16xf32>
    %410 = vector.shape_cast %409 : vector<1x22x16xf32> to vector<22x16xf32>
    %c1_145 = arith.constant 1 : index
    %c0_146 = arith.constant 0 : index
    %c5_147 = arith.constant 5 : index
    %411 = vector.load %arg5[%c1_145, %c0_146, %c5_147] : memref<2x22x22xf32, #tpu.memory_space<vmem>>, vector<1x22x16xf32>
    %412 = vector.shape_cast %411 : vector<1x22x16xf32> to vector<22x16xf32>
    %c0_148 = arith.constant 0 : index
    %c5_149 = arith.constant 5 : index
    %413 = memref.load %arg1[%c0_148, %c5_149] : memref<3x98xf32, #tpu.memory_space<smem>>
    %414 = vector.extract_strided_slice %410 {offsets = [0, 0], sizes = [16, 16], strides = [1, 1]} : vector<22x16xf32> to vector<16x16xf32>
    %415 = vector.broadcast %413 : f32 to vector<16x16xf32>
    %416 = arith.mulf %415, %414 : vector<16x16xf32>
    %417 = arith.addf %408, %416 : vector<16x16xf32>
    %c0_150 = arith.constant 0 : index
    %c54 = arith.constant 54 : index
    %418 = memref.load %arg1[%c0_150, %c54] : memref<3x98xf32, #tpu.memory_space<smem>>
    %419 = vector.extract_strided_slice %412 {offsets = [0, 0], sizes = [16, 16], strides = [1, 1]} : vector<22x16xf32> to vector<16x16xf32>
    %420 = vector.broadcast %418 : f32 to vector<16x16xf32>
    %421 = arith.mulf %420, %419 : vector<16x16xf32>
    %422 = arith.addf %417, %421 : vector<16x16xf32>
    %c0_151 = arith.constant 0 : index
    %c12 = arith.constant 12 : index
    %423 = memref.load %arg1[%c0_151, %c12] : memref<3x98xf32, #tpu.memory_space<smem>>
    %424 = vector.extract_strided_slice %410 {offsets = [1, 0], sizes = [16, 16], strides = [1, 1]} : vector<22x16xf32> to vector<16x16xf32>
    %425 = vector.broadcast %423 : f32 to vector<16x16xf32>
    %426 = arith.mulf %425, %424 : vector<16x16xf32>
    %427 = arith.addf %422, %426 : vector<16x16xf32>
    %c0_152 = arith.constant 0 : index
    %c61 = arith.constant 61 : index
    %428 = memref.load %arg1[%c0_152, %c61] : memref<3x98xf32, #tpu.memory_space<smem>>
    %429 = vector.extract_strided_slice %412 {offsets = [1, 0], sizes = [16, 16], strides = [1, 1]} : vector<22x16xf32> to vector<16x16xf32>
    %430 = vector.broadcast %428 : f32 to vector<16x16xf32>
    %431 = arith.mulf %430, %429 : vector<16x16xf32>
    %432 = arith.addf %427, %431 : vector<16x16xf32>
    %c0_153 = arith.constant 0 : index
    %c19 = arith.constant 19 : index
    %433 = memref.load %arg1[%c0_153, %c19] : memref<3x98xf32, #tpu.memory_space<smem>>
    %434 = vector.extract_strided_slice %410 {offsets = [2, 0], sizes = [16, 16], strides = [1, 1]} : vector<22x16xf32> to vector<16x16xf32>
    %435 = vector.broadcast %433 : f32 to vector<16x16xf32>
    %436 = arith.mulf %435, %434 : vector<16x16xf32>
    %437 = arith.addf %432, %436 : vector<16x16xf32>
    %c0_154 = arith.constant 0 : index
    %c68 = arith.constant 68 : index
    %438 = memref.load %arg1[%c0_154, %c68] : memref<3x98xf32, #tpu.memory_space<smem>>
    %439 = vector.extract_strided_slice %412 {offsets = [2, 0], sizes = [16, 16], strides = [1, 1]} : vector<22x16xf32> to vector<16x16xf32>
    %440 = vector.broadcast %438 : f32 to vector<16x16xf32>
    %441 = arith.mulf %440, %439 : vector<16x16xf32>
    %442 = arith.addf %437, %441 : vector<16x16xf32>
    %c0_155 = arith.constant 0 : index
    %c26 = arith.constant 26 : index
    %443 = memref.load %arg1[%c0_155, %c26] : memref<3x98xf32, #tpu.memory_space<smem>>
    %444 = vector.extract_strided_slice %410 {offsets = [3, 0], sizes = [16, 16], strides = [1, 1]} : vector<22x16xf32> to vector<16x16xf32>
    %445 = vector.broadcast %443 : f32 to vector<16x16xf32>
    %446 = arith.mulf %445, %444 : vector<16x16xf32>
    %447 = arith.addf %442, %446 : vector<16x16xf32>
    %c0_156 = arith.constant 0 : index
    %c75 = arith.constant 75 : index
    %448 = memref.load %arg1[%c0_156, %c75] : memref<3x98xf32, #tpu.memory_space<smem>>
    %449 = vector.extract_strided_slice %412 {offsets = [3, 0], sizes = [16, 16], strides = [1, 1]} : vector<22x16xf32> to vector<16x16xf32>
    %450 = vector.broadcast %448 : f32 to vector<16x16xf32>
    %451 = arith.mulf %450, %449 : vector<16x16xf32>
    %452 = arith.addf %447, %451 : vector<16x16xf32>
    %c0_157 = arith.constant 0 : index
    %c33 = arith.constant 33 : index
    %453 = memref.load %arg1[%c0_157, %c33] : memref<3x98xf32, #tpu.memory_space<smem>>
    %454 = vector.extract_strided_slice %410 {offsets = [4, 0], sizes = [16, 16], strides = [1, 1]} : vector<22x16xf32> to vector<16x16xf32>
    %455 = vector.broadcast %453 : f32 to vector<16x16xf32>
    %456 = arith.mulf %455, %454 : vector<16x16xf32>
    %457 = arith.addf %452, %456 : vector<16x16xf32>
    %c0_158 = arith.constant 0 : index
    %c82 = arith.constant 82 : index
    %458 = memref.load %arg1[%c0_158, %c82] : memref<3x98xf32, #tpu.memory_space<smem>>
    %459 = vector.extract_strided_slice %412 {offsets = [4, 0], sizes = [16, 16], strides = [1, 1]} : vector<22x16xf32> to vector<16x16xf32>
    %460 = vector.broadcast %458 : f32 to vector<16x16xf32>
    %461 = arith.mulf %460, %459 : vector<16x16xf32>
    %462 = arith.addf %457, %461 : vector<16x16xf32>
    %c0_159 = arith.constant 0 : index
    %c40 = arith.constant 40 : index
    %463 = memref.load %arg1[%c0_159, %c40] : memref<3x98xf32, #tpu.memory_space<smem>>
    %464 = vector.extract_strided_slice %410 {offsets = [5, 0], sizes = [16, 16], strides = [1, 1]} : vector<22x16xf32> to vector<16x16xf32>
    %465 = vector.broadcast %463 : f32 to vector<16x16xf32>
    %466 = arith.mulf %465, %464 : vector<16x16xf32>
    %467 = arith.addf %462, %466 : vector<16x16xf32>
    %c0_160 = arith.constant 0 : index
    %c89 = arith.constant 89 : index
    %468 = memref.load %arg1[%c0_160, %c89] : memref<3x98xf32, #tpu.memory_space<smem>>
    %469 = vector.extract_strided_slice %412 {offsets = [5, 0], sizes = [16, 16], strides = [1, 1]} : vector<22x16xf32> to vector<16x16xf32>
    %470 = vector.broadcast %468 : f32 to vector<16x16xf32>
    %471 = arith.mulf %470, %469 : vector<16x16xf32>
    %472 = arith.addf %467, %471 : vector<16x16xf32>
    %c0_161 = arith.constant 0 : index
    %c47 = arith.constant 47 : index
    %473 = memref.load %arg1[%c0_161, %c47] : memref<3x98xf32, #tpu.memory_space<smem>>
    %474 = vector.extract_strided_slice %410 {offsets = [6, 0], sizes = [16, 16], strides = [1, 1]} : vector<22x16xf32> to vector<16x16xf32>
    %475 = vector.broadcast %473 : f32 to vector<16x16xf32>
    %476 = arith.mulf %475, %474 : vector<16x16xf32>
    %477 = arith.addf %472, %476 : vector<16x16xf32>
    %c0_162 = arith.constant 0 : index
    %c96 = arith.constant 96 : index
    %478 = memref.load %arg1[%c0_162, %c96] : memref<3x98xf32, #tpu.memory_space<smem>>
    %479 = vector.extract_strided_slice %412 {offsets = [6, 0], sizes = [16, 16], strides = [1, 1]} : vector<22x16xf32> to vector<16x16xf32>
    %480 = vector.broadcast %478 : f32 to vector<16x16xf32>
    %481 = arith.mulf %480, %479 : vector<16x16xf32>
    %482 = arith.addf %477, %481 : vector<16x16xf32>
    %c0_163 = arith.constant 0 : index
    %c0_164 = arith.constant 0 : index
    %c6 = arith.constant 6 : index
    %483 = vector.load %arg5[%c0_163, %c0_164, %c6] : memref<2x22x22xf32, #tpu.memory_space<vmem>>, vector<1x22x16xf32>
    %484 = vector.shape_cast %483 : vector<1x22x16xf32> to vector<22x16xf32>
    %c1_165 = arith.constant 1 : index
    %c0_166 = arith.constant 0 : index
    %c6_167 = arith.constant 6 : index
    %485 = vector.load %arg5[%c1_165, %c0_166, %c6_167] : memref<2x22x22xf32, #tpu.memory_space<vmem>>, vector<1x22x16xf32>
    %486 = vector.shape_cast %485 : vector<1x22x16xf32> to vector<22x16xf32>
    %c0_168 = arith.constant 0 : index
    %c6_169 = arith.constant 6 : index
    %487 = memref.load %arg1[%c0_168, %c6_169] : memref<3x98xf32, #tpu.memory_space<smem>>
    %488 = vector.extract_strided_slice %484 {offsets = [0, 0], sizes = [16, 16], strides = [1, 1]} : vector<22x16xf32> to vector<16x16xf32>
    %489 = vector.broadcast %487 : f32 to vector<16x16xf32>
    %490 = arith.mulf %489, %488 : vector<16x16xf32>
    %491 = arith.addf %482, %490 : vector<16x16xf32>
    %c0_170 = arith.constant 0 : index
    %c55 = arith.constant 55 : index
    %492 = memref.load %arg1[%c0_170, %c55] : memref<3x98xf32, #tpu.memory_space<smem>>
    %493 = vector.extract_strided_slice %486 {offsets = [0, 0], sizes = [16, 16], strides = [1, 1]} : vector<22x16xf32> to vector<16x16xf32>
    %494 = vector.broadcast %492 : f32 to vector<16x16xf32>
    %495 = arith.mulf %494, %493 : vector<16x16xf32>
    %496 = arith.addf %491, %495 : vector<16x16xf32>
    %c0_171 = arith.constant 0 : index
    %c13 = arith.constant 13 : index
    %497 = memref.load %arg1[%c0_171, %c13] : memref<3x98xf32, #tpu.memory_space<smem>>
    %498 = vector.extract_strided_slice %484 {offsets = [1, 0], sizes = [16, 16], strides = [1, 1]} : vector<22x16xf32> to vector<16x16xf32>
    %499 = vector.broadcast %497 : f32 to vector<16x16xf32>
    %500 = arith.mulf %499, %498 : vector<16x16xf32>
    %501 = arith.addf %496, %500 : vector<16x16xf32>
    %c0_172 = arith.constant 0 : index
    %c62 = arith.constant 62 : index
    %502 = memref.load %arg1[%c0_172, %c62] : memref<3x98xf32, #tpu.memory_space<smem>>
    %503 = vector.extract_strided_slice %486 {offsets = [1, 0], sizes = [16, 16], strides = [1, 1]} : vector<22x16xf32> to vector<16x16xf32>
    %504 = vector.broadcast %502 : f32 to vector<16x16xf32>
    %505 = arith.mulf %504, %503 : vector<16x16xf32>
    %506 = arith.addf %501, %505 : vector<16x16xf32>
    %c0_173 = arith.constant 0 : index
    %c20 = arith.constant 20 : index
    %507 = memref.load %arg1[%c0_173, %c20] : memref<3x98xf32, #tpu.memory_space<smem>>
    %508 = vector.extract_strided_slice %484 {offsets = [2, 0], sizes = [16, 16], strides = [1, 1]} : vector<22x16xf32> to vector<16x16xf32>
    %509 = vector.broadcast %507 : f32 to vector<16x16xf32>
    %510 = arith.mulf %509, %508 : vector<16x16xf32>
    %511 = arith.addf %506, %510 : vector<16x16xf32>
    %c0_174 = arith.constant 0 : index
    %c69 = arith.constant 69 : index
    %512 = memref.load %arg1[%c0_174, %c69] : memref<3x98xf32, #tpu.memory_space<smem>>
    %513 = vector.extract_strided_slice %486 {offsets = [2, 0], sizes = [16, 16], strides = [1, 1]} : vector<22x16xf32> to vector<16x16xf32>
    %514 = vector.broadcast %512 : f32 to vector<16x16xf32>
    %515 = arith.mulf %514, %513 : vector<16x16xf32>
    %516 = arith.addf %511, %515 : vector<16x16xf32>
    %c0_175 = arith.constant 0 : index
    %c27 = arith.constant 27 : index
    %517 = memref.load %arg1[%c0_175, %c27] : memref<3x98xf32, #tpu.memory_space<smem>>
    %518 = vector.extract_strided_slice %484 {offsets = [3, 0], sizes = [16, 16], strides = [1, 1]} : vector<22x16xf32> to vector<16x16xf32>
    %519 = vector.broadcast %517 : f32 to vector<16x16xf32>
    %520 = arith.mulf %519, %518 : vector<16x16xf32>
    %521 = arith.addf %516, %520 : vector<16x16xf32>
    %c0_176 = arith.constant 0 : index
    %c76 = arith.constant 76 : index
    %522 = memref.load %arg1[%c0_176, %c76] : memref<3x98xf32, #tpu.memory_space<smem>>
    %523 = vector.extract_strided_slice %486 {offsets = [3, 0], sizes = [16, 16], strides = [1, 1]} : vector<22x16xf32> to vector<16x16xf32>
    %524 = vector.broadcast %522 : f32 to vector<16x16xf32>
    %525 = arith.mulf %524, %523 : vector<16x16xf32>
    %526 = arith.addf %521, %525 : vector<16x16xf32>
    %c0_177 = arith.constant 0 : index
    %c34 = arith.constant 34 : index
    %527 = memref.load %arg1[%c0_177, %c34] : memref<3x98xf32, #tpu.memory_space<smem>>
    %528 = vector.extract_strided_slice %484 {offsets = [4, 0], sizes = [16, 16], strides = [1, 1]} : vector<22x16xf32> to vector<16x16xf32>
    %529 = vector.broadcast %527 : f32 to vector<16x16xf32>
    %530 = arith.mulf %529, %528 : vector<16x16xf32>
    %531 = arith.addf %526, %530 : vector<16x16xf32>
    %c0_178 = arith.constant 0 : index
    %c83 = arith.constant 83 : index
    %532 = memref.load %arg1[%c0_178, %c83] : memref<3x98xf32, #tpu.memory_space<smem>>
    %533 = vector.extract_strided_slice %486 {offsets = [4, 0], sizes = [16, 16], strides = [1, 1]} : vector<22x16xf32> to vector<16x16xf32>
    %534 = vector.broadcast %532 : f32 to vector<16x16xf32>
    %535 = arith.mulf %534, %533 : vector<16x16xf32>
    %536 = arith.addf %531, %535 : vector<16x16xf32>
    %c0_179 = arith.constant 0 : index
    %c41 = arith.constant 41 : index
    %537 = memref.load %arg1[%c0_179, %c41] : memref<3x98xf32, #tpu.memory_space<smem>>
    %538 = vector.extract_strided_slice %484 {offsets = [5, 0], sizes = [16, 16], strides = [1, 1]} : vector<22x16xf32> to vector<16x16xf32>
    %539 = vector.broadcast %537 : f32 to vector<16x16xf32>
    %540 = arith.mulf %539, %538 : vector<16x16xf32>
    %541 = arith.addf %536, %540 : vector<16x16xf32>
    %c0_180 = arith.constant 0 : index
    %c90 = arith.constant 90 : index
    %542 = memref.load %arg1[%c0_180, %c90] : memref<3x98xf32, #tpu.memory_space<smem>>
    %543 = vector.extract_strided_slice %486 {offsets = [5, 0], sizes = [16, 16], strides = [1, 1]} : vector<22x16xf32> to vector<16x16xf32>
    %544 = vector.broadcast %542 : f32 to vector<16x16xf32>
    %545 = arith.mulf %544, %543 : vector<16x16xf32>
    %546 = arith.addf %541, %545 : vector<16x16xf32>
    %c0_181 = arith.constant 0 : index
    %c48 = arith.constant 48 : index
    %547 = memref.load %arg1[%c0_181, %c48] : memref<3x98xf32, #tpu.memory_space<smem>>
    %548 = vector.extract_strided_slice %484 {offsets = [6, 0], sizes = [16, 16], strides = [1, 1]} : vector<22x16xf32> to vector<16x16xf32>
    %549 = vector.broadcast %547 : f32 to vector<16x16xf32>
    %550 = arith.mulf %549, %548 : vector<16x16xf32>
    %551 = arith.addf %546, %550 : vector<16x16xf32>
    %c0_182 = arith.constant 0 : index
    %c97 = arith.constant 97 : index
    %552 = memref.load %arg1[%c0_182, %c97] : memref<3x98xf32, #tpu.memory_space<smem>>
    %553 = vector.extract_strided_slice %486 {offsets = [6, 0], sizes = [16, 16], strides = [1, 1]} : vector<22x16xf32> to vector<16x16xf32>
    %554 = vector.broadcast %552 : f32 to vector<16x16xf32>
    %555 = arith.mulf %554, %553 : vector<16x16xf32>
    %556 = arith.addf %551, %555 : vector<16x16xf32>
    %c0_183 = arith.constant 0 : index
    %557 = memref.load %arg2[%c0_183] : memref<3xf32, #tpu.memory_space<smem>>
    %558 = vector.broadcast %557 : f32 to vector<16x16xf32>
    %559 = arith.addf %556, %558 : vector<16x16xf32>
    %560 = arith.negf %559 : vector<16x16xf32>
    %561 = math.exp %560 : vector<16x16xf32>
    %cst_184 = arith.constant 1.000000e+00 : f32
    %562 = vector.broadcast %cst_184 : f32 to vector<16x16xf32>
    %563 = arith.addf %562, %561 : vector<16x16xf32>
    %564 = arith.divf %562, %563 : vector<16x16xf32>
    %cst_185 = arith.constant 0.000000e+00 : f32
    %565 = vector.broadcast %cst_185 : f32 to vector<4x16xf32>
    %c0_186 = arith.constant 0 : index
    %c0_187 = arith.constant 0 : index
    %c0_188 = arith.constant 0 : index
    %566 = vector.load %arg6[%c0_186, %c0_187, %c0_188] : memref<2x10x22xf32, #tpu.memory_space<vmem>>, vector<1x10x16xf32>
    %567 = vector.shape_cast %566 : vector<1x10x16xf32> to vector<10x16xf32>
    %c1_189 = arith.constant 1 : index
    %c0_190 = arith.constant 0 : index
    %c0_191 = arith.constant 0 : index
    %568 = vector.load %arg6[%c1_189, %c0_190, %c0_191] : memref<2x10x22xf32, #tpu.memory_space<vmem>>, vector<1x10x16xf32>
    %569 = vector.shape_cast %568 : vector<1x10x16xf32> to vector<10x16xf32>
    %c1_192 = arith.constant 1 : index
    %c0_193 = arith.constant 0 : index
    %570 = memref.load %arg1[%c1_192, %c0_193] : memref<3x98xf32, #tpu.memory_space<smem>>
    %571 = vector.extract_strided_slice %567 {offsets = [0, 0], sizes = [4, 16], strides = [1, 1]} : vector<10x16xf32> to vector<4x16xf32>
    %572 = vector.broadcast %570 : f32 to vector<4x16xf32>
    %573 = arith.mulf %572, %571 : vector<4x16xf32>
    %574 = arith.addf %565, %573 : vector<4x16xf32>
    %c1_194 = arith.constant 1 : index
    %c49_195 = arith.constant 49 : index
    %575 = memref.load %arg1[%c1_194, %c49_195] : memref<3x98xf32, #tpu.memory_space<smem>>
    %576 = vector.extract_strided_slice %569 {offsets = [0, 0], sizes = [4, 16], strides = [1, 1]} : vector<10x16xf32> to vector<4x16xf32>
    %577 = vector.broadcast %575 : f32 to vector<4x16xf32>
    %578 = arith.mulf %577, %576 : vector<4x16xf32>
    %579 = arith.addf %574, %578 : vector<4x16xf32>
    %c1_196 = arith.constant 1 : index
    %c7_197 = arith.constant 7 : index
    %580 = memref.load %arg1[%c1_196, %c7_197] : memref<3x98xf32, #tpu.memory_space<smem>>
    %581 = vector.extract_strided_slice %567 {offsets = [1, 0], sizes = [4, 16], strides = [1, 1]} : vector<10x16xf32> to vector<4x16xf32>
    %582 = vector.broadcast %580 : f32 to vector<4x16xf32>
    %583 = arith.mulf %582, %581 : vector<4x16xf32>
    %584 = arith.addf %579, %583 : vector<4x16xf32>
    %c1_198 = arith.constant 1 : index
    %c56_199 = arith.constant 56 : index
    %585 = memref.load %arg1[%c1_198, %c56_199] : memref<3x98xf32, #tpu.memory_space<smem>>
    %586 = vector.extract_strided_slice %569 {offsets = [1, 0], sizes = [4, 16], strides = [1, 1]} : vector<10x16xf32> to vector<4x16xf32>
    %587 = vector.broadcast %585 : f32 to vector<4x16xf32>
    %588 = arith.mulf %587, %586 : vector<4x16xf32>
    %589 = arith.addf %584, %588 : vector<4x16xf32>
    %c1_200 = arith.constant 1 : index
    %c14_201 = arith.constant 14 : index
    %590 = memref.load %arg1[%c1_200, %c14_201] : memref<3x98xf32, #tpu.memory_space<smem>>
    %591 = vector.extract_strided_slice %567 {offsets = [2, 0], sizes = [4, 16], strides = [1, 1]} : vector<10x16xf32> to vector<4x16xf32>
    %592 = vector.broadcast %590 : f32 to vector<4x16xf32>
    %593 = arith.mulf %592, %591 : vector<4x16xf32>
    %594 = arith.addf %589, %593 : vector<4x16xf32>
    %c1_202 = arith.constant 1 : index
    %c63_203 = arith.constant 63 : index
    %595 = memref.load %arg1[%c1_202, %c63_203] : memref<3x98xf32, #tpu.memory_space<smem>>
    %596 = vector.extract_strided_slice %569 {offsets = [2, 0], sizes = [4, 16], strides = [1, 1]} : vector<10x16xf32> to vector<4x16xf32>
    %597 = vector.broadcast %595 : f32 to vector<4x16xf32>
    %598 = arith.mulf %597, %596 : vector<4x16xf32>
    %599 = arith.addf %594, %598 : vector<4x16xf32>
    %c1_204 = arith.constant 1 : index
    %c21_205 = arith.constant 21 : index
    %600 = memref.load %arg1[%c1_204, %c21_205] : memref<3x98xf32, #tpu.memory_space<smem>>
    %601 = vector.extract_strided_slice %567 {offsets = [3, 0], sizes = [4, 16], strides = [1, 1]} : vector<10x16xf32> to vector<4x16xf32>
    %602 = vector.broadcast %600 : f32 to vector<4x16xf32>
    %603 = arith.mulf %602, %601 : vector<4x16xf32>
    %604 = arith.addf %599, %603 : vector<4x16xf32>
    %c1_206 = arith.constant 1 : index
    %c70_207 = arith.constant 70 : index
    %605 = memref.load %arg1[%c1_206, %c70_207] : memref<3x98xf32, #tpu.memory_space<smem>>
    %606 = vector.extract_strided_slice %569 {offsets = [3, 0], sizes = [4, 16], strides = [1, 1]} : vector<10x16xf32> to vector<4x16xf32>
    %607 = vector.broadcast %605 : f32 to vector<4x16xf32>
    %608 = arith.mulf %607, %606 : vector<4x16xf32>
    %609 = arith.addf %604, %608 : vector<4x16xf32>
    %c1_208 = arith.constant 1 : index
    %c28_209 = arith.constant 28 : index
    %610 = memref.load %arg1[%c1_208, %c28_209] : memref<3x98xf32, #tpu.memory_space<smem>>
    %611 = vector.extract_strided_slice %567 {offsets = [4, 0], sizes = [4, 16], strides = [1, 1]} : vector<10x16xf32> to vector<4x16xf32>
    %612 = vector.broadcast %610 : f32 to vector<4x16xf32>
    %613 = arith.mulf %612, %611 : vector<4x16xf32>
    %614 = arith.addf %609, %613 : vector<4x16xf32>
    %c1_210 = arith.constant 1 : index
    %c77_211 = arith.constant 77 : index
    %615 = memref.load %arg1[%c1_210, %c77_211] : memref<3x98xf32, #tpu.memory_space<smem>>
    %616 = vector.extract_strided_slice %569 {offsets = [4, 0], sizes = [4, 16], strides = [1, 1]} : vector<10x16xf32> to vector<4x16xf32>
    %617 = vector.broadcast %615 : f32 to vector<4x16xf32>
    %618 = arith.mulf %617, %616 : vector<4x16xf32>
    %619 = arith.addf %614, %618 : vector<4x16xf32>
    %c1_212 = arith.constant 1 : index
    %c35_213 = arith.constant 35 : index
    %620 = memref.load %arg1[%c1_212, %c35_213] : memref<3x98xf32, #tpu.memory_space<smem>>
    %621 = vector.extract_strided_slice %567 {offsets = [5, 0], sizes = [4, 16], strides = [1, 1]} : vector<10x16xf32> to vector<4x16xf32>
    %622 = vector.broadcast %620 : f32 to vector<4x16xf32>
    %623 = arith.mulf %622, %621 : vector<4x16xf32>
    %624 = arith.addf %619, %623 : vector<4x16xf32>
    %c1_214 = arith.constant 1 : index
    %c84_215 = arith.constant 84 : index
    %625 = memref.load %arg1[%c1_214, %c84_215] : memref<3x98xf32, #tpu.memory_space<smem>>
    %626 = vector.extract_strided_slice %569 {offsets = [5, 0], sizes = [4, 16], strides = [1, 1]} : vector<10x16xf32> to vector<4x16xf32>
    %627 = vector.broadcast %625 : f32 to vector<4x16xf32>
    %628 = arith.mulf %627, %626 : vector<4x16xf32>
    %629 = arith.addf %624, %628 : vector<4x16xf32>
    %c1_216 = arith.constant 1 : index
    %c42_217 = arith.constant 42 : index
    %630 = memref.load %arg1[%c1_216, %c42_217] : memref<3x98xf32, #tpu.memory_space<smem>>
    %631 = vector.extract_strided_slice %567 {offsets = [6, 0], sizes = [4, 16], strides = [1, 1]} : vector<10x16xf32> to vector<4x16xf32>
    %632 = vector.broadcast %630 : f32 to vector<4x16xf32>
    %633 = arith.mulf %632, %631 : vector<4x16xf32>
    %634 = arith.addf %629, %633 : vector<4x16xf32>
    %c1_218 = arith.constant 1 : index
    %c91_219 = arith.constant 91 : index
    %635 = memref.load %arg1[%c1_218, %c91_219] : memref<3x98xf32, #tpu.memory_space<smem>>
    %636 = vector.extract_strided_slice %569 {offsets = [6, 0], sizes = [4, 16], strides = [1, 1]} : vector<10x16xf32> to vector<4x16xf32>
    %637 = vector.broadcast %635 : f32 to vector<4x16xf32>
    %638 = arith.mulf %637, %636 : vector<4x16xf32>
    %639 = arith.addf %634, %638 : vector<4x16xf32>
    %c0_220 = arith.constant 0 : index
    %c0_221 = arith.constant 0 : index
    %c1_222 = arith.constant 1 : index
    %640 = vector.load %arg6[%c0_220, %c0_221, %c1_222] : memref<2x10x22xf32, #tpu.memory_space<vmem>>, vector<1x10x16xf32>
    %641 = vector.shape_cast %640 : vector<1x10x16xf32> to vector<10x16xf32>
    %c1_223 = arith.constant 1 : index
    %c0_224 = arith.constant 0 : index
    %c1_225 = arith.constant 1 : index
    %642 = vector.load %arg6[%c1_223, %c0_224, %c1_225] : memref<2x10x22xf32, #tpu.memory_space<vmem>>, vector<1x10x16xf32>
    %643 = vector.shape_cast %642 : vector<1x10x16xf32> to vector<10x16xf32>
    %c1_226 = arith.constant 1 : index
    %c1_227 = arith.constant 1 : index
    %644 = memref.load %arg1[%c1_226, %c1_227] : memref<3x98xf32, #tpu.memory_space<smem>>
    %645 = vector.extract_strided_slice %641 {offsets = [0, 0], sizes = [4, 16], strides = [1, 1]} : vector<10x16xf32> to vector<4x16xf32>
    %646 = vector.broadcast %644 : f32 to vector<4x16xf32>
    %647 = arith.mulf %646, %645 : vector<4x16xf32>
    %648 = arith.addf %639, %647 : vector<4x16xf32>
    %c1_228 = arith.constant 1 : index
    %c50_229 = arith.constant 50 : index
    %649 = memref.load %arg1[%c1_228, %c50_229] : memref<3x98xf32, #tpu.memory_space<smem>>
    %650 = vector.extract_strided_slice %643 {offsets = [0, 0], sizes = [4, 16], strides = [1, 1]} : vector<10x16xf32> to vector<4x16xf32>
    %651 = vector.broadcast %649 : f32 to vector<4x16xf32>
    %652 = arith.mulf %651, %650 : vector<4x16xf32>
    %653 = arith.addf %648, %652 : vector<4x16xf32>
    %c1_230 = arith.constant 1 : index
    %c8_231 = arith.constant 8 : index
    %654 = memref.load %arg1[%c1_230, %c8_231] : memref<3x98xf32, #tpu.memory_space<smem>>
    %655 = vector.extract_strided_slice %641 {offsets = [1, 0], sizes = [4, 16], strides = [1, 1]} : vector<10x16xf32> to vector<4x16xf32>
    %656 = vector.broadcast %654 : f32 to vector<4x16xf32>
    %657 = arith.mulf %656, %655 : vector<4x16xf32>
    %658 = arith.addf %653, %657 : vector<4x16xf32>
    %c1_232 = arith.constant 1 : index
    %c57_233 = arith.constant 57 : index
    %659 = memref.load %arg1[%c1_232, %c57_233] : memref<3x98xf32, #tpu.memory_space<smem>>
    %660 = vector.extract_strided_slice %643 {offsets = [1, 0], sizes = [4, 16], strides = [1, 1]} : vector<10x16xf32> to vector<4x16xf32>
    %661 = vector.broadcast %659 : f32 to vector<4x16xf32>
    %662 = arith.mulf %661, %660 : vector<4x16xf32>
    %663 = arith.addf %658, %662 : vector<4x16xf32>
    %c1_234 = arith.constant 1 : index
    %c15_235 = arith.constant 15 : index
    %664 = memref.load %arg1[%c1_234, %c15_235] : memref<3x98xf32, #tpu.memory_space<smem>>
    %665 = vector.extract_strided_slice %641 {offsets = [2, 0], sizes = [4, 16], strides = [1, 1]} : vector<10x16xf32> to vector<4x16xf32>
    %666 = vector.broadcast %664 : f32 to vector<4x16xf32>
    %667 = arith.mulf %666, %665 : vector<4x16xf32>
    %668 = arith.addf %663, %667 : vector<4x16xf32>
    %c1_236 = arith.constant 1 : index
    %c64_237 = arith.constant 64 : index
    %669 = memref.load %arg1[%c1_236, %c64_237] : memref<3x98xf32, #tpu.memory_space<smem>>
    %670 = vector.extract_strided_slice %643 {offsets = [2, 0], sizes = [4, 16], strides = [1, 1]} : vector<10x16xf32> to vector<4x16xf32>
    %671 = vector.broadcast %669 : f32 to vector<4x16xf32>
    %672 = arith.mulf %671, %670 : vector<4x16xf32>
    %673 = arith.addf %668, %672 : vector<4x16xf32>
    %c1_238 = arith.constant 1 : index
    %c22_239 = arith.constant 22 : index
    %674 = memref.load %arg1[%c1_238, %c22_239] : memref<3x98xf32, #tpu.memory_space<smem>>
    %675 = vector.extract_strided_slice %641 {offsets = [3, 0], sizes = [4, 16], strides = [1, 1]} : vector<10x16xf32> to vector<4x16xf32>
    %676 = vector.broadcast %674 : f32 to vector<4x16xf32>
    %677 = arith.mulf %676, %675 : vector<4x16xf32>
    %678 = arith.addf %673, %677 : vector<4x16xf32>
    %c1_240 = arith.constant 1 : index
    %c71_241 = arith.constant 71 : index
    %679 = memref.load %arg1[%c1_240, %c71_241] : memref<3x98xf32, #tpu.memory_space<smem>>
    %680 = vector.extract_strided_slice %643 {offsets = [3, 0], sizes = [4, 16], strides = [1, 1]} : vector<10x16xf32> to vector<4x16xf32>
    %681 = vector.broadcast %679 : f32 to vector<4x16xf32>
    %682 = arith.mulf %681, %680 : vector<4x16xf32>
    %683 = arith.addf %678, %682 : vector<4x16xf32>
    %c1_242 = arith.constant 1 : index
    %c29_243 = arith.constant 29 : index
    %684 = memref.load %arg1[%c1_242, %c29_243] : memref<3x98xf32, #tpu.memory_space<smem>>
    %685 = vector.extract_strided_slice %641 {offsets = [4, 0], sizes = [4, 16], strides = [1, 1]} : vector<10x16xf32> to vector<4x16xf32>
    %686 = vector.broadcast %684 : f32 to vector<4x16xf32>
    %687 = arith.mulf %686, %685 : vector<4x16xf32>
    %688 = arith.addf %683, %687 : vector<4x16xf32>
    %c1_244 = arith.constant 1 : index
    %c78_245 = arith.constant 78 : index
    %689 = memref.load %arg1[%c1_244, %c78_245] : memref<3x98xf32, #tpu.memory_space<smem>>
    %690 = vector.extract_strided_slice %643 {offsets = [4, 0], sizes = [4, 16], strides = [1, 1]} : vector<10x16xf32> to vector<4x16xf32>
    %691 = vector.broadcast %689 : f32 to vector<4x16xf32>
    %692 = arith.mulf %691, %690 : vector<4x16xf32>
    %693 = arith.addf %688, %692 : vector<4x16xf32>
    %c1_246 = arith.constant 1 : index
    %c36_247 = arith.constant 36 : index
    %694 = memref.load %arg1[%c1_246, %c36_247] : memref<3x98xf32, #tpu.memory_space<smem>>
    %695 = vector.extract_strided_slice %641 {offsets = [5, 0], sizes = [4, 16], strides = [1, 1]} : vector<10x16xf32> to vector<4x16xf32>
    %696 = vector.broadcast %694 : f32 to vector<4x16xf32>
    %697 = arith.mulf %696, %695 : vector<4x16xf32>
    %698 = arith.addf %693, %697 : vector<4x16xf32>
    %c1_248 = arith.constant 1 : index
    %c85_249 = arith.constant 85 : index
    %699 = memref.load %arg1[%c1_248, %c85_249] : memref<3x98xf32, #tpu.memory_space<smem>>
    %700 = vector.extract_strided_slice %643 {offsets = [5, 0], sizes = [4, 16], strides = [1, 1]} : vector<10x16xf32> to vector<4x16xf32>
    %701 = vector.broadcast %699 : f32 to vector<4x16xf32>
    %702 = arith.mulf %701, %700 : vector<4x16xf32>
    %703 = arith.addf %698, %702 : vector<4x16xf32>
    %c1_250 = arith.constant 1 : index
    %c43_251 = arith.constant 43 : index
    %704 = memref.load %arg1[%c1_250, %c43_251] : memref<3x98xf32, #tpu.memory_space<smem>>
    %705 = vector.extract_strided_slice %641 {offsets = [6, 0], sizes = [4, 16], strides = [1, 1]} : vector<10x16xf32> to vector<4x16xf32>
    %706 = vector.broadcast %704 : f32 to vector<4x16xf32>
    %707 = arith.mulf %706, %705 : vector<4x16xf32>
    %708 = arith.addf %703, %707 : vector<4x16xf32>
    %c1_252 = arith.constant 1 : index
    %c92_253 = arith.constant 92 : index
    %709 = memref.load %arg1[%c1_252, %c92_253] : memref<3x98xf32, #tpu.memory_space<smem>>
    %710 = vector.extract_strided_slice %643 {offsets = [6, 0], sizes = [4, 16], strides = [1, 1]} : vector<10x16xf32> to vector<4x16xf32>
    %711 = vector.broadcast %709 : f32 to vector<4x16xf32>
    %712 = arith.mulf %711, %710 : vector<4x16xf32>
    %713 = arith.addf %708, %712 : vector<4x16xf32>
    %c0_254 = arith.constant 0 : index
    %c0_255 = arith.constant 0 : index
    %c2_256 = arith.constant 2 : index
    %714 = vector.load %arg6[%c0_254, %c0_255, %c2_256] : memref<2x10x22xf32, #tpu.memory_space<vmem>>, vector<1x10x16xf32>
    %715 = vector.shape_cast %714 : vector<1x10x16xf32> to vector<10x16xf32>
    %c1_257 = arith.constant 1 : index
    %c0_258 = arith.constant 0 : index
    %c2_259 = arith.constant 2 : index
    %716 = vector.load %arg6[%c1_257, %c0_258, %c2_259] : memref<2x10x22xf32, #tpu.memory_space<vmem>>, vector<1x10x16xf32>
    %717 = vector.shape_cast %716 : vector<1x10x16xf32> to vector<10x16xf32>
    %c1_260 = arith.constant 1 : index
    %c2_261 = arith.constant 2 : index
    %718 = memref.load %arg1[%c1_260, %c2_261] : memref<3x98xf32, #tpu.memory_space<smem>>
    %719 = vector.extract_strided_slice %715 {offsets = [0, 0], sizes = [4, 16], strides = [1, 1]} : vector<10x16xf32> to vector<4x16xf32>
    %720 = vector.broadcast %718 : f32 to vector<4x16xf32>
    %721 = arith.mulf %720, %719 : vector<4x16xf32>
    %722 = arith.addf %713, %721 : vector<4x16xf32>
    %c1_262 = arith.constant 1 : index
    %c51_263 = arith.constant 51 : index
    %723 = memref.load %arg1[%c1_262, %c51_263] : memref<3x98xf32, #tpu.memory_space<smem>>
    %724 = vector.extract_strided_slice %717 {offsets = [0, 0], sizes = [4, 16], strides = [1, 1]} : vector<10x16xf32> to vector<4x16xf32>
    %725 = vector.broadcast %723 : f32 to vector<4x16xf32>
    %726 = arith.mulf %725, %724 : vector<4x16xf32>
    %727 = arith.addf %722, %726 : vector<4x16xf32>
    %c1_264 = arith.constant 1 : index
    %c9_265 = arith.constant 9 : index
    %728 = memref.load %arg1[%c1_264, %c9_265] : memref<3x98xf32, #tpu.memory_space<smem>>
    %729 = vector.extract_strided_slice %715 {offsets = [1, 0], sizes = [4, 16], strides = [1, 1]} : vector<10x16xf32> to vector<4x16xf32>
    %730 = vector.broadcast %728 : f32 to vector<4x16xf32>
    %731 = arith.mulf %730, %729 : vector<4x16xf32>
    %732 = arith.addf %727, %731 : vector<4x16xf32>
    %c1_266 = arith.constant 1 : index
    %c58_267 = arith.constant 58 : index
    %733 = memref.load %arg1[%c1_266, %c58_267] : memref<3x98xf32, #tpu.memory_space<smem>>
    %734 = vector.extract_strided_slice %717 {offsets = [1, 0], sizes = [4, 16], strides = [1, 1]} : vector<10x16xf32> to vector<4x16xf32>
    %735 = vector.broadcast %733 : f32 to vector<4x16xf32>
    %736 = arith.mulf %735, %734 : vector<4x16xf32>
    %737 = arith.addf %732, %736 : vector<4x16xf32>
    %c1_268 = arith.constant 1 : index
    %c16_269 = arith.constant 16 : index
    %738 = memref.load %arg1[%c1_268, %c16_269] : memref<3x98xf32, #tpu.memory_space<smem>>
    %739 = vector.extract_strided_slice %715 {offsets = [2, 0], sizes = [4, 16], strides = [1, 1]} : vector<10x16xf32> to vector<4x16xf32>
    %740 = vector.broadcast %738 : f32 to vector<4x16xf32>
    %741 = arith.mulf %740, %739 : vector<4x16xf32>
    %742 = arith.addf %737, %741 : vector<4x16xf32>
    %c1_270 = arith.constant 1 : index
    %c65_271 = arith.constant 65 : index
    %743 = memref.load %arg1[%c1_270, %c65_271] : memref<3x98xf32, #tpu.memory_space<smem>>
    %744 = vector.extract_strided_slice %717 {offsets = [2, 0], sizes = [4, 16], strides = [1, 1]} : vector<10x16xf32> to vector<4x16xf32>
    %745 = vector.broadcast %743 : f32 to vector<4x16xf32>
    %746 = arith.mulf %745, %744 : vector<4x16xf32>
    %747 = arith.addf %742, %746 : vector<4x16xf32>
    %c1_272 = arith.constant 1 : index
    %c23_273 = arith.constant 23 : index
    %748 = memref.load %arg1[%c1_272, %c23_273] : memref<3x98xf32, #tpu.memory_space<smem>>
    %749 = vector.extract_strided_slice %715 {offsets = [3, 0], sizes = [4, 16], strides = [1, 1]} : vector<10x16xf32> to vector<4x16xf32>
    %750 = vector.broadcast %748 : f32 to vector<4x16xf32>
    %751 = arith.mulf %750, %749 : vector<4x16xf32>
    %752 = arith.addf %747, %751 : vector<4x16xf32>
    %c1_274 = arith.constant 1 : index
    %c72_275 = arith.constant 72 : index
    %753 = memref.load %arg1[%c1_274, %c72_275] : memref<3x98xf32, #tpu.memory_space<smem>>
    %754 = vector.extract_strided_slice %717 {offsets = [3, 0], sizes = [4, 16], strides = [1, 1]} : vector<10x16xf32> to vector<4x16xf32>
    %755 = vector.broadcast %753 : f32 to vector<4x16xf32>
    %756 = arith.mulf %755, %754 : vector<4x16xf32>
    %757 = arith.addf %752, %756 : vector<4x16xf32>
    %c1_276 = arith.constant 1 : index
    %c30_277 = arith.constant 30 : index
    %758 = memref.load %arg1[%c1_276, %c30_277] : memref<3x98xf32, #tpu.memory_space<smem>>
    %759 = vector.extract_strided_slice %715 {offsets = [4, 0], sizes = [4, 16], strides = [1, 1]} : vector<10x16xf32> to vector<4x16xf32>
    %760 = vector.broadcast %758 : f32 to vector<4x16xf32>
    %761 = arith.mulf %760, %759 : vector<4x16xf32>
    %762 = arith.addf %757, %761 : vector<4x16xf32>
    %c1_278 = arith.constant 1 : index
    %c79_279 = arith.constant 79 : index
    %763 = memref.load %arg1[%c1_278, %c79_279] : memref<3x98xf32, #tpu.memory_space<smem>>
    %764 = vector.extract_strided_slice %717 {offsets = [4, 0], sizes = [4, 16], strides = [1, 1]} : vector<10x16xf32> to vector<4x16xf32>
    %765 = vector.broadcast %763 : f32 to vector<4x16xf32>
    %766 = arith.mulf %765, %764 : vector<4x16xf32>
    %767 = arith.addf %762, %766 : vector<4x16xf32>
    %c1_280 = arith.constant 1 : index
    %c37_281 = arith.constant 37 : index
    %768 = memref.load %arg1[%c1_280, %c37_281] : memref<3x98xf32, #tpu.memory_space<smem>>
    %769 = vector.extract_strided_slice %715 {offsets = [5, 0], sizes = [4, 16], strides = [1, 1]} : vector<10x16xf32> to vector<4x16xf32>
    %770 = vector.broadcast %768 : f32 to vector<4x16xf32>
    %771 = arith.mulf %770, %769 : vector<4x16xf32>
    %772 = arith.addf %767, %771 : vector<4x16xf32>
    %c1_282 = arith.constant 1 : index
    %c86_283 = arith.constant 86 : index
    %773 = memref.load %arg1[%c1_282, %c86_283] : memref<3x98xf32, #tpu.memory_space<smem>>
    %774 = vector.extract_strided_slice %717 {offsets = [5, 0], sizes = [4, 16], strides = [1, 1]} : vector<10x16xf32> to vector<4x16xf32>
    %775 = vector.broadcast %773 : f32 to vector<4x16xf32>
    %776 = arith.mulf %775, %774 : vector<4x16xf32>
    %777 = arith.addf %772, %776 : vector<4x16xf32>
    %c1_284 = arith.constant 1 : index
    %c44_285 = arith.constant 44 : index
    %778 = memref.load %arg1[%c1_284, %c44_285] : memref<3x98xf32, #tpu.memory_space<smem>>
    %779 = vector.extract_strided_slice %715 {offsets = [6, 0], sizes = [4, 16], strides = [1, 1]} : vector<10x16xf32> to vector<4x16xf32>
    %780 = vector.broadcast %778 : f32 to vector<4x16xf32>
    %781 = arith.mulf %780, %779 : vector<4x16xf32>
    %782 = arith.addf %777, %781 : vector<4x16xf32>
    %c1_286 = arith.constant 1 : index
    %c93_287 = arith.constant 93 : index
    %783 = memref.load %arg1[%c1_286, %c93_287] : memref<3x98xf32, #tpu.memory_space<smem>>
    %784 = vector.extract_strided_slice %717 {offsets = [6, 0], sizes = [4, 16], strides = [1, 1]} : vector<10x16xf32> to vector<4x16xf32>
    %785 = vector.broadcast %783 : f32 to vector<4x16xf32>
    %786 = arith.mulf %785, %784 : vector<4x16xf32>
    %787 = arith.addf %782, %786 : vector<4x16xf32>
    %c0_288 = arith.constant 0 : index
    %c0_289 = arith.constant 0 : index
    %c3_290 = arith.constant 3 : index
    %788 = vector.load %arg6[%c0_288, %c0_289, %c3_290] : memref<2x10x22xf32, #tpu.memory_space<vmem>>, vector<1x10x16xf32>
    %789 = vector.shape_cast %788 : vector<1x10x16xf32> to vector<10x16xf32>
    %c1_291 = arith.constant 1 : index
    %c0_292 = arith.constant 0 : index
    %c3_293 = arith.constant 3 : index
    %790 = vector.load %arg6[%c1_291, %c0_292, %c3_293] : memref<2x10x22xf32, #tpu.memory_space<vmem>>, vector<1x10x16xf32>
    %791 = vector.shape_cast %790 : vector<1x10x16xf32> to vector<10x16xf32>
    %c1_294 = arith.constant 1 : index
    %c3_295 = arith.constant 3 : index
    %792 = memref.load %arg1[%c1_294, %c3_295] : memref<3x98xf32, #tpu.memory_space<smem>>
    %793 = vector.extract_strided_slice %789 {offsets = [0, 0], sizes = [4, 16], strides = [1, 1]} : vector<10x16xf32> to vector<4x16xf32>
    %794 = vector.broadcast %792 : f32 to vector<4x16xf32>
    %795 = arith.mulf %794, %793 : vector<4x16xf32>
    %796 = arith.addf %787, %795 : vector<4x16xf32>
    %c1_296 = arith.constant 1 : index
    %c52_297 = arith.constant 52 : index
    %797 = memref.load %arg1[%c1_296, %c52_297] : memref<3x98xf32, #tpu.memory_space<smem>>
    %798 = vector.extract_strided_slice %791 {offsets = [0, 0], sizes = [4, 16], strides = [1, 1]} : vector<10x16xf32> to vector<4x16xf32>
    %799 = vector.broadcast %797 : f32 to vector<4x16xf32>
    %800 = arith.mulf %799, %798 : vector<4x16xf32>
    %801 = arith.addf %796, %800 : vector<4x16xf32>
    %c1_298 = arith.constant 1 : index
    %c10_299 = arith.constant 10 : index
    %802 = memref.load %arg1[%c1_298, %c10_299] : memref<3x98xf32, #tpu.memory_space<smem>>
    %803 = vector.extract_strided_slice %789 {offsets = [1, 0], sizes = [4, 16], strides = [1, 1]} : vector<10x16xf32> to vector<4x16xf32>
    %804 = vector.broadcast %802 : f32 to vector<4x16xf32>
    %805 = arith.mulf %804, %803 : vector<4x16xf32>
    %806 = arith.addf %801, %805 : vector<4x16xf32>
    %c1_300 = arith.constant 1 : index
    %c59_301 = arith.constant 59 : index
    %807 = memref.load %arg1[%c1_300, %c59_301] : memref<3x98xf32, #tpu.memory_space<smem>>
    %808 = vector.extract_strided_slice %791 {offsets = [1, 0], sizes = [4, 16], strides = [1, 1]} : vector<10x16xf32> to vector<4x16xf32>
    %809 = vector.broadcast %807 : f32 to vector<4x16xf32>
    %810 = arith.mulf %809, %808 : vector<4x16xf32>
    %811 = arith.addf %806, %810 : vector<4x16xf32>
    %c1_302 = arith.constant 1 : index
    %c17_303 = arith.constant 17 : index
    %812 = memref.load %arg1[%c1_302, %c17_303] : memref<3x98xf32, #tpu.memory_space<smem>>
    %813 = vector.extract_strided_slice %789 {offsets = [2, 0], sizes = [4, 16], strides = [1, 1]} : vector<10x16xf32> to vector<4x16xf32>
    %814 = vector.broadcast %812 : f32 to vector<4x16xf32>
    %815 = arith.mulf %814, %813 : vector<4x16xf32>
    %816 = arith.addf %811, %815 : vector<4x16xf32>
    %c1_304 = arith.constant 1 : index
    %c66_305 = arith.constant 66 : index
    %817 = memref.load %arg1[%c1_304, %c66_305] : memref<3x98xf32, #tpu.memory_space<smem>>
    %818 = vector.extract_strided_slice %791 {offsets = [2, 0], sizes = [4, 16], strides = [1, 1]} : vector<10x16xf32> to vector<4x16xf32>
    %819 = vector.broadcast %817 : f32 to vector<4x16xf32>
    %820 = arith.mulf %819, %818 : vector<4x16xf32>
    %821 = arith.addf %816, %820 : vector<4x16xf32>
    %c1_306 = arith.constant 1 : index
    %c24_307 = arith.constant 24 : index
    %822 = memref.load %arg1[%c1_306, %c24_307] : memref<3x98xf32, #tpu.memory_space<smem>>
    %823 = vector.extract_strided_slice %789 {offsets = [3, 0], sizes = [4, 16], strides = [1, 1]} : vector<10x16xf32> to vector<4x16xf32>
    %824 = vector.broadcast %822 : f32 to vector<4x16xf32>
    %825 = arith.mulf %824, %823 : vector<4x16xf32>
    %826 = arith.addf %821, %825 : vector<4x16xf32>
    %c1_308 = arith.constant 1 : index
    %c73_309 = arith.constant 73 : index
    %827 = memref.load %arg1[%c1_308, %c73_309] : memref<3x98xf32, #tpu.memory_space<smem>>
    %828 = vector.extract_strided_slice %791 {offsets = [3, 0], sizes = [4, 16], strides = [1, 1]} : vector<10x16xf32> to vector<4x16xf32>
    %829 = vector.broadcast %827 : f32 to vector<4x16xf32>
    %830 = arith.mulf %829, %828 : vector<4x16xf32>
    %831 = arith.addf %826, %830 : vector<4x16xf32>
    %c1_310 = arith.constant 1 : index
    %c31_311 = arith.constant 31 : index
    %832 = memref.load %arg1[%c1_310, %c31_311] : memref<3x98xf32, #tpu.memory_space<smem>>
    %833 = vector.extract_strided_slice %789 {offsets = [4, 0], sizes = [4, 16], strides = [1, 1]} : vector<10x16xf32> to vector<4x16xf32>
    %834 = vector.broadcast %832 : f32 to vector<4x16xf32>
    %835 = arith.mulf %834, %833 : vector<4x16xf32>
    %836 = arith.addf %831, %835 : vector<4x16xf32>
    %c1_312 = arith.constant 1 : index
    %c80_313 = arith.constant 80 : index
    %837 = memref.load %arg1[%c1_312, %c80_313] : memref<3x98xf32, #tpu.memory_space<smem>>
    %838 = vector.extract_strided_slice %791 {offsets = [4, 0], sizes = [4, 16], strides = [1, 1]} : vector<10x16xf32> to vector<4x16xf32>
    %839 = vector.broadcast %837 : f32 to vector<4x16xf32>
    %840 = arith.mulf %839, %838 : vector<4x16xf32>
    %841 = arith.addf %836, %840 : vector<4x16xf32>
    %c1_314 = arith.constant 1 : index
    %c38_315 = arith.constant 38 : index
    %842 = memref.load %arg1[%c1_314, %c38_315] : memref<3x98xf32, #tpu.memory_space<smem>>
    %843 = vector.extract_strided_slice %789 {offsets = [5, 0], sizes = [4, 16], strides = [1, 1]} : vector<10x16xf32> to vector<4x16xf32>
    %844 = vector.broadcast %842 : f32 to vector<4x16xf32>
    %845 = arith.mulf %844, %843 : vector<4x16xf32>
    %846 = arith.addf %841, %845 : vector<4x16xf32>
    %c1_316 = arith.constant 1 : index
    %c87_317 = arith.constant 87 : index
    %847 = memref.load %arg1[%c1_316, %c87_317] : memref<3x98xf32, #tpu.memory_space<smem>>
    %848 = vector.extract_strided_slice %791 {offsets = [5, 0], sizes = [4, 16], strides = [1, 1]} : vector<10x16xf32> to vector<4x16xf32>
    %849 = vector.broadcast %847 : f32 to vector<4x16xf32>
    %850 = arith.mulf %849, %848 : vector<4x16xf32>
    %851 = arith.addf %846, %850 : vector<4x16xf32>
    %c1_318 = arith.constant 1 : index
    %c45_319 = arith.constant 45 : index
    %852 = memref.load %arg1[%c1_318, %c45_319] : memref<3x98xf32, #tpu.memory_space<smem>>
    %853 = vector.extract_strided_slice %789 {offsets = [6, 0], sizes = [4, 16], strides = [1, 1]} : vector<10x16xf32> to vector<4x16xf32>
    %854 = vector.broadcast %852 : f32 to vector<4x16xf32>
    %855 = arith.mulf %854, %853 : vector<4x16xf32>
    %856 = arith.addf %851, %855 : vector<4x16xf32>
    %c1_320 = arith.constant 1 : index
    %c94_321 = arith.constant 94 : index
    %857 = memref.load %arg1[%c1_320, %c94_321] : memref<3x98xf32, #tpu.memory_space<smem>>
    %858 = vector.extract_strided_slice %791 {offsets = [6, 0], sizes = [4, 16], strides = [1, 1]} : vector<10x16xf32> to vector<4x16xf32>
    %859 = vector.broadcast %857 : f32 to vector<4x16xf32>
    %860 = arith.mulf %859, %858 : vector<4x16xf32>
    %861 = arith.addf %856, %860 : vector<4x16xf32>
    %c0_322 = arith.constant 0 : index
    %c0_323 = arith.constant 0 : index
    %c4_324 = arith.constant 4 : index
    %862 = vector.load %arg6[%c0_322, %c0_323, %c4_324] : memref<2x10x22xf32, #tpu.memory_space<vmem>>, vector<1x10x16xf32>
    %863 = vector.shape_cast %862 : vector<1x10x16xf32> to vector<10x16xf32>
    %c1_325 = arith.constant 1 : index
    %c0_326 = arith.constant 0 : index
    %c4_327 = arith.constant 4 : index
    %864 = vector.load %arg6[%c1_325, %c0_326, %c4_327] : memref<2x10x22xf32, #tpu.memory_space<vmem>>, vector<1x10x16xf32>
    %865 = vector.shape_cast %864 : vector<1x10x16xf32> to vector<10x16xf32>
    %c1_328 = arith.constant 1 : index
    %c4_329 = arith.constant 4 : index
    %866 = memref.load %arg1[%c1_328, %c4_329] : memref<3x98xf32, #tpu.memory_space<smem>>
    %867 = vector.extract_strided_slice %863 {offsets = [0, 0], sizes = [4, 16], strides = [1, 1]} : vector<10x16xf32> to vector<4x16xf32>
    %868 = vector.broadcast %866 : f32 to vector<4x16xf32>
    %869 = arith.mulf %868, %867 : vector<4x16xf32>
    %870 = arith.addf %861, %869 : vector<4x16xf32>
    %c1_330 = arith.constant 1 : index
    %c53_331 = arith.constant 53 : index
    %871 = memref.load %arg1[%c1_330, %c53_331] : memref<3x98xf32, #tpu.memory_space<smem>>
    %872 = vector.extract_strided_slice %865 {offsets = [0, 0], sizes = [4, 16], strides = [1, 1]} : vector<10x16xf32> to vector<4x16xf32>
    %873 = vector.broadcast %871 : f32 to vector<4x16xf32>
    %874 = arith.mulf %873, %872 : vector<4x16xf32>
    %875 = arith.addf %870, %874 : vector<4x16xf32>
    %c1_332 = arith.constant 1 : index
    %c11_333 = arith.constant 11 : index
    %876 = memref.load %arg1[%c1_332, %c11_333] : memref<3x98xf32, #tpu.memory_space<smem>>
    %877 = vector.extract_strided_slice %863 {offsets = [1, 0], sizes = [4, 16], strides = [1, 1]} : vector<10x16xf32> to vector<4x16xf32>
    %878 = vector.broadcast %876 : f32 to vector<4x16xf32>
    %879 = arith.mulf %878, %877 : vector<4x16xf32>
    %880 = arith.addf %875, %879 : vector<4x16xf32>
    %c1_334 = arith.constant 1 : index
    %c60_335 = arith.constant 60 : index
    %881 = memref.load %arg1[%c1_334, %c60_335] : memref<3x98xf32, #tpu.memory_space<smem>>
    %882 = vector.extract_strided_slice %865 {offsets = [1, 0], sizes = [4, 16], strides = [1, 1]} : vector<10x16xf32> to vector<4x16xf32>
    %883 = vector.broadcast %881 : f32 to vector<4x16xf32>
    %884 = arith.mulf %883, %882 : vector<4x16xf32>
    %885 = arith.addf %880, %884 : vector<4x16xf32>
    %c1_336 = arith.constant 1 : index
    %c18_337 = arith.constant 18 : index
    %886 = memref.load %arg1[%c1_336, %c18_337] : memref<3x98xf32, #tpu.memory_space<smem>>
    %887 = vector.extract_strided_slice %863 {offsets = [2, 0], sizes = [4, 16], strides = [1, 1]} : vector<10x16xf32> to vector<4x16xf32>
    %888 = vector.broadcast %886 : f32 to vector<4x16xf32>
    %889 = arith.mulf %888, %887 : vector<4x16xf32>
    %890 = arith.addf %885, %889 : vector<4x16xf32>
    %c1_338 = arith.constant 1 : index
    %c67_339 = arith.constant 67 : index
    %891 = memref.load %arg1[%c1_338, %c67_339] : memref<3x98xf32, #tpu.memory_space<smem>>
    %892 = vector.extract_strided_slice %865 {offsets = [2, 0], sizes = [4, 16], strides = [1, 1]} : vector<10x16xf32> to vector<4x16xf32>
    %893 = vector.broadcast %891 : f32 to vector<4x16xf32>
    %894 = arith.mulf %893, %892 : vector<4x16xf32>
    %895 = arith.addf %890, %894 : vector<4x16xf32>
    %c1_340 = arith.constant 1 : index
    %c25_341 = arith.constant 25 : index
    %896 = memref.load %arg1[%c1_340, %c25_341] : memref<3x98xf32, #tpu.memory_space<smem>>
    %897 = vector.extract_strided_slice %863 {offsets = [3, 0], sizes = [4, 16], strides = [1, 1]} : vector<10x16xf32> to vector<4x16xf32>
    %898 = vector.broadcast %896 : f32 to vector<4x16xf32>
    %899 = arith.mulf %898, %897 : vector<4x16xf32>
    %900 = arith.addf %895, %899 : vector<4x16xf32>
    %c1_342 = arith.constant 1 : index
    %c74_343 = arith.constant 74 : index
    %901 = memref.load %arg1[%c1_342, %c74_343] : memref<3x98xf32, #tpu.memory_space<smem>>
    %902 = vector.extract_strided_slice %865 {offsets = [3, 0], sizes = [4, 16], strides = [1, 1]} : vector<10x16xf32> to vector<4x16xf32>
    %903 = vector.broadcast %901 : f32 to vector<4x16xf32>
    %904 = arith.mulf %903, %902 : vector<4x16xf32>
    %905 = arith.addf %900, %904 : vector<4x16xf32>
    %c1_344 = arith.constant 1 : index
    %c32_345 = arith.constant 32 : index
    %906 = memref.load %arg1[%c1_344, %c32_345] : memref<3x98xf32, #tpu.memory_space<smem>>
    %907 = vector.extract_strided_slice %863 {offsets = [4, 0], sizes = [4, 16], strides = [1, 1]} : vector<10x16xf32> to vector<4x16xf32>
    %908 = vector.broadcast %906 : f32 to vector<4x16xf32>
    %909 = arith.mulf %908, %907 : vector<4x16xf32>
    %910 = arith.addf %905, %909 : vector<4x16xf32>
    %c1_346 = arith.constant 1 : index
    %c81_347 = arith.constant 81 : index
    %911 = memref.load %arg1[%c1_346, %c81_347] : memref<3x98xf32, #tpu.memory_space<smem>>
    %912 = vector.extract_strided_slice %865 {offsets = [4, 0], sizes = [4, 16], strides = [1, 1]} : vector<10x16xf32> to vector<4x16xf32>
    %913 = vector.broadcast %911 : f32 to vector<4x16xf32>
    %914 = arith.mulf %913, %912 : vector<4x16xf32>
    %915 = arith.addf %910, %914 : vector<4x16xf32>
    %c1_348 = arith.constant 1 : index
    %c39_349 = arith.constant 39 : index
    %916 = memref.load %arg1[%c1_348, %c39_349] : memref<3x98xf32, #tpu.memory_space<smem>>
    %917 = vector.extract_strided_slice %863 {offsets = [5, 0], sizes = [4, 16], strides = [1, 1]} : vector<10x16xf32> to vector<4x16xf32>
    %918 = vector.broadcast %916 : f32 to vector<4x16xf32>
    %919 = arith.mulf %918, %917 : vector<4x16xf32>
    %920 = arith.addf %915, %919 : vector<4x16xf32>
    %c1_350 = arith.constant 1 : index
    %c88_351 = arith.constant 88 : index
    %921 = memref.load %arg1[%c1_350, %c88_351] : memref<3x98xf32, #tpu.memory_space<smem>>
    %922 = vector.extract_strided_slice %865 {offsets = [5, 0], sizes = [4, 16], strides = [1, 1]} : vector<10x16xf32> to vector<4x16xf32>
    %923 = vector.broadcast %921 : f32 to vector<4x16xf32>
    %924 = arith.mulf %923, %922 : vector<4x16xf32>
    %925 = arith.addf %920, %924 : vector<4x16xf32>
    %c1_352 = arith.constant 1 : index
    %c46_353 = arith.constant 46 : index
    %926 = memref.load %arg1[%c1_352, %c46_353] : memref<3x98xf32, #tpu.memory_space<smem>>
    %927 = vector.extract_strided_slice %863 {offsets = [6, 0], sizes = [4, 16], strides = [1, 1]} : vector<10x16xf32> to vector<4x16xf32>
    %928 = vector.broadcast %926 : f32 to vector<4x16xf32>
    %929 = arith.mulf %928, %927 : vector<4x16xf32>
    %930 = arith.addf %925, %929 : vector<4x16xf32>
    %c1_354 = arith.constant 1 : index
    %c95_355 = arith.constant 95 : index
    %931 = memref.load %arg1[%c1_354, %c95_355] : memref<3x98xf32, #tpu.memory_space<smem>>
    %932 = vector.extract_strided_slice %865 {offsets = [6, 0], sizes = [4, 16], strides = [1, 1]} : vector<10x16xf32> to vector<4x16xf32>
    %933 = vector.broadcast %931 : f32 to vector<4x16xf32>
    %934 = arith.mulf %933, %932 : vector<4x16xf32>
    %935 = arith.addf %930, %934 : vector<4x16xf32>
    %c0_356 = arith.constant 0 : index
    %c0_357 = arith.constant 0 : index
    %c5_358 = arith.constant 5 : index
    %936 = vector.load %arg6[%c0_356, %c0_357, %c5_358] : memref<2x10x22xf32, #tpu.memory_space<vmem>>, vector<1x10x16xf32>
    %937 = vector.shape_cast %936 : vector<1x10x16xf32> to vector<10x16xf32>
    %c1_359 = arith.constant 1 : index
    %c0_360 = arith.constant 0 : index
    %c5_361 = arith.constant 5 : index
    %938 = vector.load %arg6[%c1_359, %c0_360, %c5_361] : memref<2x10x22xf32, #tpu.memory_space<vmem>>, vector<1x10x16xf32>
    %939 = vector.shape_cast %938 : vector<1x10x16xf32> to vector<10x16xf32>
    %c1_362 = arith.constant 1 : index
    %c5_363 = arith.constant 5 : index
    %940 = memref.load %arg1[%c1_362, %c5_363] : memref<3x98xf32, #tpu.memory_space<smem>>
    %941 = vector.extract_strided_slice %937 {offsets = [0, 0], sizes = [4, 16], strides = [1, 1]} : vector<10x16xf32> to vector<4x16xf32>
    %942 = vector.broadcast %940 : f32 to vector<4x16xf32>
    %943 = arith.mulf %942, %941 : vector<4x16xf32>
    %944 = arith.addf %935, %943 : vector<4x16xf32>
    %c1_364 = arith.constant 1 : index
    %c54_365 = arith.constant 54 : index
    %945 = memref.load %arg1[%c1_364, %c54_365] : memref<3x98xf32, #tpu.memory_space<smem>>
    %946 = vector.extract_strided_slice %939 {offsets = [0, 0], sizes = [4, 16], strides = [1, 1]} : vector<10x16xf32> to vector<4x16xf32>
    %947 = vector.broadcast %945 : f32 to vector<4x16xf32>
    %948 = arith.mulf %947, %946 : vector<4x16xf32>
    %949 = arith.addf %944, %948 : vector<4x16xf32>
    %c1_366 = arith.constant 1 : index
    %c12_367 = arith.constant 12 : index
    %950 = memref.load %arg1[%c1_366, %c12_367] : memref<3x98xf32, #tpu.memory_space<smem>>
    %951 = vector.extract_strided_slice %937 {offsets = [1, 0], sizes = [4, 16], strides = [1, 1]} : vector<10x16xf32> to vector<4x16xf32>
    %952 = vector.broadcast %950 : f32 to vector<4x16xf32>
    %953 = arith.mulf %952, %951 : vector<4x16xf32>
    %954 = arith.addf %949, %953 : vector<4x16xf32>
    %c1_368 = arith.constant 1 : index
    %c61_369 = arith.constant 61 : index
    %955 = memref.load %arg1[%c1_368, %c61_369] : memref<3x98xf32, #tpu.memory_space<smem>>
    %956 = vector.extract_strided_slice %939 {offsets = [1, 0], sizes = [4, 16], strides = [1, 1]} : vector<10x16xf32> to vector<4x16xf32>
    %957 = vector.broadcast %955 : f32 to vector<4x16xf32>
    %958 = arith.mulf %957, %956 : vector<4x16xf32>
    %959 = arith.addf %954, %958 : vector<4x16xf32>
    %c1_370 = arith.constant 1 : index
    %c19_371 = arith.constant 19 : index
    %960 = memref.load %arg1[%c1_370, %c19_371] : memref<3x98xf32, #tpu.memory_space<smem>>
    %961 = vector.extract_strided_slice %937 {offsets = [2, 0], sizes = [4, 16], strides = [1, 1]} : vector<10x16xf32> to vector<4x16xf32>
    %962 = vector.broadcast %960 : f32 to vector<4x16xf32>
    %963 = arith.mulf %962, %961 : vector<4x16xf32>
    %964 = arith.addf %959, %963 : vector<4x16xf32>
    %c1_372 = arith.constant 1 : index
    %c68_373 = arith.constant 68 : index
    %965 = memref.load %arg1[%c1_372, %c68_373] : memref<3x98xf32, #tpu.memory_space<smem>>
    %966 = vector.extract_strided_slice %939 {offsets = [2, 0], sizes = [4, 16], strides = [1, 1]} : vector<10x16xf32> to vector<4x16xf32>
    %967 = vector.broadcast %965 : f32 to vector<4x16xf32>
    %968 = arith.mulf %967, %966 : vector<4x16xf32>
    %969 = arith.addf %964, %968 : vector<4x16xf32>
    %c1_374 = arith.constant 1 : index
    %c26_375 = arith.constant 26 : index
    %970 = memref.load %arg1[%c1_374, %c26_375] : memref<3x98xf32, #tpu.memory_space<smem>>
    %971 = vector.extract_strided_slice %937 {offsets = [3, 0], sizes = [4, 16], strides = [1, 1]} : vector<10x16xf32> to vector<4x16xf32>
    %972 = vector.broadcast %970 : f32 to vector<4x16xf32>
    %973 = arith.mulf %972, %971 : vector<4x16xf32>
    %974 = arith.addf %969, %973 : vector<4x16xf32>
    %c1_376 = arith.constant 1 : index
    %c75_377 = arith.constant 75 : index
    %975 = memref.load %arg1[%c1_376, %c75_377] : memref<3x98xf32, #tpu.memory_space<smem>>
    %976 = vector.extract_strided_slice %939 {offsets = [3, 0], sizes = [4, 16], strides = [1, 1]} : vector<10x16xf32> to vector<4x16xf32>
    %977 = vector.broadcast %975 : f32 to vector<4x16xf32>
    %978 = arith.mulf %977, %976 : vector<4x16xf32>
    %979 = arith.addf %974, %978 : vector<4x16xf32>
    %c1_378 = arith.constant 1 : index
    %c33_379 = arith.constant 33 : index
    %980 = memref.load %arg1[%c1_378, %c33_379] : memref<3x98xf32, #tpu.memory_space<smem>>
    %981 = vector.extract_strided_slice %937 {offsets = [4, 0], sizes = [4, 16], strides = [1, 1]} : vector<10x16xf32> to vector<4x16xf32>
    %982 = vector.broadcast %980 : f32 to vector<4x16xf32>
    %983 = arith.mulf %982, %981 : vector<4x16xf32>
    %984 = arith.addf %979, %983 : vector<4x16xf32>
    %c1_380 = arith.constant 1 : index
    %c82_381 = arith.constant 82 : index
    %985 = memref.load %arg1[%c1_380, %c82_381] : memref<3x98xf32, #tpu.memory_space<smem>>
    %986 = vector.extract_strided_slice %939 {offsets = [4, 0], sizes = [4, 16], strides = [1, 1]} : vector<10x16xf32> to vector<4x16xf32>
    %987 = vector.broadcast %985 : f32 to vector<4x16xf32>
    %988 = arith.mulf %987, %986 : vector<4x16xf32>
    %989 = arith.addf %984, %988 : vector<4x16xf32>
    %c1_382 = arith.constant 1 : index
    %c40_383 = arith.constant 40 : index
    %990 = memref.load %arg1[%c1_382, %c40_383] : memref<3x98xf32, #tpu.memory_space<smem>>
    %991 = vector.extract_strided_slice %937 {offsets = [5, 0], sizes = [4, 16], strides = [1, 1]} : vector<10x16xf32> to vector<4x16xf32>
    %992 = vector.broadcast %990 : f32 to vector<4x16xf32>
    %993 = arith.mulf %992, %991 : vector<4x16xf32>
    %994 = arith.addf %989, %993 : vector<4x16xf32>
    %c1_384 = arith.constant 1 : index
    %c89_385 = arith.constant 89 : index
    %995 = memref.load %arg1[%c1_384, %c89_385] : memref<3x98xf32, #tpu.memory_space<smem>>
    %996 = vector.extract_strided_slice %939 {offsets = [5, 0], sizes = [4, 16], strides = [1, 1]} : vector<10x16xf32> to vector<4x16xf32>
    %997 = vector.broadcast %995 : f32 to vector<4x16xf32>
    %998 = arith.mulf %997, %996 : vector<4x16xf32>
    %999 = arith.addf %994, %998 : vector<4x16xf32>
    %c1_386 = arith.constant 1 : index
    %c47_387 = arith.constant 47 : index
    %1000 = memref.load %arg1[%c1_386, %c47_387] : memref<3x98xf32, #tpu.memory_space<smem>>
    %1001 = vector.extract_strided_slice %937 {offsets = [6, 0], sizes = [4, 16], strides = [1, 1]} : vector<10x16xf32> to vector<4x16xf32>
    %1002 = vector.broadcast %1000 : f32 to vector<4x16xf32>
    %1003 = arith.mulf %1002, %1001 : vector<4x16xf32>
    %1004 = arith.addf %999, %1003 : vector<4x16xf32>
    %c1_388 = arith.constant 1 : index
    %c96_389 = arith.constant 96 : index
    %1005 = memref.load %arg1[%c1_388, %c96_389] : memref<3x98xf32, #tpu.memory_space<smem>>
    %1006 = vector.extract_strided_slice %939 {offsets = [6, 0], sizes = [4, 16], strides = [1, 1]} : vector<10x16xf32> to vector<4x16xf32>
    %1007 = vector.broadcast %1005 : f32 to vector<4x16xf32>
    %1008 = arith.mulf %1007, %1006 : vector<4x16xf32>
    %1009 = arith.addf %1004, %1008 : vector<4x16xf32>
    %c0_390 = arith.constant 0 : index
    %c0_391 = arith.constant 0 : index
    %c6_392 = arith.constant 6 : index
    %1010 = vector.load %arg6[%c0_390, %c0_391, %c6_392] : memref<2x10x22xf32, #tpu.memory_space<vmem>>, vector<1x10x16xf32>
    %1011 = vector.shape_cast %1010 : vector<1x10x16xf32> to vector<10x16xf32>
    %c1_393 = arith.constant 1 : index
    %c0_394 = arith.constant 0 : index
    %c6_395 = arith.constant 6 : index
    %1012 = vector.load %arg6[%c1_393, %c0_394, %c6_395] : memref<2x10x22xf32, #tpu.memory_space<vmem>>, vector<1x10x16xf32>
    %1013 = vector.shape_cast %1012 : vector<1x10x16xf32> to vector<10x16xf32>
    %c1_396 = arith.constant 1 : index
    %c6_397 = arith.constant 6 : index
    %1014 = memref.load %arg1[%c1_396, %c6_397] : memref<3x98xf32, #tpu.memory_space<smem>>
    %1015 = vector.extract_strided_slice %1011 {offsets = [0, 0], sizes = [4, 16], strides = [1, 1]} : vector<10x16xf32> to vector<4x16xf32>
    %1016 = vector.broadcast %1014 : f32 to vector<4x16xf32>
    %1017 = arith.mulf %1016, %1015 : vector<4x16xf32>
    %1018 = arith.addf %1009, %1017 : vector<4x16xf32>
    %c1_398 = arith.constant 1 : index
    %c55_399 = arith.constant 55 : index
    %1019 = memref.load %arg1[%c1_398, %c55_399] : memref<3x98xf32, #tpu.memory_space<smem>>
    %1020 = vector.extract_strided_slice %1013 {offsets = [0, 0], sizes = [4, 16], strides = [1, 1]} : vector<10x16xf32> to vector<4x16xf32>
    %1021 = vector.broadcast %1019 : f32 to vector<4x16xf32>
    %1022 = arith.mulf %1021, %1020 : vector<4x16xf32>
    %1023 = arith.addf %1018, %1022 : vector<4x16xf32>
    %c1_400 = arith.constant 1 : index
    %c13_401 = arith.constant 13 : index
    %1024 = memref.load %arg1[%c1_400, %c13_401] : memref<3x98xf32, #tpu.memory_space<smem>>
    %1025 = vector.extract_strided_slice %1011 {offsets = [1, 0], sizes = [4, 16], strides = [1, 1]} : vector<10x16xf32> to vector<4x16xf32>
    %1026 = vector.broadcast %1024 : f32 to vector<4x16xf32>
    %1027 = arith.mulf %1026, %1025 : vector<4x16xf32>
    %1028 = arith.addf %1023, %1027 : vector<4x16xf32>
    %c1_402 = arith.constant 1 : index
    %c62_403 = arith.constant 62 : index
    %1029 = memref.load %arg1[%c1_402, %c62_403] : memref<3x98xf32, #tpu.memory_space<smem>>
    %1030 = vector.extract_strided_slice %1013 {offsets = [1, 0], sizes = [4, 16], strides = [1, 1]} : vector<10x16xf32> to vector<4x16xf32>
    %1031 = vector.broadcast %1029 : f32 to vector<4x16xf32>
    %1032 = arith.mulf %1031, %1030 : vector<4x16xf32>
    %1033 = arith.addf %1028, %1032 : vector<4x16xf32>
    %c1_404 = arith.constant 1 : index
    %c20_405 = arith.constant 20 : index
    %1034 = memref.load %arg1[%c1_404, %c20_405] : memref<3x98xf32, #tpu.memory_space<smem>>
    %1035 = vector.extract_strided_slice %1011 {offsets = [2, 0], sizes = [4, 16], strides = [1, 1]} : vector<10x16xf32> to vector<4x16xf32>
    %1036 = vector.broadcast %1034 : f32 to vector<4x16xf32>
    %1037 = arith.mulf %1036, %1035 : vector<4x16xf32>
    %1038 = arith.addf %1033, %1037 : vector<4x16xf32>
    %c1_406 = arith.constant 1 : index
    %c69_407 = arith.constant 69 : index
    %1039 = memref.load %arg1[%c1_406, %c69_407] : memref<3x98xf32, #tpu.memory_space<smem>>
    %1040 = vector.extract_strided_slice %1013 {offsets = [2, 0], sizes = [4, 16], strides = [1, 1]} : vector<10x16xf32> to vector<4x16xf32>
    %1041 = vector.broadcast %1039 : f32 to vector<4x16xf32>
    %1042 = arith.mulf %1041, %1040 : vector<4x16xf32>
    %1043 = arith.addf %1038, %1042 : vector<4x16xf32>
    %c1_408 = arith.constant 1 : index
    %c27_409 = arith.constant 27 : index
    %1044 = memref.load %arg1[%c1_408, %c27_409] : memref<3x98xf32, #tpu.memory_space<smem>>
    %1045 = vector.extract_strided_slice %1011 {offsets = [3, 0], sizes = [4, 16], strides = [1, 1]} : vector<10x16xf32> to vector<4x16xf32>
    %1046 = vector.broadcast %1044 : f32 to vector<4x16xf32>
    %1047 = arith.mulf %1046, %1045 : vector<4x16xf32>
    %1048 = arith.addf %1043, %1047 : vector<4x16xf32>
    %c1_410 = arith.constant 1 : index
    %c76_411 = arith.constant 76 : index
    %1049 = memref.load %arg1[%c1_410, %c76_411] : memref<3x98xf32, #tpu.memory_space<smem>>
    %1050 = vector.extract_strided_slice %1013 {offsets = [3, 0], sizes = [4, 16], strides = [1, 1]} : vector<10x16xf32> to vector<4x16xf32>
    %1051 = vector.broadcast %1049 : f32 to vector<4x16xf32>
    %1052 = arith.mulf %1051, %1050 : vector<4x16xf32>
    %1053 = arith.addf %1048, %1052 : vector<4x16xf32>
    %c1_412 = arith.constant 1 : index
    %c34_413 = arith.constant 34 : index
    %1054 = memref.load %arg1[%c1_412, %c34_413] : memref<3x98xf32, #tpu.memory_space<smem>>
    %1055 = vector.extract_strided_slice %1011 {offsets = [4, 0], sizes = [4, 16], strides = [1, 1]} : vector<10x16xf32> to vector<4x16xf32>
    %1056 = vector.broadcast %1054 : f32 to vector<4x16xf32>
    %1057 = arith.mulf %1056, %1055 : vector<4x16xf32>
    %1058 = arith.addf %1053, %1057 : vector<4x16xf32>
    %c1_414 = arith.constant 1 : index
    %c83_415 = arith.constant 83 : index
    %1059 = memref.load %arg1[%c1_414, %c83_415] : memref<3x98xf32, #tpu.memory_space<smem>>
    %1060 = vector.extract_strided_slice %1013 {offsets = [4, 0], sizes = [4, 16], strides = [1, 1]} : vector<10x16xf32> to vector<4x16xf32>
    %1061 = vector.broadcast %1059 : f32 to vector<4x16xf32>
    %1062 = arith.mulf %1061, %1060 : vector<4x16xf32>
    %1063 = arith.addf %1058, %1062 : vector<4x16xf32>
    %c1_416 = arith.constant 1 : index
    %c41_417 = arith.constant 41 : index
    %1064 = memref.load %arg1[%c1_416, %c41_417] : memref<3x98xf32, #tpu.memory_space<smem>>
    %1065 = vector.extract_strided_slice %1011 {offsets = [5, 0], sizes = [4, 16], strides = [1, 1]} : vector<10x16xf32> to vector<4x16xf32>
    %1066 = vector.broadcast %1064 : f32 to vector<4x16xf32>
    %1067 = arith.mulf %1066, %1065 : vector<4x16xf32>
    %1068 = arith.addf %1063, %1067 : vector<4x16xf32>
    %c1_418 = arith.constant 1 : index
    %c90_419 = arith.constant 90 : index
    %1069 = memref.load %arg1[%c1_418, %c90_419] : memref<3x98xf32, #tpu.memory_space<smem>>
    %1070 = vector.extract_strided_slice %1013 {offsets = [5, 0], sizes = [4, 16], strides = [1, 1]} : vector<10x16xf32> to vector<4x16xf32>
    %1071 = vector.broadcast %1069 : f32 to vector<4x16xf32>
    %1072 = arith.mulf %1071, %1070 : vector<4x16xf32>
    %1073 = arith.addf %1068, %1072 : vector<4x16xf32>
    %c1_420 = arith.constant 1 : index
    %c48_421 = arith.constant 48 : index
    %1074 = memref.load %arg1[%c1_420, %c48_421] : memref<3x98xf32, #tpu.memory_space<smem>>
    %1075 = vector.extract_strided_slice %1011 {offsets = [6, 0], sizes = [4, 16], strides = [1, 1]} : vector<10x16xf32> to vector<4x16xf32>
    %1076 = vector.broadcast %1074 : f32 to vector<4x16xf32>
    %1077 = arith.mulf %1076, %1075 : vector<4x16xf32>
    %1078 = arith.addf %1073, %1077 : vector<4x16xf32>
    %c1_422 = arith.constant 1 : index
    %c97_423 = arith.constant 97 : index
    %1079 = memref.load %arg1[%c1_422, %c97_423] : memref<3x98xf32, #tpu.memory_space<smem>>
    %1080 = vector.extract_strided_slice %1013 {offsets = [6, 0], sizes = [4, 16], strides = [1, 1]} : vector<10x16xf32> to vector<4x16xf32>
    %1081 = vector.broadcast %1079 : f32 to vector<4x16xf32>
    %1082 = arith.mulf %1081, %1080 : vector<4x16xf32>
    %1083 = arith.addf %1078, %1082 : vector<4x16xf32>
    %c1_424 = arith.constant 1 : index
    %1084 = memref.load %arg2[%c1_424] : memref<3xf32, #tpu.memory_space<smem>>
    %1085 = vector.broadcast %1084 : f32 to vector<4x16xf32>
    %1086 = arith.addf %1083, %1085 : vector<4x16xf32>
    %1087 = arith.negf %1086 : vector<4x16xf32>
    %1088 = math.exp %1087 : vector<4x16xf32>
    %cst_425 = arith.constant 1.000000e+00 : f32
    %1089 = vector.broadcast %cst_425 : f32 to vector<4x16xf32>
    %1090 = arith.addf %1089, %1088 : vector<4x16xf32>
    %1091 = arith.divf %1089, %1090 : vector<4x16xf32>
    %cst_426 = arith.constant 0.000000e+00 : f32
    %1092 = vector.broadcast %cst_426 : f32 to vector<4x16xf32>
    %c0_427 = arith.constant 0 : index
    %c0_428 = arith.constant 0 : index
    %c0_429 = arith.constant 0 : index
    %1093 = vector.load %arg7[%c0_427, %c0_428, %c0_429] : memref<2x10x22xf32, #tpu.memory_space<vmem>>, vector<1x10x16xf32>
    %1094 = vector.shape_cast %1093 : vector<1x10x16xf32> to vector<10x16xf32>
    %c1_430 = arith.constant 1 : index
    %c0_431 = arith.constant 0 : index
    %c0_432 = arith.constant 0 : index
    %1095 = vector.load %arg7[%c1_430, %c0_431, %c0_432] : memref<2x10x22xf32, #tpu.memory_space<vmem>>, vector<1x10x16xf32>
    %1096 = vector.shape_cast %1095 : vector<1x10x16xf32> to vector<10x16xf32>
    %c2_433 = arith.constant 2 : index
    %c0_434 = arith.constant 0 : index
    %1097 = memref.load %arg1[%c2_433, %c0_434] : memref<3x98xf32, #tpu.memory_space<smem>>
    %1098 = vector.extract_strided_slice %1094 {offsets = [0, 0], sizes = [4, 16], strides = [1, 1]} : vector<10x16xf32> to vector<4x16xf32>
    %1099 = vector.broadcast %1097 : f32 to vector<4x16xf32>
    %1100 = arith.mulf %1099, %1098 : vector<4x16xf32>
    %1101 = arith.addf %1092, %1100 : vector<4x16xf32>
    %c2_435 = arith.constant 2 : index
    %c49_436 = arith.constant 49 : index
    %1102 = memref.load %arg1[%c2_435, %c49_436] : memref<3x98xf32, #tpu.memory_space<smem>>
    %1103 = vector.extract_strided_slice %1096 {offsets = [0, 0], sizes = [4, 16], strides = [1, 1]} : vector<10x16xf32> to vector<4x16xf32>
    %1104 = vector.broadcast %1102 : f32 to vector<4x16xf32>
    %1105 = arith.mulf %1104, %1103 : vector<4x16xf32>
    %1106 = arith.addf %1101, %1105 : vector<4x16xf32>
    %c2_437 = arith.constant 2 : index
    %c1_438 = arith.constant 1 : index
    %1107 = memref.load %arg1[%c2_437, %c1_438] : memref<3x98xf32, #tpu.memory_space<smem>>
    %1108 = vector.extract_strided_slice %1094 {offsets = [1, 0], sizes = [4, 16], strides = [1, 1]} : vector<10x16xf32> to vector<4x16xf32>
    %1109 = vector.broadcast %1107 : f32 to vector<4x16xf32>
    %1110 = arith.mulf %1109, %1108 : vector<4x16xf32>
    %1111 = arith.addf %1106, %1110 : vector<4x16xf32>
    %c2_439 = arith.constant 2 : index
    %c50_440 = arith.constant 50 : index
    %1112 = memref.load %arg1[%c2_439, %c50_440] : memref<3x98xf32, #tpu.memory_space<smem>>
    %1113 = vector.extract_strided_slice %1096 {offsets = [1, 0], sizes = [4, 16], strides = [1, 1]} : vector<10x16xf32> to vector<4x16xf32>
    %1114 = vector.broadcast %1112 : f32 to vector<4x16xf32>
    %1115 = arith.mulf %1114, %1113 : vector<4x16xf32>
    %1116 = arith.addf %1111, %1115 : vector<4x16xf32>
    %c2_441 = arith.constant 2 : index
    %c2_442 = arith.constant 2 : index
    %1117 = memref.load %arg1[%c2_441, %c2_442] : memref<3x98xf32, #tpu.memory_space<smem>>
    %1118 = vector.extract_strided_slice %1094 {offsets = [2, 0], sizes = [4, 16], strides = [1, 1]} : vector<10x16xf32> to vector<4x16xf32>
    %1119 = vector.broadcast %1117 : f32 to vector<4x16xf32>
    %1120 = arith.mulf %1119, %1118 : vector<4x16xf32>
    %1121 = arith.addf %1116, %1120 : vector<4x16xf32>
    %c2_443 = arith.constant 2 : index
    %c51_444 = arith.constant 51 : index
    %1122 = memref.load %arg1[%c2_443, %c51_444] : memref<3x98xf32, #tpu.memory_space<smem>>
    %1123 = vector.extract_strided_slice %1096 {offsets = [2, 0], sizes = [4, 16], strides = [1, 1]} : vector<10x16xf32> to vector<4x16xf32>
    %1124 = vector.broadcast %1122 : f32 to vector<4x16xf32>
    %1125 = arith.mulf %1124, %1123 : vector<4x16xf32>
    %1126 = arith.addf %1121, %1125 : vector<4x16xf32>
    %c2_445 = arith.constant 2 : index
    %c3_446 = arith.constant 3 : index
    %1127 = memref.load %arg1[%c2_445, %c3_446] : memref<3x98xf32, #tpu.memory_space<smem>>
    %1128 = vector.extract_strided_slice %1094 {offsets = [3, 0], sizes = [4, 16], strides = [1, 1]} : vector<10x16xf32> to vector<4x16xf32>
    %1129 = vector.broadcast %1127 : f32 to vector<4x16xf32>
    %1130 = arith.mulf %1129, %1128 : vector<4x16xf32>
    %1131 = arith.addf %1126, %1130 : vector<4x16xf32>
    %c2_447 = arith.constant 2 : index
    %c52_448 = arith.constant 52 : index
    %1132 = memref.load %arg1[%c2_447, %c52_448] : memref<3x98xf32, #tpu.memory_space<smem>>
    %1133 = vector.extract_strided_slice %1096 {offsets = [3, 0], sizes = [4, 16], strides = [1, 1]} : vector<10x16xf32> to vector<4x16xf32>
    %1134 = vector.broadcast %1132 : f32 to vector<4x16xf32>
    %1135 = arith.mulf %1134, %1133 : vector<4x16xf32>
    %1136 = arith.addf %1131, %1135 : vector<4x16xf32>
    %c2_449 = arith.constant 2 : index
    %c4_450 = arith.constant 4 : index
    %1137 = memref.load %arg1[%c2_449, %c4_450] : memref<3x98xf32, #tpu.memory_space<smem>>
    %1138 = vector.extract_strided_slice %1094 {offsets = [4, 0], sizes = [4, 16], strides = [1, 1]} : vector<10x16xf32> to vector<4x16xf32>
    %1139 = vector.broadcast %1137 : f32 to vector<4x16xf32>
    %1140 = arith.mulf %1139, %1138 : vector<4x16xf32>
    %1141 = arith.addf %1136, %1140 : vector<4x16xf32>
    %c2_451 = arith.constant 2 : index
    %c53_452 = arith.constant 53 : index
    %1142 = memref.load %arg1[%c2_451, %c53_452] : memref<3x98xf32, #tpu.memory_space<smem>>
    %1143 = vector.extract_strided_slice %1096 {offsets = [4, 0], sizes = [4, 16], strides = [1, 1]} : vector<10x16xf32> to vector<4x16xf32>
    %1144 = vector.broadcast %1142 : f32 to vector<4x16xf32>
    %1145 = arith.mulf %1144, %1143 : vector<4x16xf32>
    %1146 = arith.addf %1141, %1145 : vector<4x16xf32>
    %c2_453 = arith.constant 2 : index
    %c5_454 = arith.constant 5 : index
    %1147 = memref.load %arg1[%c2_453, %c5_454] : memref<3x98xf32, #tpu.memory_space<smem>>
    %1148 = vector.extract_strided_slice %1094 {offsets = [5, 0], sizes = [4, 16], strides = [1, 1]} : vector<10x16xf32> to vector<4x16xf32>
    %1149 = vector.broadcast %1147 : f32 to vector<4x16xf32>
    %1150 = arith.mulf %1149, %1148 : vector<4x16xf32>
    %1151 = arith.addf %1146, %1150 : vector<4x16xf32>
    %c2_455 = arith.constant 2 : index
    %c54_456 = arith.constant 54 : index
    %1152 = memref.load %arg1[%c2_455, %c54_456] : memref<3x98xf32, #tpu.memory_space<smem>>
    %1153 = vector.extract_strided_slice %1096 {offsets = [5, 0], sizes = [4, 16], strides = [1, 1]} : vector<10x16xf32> to vector<4x16xf32>
    %1154 = vector.broadcast %1152 : f32 to vector<4x16xf32>
    %1155 = arith.mulf %1154, %1153 : vector<4x16xf32>
    %1156 = arith.addf %1151, %1155 : vector<4x16xf32>
    %c2_457 = arith.constant 2 : index
    %c6_458 = arith.constant 6 : index
    %1157 = memref.load %arg1[%c2_457, %c6_458] : memref<3x98xf32, #tpu.memory_space<smem>>
    %1158 = vector.extract_strided_slice %1094 {offsets = [6, 0], sizes = [4, 16], strides = [1, 1]} : vector<10x16xf32> to vector<4x16xf32>
    %1159 = vector.broadcast %1157 : f32 to vector<4x16xf32>
    %1160 = arith.mulf %1159, %1158 : vector<4x16xf32>
    %1161 = arith.addf %1156, %1160 : vector<4x16xf32>
    %c2_459 = arith.constant 2 : index
    %c55_460 = arith.constant 55 : index
    %1162 = memref.load %arg1[%c2_459, %c55_460] : memref<3x98xf32, #tpu.memory_space<smem>>
    %1163 = vector.extract_strided_slice %1096 {offsets = [6, 0], sizes = [4, 16], strides = [1, 1]} : vector<10x16xf32> to vector<4x16xf32>
    %1164 = vector.broadcast %1162 : f32 to vector<4x16xf32>
    %1165 = arith.mulf %1164, %1163 : vector<4x16xf32>
    %1166 = arith.addf %1161, %1165 : vector<4x16xf32>
    %c0_461 = arith.constant 0 : index
    %c0_462 = arith.constant 0 : index
    %c1_463 = arith.constant 1 : index
    %1167 = vector.load %arg7[%c0_461, %c0_462, %c1_463] : memref<2x10x22xf32, #tpu.memory_space<vmem>>, vector<1x10x16xf32>
    %1168 = vector.shape_cast %1167 : vector<1x10x16xf32> to vector<10x16xf32>
    %c1_464 = arith.constant 1 : index
    %c0_465 = arith.constant 0 : index
    %c1_466 = arith.constant 1 : index
    %1169 = vector.load %arg7[%c1_464, %c0_465, %c1_466] : memref<2x10x22xf32, #tpu.memory_space<vmem>>, vector<1x10x16xf32>
    %1170 = vector.shape_cast %1169 : vector<1x10x16xf32> to vector<10x16xf32>
    %c2_467 = arith.constant 2 : index
    %c7_468 = arith.constant 7 : index
    %1171 = memref.load %arg1[%c2_467, %c7_468] : memref<3x98xf32, #tpu.memory_space<smem>>
    %1172 = vector.extract_strided_slice %1168 {offsets = [0, 0], sizes = [4, 16], strides = [1, 1]} : vector<10x16xf32> to vector<4x16xf32>
    %1173 = vector.broadcast %1171 : f32 to vector<4x16xf32>
    %1174 = arith.mulf %1173, %1172 : vector<4x16xf32>
    %1175 = arith.addf %1166, %1174 : vector<4x16xf32>
    %c2_469 = arith.constant 2 : index
    %c56_470 = arith.constant 56 : index
    %1176 = memref.load %arg1[%c2_469, %c56_470] : memref<3x98xf32, #tpu.memory_space<smem>>
    %1177 = vector.extract_strided_slice %1170 {offsets = [0, 0], sizes = [4, 16], strides = [1, 1]} : vector<10x16xf32> to vector<4x16xf32>
    %1178 = vector.broadcast %1176 : f32 to vector<4x16xf32>
    %1179 = arith.mulf %1178, %1177 : vector<4x16xf32>
    %1180 = arith.addf %1175, %1179 : vector<4x16xf32>
    %c2_471 = arith.constant 2 : index
    %c8_472 = arith.constant 8 : index
    %1181 = memref.load %arg1[%c2_471, %c8_472] : memref<3x98xf32, #tpu.memory_space<smem>>
    %1182 = vector.extract_strided_slice %1168 {offsets = [1, 0], sizes = [4, 16], strides = [1, 1]} : vector<10x16xf32> to vector<4x16xf32>
    %1183 = vector.broadcast %1181 : f32 to vector<4x16xf32>
    %1184 = arith.mulf %1183, %1182 : vector<4x16xf32>
    %1185 = arith.addf %1180, %1184 : vector<4x16xf32>
    %c2_473 = arith.constant 2 : index
    %c57_474 = arith.constant 57 : index
    %1186 = memref.load %arg1[%c2_473, %c57_474] : memref<3x98xf32, #tpu.memory_space<smem>>
    %1187 = vector.extract_strided_slice %1170 {offsets = [1, 0], sizes = [4, 16], strides = [1, 1]} : vector<10x16xf32> to vector<4x16xf32>
    %1188 = vector.broadcast %1186 : f32 to vector<4x16xf32>
    %1189 = arith.mulf %1188, %1187 : vector<4x16xf32>
    %1190 = arith.addf %1185, %1189 : vector<4x16xf32>
    %c2_475 = arith.constant 2 : index
    %c9_476 = arith.constant 9 : index
    %1191 = memref.load %arg1[%c2_475, %c9_476] : memref<3x98xf32, #tpu.memory_space<smem>>
    %1192 = vector.extract_strided_slice %1168 {offsets = [2, 0], sizes = [4, 16], strides = [1, 1]} : vector<10x16xf32> to vector<4x16xf32>
    %1193 = vector.broadcast %1191 : f32 to vector<4x16xf32>
    %1194 = arith.mulf %1193, %1192 : vector<4x16xf32>
    %1195 = arith.addf %1190, %1194 : vector<4x16xf32>
    %c2_477 = arith.constant 2 : index
    %c58_478 = arith.constant 58 : index
    %1196 = memref.load %arg1[%c2_477, %c58_478] : memref<3x98xf32, #tpu.memory_space<smem>>
    %1197 = vector.extract_strided_slice %1170 {offsets = [2, 0], sizes = [4, 16], strides = [1, 1]} : vector<10x16xf32> to vector<4x16xf32>
    %1198 = vector.broadcast %1196 : f32 to vector<4x16xf32>
    %1199 = arith.mulf %1198, %1197 : vector<4x16xf32>
    %1200 = arith.addf %1195, %1199 : vector<4x16xf32>
    %c2_479 = arith.constant 2 : index
    %c10_480 = arith.constant 10 : index
    %1201 = memref.load %arg1[%c2_479, %c10_480] : memref<3x98xf32, #tpu.memory_space<smem>>
    %1202 = vector.extract_strided_slice %1168 {offsets = [3, 0], sizes = [4, 16], strides = [1, 1]} : vector<10x16xf32> to vector<4x16xf32>
    %1203 = vector.broadcast %1201 : f32 to vector<4x16xf32>
    %1204 = arith.mulf %1203, %1202 : vector<4x16xf32>
    %1205 = arith.addf %1200, %1204 : vector<4x16xf32>
    %c2_481 = arith.constant 2 : index
    %c59_482 = arith.constant 59 : index
    %1206 = memref.load %arg1[%c2_481, %c59_482] : memref<3x98xf32, #tpu.memory_space<smem>>
    %1207 = vector.extract_strided_slice %1170 {offsets = [3, 0], sizes = [4, 16], strides = [1, 1]} : vector<10x16xf32> to vector<4x16xf32>
    %1208 = vector.broadcast %1206 : f32 to vector<4x16xf32>
    %1209 = arith.mulf %1208, %1207 : vector<4x16xf32>
    %1210 = arith.addf %1205, %1209 : vector<4x16xf32>
    %c2_483 = arith.constant 2 : index
    %c11_484 = arith.constant 11 : index
    %1211 = memref.load %arg1[%c2_483, %c11_484] : memref<3x98xf32, #tpu.memory_space<smem>>
    %1212 = vector.extract_strided_slice %1168 {offsets = [4, 0], sizes = [4, 16], strides = [1, 1]} : vector<10x16xf32> to vector<4x16xf32>
    %1213 = vector.broadcast %1211 : f32 to vector<4x16xf32>
    %1214 = arith.mulf %1213, %1212 : vector<4x16xf32>
    %1215 = arith.addf %1210, %1214 : vector<4x16xf32>
    %c2_485 = arith.constant 2 : index
    %c60_486 = arith.constant 60 : index
    %1216 = memref.load %arg1[%c2_485, %c60_486] : memref<3x98xf32, #tpu.memory_space<smem>>
    %1217 = vector.extract_strided_slice %1170 {offsets = [4, 0], sizes = [4, 16], strides = [1, 1]} : vector<10x16xf32> to vector<4x16xf32>
    %1218 = vector.broadcast %1216 : f32 to vector<4x16xf32>
    %1219 = arith.mulf %1218, %1217 : vector<4x16xf32>
    %1220 = arith.addf %1215, %1219 : vector<4x16xf32>
    %c2_487 = arith.constant 2 : index
    %c12_488 = arith.constant 12 : index
    %1221 = memref.load %arg1[%c2_487, %c12_488] : memref<3x98xf32, #tpu.memory_space<smem>>
    %1222 = vector.extract_strided_slice %1168 {offsets = [5, 0], sizes = [4, 16], strides = [1, 1]} : vector<10x16xf32> to vector<4x16xf32>
    %1223 = vector.broadcast %1221 : f32 to vector<4x16xf32>
    %1224 = arith.mulf %1223, %1222 : vector<4x16xf32>
    %1225 = arith.addf %1220, %1224 : vector<4x16xf32>
    %c2_489 = arith.constant 2 : index
    %c61_490 = arith.constant 61 : index
    %1226 = memref.load %arg1[%c2_489, %c61_490] : memref<3x98xf32, #tpu.memory_space<smem>>
    %1227 = vector.extract_strided_slice %1170 {offsets = [5, 0], sizes = [4, 16], strides = [1, 1]} : vector<10x16xf32> to vector<4x16xf32>
    %1228 = vector.broadcast %1226 : f32 to vector<4x16xf32>
    %1229 = arith.mulf %1228, %1227 : vector<4x16xf32>
    %1230 = arith.addf %1225, %1229 : vector<4x16xf32>
    %c2_491 = arith.constant 2 : index
    %c13_492 = arith.constant 13 : index
    %1231 = memref.load %arg1[%c2_491, %c13_492] : memref<3x98xf32, #tpu.memory_space<smem>>
    %1232 = vector.extract_strided_slice %1168 {offsets = [6, 0], sizes = [4, 16], strides = [1, 1]} : vector<10x16xf32> to vector<4x16xf32>
    %1233 = vector.broadcast %1231 : f32 to vector<4x16xf32>
    %1234 = arith.mulf %1233, %1232 : vector<4x16xf32>
    %1235 = arith.addf %1230, %1234 : vector<4x16xf32>
    %c2_493 = arith.constant 2 : index
    %c62_494 = arith.constant 62 : index
    %1236 = memref.load %arg1[%c2_493, %c62_494] : memref<3x98xf32, #tpu.memory_space<smem>>
    %1237 = vector.extract_strided_slice %1170 {offsets = [6, 0], sizes = [4, 16], strides = [1, 1]} : vector<10x16xf32> to vector<4x16xf32>
    %1238 = vector.broadcast %1236 : f32 to vector<4x16xf32>
    %1239 = arith.mulf %1238, %1237 : vector<4x16xf32>
    %1240 = arith.addf %1235, %1239 : vector<4x16xf32>
    %c0_495 = arith.constant 0 : index
    %c0_496 = arith.constant 0 : index
    %c2_497 = arith.constant 2 : index
    %1241 = vector.load %arg7[%c0_495, %c0_496, %c2_497] : memref<2x10x22xf32, #tpu.memory_space<vmem>>, vector<1x10x16xf32>
    %1242 = vector.shape_cast %1241 : vector<1x10x16xf32> to vector<10x16xf32>
    %c1_498 = arith.constant 1 : index
    %c0_499 = arith.constant 0 : index
    %c2_500 = arith.constant 2 : index
    %1243 = vector.load %arg7[%c1_498, %c0_499, %c2_500] : memref<2x10x22xf32, #tpu.memory_space<vmem>>, vector<1x10x16xf32>
    %1244 = vector.shape_cast %1243 : vector<1x10x16xf32> to vector<10x16xf32>
    %c2_501 = arith.constant 2 : index
    %c14_502 = arith.constant 14 : index
    %1245 = memref.load %arg1[%c2_501, %c14_502] : memref<3x98xf32, #tpu.memory_space<smem>>
    %1246 = vector.extract_strided_slice %1242 {offsets = [0, 0], sizes = [4, 16], strides = [1, 1]} : vector<10x16xf32> to vector<4x16xf32>
    %1247 = vector.broadcast %1245 : f32 to vector<4x16xf32>
    %1248 = arith.mulf %1247, %1246 : vector<4x16xf32>
    %1249 = arith.addf %1240, %1248 : vector<4x16xf32>
    %c2_503 = arith.constant 2 : index
    %c63_504 = arith.constant 63 : index
    %1250 = memref.load %arg1[%c2_503, %c63_504] : memref<3x98xf32, #tpu.memory_space<smem>>
    %1251 = vector.extract_strided_slice %1244 {offsets = [0, 0], sizes = [4, 16], strides = [1, 1]} : vector<10x16xf32> to vector<4x16xf32>
    %1252 = vector.broadcast %1250 : f32 to vector<4x16xf32>
    %1253 = arith.mulf %1252, %1251 : vector<4x16xf32>
    %1254 = arith.addf %1249, %1253 : vector<4x16xf32>
    %c2_505 = arith.constant 2 : index
    %c15_506 = arith.constant 15 : index
    %1255 = memref.load %arg1[%c2_505, %c15_506] : memref<3x98xf32, #tpu.memory_space<smem>>
    %1256 = vector.extract_strided_slice %1242 {offsets = [1, 0], sizes = [4, 16], strides = [1, 1]} : vector<10x16xf32> to vector<4x16xf32>
    %1257 = vector.broadcast %1255 : f32 to vector<4x16xf32>
    %1258 = arith.mulf %1257, %1256 : vector<4x16xf32>
    %1259 = arith.addf %1254, %1258 : vector<4x16xf32>
    %c2_507 = arith.constant 2 : index
    %c64_508 = arith.constant 64 : index
    %1260 = memref.load %arg1[%c2_507, %c64_508] : memref<3x98xf32, #tpu.memory_space<smem>>
    %1261 = vector.extract_strided_slice %1244 {offsets = [1, 0], sizes = [4, 16], strides = [1, 1]} : vector<10x16xf32> to vector<4x16xf32>
    %1262 = vector.broadcast %1260 : f32 to vector<4x16xf32>
    %1263 = arith.mulf %1262, %1261 : vector<4x16xf32>
    %1264 = arith.addf %1259, %1263 : vector<4x16xf32>
    %c2_509 = arith.constant 2 : index
    %c16_510 = arith.constant 16 : index
    %1265 = memref.load %arg1[%c2_509, %c16_510] : memref<3x98xf32, #tpu.memory_space<smem>>
    %1266 = vector.extract_strided_slice %1242 {offsets = [2, 0], sizes = [4, 16], strides = [1, 1]} : vector<10x16xf32> to vector<4x16xf32>
    %1267 = vector.broadcast %1265 : f32 to vector<4x16xf32>
    %1268 = arith.mulf %1267, %1266 : vector<4x16xf32>
    %1269 = arith.addf %1264, %1268 : vector<4x16xf32>
    %c2_511 = arith.constant 2 : index
    %c65_512 = arith.constant 65 : index
    %1270 = memref.load %arg1[%c2_511, %c65_512] : memref<3x98xf32, #tpu.memory_space<smem>>
    %1271 = vector.extract_strided_slice %1244 {offsets = [2, 0], sizes = [4, 16], strides = [1, 1]} : vector<10x16xf32> to vector<4x16xf32>
    %1272 = vector.broadcast %1270 : f32 to vector<4x16xf32>
    %1273 = arith.mulf %1272, %1271 : vector<4x16xf32>
    %1274 = arith.addf %1269, %1273 : vector<4x16xf32>
    %c2_513 = arith.constant 2 : index
    %c17_514 = arith.constant 17 : index
    %1275 = memref.load %arg1[%c2_513, %c17_514] : memref<3x98xf32, #tpu.memory_space<smem>>
    %1276 = vector.extract_strided_slice %1242 {offsets = [3, 0], sizes = [4, 16], strides = [1, 1]} : vector<10x16xf32> to vector<4x16xf32>
    %1277 = vector.broadcast %1275 : f32 to vector<4x16xf32>
    %1278 = arith.mulf %1277, %1276 : vector<4x16xf32>
    %1279 = arith.addf %1274, %1278 : vector<4x16xf32>
    %c2_515 = arith.constant 2 : index
    %c66_516 = arith.constant 66 : index
    %1280 = memref.load %arg1[%c2_515, %c66_516] : memref<3x98xf32, #tpu.memory_space<smem>>
    %1281 = vector.extract_strided_slice %1244 {offsets = [3, 0], sizes = [4, 16], strides = [1, 1]} : vector<10x16xf32> to vector<4x16xf32>
    %1282 = vector.broadcast %1280 : f32 to vector<4x16xf32>
    %1283 = arith.mulf %1282, %1281 : vector<4x16xf32>
    %1284 = arith.addf %1279, %1283 : vector<4x16xf32>
    %c2_517 = arith.constant 2 : index
    %c18_518 = arith.constant 18 : index
    %1285 = memref.load %arg1[%c2_517, %c18_518] : memref<3x98xf32, #tpu.memory_space<smem>>
    %1286 = vector.extract_strided_slice %1242 {offsets = [4, 0], sizes = [4, 16], strides = [1, 1]} : vector<10x16xf32> to vector<4x16xf32>
    %1287 = vector.broadcast %1285 : f32 to vector<4x16xf32>
    %1288 = arith.mulf %1287, %1286 : vector<4x16xf32>
    %1289 = arith.addf %1284, %1288 : vector<4x16xf32>
    %c2_519 = arith.constant 2 : index
    %c67_520 = arith.constant 67 : index
    %1290 = memref.load %arg1[%c2_519, %c67_520] : memref<3x98xf32, #tpu.memory_space<smem>>
    %1291 = vector.extract_strided_slice %1244 {offsets = [4, 0], sizes = [4, 16], strides = [1, 1]} : vector<10x16xf32> to vector<4x16xf32>
    %1292 = vector.broadcast %1290 : f32 to vector<4x16xf32>
    %1293 = arith.mulf %1292, %1291 : vector<4x16xf32>
    %1294 = arith.addf %1289, %1293 : vector<4x16xf32>
    %c2_521 = arith.constant 2 : index
    %c19_522 = arith.constant 19 : index
    %1295 = memref.load %arg1[%c2_521, %c19_522] : memref<3x98xf32, #tpu.memory_space<smem>>
    %1296 = vector.extract_strided_slice %1242 {offsets = [5, 0], sizes = [4, 16], strides = [1, 1]} : vector<10x16xf32> to vector<4x16xf32>
    %1297 = vector.broadcast %1295 : f32 to vector<4x16xf32>
    %1298 = arith.mulf %1297, %1296 : vector<4x16xf32>
    %1299 = arith.addf %1294, %1298 : vector<4x16xf32>
    %c2_523 = arith.constant 2 : index
    %c68_524 = arith.constant 68 : index
    %1300 = memref.load %arg1[%c2_523, %c68_524] : memref<3x98xf32, #tpu.memory_space<smem>>
    %1301 = vector.extract_strided_slice %1244 {offsets = [5, 0], sizes = [4, 16], strides = [1, 1]} : vector<10x16xf32> to vector<4x16xf32>
    %1302 = vector.broadcast %1300 : f32 to vector<4x16xf32>
    %1303 = arith.mulf %1302, %1301 : vector<4x16xf32>
    %1304 = arith.addf %1299, %1303 : vector<4x16xf32>
    %c2_525 = arith.constant 2 : index
    %c20_526 = arith.constant 20 : index
    %1305 = memref.load %arg1[%c2_525, %c20_526] : memref<3x98xf32, #tpu.memory_space<smem>>
    %1306 = vector.extract_strided_slice %1242 {offsets = [6, 0], sizes = [4, 16], strides = [1, 1]} : vector<10x16xf32> to vector<4x16xf32>
    %1307 = vector.broadcast %1305 : f32 to vector<4x16xf32>
    %1308 = arith.mulf %1307, %1306 : vector<4x16xf32>
    %1309 = arith.addf %1304, %1308 : vector<4x16xf32>
    %c2_527 = arith.constant 2 : index
    %c69_528 = arith.constant 69 : index
    %1310 = memref.load %arg1[%c2_527, %c69_528] : memref<3x98xf32, #tpu.memory_space<smem>>
    %1311 = vector.extract_strided_slice %1244 {offsets = [6, 0], sizes = [4, 16], strides = [1, 1]} : vector<10x16xf32> to vector<4x16xf32>
    %1312 = vector.broadcast %1310 : f32 to vector<4x16xf32>
    %1313 = arith.mulf %1312, %1311 : vector<4x16xf32>
    %1314 = arith.addf %1309, %1313 : vector<4x16xf32>
    %c0_529 = arith.constant 0 : index
    %c0_530 = arith.constant 0 : index
    %c3_531 = arith.constant 3 : index
    %1315 = vector.load %arg7[%c0_529, %c0_530, %c3_531] : memref<2x10x22xf32, #tpu.memory_space<vmem>>, vector<1x10x16xf32>
    %1316 = vector.shape_cast %1315 : vector<1x10x16xf32> to vector<10x16xf32>
    %c1_532 = arith.constant 1 : index
    %c0_533 = arith.constant 0 : index
    %c3_534 = arith.constant 3 : index
    %1317 = vector.load %arg7[%c1_532, %c0_533, %c3_534] : memref<2x10x22xf32, #tpu.memory_space<vmem>>, vector<1x10x16xf32>
    %1318 = vector.shape_cast %1317 : vector<1x10x16xf32> to vector<10x16xf32>
    %c2_535 = arith.constant 2 : index
    %c21_536 = arith.constant 21 : index
    %1319 = memref.load %arg1[%c2_535, %c21_536] : memref<3x98xf32, #tpu.memory_space<smem>>
    %1320 = vector.extract_strided_slice %1316 {offsets = [0, 0], sizes = [4, 16], strides = [1, 1]} : vector<10x16xf32> to vector<4x16xf32>
    %1321 = vector.broadcast %1319 : f32 to vector<4x16xf32>
    %1322 = arith.mulf %1321, %1320 : vector<4x16xf32>
    %1323 = arith.addf %1314, %1322 : vector<4x16xf32>
    %c2_537 = arith.constant 2 : index
    %c70_538 = arith.constant 70 : index
    %1324 = memref.load %arg1[%c2_537, %c70_538] : memref<3x98xf32, #tpu.memory_space<smem>>
    %1325 = vector.extract_strided_slice %1318 {offsets = [0, 0], sizes = [4, 16], strides = [1, 1]} : vector<10x16xf32> to vector<4x16xf32>
    %1326 = vector.broadcast %1324 : f32 to vector<4x16xf32>
    %1327 = arith.mulf %1326, %1325 : vector<4x16xf32>
    %1328 = arith.addf %1323, %1327 : vector<4x16xf32>
    %c2_539 = arith.constant 2 : index
    %c22_540 = arith.constant 22 : index
    %1329 = memref.load %arg1[%c2_539, %c22_540] : memref<3x98xf32, #tpu.memory_space<smem>>
    %1330 = vector.extract_strided_slice %1316 {offsets = [1, 0], sizes = [4, 16], strides = [1, 1]} : vector<10x16xf32> to vector<4x16xf32>
    %1331 = vector.broadcast %1329 : f32 to vector<4x16xf32>
    %1332 = arith.mulf %1331, %1330 : vector<4x16xf32>
    %1333 = arith.addf %1328, %1332 : vector<4x16xf32>
    %c2_541 = arith.constant 2 : index
    %c71_542 = arith.constant 71 : index
    %1334 = memref.load %arg1[%c2_541, %c71_542] : memref<3x98xf32, #tpu.memory_space<smem>>
    %1335 = vector.extract_strided_slice %1318 {offsets = [1, 0], sizes = [4, 16], strides = [1, 1]} : vector<10x16xf32> to vector<4x16xf32>
    %1336 = vector.broadcast %1334 : f32 to vector<4x16xf32>
    %1337 = arith.mulf %1336, %1335 : vector<4x16xf32>
    %1338 = arith.addf %1333, %1337 : vector<4x16xf32>
    %c2_543 = arith.constant 2 : index
    %c23_544 = arith.constant 23 : index
    %1339 = memref.load %arg1[%c2_543, %c23_544] : memref<3x98xf32, #tpu.memory_space<smem>>
    %1340 = vector.extract_strided_slice %1316 {offsets = [2, 0], sizes = [4, 16], strides = [1, 1]} : vector<10x16xf32> to vector<4x16xf32>
    %1341 = vector.broadcast %1339 : f32 to vector<4x16xf32>
    %1342 = arith.mulf %1341, %1340 : vector<4x16xf32>
    %1343 = arith.addf %1338, %1342 : vector<4x16xf32>
    %c2_545 = arith.constant 2 : index
    %c72_546 = arith.constant 72 : index
    %1344 = memref.load %arg1[%c2_545, %c72_546] : memref<3x98xf32, #tpu.memory_space<smem>>
    %1345 = vector.extract_strided_slice %1318 {offsets = [2, 0], sizes = [4, 16], strides = [1, 1]} : vector<10x16xf32> to vector<4x16xf32>
    %1346 = vector.broadcast %1344 : f32 to vector<4x16xf32>
    %1347 = arith.mulf %1346, %1345 : vector<4x16xf32>
    %1348 = arith.addf %1343, %1347 : vector<4x16xf32>
    %c2_547 = arith.constant 2 : index
    %c24_548 = arith.constant 24 : index
    %1349 = memref.load %arg1[%c2_547, %c24_548] : memref<3x98xf32, #tpu.memory_space<smem>>
    %1350 = vector.extract_strided_slice %1316 {offsets = [3, 0], sizes = [4, 16], strides = [1, 1]} : vector<10x16xf32> to vector<4x16xf32>
    %1351 = vector.broadcast %1349 : f32 to vector<4x16xf32>
    %1352 = arith.mulf %1351, %1350 : vector<4x16xf32>
    %1353 = arith.addf %1348, %1352 : vector<4x16xf32>
    %c2_549 = arith.constant 2 : index
    %c73_550 = arith.constant 73 : index
    %1354 = memref.load %arg1[%c2_549, %c73_550] : memref<3x98xf32, #tpu.memory_space<smem>>
    %1355 = vector.extract_strided_slice %1318 {offsets = [3, 0], sizes = [4, 16], strides = [1, 1]} : vector<10x16xf32> to vector<4x16xf32>
    %1356 = vector.broadcast %1354 : f32 to vector<4x16xf32>
    %1357 = arith.mulf %1356, %1355 : vector<4x16xf32>
    %1358 = arith.addf %1353, %1357 : vector<4x16xf32>
    %c2_551 = arith.constant 2 : index
    %c25_552 = arith.constant 25 : index
    %1359 = memref.load %arg1[%c2_551, %c25_552] : memref<3x98xf32, #tpu.memory_space<smem>>
    %1360 = vector.extract_strided_slice %1316 {offsets = [4, 0], sizes = [4, 16], strides = [1, 1]} : vector<10x16xf32> to vector<4x16xf32>
    %1361 = vector.broadcast %1359 : f32 to vector<4x16xf32>
    %1362 = arith.mulf %1361, %1360 : vector<4x16xf32>
    %1363 = arith.addf %1358, %1362 : vector<4x16xf32>
    %c2_553 = arith.constant 2 : index
    %c74_554 = arith.constant 74 : index
    %1364 = memref.load %arg1[%c2_553, %c74_554] : memref<3x98xf32, #tpu.memory_space<smem>>
    %1365 = vector.extract_strided_slice %1318 {offsets = [4, 0], sizes = [4, 16], strides = [1, 1]} : vector<10x16xf32> to vector<4x16xf32>
    %1366 = vector.broadcast %1364 : f32 to vector<4x16xf32>
    %1367 = arith.mulf %1366, %1365 : vector<4x16xf32>
    %1368 = arith.addf %1363, %1367 : vector<4x16xf32>
    %c2_555 = arith.constant 2 : index
    %c26_556 = arith.constant 26 : index
    %1369 = memref.load %arg1[%c2_555, %c26_556] : memref<3x98xf32, #tpu.memory_space<smem>>
    %1370 = vector.extract_strided_slice %1316 {offsets = [5, 0], sizes = [4, 16], strides = [1, 1]} : vector<10x16xf32> to vector<4x16xf32>
    %1371 = vector.broadcast %1369 : f32 to vector<4x16xf32>
    %1372 = arith.mulf %1371, %1370 : vector<4x16xf32>
    %1373 = arith.addf %1368, %1372 : vector<4x16xf32>
    %c2_557 = arith.constant 2 : index
    %c75_558 = arith.constant 75 : index
    %1374 = memref.load %arg1[%c2_557, %c75_558] : memref<3x98xf32, #tpu.memory_space<smem>>
    %1375 = vector.extract_strided_slice %1318 {offsets = [5, 0], sizes = [4, 16], strides = [1, 1]} : vector<10x16xf32> to vector<4x16xf32>
    %1376 = vector.broadcast %1374 : f32 to vector<4x16xf32>
    %1377 = arith.mulf %1376, %1375 : vector<4x16xf32>
    %1378 = arith.addf %1373, %1377 : vector<4x16xf32>
    %c2_559 = arith.constant 2 : index
    %c27_560 = arith.constant 27 : index
    %1379 = memref.load %arg1[%c2_559, %c27_560] : memref<3x98xf32, #tpu.memory_space<smem>>
    %1380 = vector.extract_strided_slice %1316 {offsets = [6, 0], sizes = [4, 16], strides = [1, 1]} : vector<10x16xf32> to vector<4x16xf32>
    %1381 = vector.broadcast %1379 : f32 to vector<4x16xf32>
    %1382 = arith.mulf %1381, %1380 : vector<4x16xf32>
    %1383 = arith.addf %1378, %1382 : vector<4x16xf32>
    %c2_561 = arith.constant 2 : index
    %c76_562 = arith.constant 76 : index
    %1384 = memref.load %arg1[%c2_561, %c76_562] : memref<3x98xf32, #tpu.memory_space<smem>>
    %1385 = vector.extract_strided_slice %1318 {offsets = [6, 0], sizes = [4, 16], strides = [1, 1]} : vector<10x16xf32> to vector<4x16xf32>
    %1386 = vector.broadcast %1384 : f32 to vector<4x16xf32>
    %1387 = arith.mulf %1386, %1385 : vector<4x16xf32>
    %1388 = arith.addf %1383, %1387 : vector<4x16xf32>
    %c0_563 = arith.constant 0 : index
    %c0_564 = arith.constant 0 : index
    %c4_565 = arith.constant 4 : index
    %1389 = vector.load %arg7[%c0_563, %c0_564, %c4_565] : memref<2x10x22xf32, #tpu.memory_space<vmem>>, vector<1x10x16xf32>
    %1390 = vector.shape_cast %1389 : vector<1x10x16xf32> to vector<10x16xf32>
    %c1_566 = arith.constant 1 : index
    %c0_567 = arith.constant 0 : index
    %c4_568 = arith.constant 4 : index
    %1391 = vector.load %arg7[%c1_566, %c0_567, %c4_568] : memref<2x10x22xf32, #tpu.memory_space<vmem>>, vector<1x10x16xf32>
    %1392 = vector.shape_cast %1391 : vector<1x10x16xf32> to vector<10x16xf32>
    %c2_569 = arith.constant 2 : index
    %c28_570 = arith.constant 28 : index
    %1393 = memref.load %arg1[%c2_569, %c28_570] : memref<3x98xf32, #tpu.memory_space<smem>>
    %1394 = vector.extract_strided_slice %1390 {offsets = [0, 0], sizes = [4, 16], strides = [1, 1]} : vector<10x16xf32> to vector<4x16xf32>
    %1395 = vector.broadcast %1393 : f32 to vector<4x16xf32>
    %1396 = arith.mulf %1395, %1394 : vector<4x16xf32>
    %1397 = arith.addf %1388, %1396 : vector<4x16xf32>
    %c2_571 = arith.constant 2 : index
    %c77_572 = arith.constant 77 : index
    %1398 = memref.load %arg1[%c2_571, %c77_572] : memref<3x98xf32, #tpu.memory_space<smem>>
    %1399 = vector.extract_strided_slice %1392 {offsets = [0, 0], sizes = [4, 16], strides = [1, 1]} : vector<10x16xf32> to vector<4x16xf32>
    %1400 = vector.broadcast %1398 : f32 to vector<4x16xf32>
    %1401 = arith.mulf %1400, %1399 : vector<4x16xf32>
    %1402 = arith.addf %1397, %1401 : vector<4x16xf32>
    %c2_573 = arith.constant 2 : index
    %c29_574 = arith.constant 29 : index
    %1403 = memref.load %arg1[%c2_573, %c29_574] : memref<3x98xf32, #tpu.memory_space<smem>>
    %1404 = vector.extract_strided_slice %1390 {offsets = [1, 0], sizes = [4, 16], strides = [1, 1]} : vector<10x16xf32> to vector<4x16xf32>
    %1405 = vector.broadcast %1403 : f32 to vector<4x16xf32>
    %1406 = arith.mulf %1405, %1404 : vector<4x16xf32>
    %1407 = arith.addf %1402, %1406 : vector<4x16xf32>
    %c2_575 = arith.constant 2 : index
    %c78_576 = arith.constant 78 : index
    %1408 = memref.load %arg1[%c2_575, %c78_576] : memref<3x98xf32, #tpu.memory_space<smem>>
    %1409 = vector.extract_strided_slice %1392 {offsets = [1, 0], sizes = [4, 16], strides = [1, 1]} : vector<10x16xf32> to vector<4x16xf32>
    %1410 = vector.broadcast %1408 : f32 to vector<4x16xf32>
    %1411 = arith.mulf %1410, %1409 : vector<4x16xf32>
    %1412 = arith.addf %1407, %1411 : vector<4x16xf32>
    %c2_577 = arith.constant 2 : index
    %c30_578 = arith.constant 30 : index
    %1413 = memref.load %arg1[%c2_577, %c30_578] : memref<3x98xf32, #tpu.memory_space<smem>>
    %1414 = vector.extract_strided_slice %1390 {offsets = [2, 0], sizes = [4, 16], strides = [1, 1]} : vector<10x16xf32> to vector<4x16xf32>
    %1415 = vector.broadcast %1413 : f32 to vector<4x16xf32>
    %1416 = arith.mulf %1415, %1414 : vector<4x16xf32>
    %1417 = arith.addf %1412, %1416 : vector<4x16xf32>
    %c2_579 = arith.constant 2 : index
    %c79_580 = arith.constant 79 : index
    %1418 = memref.load %arg1[%c2_579, %c79_580] : memref<3x98xf32, #tpu.memory_space<smem>>
    %1419 = vector.extract_strided_slice %1392 {offsets = [2, 0], sizes = [4, 16], strides = [1, 1]} : vector<10x16xf32> to vector<4x16xf32>
    %1420 = vector.broadcast %1418 : f32 to vector<4x16xf32>
    %1421 = arith.mulf %1420, %1419 : vector<4x16xf32>
    %1422 = arith.addf %1417, %1421 : vector<4x16xf32>
    %c2_581 = arith.constant 2 : index
    %c31_582 = arith.constant 31 : index
    %1423 = memref.load %arg1[%c2_581, %c31_582] : memref<3x98xf32, #tpu.memory_space<smem>>
    %1424 = vector.extract_strided_slice %1390 {offsets = [3, 0], sizes = [4, 16], strides = [1, 1]} : vector<10x16xf32> to vector<4x16xf32>
    %1425 = vector.broadcast %1423 : f32 to vector<4x16xf32>
    %1426 = arith.mulf %1425, %1424 : vector<4x16xf32>
    %1427 = arith.addf %1422, %1426 : vector<4x16xf32>
    %c2_583 = arith.constant 2 : index
    %c80_584 = arith.constant 80 : index
    %1428 = memref.load %arg1[%c2_583, %c80_584] : memref<3x98xf32, #tpu.memory_space<smem>>
    %1429 = vector.extract_strided_slice %1392 {offsets = [3, 0], sizes = [4, 16], strides = [1, 1]} : vector<10x16xf32> to vector<4x16xf32>
    %1430 = vector.broadcast %1428 : f32 to vector<4x16xf32>
    %1431 = arith.mulf %1430, %1429 : vector<4x16xf32>
    %1432 = arith.addf %1427, %1431 : vector<4x16xf32>
    %c2_585 = arith.constant 2 : index
    %c32_586 = arith.constant 32 : index
    %1433 = memref.load %arg1[%c2_585, %c32_586] : memref<3x98xf32, #tpu.memory_space<smem>>
    %1434 = vector.extract_strided_slice %1390 {offsets = [4, 0], sizes = [4, 16], strides = [1, 1]} : vector<10x16xf32> to vector<4x16xf32>
    %1435 = vector.broadcast %1433 : f32 to vector<4x16xf32>
    %1436 = arith.mulf %1435, %1434 : vector<4x16xf32>
    %1437 = arith.addf %1432, %1436 : vector<4x16xf32>
    %c2_587 = arith.constant 2 : index
    %c81_588 = arith.constant 81 : index
    %1438 = memref.load %arg1[%c2_587, %c81_588] : memref<3x98xf32, #tpu.memory_space<smem>>
    %1439 = vector.extract_strided_slice %1392 {offsets = [4, 0], sizes = [4, 16], strides = [1, 1]} : vector<10x16xf32> to vector<4x16xf32>
    %1440 = vector.broadcast %1438 : f32 to vector<4x16xf32>
    %1441 = arith.mulf %1440, %1439 : vector<4x16xf32>
    %1442 = arith.addf %1437, %1441 : vector<4x16xf32>
    %c2_589 = arith.constant 2 : index
    %c33_590 = arith.constant 33 : index
    %1443 = memref.load %arg1[%c2_589, %c33_590] : memref<3x98xf32, #tpu.memory_space<smem>>
    %1444 = vector.extract_strided_slice %1390 {offsets = [5, 0], sizes = [4, 16], strides = [1, 1]} : vector<10x16xf32> to vector<4x16xf32>
    %1445 = vector.broadcast %1443 : f32 to vector<4x16xf32>
    %1446 = arith.mulf %1445, %1444 : vector<4x16xf32>
    %1447 = arith.addf %1442, %1446 : vector<4x16xf32>
    %c2_591 = arith.constant 2 : index
    %c82_592 = arith.constant 82 : index
    %1448 = memref.load %arg1[%c2_591, %c82_592] : memref<3x98xf32, #tpu.memory_space<smem>>
    %1449 = vector.extract_strided_slice %1392 {offsets = [5, 0], sizes = [4, 16], strides = [1, 1]} : vector<10x16xf32> to vector<4x16xf32>
    %1450 = vector.broadcast %1448 : f32 to vector<4x16xf32>
    %1451 = arith.mulf %1450, %1449 : vector<4x16xf32>
    %1452 = arith.addf %1447, %1451 : vector<4x16xf32>
    %c2_593 = arith.constant 2 : index
    %c34_594 = arith.constant 34 : index
    %1453 = memref.load %arg1[%c2_593, %c34_594] : memref<3x98xf32, #tpu.memory_space<smem>>
    %1454 = vector.extract_strided_slice %1390 {offsets = [6, 0], sizes = [4, 16], strides = [1, 1]} : vector<10x16xf32> to vector<4x16xf32>
    %1455 = vector.broadcast %1453 : f32 to vector<4x16xf32>
    %1456 = arith.mulf %1455, %1454 : vector<4x16xf32>
    %1457 = arith.addf %1452, %1456 : vector<4x16xf32>
    %c2_595 = arith.constant 2 : index
    %c83_596 = arith.constant 83 : index
    %1458 = memref.load %arg1[%c2_595, %c83_596] : memref<3x98xf32, #tpu.memory_space<smem>>
    %1459 = vector.extract_strided_slice %1392 {offsets = [6, 0], sizes = [4, 16], strides = [1, 1]} : vector<10x16xf32> to vector<4x16xf32>
    %1460 = vector.broadcast %1458 : f32 to vector<4x16xf32>
    %1461 = arith.mulf %1460, %1459 : vector<4x16xf32>
    %1462 = arith.addf %1457, %1461 : vector<4x16xf32>
    %c0_597 = arith.constant 0 : index
    %c0_598 = arith.constant 0 : index
    %c5_599 = arith.constant 5 : index
    %1463 = vector.load %arg7[%c0_597, %c0_598, %c5_599] : memref<2x10x22xf32, #tpu.memory_space<vmem>>, vector<1x10x16xf32>
    %1464 = vector.shape_cast %1463 : vector<1x10x16xf32> to vector<10x16xf32>
    %c1_600 = arith.constant 1 : index
    %c0_601 = arith.constant 0 : index
    %c5_602 = arith.constant 5 : index
    %1465 = vector.load %arg7[%c1_600, %c0_601, %c5_602] : memref<2x10x22xf32, #tpu.memory_space<vmem>>, vector<1x10x16xf32>
    %1466 = vector.shape_cast %1465 : vector<1x10x16xf32> to vector<10x16xf32>
    %c2_603 = arith.constant 2 : index
    %c35_604 = arith.constant 35 : index
    %1467 = memref.load %arg1[%c2_603, %c35_604] : memref<3x98xf32, #tpu.memory_space<smem>>
    %1468 = vector.extract_strided_slice %1464 {offsets = [0, 0], sizes = [4, 16], strides = [1, 1]} : vector<10x16xf32> to vector<4x16xf32>
    %1469 = vector.broadcast %1467 : f32 to vector<4x16xf32>
    %1470 = arith.mulf %1469, %1468 : vector<4x16xf32>
    %1471 = arith.addf %1462, %1470 : vector<4x16xf32>
    %c2_605 = arith.constant 2 : index
    %c84_606 = arith.constant 84 : index
    %1472 = memref.load %arg1[%c2_605, %c84_606] : memref<3x98xf32, #tpu.memory_space<smem>>
    %1473 = vector.extract_strided_slice %1466 {offsets = [0, 0], sizes = [4, 16], strides = [1, 1]} : vector<10x16xf32> to vector<4x16xf32>
    %1474 = vector.broadcast %1472 : f32 to vector<4x16xf32>
    %1475 = arith.mulf %1474, %1473 : vector<4x16xf32>
    %1476 = arith.addf %1471, %1475 : vector<4x16xf32>
    %c2_607 = arith.constant 2 : index
    %c36_608 = arith.constant 36 : index
    %1477 = memref.load %arg1[%c2_607, %c36_608] : memref<3x98xf32, #tpu.memory_space<smem>>
    %1478 = vector.extract_strided_slice %1464 {offsets = [1, 0], sizes = [4, 16], strides = [1, 1]} : vector<10x16xf32> to vector<4x16xf32>
    %1479 = vector.broadcast %1477 : f32 to vector<4x16xf32>
    %1480 = arith.mulf %1479, %1478 : vector<4x16xf32>
    %1481 = arith.addf %1476, %1480 : vector<4x16xf32>
    %c2_609 = arith.constant 2 : index
    %c85_610 = arith.constant 85 : index
    %1482 = memref.load %arg1[%c2_609, %c85_610] : memref<3x98xf32, #tpu.memory_space<smem>>
    %1483 = vector.extract_strided_slice %1466 {offsets = [1, 0], sizes = [4, 16], strides = [1, 1]} : vector<10x16xf32> to vector<4x16xf32>
    %1484 = vector.broadcast %1482 : f32 to vector<4x16xf32>
    %1485 = arith.mulf %1484, %1483 : vector<4x16xf32>
    %1486 = arith.addf %1481, %1485 : vector<4x16xf32>
    %c2_611 = arith.constant 2 : index
    %c37_612 = arith.constant 37 : index
    %1487 = memref.load %arg1[%c2_611, %c37_612] : memref<3x98xf32, #tpu.memory_space<smem>>
    %1488 = vector.extract_strided_slice %1464 {offsets = [2, 0], sizes = [4, 16], strides = [1, 1]} : vector<10x16xf32> to vector<4x16xf32>
    %1489 = vector.broadcast %1487 : f32 to vector<4x16xf32>
    %1490 = arith.mulf %1489, %1488 : vector<4x16xf32>
    %1491 = arith.addf %1486, %1490 : vector<4x16xf32>
    %c2_613 = arith.constant 2 : index
    %c86_614 = arith.constant 86 : index
    %1492 = memref.load %arg1[%c2_613, %c86_614] : memref<3x98xf32, #tpu.memory_space<smem>>
    %1493 = vector.extract_strided_slice %1466 {offsets = [2, 0], sizes = [4, 16], strides = [1, 1]} : vector<10x16xf32> to vector<4x16xf32>
    %1494 = vector.broadcast %1492 : f32 to vector<4x16xf32>
    %1495 = arith.mulf %1494, %1493 : vector<4x16xf32>
    %1496 = arith.addf %1491, %1495 : vector<4x16xf32>
    %c2_615 = arith.constant 2 : index
    %c38_616 = arith.constant 38 : index
    %1497 = memref.load %arg1[%c2_615, %c38_616] : memref<3x98xf32, #tpu.memory_space<smem>>
    %1498 = vector.extract_strided_slice %1464 {offsets = [3, 0], sizes = [4, 16], strides = [1, 1]} : vector<10x16xf32> to vector<4x16xf32>
    %1499 = vector.broadcast %1497 : f32 to vector<4x16xf32>
    %1500 = arith.mulf %1499, %1498 : vector<4x16xf32>
    %1501 = arith.addf %1496, %1500 : vector<4x16xf32>
    %c2_617 = arith.constant 2 : index
    %c87_618 = arith.constant 87 : index
    %1502 = memref.load %arg1[%c2_617, %c87_618] : memref<3x98xf32, #tpu.memory_space<smem>>
    %1503 = vector.extract_strided_slice %1466 {offsets = [3, 0], sizes = [4, 16], strides = [1, 1]} : vector<10x16xf32> to vector<4x16xf32>
    %1504 = vector.broadcast %1502 : f32 to vector<4x16xf32>
    %1505 = arith.mulf %1504, %1503 : vector<4x16xf32>
    %1506 = arith.addf %1501, %1505 : vector<4x16xf32>
    %c2_619 = arith.constant 2 : index
    %c39_620 = arith.constant 39 : index
    %1507 = memref.load %arg1[%c2_619, %c39_620] : memref<3x98xf32, #tpu.memory_space<smem>>
    %1508 = vector.extract_strided_slice %1464 {offsets = [4, 0], sizes = [4, 16], strides = [1, 1]} : vector<10x16xf32> to vector<4x16xf32>
    %1509 = vector.broadcast %1507 : f32 to vector<4x16xf32>
    %1510 = arith.mulf %1509, %1508 : vector<4x16xf32>
    %1511 = arith.addf %1506, %1510 : vector<4x16xf32>
    %c2_621 = arith.constant 2 : index
    %c88_622 = arith.constant 88 : index
    %1512 = memref.load %arg1[%c2_621, %c88_622] : memref<3x98xf32, #tpu.memory_space<smem>>
    %1513 = vector.extract_strided_slice %1466 {offsets = [4, 0], sizes = [4, 16], strides = [1, 1]} : vector<10x16xf32> to vector<4x16xf32>
    %1514 = vector.broadcast %1512 : f32 to vector<4x16xf32>
    %1515 = arith.mulf %1514, %1513 : vector<4x16xf32>
    %1516 = arith.addf %1511, %1515 : vector<4x16xf32>
    %c2_623 = arith.constant 2 : index
    %c40_624 = arith.constant 40 : index
    %1517 = memref.load %arg1[%c2_623, %c40_624] : memref<3x98xf32, #tpu.memory_space<smem>>
    %1518 = vector.extract_strided_slice %1464 {offsets = [5, 0], sizes = [4, 16], strides = [1, 1]} : vector<10x16xf32> to vector<4x16xf32>
    %1519 = vector.broadcast %1517 : f32 to vector<4x16xf32>
    %1520 = arith.mulf %1519, %1518 : vector<4x16xf32>
    %1521 = arith.addf %1516, %1520 : vector<4x16xf32>
    %c2_625 = arith.constant 2 : index
    %c89_626 = arith.constant 89 : index
    %1522 = memref.load %arg1[%c2_625, %c89_626] : memref<3x98xf32, #tpu.memory_space<smem>>
    %1523 = vector.extract_strided_slice %1466 {offsets = [5, 0], sizes = [4, 16], strides = [1, 1]} : vector<10x16xf32> to vector<4x16xf32>
    %1524 = vector.broadcast %1522 : f32 to vector<4x16xf32>
    %1525 = arith.mulf %1524, %1523 : vector<4x16xf32>
    %1526 = arith.addf %1521, %1525 : vector<4x16xf32>
    %c2_627 = arith.constant 2 : index
    %c41_628 = arith.constant 41 : index
    %1527 = memref.load %arg1[%c2_627, %c41_628] : memref<3x98xf32, #tpu.memory_space<smem>>
    %1528 = vector.extract_strided_slice %1464 {offsets = [6, 0], sizes = [4, 16], strides = [1, 1]} : vector<10x16xf32> to vector<4x16xf32>
    %1529 = vector.broadcast %1527 : f32 to vector<4x16xf32>
    %1530 = arith.mulf %1529, %1528 : vector<4x16xf32>
    %1531 = arith.addf %1526, %1530 : vector<4x16xf32>
    %c2_629 = arith.constant 2 : index
    %c90_630 = arith.constant 90 : index
    %1532 = memref.load %arg1[%c2_629, %c90_630] : memref<3x98xf32, #tpu.memory_space<smem>>
    %1533 = vector.extract_strided_slice %1466 {offsets = [6, 0], sizes = [4, 16], strides = [1, 1]} : vector<10x16xf32> to vector<4x16xf32>
    %1534 = vector.broadcast %1532 : f32 to vector<4x16xf32>
    %1535 = arith.mulf %1534, %1533 : vector<4x16xf32>
    %1536 = arith.addf %1531, %1535 : vector<4x16xf32>
    %c0_631 = arith.constant 0 : index
    %c0_632 = arith.constant 0 : index
    %c6_633 = arith.constant 6 : index
    %1537 = vector.load %arg7[%c0_631, %c0_632, %c6_633] : memref<2x10x22xf32, #tpu.memory_space<vmem>>, vector<1x10x16xf32>
    %1538 = vector.shape_cast %1537 : vector<1x10x16xf32> to vector<10x16xf32>
    %c1_634 = arith.constant 1 : index
    %c0_635 = arith.constant 0 : index
    %c6_636 = arith.constant 6 : index
    %1539 = vector.load %arg7[%c1_634, %c0_635, %c6_636] : memref<2x10x22xf32, #tpu.memory_space<vmem>>, vector<1x10x16xf32>
    %1540 = vector.shape_cast %1539 : vector<1x10x16xf32> to vector<10x16xf32>
    %c2_637 = arith.constant 2 : index
    %c42_638 = arith.constant 42 : index
    %1541 = memref.load %arg1[%c2_637, %c42_638] : memref<3x98xf32, #tpu.memory_space<smem>>
    %1542 = vector.extract_strided_slice %1538 {offsets = [0, 0], sizes = [4, 16], strides = [1, 1]} : vector<10x16xf32> to vector<4x16xf32>
    %1543 = vector.broadcast %1541 : f32 to vector<4x16xf32>
    %1544 = arith.mulf %1543, %1542 : vector<4x16xf32>
    %1545 = arith.addf %1536, %1544 : vector<4x16xf32>
    %c2_639 = arith.constant 2 : index
    %c91_640 = arith.constant 91 : index
    %1546 = memref.load %arg1[%c2_639, %c91_640] : memref<3x98xf32, #tpu.memory_space<smem>>
    %1547 = vector.extract_strided_slice %1540 {offsets = [0, 0], sizes = [4, 16], strides = [1, 1]} : vector<10x16xf32> to vector<4x16xf32>
    %1548 = vector.broadcast %1546 : f32 to vector<4x16xf32>
    %1549 = arith.mulf %1548, %1547 : vector<4x16xf32>
    %1550 = arith.addf %1545, %1549 : vector<4x16xf32>
    %c2_641 = arith.constant 2 : index
    %c43_642 = arith.constant 43 : index
    %1551 = memref.load %arg1[%c2_641, %c43_642] : memref<3x98xf32, #tpu.memory_space<smem>>
    %1552 = vector.extract_strided_slice %1538 {offsets = [1, 0], sizes = [4, 16], strides = [1, 1]} : vector<10x16xf32> to vector<4x16xf32>
    %1553 = vector.broadcast %1551 : f32 to vector<4x16xf32>
    %1554 = arith.mulf %1553, %1552 : vector<4x16xf32>
    %1555 = arith.addf %1550, %1554 : vector<4x16xf32>
    %c2_643 = arith.constant 2 : index
    %c92_644 = arith.constant 92 : index
    %1556 = memref.load %arg1[%c2_643, %c92_644] : memref<3x98xf32, #tpu.memory_space<smem>>
    %1557 = vector.extract_strided_slice %1540 {offsets = [1, 0], sizes = [4, 16], strides = [1, 1]} : vector<10x16xf32> to vector<4x16xf32>
    %1558 = vector.broadcast %1556 : f32 to vector<4x16xf32>
    %1559 = arith.mulf %1558, %1557 : vector<4x16xf32>
    %1560 = arith.addf %1555, %1559 : vector<4x16xf32>
    %c2_645 = arith.constant 2 : index
    %c44_646 = arith.constant 44 : index
    %1561 = memref.load %arg1[%c2_645, %c44_646] : memref<3x98xf32, #tpu.memory_space<smem>>
    %1562 = vector.extract_strided_slice %1538 {offsets = [2, 0], sizes = [4, 16], strides = [1, 1]} : vector<10x16xf32> to vector<4x16xf32>
    %1563 = vector.broadcast %1561 : f32 to vector<4x16xf32>
    %1564 = arith.mulf %1563, %1562 : vector<4x16xf32>
    %1565 = arith.addf %1560, %1564 : vector<4x16xf32>
    %c2_647 = arith.constant 2 : index
    %c93_648 = arith.constant 93 : index
    %1566 = memref.load %arg1[%c2_647, %c93_648] : memref<3x98xf32, #tpu.memory_space<smem>>
    %1567 = vector.extract_strided_slice %1540 {offsets = [2, 0], sizes = [4, 16], strides = [1, 1]} : vector<10x16xf32> to vector<4x16xf32>
    %1568 = vector.broadcast %1566 : f32 to vector<4x16xf32>
    %1569 = arith.mulf %1568, %1567 : vector<4x16xf32>
    %1570 = arith.addf %1565, %1569 : vector<4x16xf32>
    %c2_649 = arith.constant 2 : index
    %c45_650 = arith.constant 45 : index
    %1571 = memref.load %arg1[%c2_649, %c45_650] : memref<3x98xf32, #tpu.memory_space<smem>>
    %1572 = vector.extract_strided_slice %1538 {offsets = [3, 0], sizes = [4, 16], strides = [1, 1]} : vector<10x16xf32> to vector<4x16xf32>
    %1573 = vector.broadcast %1571 : f32 to vector<4x16xf32>
    %1574 = arith.mulf %1573, %1572 : vector<4x16xf32>
    %1575 = arith.addf %1570, %1574 : vector<4x16xf32>
    %c2_651 = arith.constant 2 : index
    %c94_652 = arith.constant 94 : index
    %1576 = memref.load %arg1[%c2_651, %c94_652] : memref<3x98xf32, #tpu.memory_space<smem>>
    %1577 = vector.extract_strided_slice %1540 {offsets = [3, 0], sizes = [4, 16], strides = [1, 1]} : vector<10x16xf32> to vector<4x16xf32>
    %1578 = vector.broadcast %1576 : f32 to vector<4x16xf32>
    %1579 = arith.mulf %1578, %1577 : vector<4x16xf32>
    %1580 = arith.addf %1575, %1579 : vector<4x16xf32>
    %c2_653 = arith.constant 2 : index
    %c46_654 = arith.constant 46 : index
    %1581 = memref.load %arg1[%c2_653, %c46_654] : memref<3x98xf32, #tpu.memory_space<smem>>
    %1582 = vector.extract_strided_slice %1538 {offsets = [4, 0], sizes = [4, 16], strides = [1, 1]} : vector<10x16xf32> to vector<4x16xf32>
    %1583 = vector.broadcast %1581 : f32 to vector<4x16xf32>
    %1584 = arith.mulf %1583, %1582 : vector<4x16xf32>
    %1585 = arith.addf %1580, %1584 : vector<4x16xf32>
    %c2_655 = arith.constant 2 : index
    %c95_656 = arith.constant 95 : index
    %1586 = memref.load %arg1[%c2_655, %c95_656] : memref<3x98xf32, #tpu.memory_space<smem>>
    %1587 = vector.extract_strided_slice %1540 {offsets = [4, 0], sizes = [4, 16], strides = [1, 1]} : vector<10x16xf32> to vector<4x16xf32>
    %1588 = vector.broadcast %1586 : f32 to vector<4x16xf32>
    %1589 = arith.mulf %1588, %1587 : vector<4x16xf32>
    %1590 = arith.addf %1585, %1589 : vector<4x16xf32>
    %c2_657 = arith.constant 2 : index
    %c47_658 = arith.constant 47 : index
    %1591 = memref.load %arg1[%c2_657, %c47_658] : memref<3x98xf32, #tpu.memory_space<smem>>
    %1592 = vector.extract_strided_slice %1538 {offsets = [5, 0], sizes = [4, 16], strides = [1, 1]} : vector<10x16xf32> to vector<4x16xf32>
    %1593 = vector.broadcast %1591 : f32 to vector<4x16xf32>
    %1594 = arith.mulf %1593, %1592 : vector<4x16xf32>
    %1595 = arith.addf %1590, %1594 : vector<4x16xf32>
    %c2_659 = arith.constant 2 : index
    %c96_660 = arith.constant 96 : index
    %1596 = memref.load %arg1[%c2_659, %c96_660] : memref<3x98xf32, #tpu.memory_space<smem>>
    %1597 = vector.extract_strided_slice %1540 {offsets = [5, 0], sizes = [4, 16], strides = [1, 1]} : vector<10x16xf32> to vector<4x16xf32>
    %1598 = vector.broadcast %1596 : f32 to vector<4x16xf32>
    %1599 = arith.mulf %1598, %1597 : vector<4x16xf32>
    %1600 = arith.addf %1595, %1599 : vector<4x16xf32>
    %c2_661 = arith.constant 2 : index
    %c48_662 = arith.constant 48 : index
    %1601 = memref.load %arg1[%c2_661, %c48_662] : memref<3x98xf32, #tpu.memory_space<smem>>
    %1602 = vector.extract_strided_slice %1538 {offsets = [6, 0], sizes = [4, 16], strides = [1, 1]} : vector<10x16xf32> to vector<4x16xf32>
    %1603 = vector.broadcast %1601 : f32 to vector<4x16xf32>
    %1604 = arith.mulf %1603, %1602 : vector<4x16xf32>
    %1605 = arith.addf %1600, %1604 : vector<4x16xf32>
    %c2_663 = arith.constant 2 : index
    %c97_664 = arith.constant 97 : index
    %1606 = memref.load %arg1[%c2_663, %c97_664] : memref<3x98xf32, #tpu.memory_space<smem>>
    %1607 = vector.extract_strided_slice %1540 {offsets = [6, 0], sizes = [4, 16], strides = [1, 1]} : vector<10x16xf32> to vector<4x16xf32>
    %1608 = vector.broadcast %1606 : f32 to vector<4x16xf32>
    %1609 = arith.mulf %1608, %1607 : vector<4x16xf32>
    %1610 = arith.addf %1605, %1609 : vector<4x16xf32>
    %c2_665 = arith.constant 2 : index
    %1611 = memref.load %arg2[%c2_665] : memref<3xf32, #tpu.memory_space<smem>>
    %1612 = vector.broadcast %1611 : f32 to vector<4x16xf32>
    %1613 = arith.addf %1610, %1612 : vector<4x16xf32>
    %1614 = arith.negf %1613 : vector<4x16xf32>
    %1615 = math.exp %1614 : vector<4x16xf32>
    %cst_666 = arith.constant 1.000000e+00 : f32
    %1616 = vector.broadcast %cst_666 : f32 to vector<4x16xf32>
    %1617 = arith.addf %1616, %1615 : vector<4x16xf32>
    %1618 = arith.divf %1616, %1617 : vector<4x16xf32>
    %1619 = vector.shape_cast %564 : vector<16x16xf32> to vector<1x16x16xf32>
    %1620 = vector.shape_cast %1091 : vector<4x16xf32> to vector<4x1x16xf32>
    %1621 = vector.broadcast %1619 : vector<1x16x16xf32> to vector<4x16x16xf32>
    %1622 = vector.broadcast %1620 : vector<4x1x16xf32> to vector<4x16x16xf32>
    %1623 = arith.addf %1621, %1622 : vector<4x16x16xf32>
    %1624 = vector.shape_cast %1618 : vector<4x16xf32> to vector<4x16x1xf32>
    %1625 = vector.broadcast %1624 : vector<4x16x1xf32> to vector<4x16x16xf32>
    %1626 = arith.addf %1623, %1625 : vector<4x16x16xf32>
    %cst_667 = arith.constant 0.333333343 : f32
    %1627 = vector.broadcast %cst_667 : f32 to vector<4x16x16xf32>
    %1628 = arith.mulf %1626, %1627 : vector<4x16x16xf32>
    %1629 = arith.mulf %1, %1628 : vector<4x16x16xf32>
    %c0_668 = arith.constant 0 : index
    %c0_669 = arith.constant 0 : index
    %c0_670 = arith.constant 0 : index
    %c0_671 = arith.constant 0 : index
    %1630 = vector.load %arg4[%c0_668, %c0_669, %c0_670, %c0_671] : memref<1x4x16x16xf32, #tpu.memory_space<vmem>>, vector<1x4x16x16xf32>
    %1631 = vector.shape_cast %1630 : vector<1x4x16x16xf32> to vector<4x16x16xf32>
    %1632 = vector.shape_cast %1629 : vector<4x16x16xf32> to vector<1x4x16x16xf32>
    tpu.vector_store %arg4[%c0_668, %c0_669, %c0_670, %c0_671], %1632 {strides = array<i32>} : memref<1x4x16x16xf32, #tpu.memory_space<vmem>>, vector<1x4x16x16xf32>,
    return
  }
  func.func @transform_0(%arg0: i32, %arg1: memref<3x98xf32, #tpu.memory_space<smem>>, %arg2: memref<3xf32, #tpu.memory_space<smem>>) -> (i32, i32, i32, i32) {
    %c0_i32 = arith.constant 0 : i32
    %c0_i32_0 = arith.constant 0 : i32
    %c0_i32_1 = arith.constant 0 : i32
    %c0_i32_2 = arith.constant 0 : i32
    return %arg0, %c0_i32, %c0_i32_0, %c0_i32_1 : i32, i32, i32, i32
  }
  func.func @transform_1(%arg0: i32, %arg1: memref<3x98xf32, #tpu.memory_space<smem>>, %arg2: memref<3xf32, #tpu.memory_space<smem>>) -> (i32, i32, i32, i32) {
    %c0_i32 = arith.constant 0 : i32
    %c0_i32_0 = arith.constant 0 : i32
    %c0_i32_1 = arith.constant 0 : i32
    %c0_i32_2 = arith.constant 0 : i32
    return %arg0, %c0_i32, %c0_i32_0, %c0_i32_1 : i32, i32, i32, i32
  }
}

</mosaic_0001>

<bundles_post_ra>
// kernel: tpu_custom_call.1
= control target key start
LH: loop header
LB: loop body
LE: loop exit
PB: predicated region body
PF: predicated region fallthrough
CT: control target
= control target key end

     0   :  { %s8414_s0 = inlined_call_operand.hbm [shape: f32[3,98], index: 0, kind: input, shape index: {}]   ;;  %s8415_s2 = inlined_call_operand.hbm [shape: f32[2,4,16,16], index: 2, kind: input, shape index: {}]   ;;  %s8416_s3 = inlined_call_operand.hbm [shape: f32[2,4,16,16], index: 3, kind: output, shape index: {}]   ;;  %s8417_s1 = inlined_call_operand.hbm [shape: f32[3], index: 1, kind: input, shape index: {}]  }
   0x1   :  { %s4947_s14 = scalar_lea.hbm %s8414_s0, 64 }
   0x2   :  { %p4948_p0 = scmp.ne.s32.totalorder %s8414_s0, %s4947_s14  ;;  %p4951_p1 = scmp.lt.u32.totalorder %s4947_s14, %s8414_s0 }
   0x4   :  { %p4953_p2 = pnand %p4951_p1, %p4948_p0 }
   0x6   :  { %4956 = shalt.err (!%p4953_p2)  }
   0x7   :  { %s5067_s19 = smov [#allocation6]   ;;  %s4957_s24 = scalar_lea.hbm %s8417_s1, 16 }
   0x8   :  { %9 = dma.hbm_to_smem %s8414_s0, 64, %s5067_s19, [#allocation5] }
   0x9   :  { %p4958_p3 = scmp.ne.s32.totalorder %s8417_s1, %s4957_s24  ;;  %p4961_p4 = scmp.lt.u32.totalorder %s4957_s24, %s8417_s1 }
   0xb   :  { %p4963_p5 = pnand %p4961_p4, %p4958_p3 }
   0xd   :  { %4966 = shalt.err (!%p4963_p5)  }
   0xe   :  { %s5068_s29 = smov [#allocation7]  }
   0xf   :  { %11 = dma.hbm_to_smem %s8417_s1, 16, %s5068_s29, [#allocation5] }
  0x10   :  { %5041 = dma.done.wait [#allocation5], 80 }
  0x11   :  { %5042 = vsyncadd [#allocation5], 4294967216 }
  0x12   :  { %13 = sfence }
  0x13   :  { %14 = vsyncpa [#allocation9], 0 }
  0x14   :  { %16 = vsyncpa [#allocation9 + $0x1], 0 }
  0x15   :  { %17 = vsyncpa [#allocation10], 0 }
  0x16   :  { %19 = vsyncpa [#allocation10 + $0x1], 0  ;;  %s5128_s0 = smov 0   ;;  %s5130_s5 = smov 0  }
  0x17   :  { %s5132_s6 = smov 0   ;;  %s5134_s7 = smov 0  }
  0x18 LB: > { %s5149_s1 = sadd.s32 4294967295, %s5065_s7   ;;  %s4516_s8 = sadd.s32 4294967294, %s5065_s7   ;;  %s5065_s7 = sphi %s5134_s7, %s8852_s7   ;;  %s5061_s6 = sphi %s5132_s6, %s8851_s6   ;;  %s5057_s5 = sphi %s5130_s5, %s8850_s5   ;;  %s5053_s0 = sphi %s5128_s0, %s8849_s0  }
  0x19   : > { %s5153_s9 = sadd.s32 1, %s5065_s7   ;;  %s32_s10 = sadd.s32 1, %s5061_s6 }
  0x1a   : > { %s29_s11 = ssub.s32 %s5065_s7, %s5153_s9  ;;  %p39_p6 = scmp.ne.s32.totalorder %s5061_s6, %s5057_s5 }
  0x1b   : > { %p30_p7 = scmp.eq.s32.totalorder %s29_s11, 0  ;;  %p40_p8 = scmp.eq.s32.totalorder %s5065_s7, 0 }
  0x1c   : > { %p45_p9 = scmp.ne.s32.totalorder %s5057_s5, %s5053_s0  ;;  %p46_p10 = scmp.eq.s32.totalorder %s5149_s1, 0 }
  0x1d   : > { %s5165_s12 = scalar_select %p30_p7, %s5061_s6, %s32_s10  }
  0x1e   : > { %p5167_p11 = por %p40_p8, %p39_p6  ;;  %p5171_p12 = por %p46_p10, %p45_p9 }
  0x1f   : > { %p69_p13 = scmp.eq.s32.totalorder %s5149_s1, 1  ;;  %p75_p0 = scmp.eq.s32.totalorder %s4516_s8, 1 }
  0x20   : > { %p4843_p2 = scmp.lt.s32.totalorder %s5065_s7, 2  ;;  %s95_s17 = sand.u32 1, %s5061_s6  }
  0x21   : > { %p5178_p3 = por %p69_p13, %p39_p6  ;;  %p5182_p4 = por %p75_p0, %p45_p9 }
  0x22   : > { %s4829_s18 = sshll.u32 %s5065_s7, 10  ;;  %s4519_s19 = sshll.u32 %s95_s17, 6 }
  0x23   : > { %s8433_s15 = scalar_select %p5178_p3, 1, 0 }
  0x24   : > { %s8434_s16 = scalar_select %p5182_p4, 1, 0 }
  0x25   : > { %s5191_s22 = scalar_lea.hbm %s8415_s2, %s4829_s18  ;;  %s99_s23 = scalar_lea.vmem [#allocation8], %s4519_s19 }
  0x26   : > { %s106_s24 = sshll.u32 %s99_s23, 4  ;;  %p5195_p5 = pnand %p4843_p2, %p5167_p11  ;;  %s5199_s24 = int_to_ptr.vmem [resolvable:$true] %s106_s24 }
  0x27   : > { %s5201_s26 = scalar_lea.sflag [#allocation9], %s95_s17  ;;  %s4967_s27 = scalar_lea.hbm %s5191_s22, 1024 }
  0x28   : > { %p4968_p6 = scmp.ne.s32.totalorder %s5191_s22, %s4967_s27  ;;  %p4969_p7 = pneg %p5195_p5 }
  0x29   : > { %s4972_s30 = scalar_lea.hbm %s8415_s2, 2048  ;;  %p4973_p10 = scmp.lt.u32.totalorder %s5191_s22, %s8415_s2 }
  0x2a   : > { %p4970_p8 = pnand %p4969_p7, %p4968_p6  ;;  %p4974_p11 = scmp.lt.u32.totalorder %s4972_s30, %s4967_s27 }
  0x2b   : > { %p4976_p0 = scmp.lt.u32.totalorder %s4967_s27, %s5191_s22 }
  0x2c   : > { %p4971_p9 = pneg %p4970_p8  ;;  %p4975_p13 = por %p4974_p11, %p4973_p10 }
  0x2e   : > { %p4977_p2 = por %p4976_p0, %p4975_p13 }
  0x30   : > { %p4978_p1 = pnand %p4977_p2, %p4971_p9 }
  0x32   : > { %4981 = shalt.err (!%p4978_p1)
}
  0x33   : > { %s4982_s10 = scalar_lea.vmem %s5199_s24, 1024  ;;  %s5069_s11 = smov [#allocation8]  }
  0x34   : > { %p4983_p6 = scmp.ne.s32.totalorder %s5199_s24, %s4982_s10  ;;  %s4987_s13 = sshll.u32 %s5069_s11, 4  ;;  %s4988_s13 = int_to_ptr.vmem [resolvable:$false] %s4987_s13 }
  0x35   : > { %s4989_s17 = scalar_lea.vmem %s4988_s13, 2048  ;;  %p4990_p3 = scmp.lt.s32.totalorder %s5199_s24, %s4988_s13 }
  0x36   : > { %p4985_p8 = pnand %p4983_p6, %p4969_p7  ;;  %p4991_p10 = scmp.lt.s32.totalorder %s4989_s17, %s4982_s10 }
  0x38   : > { %p4986_p4 = pneg %p4985_p8  ;;  %p4992_p11 = por %p4991_p10, %p4990_p3 }
  0x3a   : > { %p4993_p13 = pnand %p4992_p11, %p4986_p4 }
  0x3c   : > { %4996 = shalt.err (!%p4993_p13)
}
  0x3d   : > { %s5070_s18 = smov 128   ;;  %s5071_s19 = smov 8  }
  0x3e   : > { %4838 = dma.hbm_to_vmem [thread:$0]  (!%p5195_p5), %s5191_s22, 1024, %s5199_s24, %s5201_s26, %s5070_s18, %s5070_s18, %s5071_s19  }
  0x3f   : > { %p4522_p1 = scmp.ge.s32.totalorder %s5065_s7, 1  ;;  %p114_p7 = scmp.lt.s32.totalorder %s5065_s7, 3 }
  0x41   : > { %p115_p9 = pnand %p4522_p1, %p114_p7 }
  0x43   : > { %118 = sbr.rel (%p115_p9) target bundleno = 1135 (0x46f), region = 24 }
  0x4a   : > { %s5232_s20 = sand.u32 1, %s5057_s5  }
  0x4b   : > { %s8421_s21 = sshll.u32 %s5232_s20, 6  ;;  %s121_s23 = scalar_lea.sflag [#allocation9], %s5232_s20 }
  0x4c   : > { %s5238_s27 = scalar_lea.vmem [#allocation8], %s8421_s21 }
  0x4d   : > { %5044 = dma.done.wait (%p5171_p12), %s121_s23, 1024  }
  0x4e   : > { %5046 = vsyncadd (%p5171_p12), %s121_s23, 4294966272  ;;  %vm151_vm0 = vcmask 179200   ;;  %v5072_v0 = vmov 0.0   ;;  %vm168_vm1 = vcmask 130048   ;;  %v143_v1 = vld [vmem:[%s5238_s27] sm:$0xff]  ;;  %v144_v2 = vld [vmem:[%s5238_s27 + $0x8] sm:$0xff] }
  0x4f   : > { %152 = vst.msk [vmem:[#allocation2] sm:$0xff] %vm151_vm0, %v5072_v0  ;;  %153 = vst.msk [vmem:[#allocation2 + $0x8] sm:$0xff] %vm151_vm0, %v5072_v0  ;;  %v145_v3 = vld [vmem:[%s5238_s27 + $0x10] sm:$0xff]  ;;  %v146_v4 = vld [vmem:[%s5238_s27 + $0x18] sm:$0xff]  ;;  %v5259_v7 = vsel %vm168_vm1, %v143_v1, -inf  ;;  %v5265_v9 = vsel %vm168_vm1, %v144_v2, -inf }
  0x50   : > { %156 = vst.msk [vmem:[#allocation2 + $0x18] sm:$0xff] %vm151_vm0, %v5072_v0  ;;  %157 = vst.msk [vmem:[#allocation2 + $0x20] sm:$0xff] %vm151_vm0, %v5072_v0  ;;  %v147_v5 = vld [vmem:[%s5238_s27 + $0x20] sm:$0xff]  ;;  %v148_v6 = vld [vmem:[%s5238_s27 + $0x28] sm:$0xff]  ;;  %v5262_v8 = vsel %vm168_vm1, %v145_v3, -inf  ;;  %v5273_v13 = vsel %vm168_vm1, %v146_v4, -inf  ;;  %v222_v15 = vmax.f32 %v5259_v7, %v5265_v9 }
  0x51   : > { %159 = vst.msk [vmem:[#allocation3] sm:$0xff] %vm151_vm0, %v5072_v0  ;;  %162 = vst.msk [vmem:[#allocation3 + $0x10] sm:$0xff] %vm151_vm0, %v5072_v0  ;;  %v149_v10 = vld [vmem:[%s5238_s27 + $0x30] sm:$0xff]  ;;  %v150_v11 = vld [vmem:[%s5238_s27 + $0x38] sm:$0xff]  ;;  %v5270_v12 = vsel %vm168_vm1, %v147_v5, -inf  ;;  %v5276_v14 = vsel %vm168_vm1, %v148_v6, -inf  ;;  %v229_v19 = vmax.f32 %v5262_v8, %v5273_v13 }
  0x52   : > { %164 = vst.msk [vmem:[#allocation4] sm:$0xff] %vm151_vm0, %v5072_v0  ;;  %166 = vst.msk [vmem:[#allocation4 + $0x10] sm:$0xff] %vm151_vm0, %v5072_v0  ;;  %v172_v16 = vmax.f32 %v5259_v7, %v5270_v12  ;;  %v5283_v17 = vsel %vm168_vm1, %v149_v10, -inf  ;;  %v5286_v18 = vsel %vm168_vm1, %v150_v11, -inf  ;;  %v223_v21 = vrot.slane %v222_v15, 4  ;;  %s5073_s14 = smov 3  }
  0x53   : > { %v174_v20 = vmax.f32 %v5262_v8, %v5283_v17  ;;  %v236_v22 = vmax.f32 %v5270_v12, %v5276_v14  ;;  %v243_v23 = vmax.f32 %v5283_v17, %v5286_v18  ;;  %v230_v24 = vrot.slane %v229_v19, 4  ;;  %s4538_s22 = sld [smem:[#allocation6 + $0x1]]  ;;  %s5371_s24 = sld [smem:[#allocation6 + $0x2]] }
  0x54   : > { %v5297_v25 = vsel %vm168_vm1, %v143_v1, 0.0  ;;  %v5300_v26 = vsel %vm168_vm1, %v145_v3, 0.0  ;;  %v5303_v27 = vsel %vm168_vm1, %v147_v5, 0.0  ;;  %v224_v29 = vmax.f32 %v222_v15, %v223_v21  ;;  %s4540_s25 = sld [smem:[#allocation6 + $0x8]]  ;;  %s4542_s26 = sld [smem:[#allocation6 + $0xf]] }
  0x55   : > { %v175_v28 = vmax.f32 %v172_v16, %v174_v20  ;;  %v237_v30 = vrot.slane %v236_v22, 4  ;;  %v244_v31 = vrot.slane %v243_v23, 4  ;;  %v231_v32 = vmax.f32 %v229_v19, %v230_v24  ;;  %s5074_s28 = smov 127   ;;  %s4544_s29 = sld [smem:[#allocation6 + $0x16]] }
  0x56   : > { %v196_v33 = vadd.f32 %v5300_v26, %v5297_v25  ;;  %v5308_v34 = vsel %vm168_vm1, %v149_v10, 0.0  ;;  %v5311_v35 = vsel %vm168_vm1, %v144_v2, 0.0  ;;  %v225_v36 = vrot.slane %v224_v29, 2  ;;  %s5380_s30 = sld [smem:[#allocation6 + $0x1d]]  ;;  %s5075_s4 = smov 126  }
  0x57   : > { %v238_v37 = vmax.f32 %v236_v22, %v237_v30  ;;  %v245_v38 = vmax.f32 %v243_v23, %v244_v31  ;;  %185 = vrot.lane.b32.xlu0 %v175_v28, %s5073_s14  ;;  %v5315_v39 = vsel %vm168_vm1, %v146_v4, 0.0  ;;  %vm254_vm2 = vcmask 1041409   ;;  %s4548_s8 = sld [smem:[#allocation6 + $0x24]]  ;;  %s4550_s10 = sld [smem:[#allocation6 + $0x2b]] }
  0x58   : > { %v232_v40 = vrot.slane %v231_v32, 2  ;;  %v198_v41 = vadd.f32 %v5303_v27, %v196_v33  ;;  %v5319_v42 = vsel %vm168_vm1, %v148_v6, 0.0  ;;  %v5322_v43 = vsel %vm168_vm1, %v150_v11, 0.0  ;;  %s4541_s11 = sld [smem:[#allocation6 + $0x39]]  ;;  %s5422_s13 = sld [smem:[#allocation6 + $0x32]] }
  0x59   : > { %v226_v44 = vmax.f32 %v224_v29, %v225_v36  ;;  %v239_v45 = vrot.slane %v238_v37, 2  ;;  %v265_v46 = vadd.f32 %v5311_v35, %v5297_v25  ;;  %v272_v47 = vadd.f32 %v5315_v39, %v5300_v26  ;;  %s4543_s17 = sld [smem:[#allocation6 + $0x40]]  ;;  %s4545_s18 = sld [smem:[#allocation6 + $0x47]] }
  0x5a   : > { %v233_v48 = vmax.f32 %v231_v32, %v232_v40  ;;  %v200_v49 = vadd.f32 %v5308_v34, %v198_v41  ;;  %v279_v50 = vadd.f32 %v5319_v42, %v5303_v27  ;;  %v286_v51 = vadd.f32 %v5322_v43, %v5308_v34  ;;  %s4547_s19 = sld [smem:[#allocation6 + $0x4e]]  ;;  %s4549_s23 = sld [smem:[#allocation6 + $0x55]] }
  0x5b   : > { %v266_v52 = vrot.slane %v265_v46, 4  ;;  %v273_v53 = vrot.slane %v272_v47, 4  ;;  %v179_v54 = vmax.f32 %v5265_v9, %v5276_v14  ;;  %v181_v55 = vmax.f32 %v5273_v13, %v5286_v18  ;;  %s6804_s21 = sld [smem:[#allocation6 + $0x9e]]  ;;  %p8846_p3 = scmp.ne.s32.totalorder %s8433_s15, 0 }
  0x5c   : > { %vm256_vm3 = vcmask 1042434   ;;  %v209_v56 = vmul.f32 0.25, %v200_v49  ;;  %v280_v57 = vrot.slane %v279_v50, 4  ;;  %v287_v58 = vrot.slane %v286_v51, 4 }
  0x5d   : > { %v203_v59 = vadd.f32 %v5315_v39, %v5311_v35  ;;  %v267_v60 = vadd.f32 %v266_v52, %v265_v46  ;;  %v274_v61 = vadd.f32 %v273_v53, %v272_v47  ;;  %v182_v62 = vmax.f32 %v179_v54, %v181_v55 }
  0x5e   : > { %v227_v63 = vrot.slane %v226_v44, 1  ;;  %v281_v1 = vadd.f32 %v280_v57, %v279_v50  ;;  %v288_v2 = vadd.f32 %v287_v58, %v286_v51  ;;  %213 = vrot.lane.b32.xlu1 %v209_v56, %s5073_s14  ;;  %v234_v4 = vrot.slane %v233_v48, 1 }
  0x5f   : > { %v205_v3 = vadd.f32 %v5319_v42, %v203_v59  ;;  %v268_v5 = vrot.slane %v267_v60, 2  ;;  %v275_v6 = vrot.slane %v274_v61, 2  ;;  %187 = vrot.lane.b32.xlu0 %v182_v62, %s5073_s14  ;;  %v240_v11 = vmax.f32 %v238_v37, %v239_v45 }
  0x60   : > { %v228_v10 = vmax.f32 %v226_v44, %v227_v63  ;;  %v282_v15 = vrot.slane %v281_v1, 2  ;;  %v289_v16 = vrot.slane %v288_v2, 2  ;;  %v235_v20 = vmax.f32 %v233_v48, %v234_v4 }
  0x61   : > { %v207_v19 = vadd.f32 %v5322_v43, %v205_v3  ;;  %v241_v21 = vrot.slane %v240_v11, 1  ;;  %v246_v22 = vrot.slane %v245_v38, 2  ;;  %v269_v23 = vadd.f32 %v268_v5, %v267_v60 }
  0x62   : > { %v276_v24 = vadd.f32 %v275_v6, %v274_v61  ;;  %v255_v29 = vsel %vm254_vm2, %v235_v20, %v228_v10  ;;  %v283_v30 = vadd.f32 %v282_v15, %v281_v1  ;;  %v290_v31 = vadd.f32 %v289_v16, %v288_v2 }
  0x63   : > { %v210_v28 = vmul.f32 0.25, %v207_v19  ;;  %v242_v32 = vmax.f32 %v240_v11, %v241_v21  ;;  %v247_v33 = vmax.f32 %v245_v38, %v246_v22  ;;  %v270_v36 = vrot.slane %v269_v23, 1 }
  0x64   : > { %v277_v40 = vrot.slane %v276_v24, 1  ;;  %v284_v37 = vrot.slane %v283_v30, 1  ;;  %v291_v41 = vrot.slane %v290_v31, 1  ;;  %vm154_vm4 = vcmask 177152  }
  0x65   : > { %215 = vrot.lane.b32.xlu1 %v210_v28, %s5073_s14  ;;  %v248_v44 = vrot.slane %v247_v33, 1  ;;  %v271_v45 = vadd.f32 %v270_v36, %v269_v23  ;;  %155 = vst.msk [vmem:[#allocation2 + $0x10] sm:$0x3f] %vm154_vm4, %v5072_v0  ;;  %158 = vst.msk [vmem:[#allocation2 + $0x28] sm:$0x3f] %vm154_vm4, %v5072_v0  ;;  %v257_v47 = vsel %vm256_vm3, %v242_v32, %v255_v29  ;;  %vm258_vm5 = vcmask 1043459  }
  0x66   : > { %v278_v46 = vadd.f32 %v277_v40, %v276_v24  ;;  %v285_v48 = vadd.f32 %v284_v37, %v283_v30  ;;  %v292_v49 = vadd.f32 %v291_v41, %v290_v31  ;;  %vm191_vm6 = vcmask 154648  }
  0x67   : > { %v249_v38 = vmax.f32 %v247_v33, %v248_v44  ;;  %v294_v50 = vmul.f32 0.0625, %v271_v45  ;;  %vm263_vm7 = vcmask 150552   ;;  %vm480_vm8 = vcmask 1046528  }
  0x68   : > { %v295_v51 = vmul.f32 0.0625, %v278_v46  ;;  %v296_v52 = vmul.f32 0.0625, %v285_v48  ;;  %v297_v53 = vmul.f32 0.0625, %v292_v49  ;;  %v795_v4 = vstv %s4544_s29  ;;  %s4557_s29 = sld [smem:[#allocation6 + $0x41]] }
  0x69   : > { %v259_v54 = vsel %vm258_vm5, %v249_v38, %v257_v47  ;;  %vm515_vm9 = vcmask 1045504   ;;  %v837_v19 = vstv %s5380_s30  ;;  %vm550_vm10 = vcmask 1044480   ;;  %s5503_s30 = sld [smem:[#allocation6 + $0x17]] }
  0x6a   : > { %v302_v55 = vsel %vm254_vm2, %v295_v51, %v294_v50  ;;  %260 = vrot.lane.b32.xlu0 %v259_v54, %s5073_s14  ;;  %vm585_vm11 = vcmask 1043456   ;;  %v879_v33 = vstv %s4548_s8  ;;  %v921_v48 = vstv %s4550_s10  ;;  %s5505_s8 = sld [smem:[#allocation6 + $0x48]]  ;;  %s5531_s10 = sld [smem:[#allocation6 + $0x1e]] }
  0x6b   : > { %v303_v56 = vsel %vm256_vm3, %v296_v52, %v302_v55  ;;  %vm620_vm12 = vcmask 1042432   ;;  %vm655_vm13 = vcmask 1041408   ;;  %vm346_vm14 = vcmask 154712  }
  0x6c   : > { %v304_v57 = vsel %vm258_vm5, %v297_v53, %v303_v56  ;;  %vm160_vm15 = vcmask 173056  }
  0x6d   : > { %305 = vrot.lane.b32.xlu1 %v304_v57, %s5073_s14  ;;  %s4551_s14 = sld [smem:[#allocation6 + $0x5c]]  ;;  %161 = vst.msk [vmem:[#allocation3 + $0x8] sm:$0x3] %vm160_vm15, %v5072_v0  ;;  %163 = vst.msk [vmem:[#allocation3 + $0x18] sm:$0x3] %vm160_vm15, %v5072_v0 }
  0x6e   : > { %165 = vst.msk [vmem:[#allocation4 + $0x8] sm:$0x3] %vm160_vm15, %v5072_v0  ;;  %167 = vst.msk [vmem:[#allocation4 + $0x18] sm:$0x3] %vm160_vm15, %v5072_v0 }
  0x89   : > { %310 = vmax.xlane.f32.xlu0 %v5259_v7 }
  0x8d   : > { %314 = vmax.xlane.f32.xlu0 %v5262_v8  ;;  %v683_v8 = vstv %s4538_s22  ;;  %s4554_s22 = sld [smem:[#allocation6 + $0x9]] }
  0x91   : > { %312 = vmax.xlane.f32.xlu1 %v5265_v9  ;;  %316 = vmax.xlane.f32.xlu0 %v5273_v13 }
  0x95   : > { %318 = vmax.xlane.f32.xlu1 %v5270_v12  ;;  %320 = vmax.xlane.f32.xlu0 %v5276_v14 }
  0x99   : > { %322 = vmax.xlane.f32.xlu1 %v5283_v17  ;;  %324 = vmax.xlane.f32.xlu0 %v5286_v18 }
  0x9d   : > { %380 = vadd.xlane.f32.xlu1 %v5297_v25  ;;  %382 = vadd.xlane.f32.xlu0 %v5311_v35 }
  0xa1   : > { %384 = vadd.xlane.f32.xlu1 %v5300_v26  ;;  %386 = vadd.xlane.f32.xlu0 %v5315_v39  ;;  %v963_v26 = vstv %s5371_s24  ;;  %s5476_s24 = sld [smem:[#allocation6 + $0x33]] }
  0xa5   : > { %388 = vadd.xlane.f32.xlu1 %v5303_v27  ;;  %390 = vadd.xlane.f32.xlu0 %v5319_v42  ;;  %v711_v27 = vstv %s4540_s25  ;;  %s4555_s25 = sld [smem:[#allocation6 + $0x3a]] }
  0xa9   : > { %392 = vadd.xlane.f32.xlu1 %v5308_v34  ;;  %394 = vadd.xlane.f32.xlu0 %v5322_v43  ;;  %v753_v34 = vstv %s4542_s26  ;;  %s4556_s26 = sld [smem:[#allocation6 + $0x10]] }
  0xc9   : > { %v186_v7 = vpop.permute.xlu0 %185 }
  0xca   : > { %192 = vst.msk [vmem:[#allocation2 + $0x3] sm:$0xff] %vm191_vm6, %v186_v7  ;;  %v732_v7 = vstv %s4541_s11  ;;  %s5533_s11 = sld [smem:[#allocation6 + $0x4f]] }
  0xd0   : > { %v214_v9 = vpop.permute.xlu1 %213 }
  0xd1   : > { %v5373_v12 = vld [vmem:[#allocation2] sm:$0xff]  ;;  %220 = vst.msk [vmem:[#allocation2 + $0x1b] sm:$0xff] %vm191_vm6, %v214_v9  ;;  %v188_v13 = vpop.permute.xlu0 %187 }
  0xd2   : > { %193 = vst.msk [vmem:[#allocation2 + $0xb] sm:$0xff] %vm191_vm6, %v188_v13  ;;  %v684_v14 = vmul.f32 %v683_v8, %v5373_v12  ;;  %v712_v63 = vmul.f32 %v711_v27, %v5373_v12  ;;  %v964_v3 = vmul.f32 %v963_v26, %v5373_v12  ;;  %v754_v16 = vmul.f32 %v753_v34, %v5373_v12 }
  0xd3   : > { %v796_v29 = vmul.f32 %v795_v4, %v5373_v12  ;;  %v838_v45 = vmul.f32 %v837_v19, %v5373_v12  ;;  %v880_v53 = vmul.f32 %v879_v33, %v5373_v12  ;;  %v922_v9 = vmul.f32 %v921_v48, %v5373_v12 }
  0xd4   : > { %688 = vrot.lane.b32.xlu1 %v684_v14, %s5074_s28  ;;  %v718_v15 = vrot.slane %v712_v63, 1  ;;  %v760_v30 = vrot.slane %v754_v16, 2 }
  0xd5   : > { %v802_v44 = vrot.slane %v796_v29, 3  ;;  %v844_v52 = vrot.slane %v838_v45, 4 }
  0xd7   : > { %v216_v17 = vpop.permute.xlu1 %215 }
  0xd8   : > { %221 = vst.msk [vmem:[#allocation2 + $0x23] sm:$0xff] %vm191_vm6, %v216_v17  ;;  %v5434_v13 = vld [vmem:[#allocation2 + $0x18] sm:$0xff]  ;;  %v697_v17 = vstv %s5422_s13  ;;  %s5560_s13 = sld [smem:[#allocation6 + $0x25]] }
  0xd9   : > { %v5382_v18 = vld [vmem:[#allocation2 + $0x8] sm:$0xff]  ;;  %v5384_v25 = vld [vmem:[#allocation2 + $0x10] sm:$0x3f] }
  0xda   : > { %v965_v35 = vmul.f32 %v963_v26, %v5382_v18  ;;  %v685_v39 = vmul.f32 %v683_v8, %v5382_v18  ;;  %v713_v42 = vmul.f32 %v711_v27, %v5382_v18  ;;  %v714_v43 = vmul.f32 %v711_v27, %v5384_v25 }
  0xdb   : > { %v755_v58 = vmul.f32 %v753_v34, %v5382_v18  ;;  %v756_v59 = vmul.f32 %v753_v34, %v5384_v25  ;;  %v797_v10 = vmul.f32 %v795_v4, %v5382_v18  ;;  %v798_v11 = vmul.f32 %v795_v4, %v5384_v25 }
  0xdc   : > { %970 = vrot.lane.b32.xlu1 %v965_v35, %s5075_s4  ;;  %690 = vrot.lane.b32.xlu0 %v685_v39, %s5074_s28  ;;  %v261_v60 = vpop.permute.xlu0 %260  ;;  %v719_v61 = vrot.slane %v713_v42, 1  ;;  %v721_v62 = vrot.slane %v714_v43, 1  ;;  %v839_v20 = vmul.f32 %v837_v19, %v5382_v18  ;;  %v840_v21 = vmul.f32 %v837_v19, %v5384_v25 }
  0xdd   : > { %264 = vst.msk [vmem:[#allocation3 + $0x3] sm:$0xf] %vm263_vm7, %v261_v60  ;;  %v761_v5 = vrot.slane %v755_v58, 2  ;;  %v763_v6 = vrot.slane %v756_v59, 2  ;;  %v803_v24 = vrot.slane %v797_v10, 3  ;;  %v805_v28 = vrot.slane %v798_v11, 3 }
  0xde   : > { %v722_v2 = vsel %vm480_vm8, %v719_v61, %v721_v62  ;;  %v720_v23 = vsel %vm480_vm8, %v718_v15, %v719_v61  ;;  %v845_v31 = vrot.slane %v839_v20, 4  ;;  %v847_v32 = vrot.slane %v840_v21, 4 }
  0xdf   : > { %v306_v1 = vpop.permute.xlu1 %305  ;;  %v764_v22 = vsel %vm515_vm9, %v761_v5, %v763_v6  ;;  %v806_v36 = vsel %vm550_vm10, %v803_v24, %v805_v28  ;;  %v762_v40 = vsel %vm515_vm9, %v760_v30, %v761_v5  ;;  %v881_v37 = vmul.f32 %v879_v33, %v5382_v18  ;;  %v5436_v14 = vld [vmem:[#allocation2 + $0x20] sm:$0xff]  ;;  %v5445_v42 = vld [vmem:[#allocation2 + $0x28] sm:$0x3f] }
  0xe0   : > { %309 = vst.msk [vmem:[#allocation3 + $0x13] sm:$0xf] %vm263_vm7, %v306_v1  ;;  %725 = vrot.lane.b32.xlu1 %v722_v2, %s5074_s28  ;;  %968 = vrot.lane.b32.xlu0 %v964_v3, %s5075_s4  ;;  %v882_v41 = vmul.f32 %v879_v33, %v5384_v25  ;;  %v848_v46 = vsel %vm585_vm11, %v845_v31, %v847_v32  ;;  %v886_v8 = vrot.slane %v880_v53, 5  ;;  %v774_v26 = vstv %s4543_s17  ;;  %s5562_s17 = sld [smem:[#allocation6 + $0x56]] }
  0xe1   : > { %v804_v47 = vsel %vm550_vm10, %v802_v44, %v803_v24  ;;  %v887_v49 = vrot.slane %v881_v37, 5  ;;  %v923_v50 = vmul.f32 %v921_v48, %v5382_v18  ;;  %v924_v51 = vmul.f32 %v921_v48, %v5384_v25 }
  0xe2   : > { %v889_v38 = vrot.slane %v882_v41, 5  ;;  %v846_v55 = vsel %vm585_vm11, %v844_v52, %v845_v31  ;;  %v733_v35 = vmul.f32 %v732_v7, %v5434_v13  ;;  %v734_v39 = vmul.f32 %v732_v7, %v5436_v14 }
  0xe3   : > { %v929_v56 = vrot.slane %v923_v50, 6  ;;  %v931_v57 = vrot.slane %v924_v51, 6  ;;  %v888_v34 = vsel %vm620_vm12, %v886_v8, %v887_v49  ;;  %v928_v43 = vrot.slane %v922_v9, 6 }
  0xe4   : > { %767 = vrot.lane.b32.xlu1 %v764_v22, %s5074_s28  ;;  %723 = vrot.lane.b32.xlu0 %v720_v23, %s5074_s28  ;;  %v890_v54 = vsel %vm620_vm12, %v887_v49, %v889_v38  ;;  %v816_v58 = vstv %s4545_s18  ;;  %v698_v59 = vmul.f32 %v697_v17, %v5434_v13  ;;  %v735_v60 = vmul.f32 %v732_v7, %v5445_v42  ;;  %s5587_s18 = sld [smem:[#allocation6 + $0x2c]] }
  0xe5   : > { %v932_v27 = vsel %vm655_vm13, %v929_v56, %v931_v57  ;;  %v775_v61 = vmul.f32 %v774_v26, %v5434_v13  ;;  %v776_v62 = vmul.f32 %v774_v26, %v5436_v14  ;;  %v930_v63 = vsel %vm655_vm13, %v928_v43, %v929_v56 }
  0xe6   : > { %v739_v1 = vrot.slane %v733_v35, 1  ;;  %v740_v2 = vrot.slane %v734_v39, 1  ;;  %v817_v3 = vmul.f32 %v816_v58, %v5434_v13  ;;  %v699_v4 = vmul.f32 %v697_v17, %v5436_v14 }
  0xe7   : > { %v742_v5 = vrot.slane %v735_v60, 1  ;;  %v781_v6 = vrot.slane %v775_v61, 2  ;;  %v782_v10 = vrot.slane %v776_v62, 2  ;;  %v777_v15 = vmul.f32 %v774_v26, %v5445_v42 }
  0xe8   : > { %809 = vrot.lane.b32.xlu1 %v806_v36, %s5074_s28  ;;  %765 = vrot.lane.b32.xlu0 %v762_v40, %s5074_s28  ;;  %v741_v11 = vsel %vm480_vm8, %v739_v1, %v740_v2  ;;  %v818_v16 = vmul.f32 %v816_v58, %v5436_v14  ;;  %v858_v19 = vstv %s4547_s19  ;;  %v900_v20 = vstv %s4549_s23  ;;  %s5599_s19 = sld [smem:[#allocation6 + $0x5d]]  ;;  %s5633_s23 = sld [smem:[#allocation6 + $0x3]] }
  0xe9   : > { %v743_v21 = vsel %vm480_vm8, %v740_v2, %v742_v5  ;;  %v783_v22 = vsel %vm515_vm9, %v781_v6, %v782_v10  ;;  %v823_v23 = vrot.slane %v817_v3, 3  ;;  %v819_v24 = vmul.f32 %v816_v58, %v5445_v42 }
  0xea   : > { %v784_v28 = vrot.slane %v777_v15, 2  ;;  %v824_v29 = vrot.slane %v818_v16, 3  ;;  %v859_v30 = vmul.f32 %v858_v19, %v5434_v13  ;;  %v860_v31 = vmul.f32 %v858_v19, %v5436_v14 }
  0xeb   : > { %v826_v32 = vrot.slane %v819_v24, 3  ;;  %v861_v33 = vmul.f32 %v858_v19, %v5445_v42  ;;  %v901_v36 = vmul.f32 %v900_v20, %v5434_v13  ;;  %v902_v40 = vmul.f32 %v900_v20, %v5436_v14 }
  0xec   : > { %851 = vrot.lane.b32.xlu1 %v848_v46, %s5074_s28  ;;  %807 = vrot.lane.b32.xlu0 %v804_v47, %s5074_s28  ;;  %v785_v37 = vsel %vm515_vm9, %v782_v10, %v784_v28  ;;  %v825_v41 = vsel %vm550_vm10, %v823_v23, %v824_v29  ;;  %v865_v44 = vrot.slane %v859_v30, 4  ;;  %v866_v45 = vrot.slane %v860_v31, 4 }
  0xed   : > { %v942_v46 = vstv %s4551_s14  ;;  %v827_v47 = vsel %vm550_vm10, %v824_v29, %v826_v32  ;;  %v868_v48 = vrot.slane %v861_v33, 4  ;;  %v907_v49 = vrot.slane %v901_v36, 5  ;;  %s4568_s14 = sld [smem:[#allocation6 + $0xa]] }
  0xee   : > { %v908_v38 = vrot.slane %v902_v40, 5  ;;  %v867_v50 = vsel %vm585_vm11, %v865_v44, %v866_v45  ;;  %v903_v51 = vmul.f32 %v900_v20, %v5445_v42  ;;  %v943_v52 = vmul.f32 %v942_v46, %v5434_v13 }
  0xef   : > { %v944_v53 = vmul.f32 %v942_v46, %v5436_v14  ;;  %v945_v8 = vmul.f32 %v942_v46, %v5445_v42  ;;  %v334_v9 = vlaneseq  ;;  %v977_v17 = vstv %s5476_s24  ;;  %s4569_s24 = sld [smem:[#allocation6 + $0x3b]] }
  0xf0   : > { %893 = vrot.lane.b32.xlu1 %v890_v54, %s5074_s28  ;;  %849 = vrot.lane.b32.xlu0 %v846_v55, %s5074_s28  ;;  %v869_v54 = vsel %vm585_vm11, %v866_v45, %v868_v48  ;;  %v909_v55 = vsel %vm620_vm12, %v907_v49, %v908_v38  ;;  %v910_v56 = vrot.slane %v903_v51, 5  ;;  %v949_v57 = vrot.slane %v943_v52, 6 }
  0xf1   : > { %v950_v7 = vrot.slane %v944_v53, 6  ;;  %v991_v26 = vstv %s4554_s22  ;;  %v952_v35 = vrot.slane %v945_v8, 6  ;;  %v1012_v43 = vstv %s4555_s25  ;;  %s5642_s22 = sld [smem:[#allocation6 + $0x34]]  ;;  %s4570_s25 = sld [smem:[#allocation6 + $0x11]] }
  0xf2   : > { %v993_v39 = vmul.f32 %v991_v26, %v5382_v18  ;;  %v335_v58 = vand.u32 127, %v334_v9  ;;  %v978_v60 = vmul.f32 %v977_v17, %v5434_v13  ;;  %v994_v61 = vmul.f32 %v991_v26, %v5384_v25 }
  0xf3   : > { %v953_v62 = vsel %vm655_vm13, %v950_v7, %v952_v35  ;;  %v1013_v1 = vmul.f32 %v1012_v43, %v5434_v13  ;;  %v1014_v2 = vmul.f32 %v1012_v43, %v5436_v14  ;;  %v1033_v6 = vstv %s4556_s26  ;;  %s5076_s26 = smov 125  }
  0xf4   : > { %935 = vrot.lane.b32.xlu1 %v932_v27, %s5074_s28  ;;  %891 = vrot.lane.b32.xlu0 %v888_v34, %s5074_s28  ;;  %v911_v27 = vsel %vm620_vm12, %v908_v38, %v910_v56  ;;  %v951_v34 = vsel %vm655_vm13, %v949_v57, %v950_v7  ;;  %v336_v3 = vadd.s32 4294967293, %v335_v58  ;;  %v341_v15 = vadd.s32 4294967285, %v335_v58 }
  0xf5   : > { %v1015_v16 = vmul.f32 %v1012_v43, %v5445_v42  ;;  %v1035_v19 = vmul.f32 %v1033_v6, %v5382_v18  ;;  %v1020_v23 = vrot.slane %v1014_v2, 1  ;;  %v1034_v24 = vmul.f32 %v1033_v6, %v5373_v12 }
  0xf6   : > { %v1054_v28 = vstv %s4557_s29  ;;  %v1036_v36 = vmul.f32 %v1033_v6, %v5384_v25  ;;  %v1075_v46 = vstv %s5503_s30  ;;  %v1117_v2 = vstv %s5531_s10  ;;  %s4571_s29 = sld [smem:[#allocation6 + $0x42]]  ;;  %s4572_s30 = sld [smem:[#allocation6 + $0x18]] }
  0xf7   : > { %v1022_v32 = vrot.slane %v1015_v16, 1  ;;  %v1041_v33 = vrot.slane %v1035_v19, 2  ;;  %v1056_v44 = vmul.f32 %v1054_v28, %v5436_v14  ;;  %v1040_v45 = vrot.slane %v1034_v24, 2  ;;  %s4574_s10 = sld [smem:[#allocation6 + $0x1f]] }
  0xf8   : > { %702 = vrot.lane.b32.xlu1 %v698_v59, %s5074_s28  ;;  %933 = vrot.lane.b32.xlu0 %v930_v63, %s5074_s28  ;;  %v992_v59 = vmul.f32 %v991_v26, %v5373_v12  ;;  %v999_v63 = vrot.slane %v993_v39, 1  ;;  %v1077_v8 = vmul.f32 %v1075_v46, %v5382_v18  ;;  %v1078_v58 = vmul.f32 %v1075_v46, %v5384_v25 }
  0xf9   : > { %v1023_v53 = vsel %vm480_vm8, %v1020_v23, %v1022_v32  ;;  %v1062_v7 = vrot.slane %v1056_v44, 2 }
  0xfa   : > { %v998_v5 = vrot.slane %v992_v59, 1 }
  0xfc   : > { %704 = vrot.lane.b32.xlu1 %v699_v4, %s5074_s28  ;;  %744 = vrot.lane.b32.xlu0 %v741_v11, %s5074_s28  ;;  %v5507_v4 = vshrl.u32 %v334_v9, 7  ;;  %v979_v11 = vmul.f32 %v977_v17, %v5436_v14  ;;  %v1000_v20 = vsel %vm480_vm8, %v998_v5, %v999_v63 }
  0xfe   : > { %8436 = vst [vmem:[#allocation15_spill] sm:$0xff] %v5507_v4  ;;  %v5517_v29 = vsub.s32 %v336_v3, %v5507_v4  ;;  %v5520_v31 = vsub.s32 %v341_v15, %v5507_v4  ;;  %v1138_v3 = vstv %s5533_s11  ;;  %s4575_s11 = sld [smem:[#allocation6 + $0x50]] }
 0x100   : > { %746 = vrot.lane.b32.xlu1 %v743_v21, %s5074_s28  ;;  %786 = vrot.lane.b32.xlu0 %v783_v22, %s5074_s28  ;;  %v1001_v21 = vrot.slane %v994_v61, 1  ;;  %v1019_v22 = vrot.slane %v1013_v1, 1 }
 0x102   : > { %v1002_v40 = vsel %vm480_vm8, %v999_v63, %v1001_v21 }
 0x104   : > { %788 = vrot.lane.b32.xlu1 %v785_v37, %s5074_s28  ;;  %828 = vrot.lane.b32.xlu0 %v825_v41, %s5074_s28  ;;  %v1021_v37 = vsel %vm480_vm8, %v1019_v22, %v1020_v23  ;;  %v1055_v41 = vmul.f32 %v1054_v28, %v5434_v13  ;;  %v1119_v22 = vmul.f32 %v1117_v2, %v5382_v18 }
 0x106   : > { %v1061_v57 = vrot.slane %v1055_v41, 2 }
 0x108   : > { %830 = vrot.lane.b32.xlu1 %v827_v47, %s5074_s28  ;;  %870 = vrot.lane.b32.xlu0 %v867_v50, %s5074_s28  ;;  %v1096_v47 = vstv %s5505_s8  ;;  %v1057_v50 = vmul.f32 %v1054_v28, %v5445_v42  ;;  %v1063_v61 = vsel %vm515_vm9, %v1061_v57, %v1062_v7  ;;  %v1141_v57 = vmul.f32 %v1138_v3, %v5445_v42  ;;  %s4573_s8 = sld [smem:[#allocation6 + $0x49]] }
 0x109   : > { %v1097_v59 = vmul.f32 %v1096_v47, %v5434_v13  ;;  %v1098_v63 = vmul.f32 %v1096_v47, %v5436_v14  ;;  %v1099_v15 = vmul.f32 %v1096_v47, %v5445_v42  ;;  %v1140_v47 = vmul.f32 %v1138_v3, %v5436_v14 }
 0x10b   : > { %v1103_v21 = vrot.slane %v1097_v59, 3 }
 0x10c   : > { %872 = vrot.lane.b32.xlu1 %v869_v54, %s5074_s28  ;;  %912 = vrot.lane.b32.xlu0 %v909_v55, %s5074_s28  ;;  %v1042_v54 = vsel %vm515_vm9, %v1040_v45, %v1041_v33  ;;  %v1043_v55 = vrot.slane %v1036_v36, 2  ;;  %v1106_v36 = vrot.slane %v1099_v15, 3 }
 0x10e   : > { %v1044_v43 = vsel %vm515_vm9, %v1041_v33, %v1043_v55 }
 0x110   : > { %914 = vrot.lane.b32.xlu1 %v911_v27, %s5074_s28  ;;  %954 = vrot.lane.b32.xlu0 %v951_v34, %s5074_s28  ;;  %v1064_v27 = vrot.slane %v1057_v50, 2  ;;  %v1076_v34 = vmul.f32 %v1075_v46, %v5373_v12  ;;  %v1139_v46 = vmul.f32 %v1138_v3, %v5434_v13  ;;  %v1125_v50 = vrot.slane %v1119_v22, 4 }
 0x114   : > { %956 = vrot.lane.b32.xlu1 %v953_v62, %s5074_s28  ;;  %982 = vrot.lane.b32.xlu0 %v978_v60, %s5075_s4  ;;  %v1083_v62 = vrot.slane %v1077_v8, 3 }
 0x116   : > { %v311_v10 = vpop.xlane.xlu0 %310 }
 0x117   : > { %v340_v48 = vrot.slane %v311_v10, %v5517_v29  ;;  %v1065_v10 = vsel %vm515_vm9, %v1062_v7, %v1064_v27 }
 0x118   : > { %984 = vrot.lane.b32.xlu1 %v979_v11, %s5075_s4  ;;  %1003 = vrot.lane.b32.xlu0 %v1000_v20, %s5075_s4  ;;  %v1082_v11 = vrot.slane %v1076_v34, 3  ;;  %v1085_v20 = vrot.slane %v1078_v58, 3 }
 0x11a   : > { %v315_v30 = vpop.xlane.xlu0 %314  ;;  %v1084_v28 = vsel %vm550_vm10, %v1082_v11, %v1083_v62  ;;  %v1086_v45 = vsel %vm550_vm10, %v1083_v62, %v1085_v20  ;;  %v1148_v62 = vrot.slane %v1141_v57, 4 }
 0x11b   : > { %v351_v49 = vrot.slane %v315_v30, %v5517_v29  ;;  %v1104_v30 = vrot.slane %v1098_v63, 3 }
 0x11c   : > { %1005 = vrot.lane.b32.xlu1 %v1002_v40, %s5075_s4  ;;  %1024 = vrot.lane.b32.xlu0 %v1021_v37, %s5075_s4  ;;  %v1118_v40 = vmul.f32 %v1117_v2, %v5373_v12  ;;  %v1120_v37 = vmul.f32 %v1117_v2, %v5384_v25 }
 0x11e   : > { %v313_v38 = vpop.xlane.xlu1 %312  ;;  %v317_v52 = vpop.xlane.xlu0 %316  ;;  %v1124_v55 = vrot.slane %v1118_v40, 4 }
 0x11f   : > { %v345_v51 = vrot.slane %v313_v38, %v5520_v31  ;;  %v355_v56 = vrot.slane %v317_v52, %v5520_v31  ;;  %v1105_v38 = vsel %vm550_vm10, %v1103_v21, %v1104_v30  ;;  %v1180_v52 = vstv %s5562_s17  ;;  %s4577_s17 = sld [smem:[#allocation6 + $0x57]] }
 0x120   : > { %1026 = vrot.lane.b32.xlu1 %v1023_v53, %s5075_s4  ;;  %1045 = vrot.lane.b32.xlu0 %v1042_v54, %s5075_s4  ;;  %v1107_v54 = vsel %vm550_vm10, %v1104_v30, %v1106_v36  ;;  %v1201_v21 = vstv %s5587_s18  ;;  %v1183_v30 = vmul.f32 %v1180_v52, %v5445_v42  ;;  %s4578_s18 = sld [smem:[#allocation6 + $0x2d]] }
 0x121   : > { %v347_v9 = vsel %vm346_vm14, %v345_v51, %v340_v48  ;;  %v356_v17 = vsel %vm346_vm14, %v355_v56, %v351_v49  ;;  %v1159_v51 = vstv %s5560_s13  ;;  %v1127_v56 = vrot.slane %v1120_v37, 4  ;;  %s4576_s13 = sld [smem:[#allocation6 + $0x26]] }
 0x122   : > { %v319_v26 = vpop.xlane.xlu1 %318  ;;  %v321_v39 = vpop.xlane.xlu0 %320  ;;  %v375_v1 = vsel %vm254_vm2, %v356_v17, %v347_v9  ;;  %v1145_v9 = vrot.slane %v1139_v46, 4  ;;  %v1146_v17 = vrot.slane %v1140_v47, 4  ;;  %v1160_v58 = vmul.f32 %v1159_v51, %v5373_v12 }
 0x123   : > { %v360_v35 = vrot.slane %v319_v26, %v5517_v29  ;;  %v364_v60 = vrot.slane %v321_v39, %v5520_v31  ;;  %v1161_v26 = vmul.f32 %v1159_v51, %v5382_v18  ;;  %v1126_v39 = vsel %vm585_vm11, %v1124_v55, %v1125_v50 }
 0x124   : > { %1047 = vrot.lane.b32.xlu1 %v1044_v43, %s5075_s4  ;;  %1066 = vrot.lane.b32.xlu0 %v1063_v61, %s5075_s4  ;;  %v1128_v61 = vsel %vm585_vm11, %v1125_v50, %v1127_v56  ;;  %v1162_v63 = vmul.f32 %v1159_v51, %v5384_v25  ;;  %v1147_v3 = vsel %vm585_vm11, %v1145_v9, %v1146_v17  ;;  %v1166_v20 = vrot.slane %v1160_v58, 5 }
 0x125   : > { %v365_v5 = vsel %vm346_vm14, %v364_v60, %v360_v35  ;;  %v1203_v37 = vmul.f32 %v1201_v21, %v5382_v18  ;;  %v1202_v50 = vmul.f32 %v1201_v21, %v5373_v12  ;;  %v1243_v58 = vstv %s5633_s23  ;;  %s5781_s23 = sld [smem:[#allocation6 + $0x4]] }
 0x126   : > { %v323_v6 = vpop.xlane.xlu1 %322  ;;  %v325_v19 = vpop.xlane.xlu0 %324  ;;  %v376_v23 = vsel %vm256_vm3, %v365_v5, %v375_v1  ;;  %v1167_v5 = vrot.slane %v1161_v26, 5 }
 0x127   : > { %v369_v16 = vrot.slane %v323_v6, %v5517_v29  ;;  %v373_v24 = vrot.slane %v325_v19, %v5520_v31  ;;  %v1181_v6 = vmul.f32 %v1180_v52, %v5434_v13 }
 0x128   : > { %1068 = vrot.lane.b32.xlu1 %v1065_v10, %s5075_s4  ;;  %1087 = vrot.lane.b32.xlu0 %v1084_v28, %s5075_s4  ;;  %v1169_v28 = vrot.slane %v1162_v63, 5 }
 0x129   : > { %v374_v32 = vsel %vm346_vm14, %v373_v24, %v369_v16  ;;  %v1182_v16 = vmul.f32 %v1180_v52, %v5436_v14  ;;  %v1149_v24 = vsel %vm585_vm11, %v1146_v17, %v1148_v62  ;;  %v1187_v40 = vrot.slane %v1181_v6, 5 }
 0x12a   : > { %v381_v33 = vpop.xlane.xlu1 %380  ;;  %v377_v41 = vsel %vm258_vm5, %v374_v32, %v376_v23  ;;  %v383_v44 = vpop.xlane.xlu0 %382  ;;  %v1170_v51 = vsel %vm620_vm12, %v1167_v5, %v1169_v28  ;;  %v1190_v52 = vrot.slane %v1183_v30, 5  ;;  %v1257_v62 = vstv %s5642_s22  ;;  %s5792_s22 = sld [smem:[#allocation6 + $0x35]] }
 0x12b   : > { %379 = vst.msk [vmem:[#allocation4 + $0x3] sm:$0xf] %vm263_vm7, %v377_v41  ;;  %v396_v48 = vmul.f32 0.0625, %v381_v33  ;;  %v397_v49 = vmul.f32 0.0625, %v383_v44  ;;  %v1188_v46 = vrot.slane %v1182_v16, 5  ;;  %v1258_v6 = vmul.f32 %v1257_v62, %v5434_v13 }
 0x12c   : > { %1089 = vrot.lane.b32.xlu1 %v1086_v45, %s5075_s4  ;;  %1108 = vrot.lane.b32.xlu0 %v1105_v38, %s5075_s4  ;;  %v1168_v45 = vsel %vm620_vm12, %v1166_v20, %v1167_v5  ;;  %v1245_v5 = vmul.f32 %v1243_v58, %v5382_v18  ;;  %v1313_v28 = vstv %s4570_s25  ;;  %s4584_s25 = sld [smem:[#allocation6 + $0x12]] }
 0x12d   : > { %v415_v27 = vrot.slane %v396_v48, %v5517_v29  ;;  %v419_v34 = vrot.slane %v397_v49, %v5520_v31  ;;  %v1222_v48 = vstv %s5599_s19  ;;  %s4579_s19 = sld [smem:[#allocation6 + $0x5e]] }
 0x12e   : > { %v385_v53 = vpop.xlane.xlu1 %384  ;;  %v387_v8 = vpop.xlane.xlu0 %386  ;;  %v1223_v56 = vmul.f32 %v1222_v48, %v5434_v13  ;;  %v1224_v57 = vmul.f32 %v1222_v48, %v5436_v14  ;;  %v1225_v9 = vmul.f32 %v1222_v48, %v5445_v42 }
 0x12f   : > { %v398_v7 = vmul.f32 0.0625, %v385_v53  ;;  %v399_v35 = vmul.f32 0.0625, %v387_v8  ;;  %v420_v10 = vsel %vm346_vm14, %v419_v34, %v415_v27  ;;  %v1209_v53 = vrot.slane %v1203_v37, 6 }
 0x130   : > { %1110 = vrot.lane.b32.xlu1 %v1107_v54, %s5075_s4  ;;  %1129 = vrot.lane.b32.xlu0 %v1126_v39, %s5075_s4  ;;  %v1204_v54 = vmul.f32 %v1201_v21, %v5384_v25  ;;  %v1191_v8 = vsel %vm620_vm12, %v1188_v46, %v1190_v52  ;;  %v1229_v27 = vrot.slane %v1223_v56, 6  ;;  %v1230_v34 = vrot.slane %v1224_v57, 6 }
 0x131   : > { %v424_v43 = vrot.slane %v398_v7, %v5517_v29  ;;  %v428_v59 = vrot.slane %v399_v35, %v5520_v31  ;;  %v1208_v7 = vrot.slane %v1202_v50, 6  ;;  %v1314_v37 = vmul.f32 %v1313_v28, %v5373_v12 }
 0x132   : > { %v389_v60 = vpop.xlane.xlu1 %388  ;;  %v391_v2 = vpop.xlane.xlu0 %390  ;;  %v1211_v26 = vrot.slane %v1204_v54, 6  ;;  %v1231_v39 = vsel %vm655_vm13, %v1229_v27, %v1230_v34  ;;  %v1355_v56 = vstv %s4572_s30  ;;  %s4585_s30 = sld [smem:[#allocation6 + $0x43]] }
 0x133   : > { %v400_v1 = vmul.f32 0.0625, %v389_v60  ;;  %v429_v11 = vsel %vm346_vm14, %v428_v59, %v424_v43  ;;  %v401_v15 = vmul.f32 0.0625, %v391_v2  ;;  %v1210_v17 = vsel %vm655_vm13, %v1208_v7, %v1209_v53 }
 0x134   : > { %1131 = vrot.lane.b32.xlu1 %v1128_v61, %s5075_s4  ;;  %1150 = vrot.lane.b32.xlu0 %v1147_v3, %s5075_s4  ;;  %v448_v32 = vsel %vm254_vm2, %v429_v11, %v420_v10  ;;  %v1212_v35 = vsel %vm655_vm13, %v1209_v53, %v1211_v26  ;;  %v1232_v43 = vrot.slane %v1225_v9, 6  ;;  %v1244_v59 = vmul.f32 %v1243_v58, %v5373_v12 }
 0x135   : > { %v433_v19 = vrot.slane %v400_v1, %v5517_v29  ;;  %v437_v22 = vrot.slane %v401_v15, %v5520_v31  ;;  %v1271_v60 = vstv %s4568_s14  ;;  %v1292_v2 = vstv %s4569_s24  ;;  %s4582_s14 = sld [smem:[#allocation6 + $0xb]]  ;;  %s4583_s24 = sld [smem:[#allocation6 + $0x3c]] }
 0x136   : > { %v393_v23 = vpop.xlane.xlu1 %392  ;;  %v395_v36 = vpop.xlane.xlu0 %394  ;;  %v1233_v61 = vsel %vm655_vm13, %v1230_v34, %v1232_v43  ;;  %v1273_v63 = vmul.f32 %v1271_v60, %v5382_v18  ;;  %v1272_v3 = vmul.f32 %v1271_v60, %v5373_v12  ;;  %v1274_v10 = vmul.f32 %v1271_v60, %v5384_v25 }
 0x137   : > { %v402_v33 = vmul.f32 0.0625, %v393_v23  ;;  %v438_v41 = vsel %vm346_vm14, %v437_v22, %v433_v19  ;;  %v403_v44 = vmul.f32 0.0625, %v395_v36  ;;  %v1293_v15 = vmul.f32 %v1292_v2, %v5434_v13 }
 0x138   : > { %1152 = vrot.lane.b32.xlu1 %v1149_v24, %s5075_s4  ;;  %1171 = vrot.lane.b32.xlu0 %v1168_v45, %s5075_s4  ;;  %v449_v49 = vsel %vm256_vm3, %v438_v41, %v448_v32  ;;  %v1279_v11 = vrot.slane %v1273_v63, 1  ;;  %v1294_v16 = vmul.f32 %v1292_v2, %v5436_v14  ;;  %v1278_v19 = vrot.slane %v1272_v3, 1 }
 0x139   : > { %v442_v47 = vrot.slane %v402_v33, %v5517_v29  ;;  %v446_v38 = vrot.slane %v403_v44, %v5520_v31  ;;  %v1189_v29 = vsel %vm620_vm12, %v1187_v40, %v1188_v46  ;;  %v1259_v22 = vmul.f32 %v1257_v62, %v5436_v14 }
 0x13a   : > { %v1281_v23 = vrot.slane %v1274_v10, 1  ;;  %v1295_v24 = vmul.f32 %v1292_v2, %v5445_v42  ;;  %v1280_v30 = vsel %vm480_vm8, %v1278_v19, %v1279_v11  ;;  %v1299_v32 = vrot.slane %v1293_v15, 1 }
 0x13b   : > { %v447_v55 = vsel %vm346_vm14, %v446_v38, %v442_v47  ;;  %v1300_v33 = vrot.slane %v1294_v16, 1  ;;  %v1315_v36 = vmul.f32 %v1313_v28, %v5382_v18  ;;  %v1334_v40 = vstv %s4571_s29  ;;  %s5077_s29 = smov 124  }
 0x13c   : > { %v450_v31 = vsel %vm258_vm5, %v447_v55, %v449_v49  ;;  %1173 = vrot.lane.b32.xlu1 %v1170_v51, %s5075_s4  ;;  %1192 = vrot.lane.b32.xlu0 %v1189_v29, %s5075_s4  ;;  %v1282_v45 = vsel %vm480_vm8, %v1279_v11, %v1281_v23  ;;  %v1302_v46 = vrot.slane %v1295_v24, 1  ;;  %v1316_v47 = vmul.f32 %v1313_v28, %v5384_v25 }
 0x13d   : > { %453 = vst.msk [vmem:[#allocation4 + $0x13] sm:$0xf] %vm263_vm7, %v450_v31  ;;  %v1301_v48 = vsel %vm480_vm8, %v1299_v32, %v1300_v33  ;;  %v1321_v49 = vrot.slane %v1315_v36, 2  ;;  %v1335_v38 = vmul.f32 %v1334_v40, %v5434_v13  ;;  %v1336_v50 = vmul.f32 %v1334_v40, %v5436_v14 }
 0x13e   : > { %v1320_v51 = vrot.slane %v1314_v37, 2  ;;  %v1303_v54 = vsel %vm480_vm8, %v1300_v33, %v1302_v46  ;;  %v1323_v55 = vrot.slane %v1316_v47, 2  ;;  %v1337_v29 = vmul.f32 %v1334_v40, %v5445_v42 }
 0x13f   : > { %v1341_v31 = vrot.slane %v1335_v38, 2  ;;  %v1342_v7 = vrot.slane %v1336_v50, 2  ;;  %v1376_v9 = vstv %s4573_s8  ;;  %v1418_v19 = vstv %s4575_s11  ;;  %s5833_s8 = sld [smem:[#allocation6 + $0x19]]  ;;  %s4588_s11 = sld [smem:[#allocation6 + $0x20]] }
 0x140   : > { %1194 = vrot.lane.b32.xlu1 %v1191_v8, %s5075_s4  ;;  %1213 = vrot.lane.b32.xlu0 %v1210_v17, %s5075_s4  ;;  %v1322_v57 = vsel %vm515_vm9, %v1320_v51, %v1321_v49  ;;  %v1357_v8 = vmul.f32 %v1355_v56, %v5382_v18  ;;  %v1356_v17 = vmul.f32 %v1355_v56, %v5373_v12 }
 0x141   : > { %v1324_v34 = vsel %vm515_vm9, %v1321_v49, %v1323_v55  ;;  %v1343_v43 = vsel %vm515_vm9, %v1341_v31, %v1342_v7  ;;  %v1378_v60 = vmul.f32 %v1376_v9, %v5436_v14  ;;  %v1419_v40 = vmul.f32 %v1418_v19, %v5434_v13 }
 0x142   : > { %v1363_v58 = vrot.slane %v1357_v8, 3  ;;  %v1420_v37 = vmul.f32 %v1418_v19, %v5436_v14  ;;  %v1439_v49 = vstv %s4576_s13  ;;  %v1460_v55 = vstv %s4577_s17  ;;  %s4589_s13 = sld [smem:[#allocation6 + $0x51]]  ;;  %s4590_s17 = sld [smem:[#allocation6 + $0x27]] }
 0x143   : > { %v1384_v15 = vrot.slane %v1378_v60, 3  ;;  %v1425_v50 = vrot.slane %v1419_v40, 4 }
 0x144   : > { %1215 = vrot.lane.b32.xlu1 %v1212_v35, %s5075_s4  ;;  %1234 = vrot.lane.b32.xlu0 %v1231_v39, %s5075_s4  ;;  %v1344_v35 = vrot.slane %v1337_v29, 2  ;;  %v1358_v39 = vmul.f32 %v1355_v56, %v5384_v25  ;;  %v1426_v51 = vrot.slane %v1420_v37, 4  ;;  %v5743_v29 = vld [vmem:[#allocation2] sm:$0xff] }
 0x145   : > { %v1440_v56 = vmul.f32 %v5743_v29, %v1439_v49 }
 0x146   : > { %v5657_v1 = vpop.permute.xlu1 %688  ;;  %v1345_v2 = vsel %vm515_vm9, %v1342_v7, %v1344_v35  ;;  %v1365_v3 = vrot.slane %v1358_v39, 3  ;;  %v1461_v35 = vmul.f32 %v1460_v55, %v5434_v13  ;;  %v1462_v39 = vmul.f32 %v1460_v55, %v5436_v14 }
 0x147   : > { %8437 = vst [vmem:[#allocation16_spill] sm:$0xff] %v5657_v1 }
 0x148   : > { %1236 = vrot.lane.b32.xlu1 %v1233_v61, %s5075_s4  ;;  %1248 = vrot.lane.b32.xlu0 %v1244_v59, %s5076_s26  ;;  %v1377_v59 = vmul.f32 %v1376_v9, %v5434_v13  ;;  %v1362_v61 = vrot.slane %v1356_v17, 3  ;;  %v1366_v28 = vsel %vm550_vm10, %v1363_v58, %v1365_v3  ;;  %v1427_v17 = vsel %vm585_vm11, %v1425_v50, %v1426_v51 }
 0x149   : > { %v1481_v3 = vstv %s4578_s18  ;;  %s4591_s18 = sld [smem:[#allocation6 + $0x58]] }
 0x14a   : > { %v1364_v10 = vsel %vm550_vm10, %v1362_v61, %v1363_v58  ;;  %v1383_v11 = vrot.slane %v1377_v59, 3 }
 0x14c   : > { %1250 = vrot.lane.b32.xlu1 %v1245_v5, %s5076_s26  ;;  %1262 = vrot.lane.b32.xlu0 %v1258_v6, %s5076_s26  ;;  %v1379_v5 = vmul.f32 %v1376_v9, %v5445_v42  ;;  %v1397_v6 = vstv %s4574_s10  ;;  %v1385_v33 = vsel %vm550_vm10, %v1383_v11, %v1384_v15  ;;  %v5751_v9 = vld [vmem:[#allocation2 + $0x10] sm:$0x3f]  ;;  %v5766_v11 = vld [vmem:[#allocation2 + $0x8] sm:$0xff]  ;;  %s5839_s10 = sld [smem:[#allocation6 + $0x4a]] }
 0x14d   : > { %v1399_v16 = vmul.f32 %v1397_v6, %v5382_v18  ;;  %v1400_v32 = vmul.f32 %v1397_v6, %v5384_v25  ;;  %v1421_v25 = vmul.f32 %v1418_v19, %v5445_v42  ;;  %v1482_v19 = vmul.f32 %v5743_v29, %v1481_v3 }
 0x14e   : > { %v5667_v20 = vpop.permute.xlu1 %970  ;;  %v5669_v21 = vpop.permute.xlu0 %690 }
 0x14f   : > { %8438 = vst [vmem:[#allocation17_spill] sm:$0xff] %v5667_v20  ;;  %8439 = vst [vmem:[#allocation18_spill] sm:$0xff] %v5669_v21  ;;  %v1405_v36 = vrot.slane %v1399_v16, 4  ;;  %v1428_v8 = vrot.slane %v1421_v25, 4  ;;  %v1502_v16 = vstv %s4579_s19  ;;  %s4592_s19 = sld [smem:[#allocation6 + $0x2e]] }
 0x150   : > { %1264 = vrot.lane.b32.xlu1 %v1259_v22, %s5076_s26  ;;  %1283 = vrot.lane.b32.xlu0 %v1280_v30, %s5076_s26  ;;  %v1398_v22 = vmul.f32 %v1397_v6, %v5373_v12  ;;  %v1386_v30 = vrot.slane %v1379_v5, 3  ;;  %v1467_v6 = vrot.slane %v1461_v35, 5  ;;  %v1503_v37 = vmul.f32 %v1502_v16, %v5434_v13 }
 0x151   : > { %v1429_v60 = vsel %vm585_vm11, %v1426_v51, %v1428_v8 }
 0x152   : > { %v5678_v41 = vpop.permute.xlu1 %725  ;;  %v5680_v44 = vpop.permute.xlu0 %968  ;;  %v1404_v12 = vrot.slane %v1398_v22, 4  ;;  %v1387_v47 = vsel %vm550_vm10, %v1384_v15, %v1386_v30  ;;  %v1483_v15 = vmul.f32 %v5766_v11, %v1481_v3  ;;  %v1509_v51 = vrot.slane %v1503_v37, 6 }
 0x153   : > { %8440 = vst [vmem:[#allocation19_spill] sm:$0xff] %v5678_v41  ;;  %8441 = vst [vmem:[#allocation20_spill] sm:$0xff] %v5680_v44 }
 0x154   : > { %1285 = vrot.lane.b32.xlu1 %v1282_v45, %s5076_s26  ;;  %1304 = vrot.lane.b32.xlu0 %v1301_v48, %s5076_s26  ;;  %v1407_v48 = vrot.slane %v1400_v32, 4  ;;  %v1406_v38 = vsel %vm585_vm11, %v1404_v12, %v1405_v36  ;;  %v1489_v40 = vrot.slane %v1483_v15, 6  ;;  %v1504_v12 = vmul.f32 %v1502_v16, %v5436_v14 }
 0x156   : > { %v5689_v52 = vpop.permute.xlu1 %767  ;;  %v5691_v53 = vpop.permute.xlu0 %723  ;;  %v1408_v7 = vsel %vm585_vm11, %v1405_v36, %v1407_v48 }
 0x157   : > { %8442 = vst [vmem:[#allocation21_spill] sm:$0xff] %v5689_v52  ;;  %8443 = vst [vmem:[#allocation22_spill] sm:$0xff] %v5691_v53 }
 0x158   : > { %1306 = vrot.lane.b32.xlu1 %v1303_v54, %s5076_s26  ;;  %1325 = vrot.lane.b32.xlu0 %v1322_v57, %s5076_s26  ;;  %v1441_v54 = vmul.f32 %v1439_v49, %v5382_v18  ;;  %v1442_v18 = vmul.f32 %v5751_v9, %v1439_v49 }
 0x15a   : > { %v5700_v26 = vpop.permute.xlu1 %809  ;;  %v5702_v27 = vpop.permute.xlu0 %765  ;;  %v1449_v61 = vrot.slane %v1442_v18, 5 }
 0x15b   : > { %8444 = vst [vmem:[#allocation23_spill] sm:$0xff] %v5700_v26  ;;  %8445 = vst [vmem:[#allocation24_spill] sm:$0xff] %v5702_v27 }
 0x15c   : > { %1327 = vrot.lane.b32.xlu1 %v1324_v34, %s5076_s26  ;;  %1346 = vrot.lane.b32.xlu0 %v1343_v43, %s5076_s26  ;;  %v1447_v34 = vrot.slane %v1441_v54, 5  ;;  %v1446_v43 = vrot.slane %v1440_v56, 5  ;;  %v1510_v54 = vrot.slane %v1504_v12, 6 }
 0x15e   : > { %v5711_v62 = vpop.permute.xlu1 %851  ;;  %v5713_v63 = vpop.permute.xlu0 %807  ;;  %v1448_v5 = vsel %vm620_vm12, %v1446_v43, %v1447_v34  ;;  %v1450_v30 = vsel %vm620_vm12, %v1447_v34, %v1449_v61  ;;  %v1511_v18 = vsel %vm655_vm13, %v1509_v51, %v1510_v54  ;;  %v1523_v34 = vstv %s5781_s23  ;;  %s4593_s23 = sld [smem:[#allocation6 + $0x5f]] }
 0x15f   : > { %8446 = vst [vmem:[#allocation25_spill] sm:$0xff] %v5711_v62  ;;  %8447 = vst [vmem:[#allocation26_spill] sm:$0xff] %v5713_v63  ;;  %v1524_v43 = vmul.f32 %v5743_v29, %v1523_v34 }
 0x160   : > { %1348 = vrot.lane.b32.xlu1 %v1345_v2, %s5076_s26  ;;  %1367 = vrot.lane.b32.xlu0 %v1364_v10, %s5076_s26  ;;  %v1463_v2 = vmul.f32 %v1460_v55, %v5445_v42  ;;  %v1468_v10 = vrot.slane %v1462_v39, 5  ;;  %v1505_v55 = vmul.f32 %v1502_v16, %v5445_v42  ;;  %v1525_v16 = vmul.f32 %v5766_v11, %v1523_v34 }
 0x162   : > { %v5722_v23 = vpop.permute.xlu1 %893  ;;  %v5724_v24 = vpop.permute.xlu0 %849  ;;  %v1470_v32 = vrot.slane %v1463_v2, 5  ;;  %v1469_v36 = vsel %vm620_vm12, %v1467_v6, %v1468_v10  ;;  %v1537_v2 = vstv %s5792_s22  ;;  %s4596_s22 = sld [smem:[#allocation6 + $0xc]] }
 0x163   : > { %8448 = vst [vmem:[#allocation27_spill] sm:$0xff] %v5722_v23  ;;  %8449 = vst [vmem:[#allocation28_spill] sm:$0xff] %v5724_v24 }
 0x164   : > { %1369 = vrot.lane.b32.xlu1 %v1366_v28, %s5076_s26  ;;  %1388 = vrot.lane.b32.xlu0 %v1385_v33, %s5076_s26  ;;  %v1484_v33 = vmul.f32 %v5751_v9, %v1481_v3  ;;  %v1471_v49 = vsel %vm620_vm12, %v1468_v10, %v1470_v32 }
 0x166   : > { %v5733_v45 = vpop.permute.xlu1 %935  ;;  %v5735_v46 = vpop.permute.xlu0 %891 }
 0x167   : > { %8450 = vst [vmem:[#allocation29_spill] sm:$0xff] %v5733_v45  ;;  %8451 = vst [vmem:[#allocation30_spill] sm:$0xff] %v5735_v46 }
 0x168   : > { %1390 = vrot.lane.b32.xlu1 %v1387_v47, %s5076_s26  ;;  %1409 = vrot.lane.b32.xlu0 %v1406_v38, %s5076_s26  ;;  %v1488_v47 = vrot.slane %v1482_v19, 6  ;;  %v1491_v38 = vrot.slane %v1484_v33, 6  ;;  %v1538_v19 = vmul.f32 %v1537_v2, %v5434_v13 }
 0x16a   : > { %v5746_v57 = vpop.permute.xlu1 %702  ;;  %v5748_v31 = vpop.permute.xlu0 %933  ;;  %v1490_v50 = vsel %vm655_vm13, %v1488_v47, %v1489_v40  ;;  %v1492_v8 = vsel %vm655_vm13, %v1489_v40, %v1491_v38  ;;  %v1539_v47 = vmul.f32 %v1537_v2, %v5436_v14  ;;  %v5853_v2 = vld [vmem:[#allocation2 + $0x18] sm:$0xff] }
 0x16b   : > { %8452 = vst [vmem:[#allocation31_spill] sm:$0xff] %v5746_v57  ;;  %8453 = vst [vmem:[#allocation32_spill] sm:$0xff] %v5748_v31 }
 0x16c   : > { %1411 = vrot.lane.b32.xlu1 %v1408_v7, %s5076_s26  ;;  %1430 = vrot.lane.b32.xlu0 %v1427_v17, %s5076_s26  ;;  %v1512_v17 = vrot.slane %v1505_v55, 6 }
 0x16e   : > { %v5759_v58 = vpop.permute.xlu1 %704  ;;  %v5761_v59 = vpop.permute.xlu0 %744  ;;  %v1513_v61 = vsel %vm655_vm13, %v1510_v54, %v1512_v17 }
 0x16f   : > { %8454 = vst [vmem:[#allocation33_spill] sm:$0xff] %v5759_v58  ;;  %8455 = vst [vmem:[#allocation34_spill] sm:$0xff] %v5761_v59 }
 0x170   : > { %1432 = vrot.lane.b32.xlu1 %v1429_v60, %s5076_s26  ;;  %1451 = vrot.lane.b32.xlu0 %v1448_v5, %s5076_s26  ;;  %v1551_v60 = vstv %s4582_s14  ;;  %v1572_v5 = vstv %s4583_s24  ;;  %s5951_s14 = sld [smem:[#allocation6 + $0x5]]  ;;  %s5962_s24 = sld [smem:[#allocation6 + $0x36]] }
 0x171   : > { %v1553_v3 = vmul.f32 %v5766_v11, %v1551_v60  ;;  %v1552_v6 = vmul.f32 %v5743_v29, %v1551_v60  ;;  %v1573_v33 = vmul.f32 %v1572_v5, %v5434_v13  ;;  %v1575_v38 = vmul.f32 %v1572_v5, %v5445_v42 }
 0x172   : > { %v5772_v22 = vpop.permute.xlu1 %746  ;;  %v5774_v28 = vpop.permute.xlu0 %786 }
 0x173   : > { %8456 = vst [vmem:[#allocation35_spill] sm:$0xff] %v5772_v22  ;;  %8457 = vst [vmem:[#allocation36_spill] sm:$0xff] %v5774_v28  ;;  %v1559_v32 = vrot.slane %v1553_v3, 1  ;;  %v1558_v40 = vrot.slane %v1552_v6, 1  ;;  %v1579_v51 = vrot.slane %v1573_v33, 1  ;;  %v1582_v34 = vrot.slane %v1575_v38, 1 }
 0x174   : > { %1453 = vrot.lane.b32.xlu1 %v1450_v30, %s5076_s26  ;;  %1472 = vrot.lane.b32.xlu0 %v1469_v36, %s5076_s26  ;;  %v1554_v30 = vmul.f32 %v5751_v9, %v1551_v60  ;;  %v1574_v36 = vmul.f32 %v1572_v5, %v5436_v14  ;;  %v5856_v5 = vld [vmem:[#allocation2 + $0x20] sm:$0xff]  ;;  %v5866_v33 = vld [vmem:[#allocation2 + $0x28] sm:$0x3f] }
 0x175   : > { %v1560_v13 = vsel %vm480_vm8, %v1558_v40, %v1559_v32  ;;  %v1635_v40 = vstv %s5833_s8  ;;  %s5078_s8 = smov 123  }
 0x176   : > { %v5785_v48 = vpop.permute.xlu1 %788  ;;  %v5787_v25 = vpop.permute.xlu0 %828  ;;  %v1580_v54 = vrot.slane %v1574_v36, 1 }
 0x177   : > { %8458 = vst [vmem:[#allocation37_spill] sm:$0xff] %v5785_v48  ;;  %8459 = vst [vmem:[#allocation38_spill] sm:$0xff] %v5787_v25 }
 0x178   : > { %1474 = vrot.lane.b32.xlu1 %v1471_v49, %s5076_s26  ;;  %1493 = vrot.lane.b32.xlu0 %v1490_v50, %s5076_s26  ;;  %v1561_v49 = vrot.slane %v1554_v30, 1  ;;  %v1593_v50 = vstv %s4584_s25  ;;  %v1581_v60 = vsel %vm480_vm8, %v1579_v51, %v1580_v54  ;;  %v1583_v30 = vsel %vm480_vm8, %v1580_v54, %v1582_v34  ;;  %s4597_s25 = sld [smem:[#allocation6 + $0x3d]] }
 0x179   : > { %v1595_v55 = vmul.f32 %v5766_v11, %v1593_v50  ;;  %v1594_v14 = vmul.f32 %v5743_v29, %v1593_v50  ;;  %v1636_v51 = vmul.f32 %v5743_v29, %v1635_v40 }
 0x17a   : > { %v5796_v56 = vpop.permute.xlu1 %830  ;;  %v5798_v7 = vpop.permute.xlu0 %870  ;;  %v1562_v17 = vsel %vm480_vm8, %v1559_v32, %v1561_v49 }
 0x17b   : > { %8460 = vst [vmem:[#allocation39_spill] sm:$0xff] %v5796_v56  ;;  %8461 = vst [vmem:[#allocation40_spill] sm:$0xff] %v5798_v7  ;;  %v1600_v6 = vrot.slane %v1594_v14, 2 }
 0x17c   : > { %1495 = vrot.lane.b32.xlu1 %v1492_v8, %s5076_s26  ;;  %1514 = vrot.lane.b32.xlu0 %v1511_v18, %s5076_s26  ;;  %v1614_v8 = vstv %s4585_s30  ;;  %s4598_s30 = sld [smem:[#allocation6 + $0x13]] }
 0x17d   : > { %v1615_v3 = vmul.f32 %v5853_v2, %v1614_v8  ;;  %v1616_v0 = vmul.f32 %v5856_v5, %v1614_v8  ;;  %v1617_v36 = vmul.f32 %v5866_v33, %v1614_v8 }
 0x17e   : > { %v5805_v35 = vpop.permute.xlu1 %872  ;;  %v5807_v39 = vpop.permute.xlu0 %912 }
 0x17f   : > { %8462 = vst [vmem:[#allocation41_spill] sm:$0xff] %v5805_v35  ;;  %8463 = vst [vmem:[#allocation42_spill] sm:$0xff] %v5807_v39  ;;  %v1621_v49 = vrot.slane %v1615_v3, 2  ;;  %v1622_v38 = vrot.slane %v1616_v0, 2  ;;  %v1624_v14 = vrot.slane %v1617_v36, 2  ;;  %v1642_v0 = vrot.slane %v1636_v51, 3 }
 0x180   : > { %1516 = vrot.lane.b32.xlu1 %v1513_v61, %s5076_s26  ;;  %1528 = vrot.lane.b32.xlu0 %v1524_v43, %s5077_s29  ;;  %v1596_v43 = vmul.f32 %v5751_v9, %v1593_v50  ;;  %v1601_v61 = vrot.slane %v1595_v55, 2  ;;  %v1637_v50 = vmul.f32 %v5766_v11, %v1635_v40  ;;  %v1698_v51 = vstv %s4589_s13  ;;  %s4601_s13 = sld [smem:[#allocation6 + $0x4b]] }
 0x181   : > { %v1623_v34 = vsel %vm515_vm9, %v1621_v49, %v1622_v38 }
 0x182   : > { %v5816_v10 = vpop.permute.xlu1 %914  ;;  %v5818_v15 = vpop.permute.xlu0 %954  ;;  %v1603_v32 = vrot.slane %v1596_v43, 2  ;;  %v1643_v43 = vrot.slane %v1637_v50, 3 }
 0x183   : > { %8464 = vst [vmem:[#allocation43_spill] sm:$0xff] %v5816_v10  ;;  %8465 = vst [vmem:[#allocation44_spill] sm:$0xff] %v5818_v15 }
 0x184   : > { %1530 = vrot.lane.b32.xlu1 %v1525_v16, %s5077_s29  ;;  %1542 = vrot.lane.b32.xlu0 %v1538_v19, %s5077_s29  ;;  %v1604_v8 = vsel %vm515_vm9, %v1601_v61, %v1603_v32 }
 0x186   : > { %v5827_v37 = vpop.permute.xlu1 %956  ;;  %v5829_v12 = vpop.permute.xlu0 %982 }
 0x187   : > { %8466 = vst [vmem:[#allocation45_spill] sm:$0xff] %v5827_v37  ;;  %8467 = vst [vmem:[#allocation46_spill] sm:$0xff] %v5829_v12  ;;  %v2701_v12 = vstv %s6804_s21  ;;  %s6868_s21 = sld [smem:[#allocation6 + $0x136]] }
 0x188   : > { %1544 = vrot.lane.b32.xlu1 %v1539_v47, %s5077_s29  ;;  %1563 = vrot.lane.b32.xlu0 %v1560_v13, %s5077_s29  ;;  %v1602_v47 = vsel %vm515_vm9, %v1600_v6, %v1601_v61  ;;  %v1656_v13 = vstv %s5839_s10  ;;  %v1625_v61 = vsel %vm515_vm9, %v1622_v38, %v1624_v14  ;;  %s4599_s10 = sld [smem:[#allocation6 + $0x44]] }
 0x189   : > { %v1658_v3 = vmul.f32 %v5856_v5, %v1656_v13  ;;  %v1659_v36 = vmul.f32 %v5866_v33, %v1656_v13 }
 0x18a   : > { %v5846_v42 = vpop.permute.xlu1 %984  ;;  %v5848_v18 = vpop.permute.xlu0 %1003 }
 0x18b   : > { %8468 = vst [vmem:[#allocation47_spill] sm:$0xff] %v5846_v42  ;;  %8469 = vst [vmem:[#allocation48_spill] sm:$0xff] %v5848_v18  ;;  %v1664_v50 = vrot.slane %v1658_v3, 3  ;;  %v1666_v14 = vrot.slane %v1659_v36, 3 }
 0x18c   : > { %1565 = vrot.lane.b32.xlu1 %v1562_v17, %s5077_s29  ;;  %1584 = vrot.lane.b32.xlu0 %v1581_v60, %s5077_s29  ;;  %v1638_v17 = vmul.f32 %v5751_v9, %v1635_v40  ;;  %v1657_v60 = vmul.f32 %v5853_v2, %v1656_v13  ;;  %v1677_v40 = vstv %s4588_s11  ;;  %s4600_s11 = sld [smem:[#allocation6 + $0x1a]] }
 0x18e   : > { %v5861_v16 = vpop.permute.xlu1 %1005  ;;  %v5863_v19 = vpop.permute.xlu0 %1024  ;;  %v1645_v32 = vrot.slane %v1638_v17, 3  ;;  %v1663_v49 = vrot.slane %v1657_v60, 3  ;;  %v1680_v17 = vmul.f32 %v5751_v9, %v1677_v40 }
 0x18f   : > { %8470 = vst [vmem:[#allocation49_spill] sm:$0xff] %v5861_v16  ;;  %8471 = vst [vmem:[#allocation50_spill] sm:$0xff] %v5863_v19 }
 0x190   : > { %1586 = vrot.lane.b32.xlu1 %v1583_v30, %s5077_s29  ;;  %1605 = vrot.lane.b32.xlu0 %v1602_v47, %s5077_s29  ;;  %v1644_v47 = vsel %vm550_vm10, %v1642_v0, %v1643_v43  ;;  %v1646_v13 = vsel %vm550_vm10, %v1643_v43, %v1645_v32  ;;  %v1665_v60 = vsel %vm550_vm10, %v1663_v49, %v1664_v50  ;;  %v1687_v32 = vrot.slane %v1680_v17, 4 }
 0x191   : > { %v1699_v0 = vmul.f32 %v5853_v2, %v1698_v51  ;;  %v1667_v43 = vsel %vm550_vm10, %v1664_v50, %v1666_v14 }
 0x192   : > { %v5876_v54 = vpop.permute.xlu1 %1026  ;;  %v5878_v55 = vpop.permute.xlu0 %1045 }
 0x193   : > { %8472 = vst [vmem:[#allocation51_spill] sm:$0xff] %v5876_v54  ;;  %8473 = vst [vmem:[#allocation52_spill] sm:$0xff] %v5878_v55  ;;  %v1705_v49 = vrot.slane %v1699_v0, 4 }
 0x194   : > { %1607 = vrot.lane.b32.xlu1 %v1604_v8, %s5077_s29  ;;  %1626 = vrot.lane.b32.xlu0 %v1623_v34, %s5077_s29  ;;  %v1679_v8 = vmul.f32 %v5766_v11, %v1677_v40  ;;  %v1678_v34 = vmul.f32 %v5743_v29, %v1677_v40 }
 0x196   : > { %v5887_v6 = vpop.permute.xlu1 %1047  ;;  %v5889_v30 = vpop.permute.xlu0 %1066  ;;  %v1685_v3 = vrot.slane %v1679_v8, 4 }
 0x197   : > { %8474 = vst [vmem:[#allocation53_spill] sm:$0xff] %v5887_v6  ;;  %8475 = vst [vmem:[#allocation54_spill] sm:$0xff] %v5889_v30 }
 0x198   : > { %1628 = vrot.lane.b32.xlu1 %v1625_v61, %s5077_s29  ;;  %1647 = vrot.lane.b32.xlu0 %v1644_v47, %s5077_s29  ;;  %v1700_v61 = vmul.f32 %v5856_v5, %v1698_v51  ;;  %v1684_v47 = vrot.slane %v1678_v34, 4  ;;  %v1688_v14 = vsel %vm585_vm11, %v1685_v3, %v1687_v32 }
 0x19a   : > { %v5898_v4 = vpop.permute.xlu1 %1068  ;;  %v5900_v38 = vpop.permute.xlu0 %1087  ;;  %v1686_v40 = vsel %vm585_vm11, %v1684_v47, %v1685_v3  ;;  %v1706_v8 = vrot.slane %v1700_v61, 4 }
 0x19b   : > { %8476 = vst [vmem:[#allocation55_spill] sm:$0xff] %v5898_v4  ;;  %8477 = vst [vmem:[#allocation56_spill] sm:$0xff] %v5900_v38  ;;  %v1719_v4 = vstv %s4590_s17  ;;  %s4602_s17 = sld [smem:[#allocation6 + $0x21]] }
 0x19c   : > { %1649 = vrot.lane.b32.xlu1 %v1646_v13, %s5077_s29  ;;  %1668 = vrot.lane.b32.xlu0 %v1665_v60, %s5077_s29  ;;  %v1721_v36 = vmul.f32 %v5766_v11, %v1719_v4  ;;  %v1701_v13 = vmul.f32 %v5866_v33, %v1698_v51  ;;  %v1720_v34 = vmul.f32 %v5743_v29, %v1719_v4  ;;  %v1740_v60 = vstv %s4591_s18  ;;  %s4603_s18 = sld [smem:[#allocation6 + $0x52]] }
 0x19d   : > { %v1722_v0 = vmul.f32 %v5751_v9, %v1719_v4  ;;  %v1707_v61 = vsel %vm585_vm11, %v1705_v49, %v1706_v8  ;;  %v1741_v47 = vmul.f32 %v5853_v2, %v1740_v60  ;;  %v1743_v4 = vmul.f32 %v5866_v33, %v1740_v60 }
 0x19e   : > { %v5909_v30 = vpop.permute.xlu1 %1089  ;;  %v5911_v38 = vpop.permute.xlu0 %1108  ;;  %v1727_v17 = vrot.slane %v1721_v36, 5  ;;  %v1708_v51 = vrot.slane %v1701_v13, 4  ;;  %v1761_v36 = vstv %s4592_s19  ;;  %s4604_s19 = sld [smem:[#allocation6 + $0x28]] }
 0x19f   : > { %8478 = vst [vmem:[#allocation57_spill] sm:$0xff] %v5909_v30  ;;  %8479 = vst [vmem:[#allocation58_spill] sm:$0xff] %v5911_v38  ;;  %v1729_v32 = vrot.slane %v1722_v0, 5  ;;  %v1747_v13 = vrot.slane %v1741_v47, 5  ;;  %v1763_v6 = vmul.f32 %v5766_v11, %v1761_v36  ;;  %v1750_v0 = vrot.slane %v1743_v4, 5 }
 0x1a0   : > { %1670 = vrot.lane.b32.xlu1 %v1667_v43, %s5077_s29  ;;  %1689 = vrot.lane.b32.xlu0 %v1686_v40, %s5077_s29  ;;  %v1742_v43 = vmul.f32 %v5856_v5, %v1740_v60  ;;  %v1726_v40 = vrot.slane %v1720_v34, 5  ;;  %v1709_v49 = vsel %vm585_vm11, %v1706_v8, %v1708_v51  ;;  %v1782_v34 = vstv %s4593_s23  ;;  %s4605_s23 = sld [smem:[#allocation6 + $0x59]] }
 0x1a1   : > { %v1730_v60 = vsel %vm620_vm12, %v1727_v17, %v1729_v32  ;;  %v1764_v8 = vmul.f32 %v5751_v9, %v1761_v36  ;;  %v1769_v47 = vrot.slane %v1763_v6, 6 }
 0x1a2   : > { %v5920_v38 = vpop.permute.xlu1 %1110  ;;  %v5922_v50 = vpop.permute.xlu0 %1129  ;;  %v1728_v3 = vsel %vm620_vm12, %v1726_v40, %v1727_v17  ;;  %v1748_v30 = vrot.slane %v1742_v43, 5  ;;  %v1783_v43 = vmul.f32 %v5853_v2, %v1782_v34 }
 0x1a3   : > { %8480 = vst [vmem:[#allocation59_spill] sm:$0xff] %v5920_v38  ;;  %8481 = vst [vmem:[#allocation60_spill] sm:$0xff] %v5922_v50  ;;  %v1771_v4 = vrot.slane %v1764_v8, 6 }
 0x1a4   : > { %1691 = vrot.lane.b32.xlu1 %v1688_v14, %s5077_s29  ;;  %1710 = vrot.lane.b32.xlu0 %v1707_v61, %s5077_s29  ;;  %v1762_v14 = vmul.f32 %v5743_v29, %v1761_v36  ;;  %v1749_v51 = vsel %vm620_vm12, %v1747_v13, %v1748_v30  ;;  %v1751_v32 = vsel %vm620_vm12, %v1748_v30, %v1750_v0  ;;  %v1789_v36 = vrot.slane %v1783_v43, 6 }
 0x1a6   : > { %v5931_v38 = vpop.permute.xlu1 %1131  ;;  %v5933_v50 = vpop.permute.xlu0 %1150 }
 0x1a7   : > { %8482 = vst [vmem:[#allocation61_spill] sm:$0xff] %v5931_v38  ;;  %8483 = vst [vmem:[#allocation62_spill] sm:$0xff] %v5933_v50 }
 0x1a8   : > { %1712 = vrot.lane.b32.xlu1 %v1709_v49, %s5077_s29  ;;  %1731 = vrot.lane.b32.xlu0 %v1728_v3, %s5077_s29  ;;  %v1784_v49 = vmul.f32 %v5856_v5, %v1782_v34  ;;  %v1768_v3 = vrot.slane %v1762_v14, 6 }
 0x1aa   : > { %v5942_v61 = vpop.permute.xlu1 %1152  ;;  %v5944_v40 = vpop.permute.xlu0 %1171  ;;  %v1770_v6 = vsel %vm655_vm13, %v1768_v3, %v1769_v47  ;;  %v1790_v13 = vrot.slane %v1784_v49, 6  ;;  %v1831_v3 = vstv %s4596_s22  ;;  %s4607_s22 = sld [smem:[#allocation6 + $0x60]] }
 0x1ab   : > { %8484 = vst [vmem:[#allocation63_spill] sm:$0xff] %v5942_v61  ;;  %8485 = vst [vmem:[#allocation64_spill] sm:$0xff] %v5944_v40  ;;  %v1785_v61 = vmul.f32 %v5866_v33, %v1782_v34 }
 0x1ac   : > { %1733 = vrot.lane.b32.xlu1 %v1730_v60, %s5077_s29  ;;  %1752 = vrot.lane.b32.xlu0 %v1749_v51, %s5077_s29  ;;  %v1772_v60 = vsel %vm655_vm13, %v1769_v47, %v1771_v4  ;;  %v1791_v0 = vsel %vm655_vm13, %v1789_v36, %v1790_v13  ;;  %v1803_v51 = vstv %s5951_s14  ;;  %v1833_v47 = vmul.f32 %v5766_v11, %v1831_v3  ;;  %s4606_s14 = sld [smem:[#allocation6 + $0x2f]] }
 0x1ad   : > { %v1792_v8 = vrot.slane %v1785_v61, 6  ;;  %v1804_v49 = vmul.f32 %v5743_v29, %v1803_v51  ;;  %v1852_v61 = vstv %s4597_s25  ;;  %v1832_v4 = vmul.f32 %v5743_v29, %v1831_v3  ;;  %s4610_s25 = sld [smem:[#allocation6 + $0xd]] }
 0x1ae   : > { %v5955_v40 = vpop.permute.xlu1 %1173  ;;  %v5957_v17 = vpop.permute.xlu0 %1192 }
 0x1af   : > { %8486 = vst [vmem:[#allocation65_spill] sm:$0xff] %v5955_v40  ;;  %8487 = vst [vmem:[#allocation66_spill] sm:$0xff] %v5957_v17 }
 0x1b0   : > { %1754 = vrot.lane.b32.xlu1 %v1751_v32, %s5077_s29  ;;  %1773 = vrot.lane.b32.xlu0 %v1770_v6, %s5077_s29  ;;  %v1793_v32 = vsel %vm655_vm13, %v1790_v13, %v1792_v8  ;;  %v1817_v6 = vstv %s5962_s24  ;;  %v1839_v8 = vrot.slane %v1833_v47, 1  ;;  %v1855_v47 = vmul.f32 %v5866_v33, %v1852_v61  ;;  %s6105_s24 = sld [smem:[#allocation6 + $0x6]] }
 0x1b1   : > { %v1818_v13 = vmul.f32 %v5853_v2, %v1817_v6 }
 0x1b2   : > { %v5966_v14 = vpop.permute.xlu1 %1194  ;;  %v5968_v30 = vpop.permute.xlu0 %1213 }
 0x1b3   : > { %8488 = vst [vmem:[#allocation67_spill] sm:$0xff] %v5966_v14  ;;  %8489 = vst [vmem:[#allocation68_spill] sm:$0xff] %v5968_v30  ;;  %v1873_v30 = vstv %s4598_s30  ;;  %s6116_s30 = sld [smem:[#allocation6 + $0x37]] }
 0x1b4   : > { %1775 = vrot.lane.b32.xlu1 %v1772_v60, %s5077_s29  ;;  %1794 = vrot.lane.b32.xlu0 %v1791_v0, %s5077_s29  ;;  %v1805_v0 = vmul.f32 %v5766_v11, %v1803_v51  ;;  %v1819_v51 = vmul.f32 %v5856_v5, %v1817_v6  ;;  %v1876_v50 = vmul.f32 %v5751_v9, %v1873_v30 }
 0x1b6   : > { %v5975_v34 = vpop.permute.xlu1 %1215  ;;  %v5977_v43 = vpop.permute.xlu0 %1234 }
 0x1b7   : > { %8490 = vst [vmem:[#allocation69_spill] sm:$0xff] %v5975_v34  ;;  %8491 = vst [vmem:[#allocation70_spill] sm:$0xff] %v5977_v43  ;;  %v1834_v43 = vmul.f32 %v5751_v9, %v1831_v3  ;;  %v1854_v34 = vmul.f32 %v5856_v5, %v1852_v61  ;;  %v1875_v3 = vmul.f32 %v5766_v11, %v1873_v30 }
 0x1b8   : > { %1796 = vrot.lane.b32.xlu1 %v1793_v32, %s5077_s29  ;;  %1808 = vrot.lane.b32.xlu0 %v1804_v49, %s5078_s8  ;;  %v1853_v32 = vmul.f32 %v5853_v2, %v1852_v61  ;;  %v1838_v49 = vrot.slane %v1832_v4, 1  ;;  %v1894_v4 = vstv %s4599_s10  ;;  %v1862_v61 = vrot.slane %v1855_v47, 1  ;;  %s4611_s10 = sld [smem:[#allocation6 + $0x3e]] }
 0x1b9   : > { %v1841_v17 = vrot.slane %v1834_v43, 1 }
 0x1ba   : > { %v5986_v36 = vpop.permute.xlu1 %1236  ;;  %v5988_v60 = vpop.permute.xlu0 %1248  ;;  %v1840_v14 = vsel %vm480_vm8, %v1838_v49, %v1839_v8  ;;  %v1859_v40 = vrot.slane %v1853_v32, 1  ;;  %v1895_v32 = vmul.f32 %v5853_v2, %v1894_v4 }
 0x1bb   : > { %8492 = vst [vmem:[#allocation71_spill] sm:$0xff] %v5986_v36  ;;  %8493 = vst [vmem:[#allocation72_spill] sm:$0xff] %v5988_v60  ;;  %v1842_v43 = vsel %vm480_vm8, %v1839_v8, %v1841_v17  ;;  %v1897_v17 = vmul.f32 %v5866_v33, %v1894_v4  ;;  %v1915_v8 = vstv %s4600_s11  ;;  %s4612_s11 = sld [smem:[#allocation6 + $0x14]] }
 0x1bc   : > { %1810 = vrot.lane.b32.xlu1 %v1805_v0, %s5078_s8  ;;  %1822 = vrot.lane.b32.xlu0 %v1818_v13, %s5078_s8  ;;  %v1860_v0 = vrot.slane %v1854_v34, 1  ;;  %v1874_v13 = vmul.f32 %v5743_v29, %v1873_v30  ;;  %v1883_v30 = vrot.slane %v1876_v50, 2 }
 0x1be   : > { %v5997_v36 = vpop.permute.xlu1 %1250  ;;  %v5999_v60 = vpop.permute.xlu0 %1262  ;;  %v1861_v34 = vsel %vm480_vm8, %v1859_v40, %v1860_v0  ;;  %v1880_v49 = vrot.slane %v1874_v13, 2  ;;  %v1863_v47 = vsel %vm480_vm8, %v1860_v0, %v1862_v61  ;;  %v1936_v13 = vstv %s4601_s13  ;;  %s8422_s13 = smov 122  }
 0x1bf   : > { %8494 = vst [vmem:[#allocation73_spill] sm:$0xff] %v5997_v36  ;;  %8495 = vst [vmem:[#allocation74_spill] sm:$0xff] %v5999_v60  ;;  %v1881_v36 = vrot.slane %v1875_v3, 2  ;;  %v1901_v3 = vrot.slane %v1895_v32, 2  ;;  %v1904_v61 = vrot.slane %v1897_v17, 2  ;;  %v1918_v32 = vmul.f32 %v5751_v9, %v1915_v8 }
 0x1c0   : > { %1824 = vrot.lane.b32.xlu1 %v1819_v51, %s5078_s8  ;;  %1843 = vrot.lane.b32.xlu0 %v1840_v14, %s5078_s8  ;;  %v1896_v14 = vmul.f32 %v5856_v5, %v1894_v4  ;;  %v1939_v17 = vmul.f32 %v5866_v33, %v1936_v13 }
 0x1c1   : > { %v1882_v40 = vsel %vm515_vm9, %v1880_v49, %v1881_v36  ;;  %v1884_v4 = vsel %vm515_vm9, %v1881_v36, %v1883_v30  ;;  %v1925_v30 = vrot.slane %v1918_v32, 3 }
 0x1c2   : > { %v6008_v60 = vpop.permute.xlu1 %1264  ;;  %v6010_v6 = vpop.permute.xlu0 %1283  ;;  %v1946_v32 = vrot.slane %v1939_v17, 3 }
 0x1c3   : > { %8496 = vst [vmem:[#allocation75_spill] sm:$0xff] %v6008_v60  ;;  %8497 = vst [vmem:[#allocation76_spill] sm:$0xff] %v6010_v6  ;;  %v1902_v60 = vrot.slane %v1896_v14, 2 }
 0x1c4   : > { %1845 = vrot.lane.b32.xlu1 %v1842_v43, %s5078_s8  ;;  %1864 = vrot.lane.b32.xlu0 %v1861_v34, %s5078_s8  ;;  %v1917_v43 = vmul.f32 %v5766_v11, %v1915_v8  ;;  %v1916_v34 = vmul.f32 %v5743_v29, %v1915_v8  ;;  %v1957_v8 = vstv %s4602_s17  ;;  %s4613_s17 = sld [smem:[#allocation6 + $0x45]] }
 0x1c5   : > { %v1903_v14 = vsel %vm515_vm9, %v1901_v3, %v1902_v60  ;;  %v1905_v36 = vsel %vm515_vm9, %v1902_v60, %v1904_v61 }
 0x1c6   : > { %v6019_v51 = vpop.permute.xlu1 %1285  ;;  %v6021_v6 = vpop.permute.xlu0 %1304  ;;  %v1923_v49 = vrot.slane %v1917_v43, 3 }
 0x1c7   : > { %8498 = vst [vmem:[#allocation77_spill] sm:$0xff] %v6019_v51  ;;  %8499 = vst [vmem:[#allocation78_spill] sm:$0xff] %v6021_v6  ;;  %v1922_v6 = vrot.slane %v1916_v34, 3  ;;  %v1978_v34 = vstv %s4603_s18  ;;  %s4614_s18 = sld [smem:[#allocation6 + $0x1b]] }
 0x1c8   : > { %1866 = vrot.lane.b32.xlu1 %v1863_v47, %s5078_s8  ;;  %1885 = vrot.lane.b32.xlu0 %v1882_v40, %s5078_s8  ;;  %v1937_v47 = vmul.f32 %v5853_v2, %v1936_v13  ;;  %v1938_v40 = vmul.f32 %v5856_v5, %v1936_v13  ;;  %v1926_v13 = vsel %vm550_vm10, %v1923_v49, %v1925_v30 }
 0x1c9   : > { %v1924_v3 = vsel %vm550_vm10, %v1922_v6, %v1923_v49  ;;  %v1960_v6 = vmul.f32 %v5751_v9, %v1957_v8  ;;  %v1981_v17 = vmul.f32 %v5866_v33, %v1978_v34 }
 0x1ca   : > { %v6030_v0 = vpop.permute.xlu1 %1306  ;;  %v6032_v50 = vpop.permute.xlu0 %1325  ;;  %v1943_v43 = vrot.slane %v1937_v47, 3  ;;  %v1944_v51 = vrot.slane %v1938_v40, 3 }
 0x1cb   : > { %8500 = vst [vmem:[#allocation79_spill] sm:$0xff] %v6030_v0  ;;  %8501 = vst [vmem:[#allocation80_spill] sm:$0xff] %v6032_v50  ;;  %v1967_v30 = vrot.slane %v1960_v6, 4  ;;  %v1988_v6 = vrot.slane %v1981_v17, 4 }
 0x1cc   : > { %1887 = vrot.lane.b32.xlu1 %v1884_v4, %s5078_s8  ;;  %1906 = vrot.lane.b32.xlu0 %v1903_v14, %s5078_s8  ;;  %v1959_v4 = vmul.f32 %v5766_v11, %v1957_v8  ;;  %v1958_v14 = vmul.f32 %v5743_v29, %v1957_v8  ;;  %v1945_v47 = vsel %vm550_vm10, %v1943_v43, %v1944_v51  ;;  %v1999_v8 = vstv %s4604_s19  ;;  %s4615_s19 = sld [smem:[#allocation6 + $0x4c]] }
 0x1cd   : > { %v1947_v49 = vsel %vm550_vm10, %v1944_v51, %v1946_v32 }
 0x1ce   : > { %v6041_v0 = vpop.permute.xlu1 %1327  ;;  %v6043_v50 = vpop.permute.xlu0 %1346  ;;  %v1965_v40 = vrot.slane %v1959_v4, 4 }
 0x1cf   : > { %8502 = vst [vmem:[#allocation81_spill] sm:$0xff] %v6041_v0  ;;  %8503 = vst [vmem:[#allocation82_spill] sm:$0xff] %v6043_v50  ;;  %v1964_v50 = vrot.slane %v1958_v14, 4  ;;  %v2020_v14 = vstv %s4605_s23  ;;  %s4616_s23 = sld [smem:[#allocation6 + $0x22]] }
 0x1d0   : > { %1908 = vrot.lane.b32.xlu1 %v1905_v36, %s5078_s8  ;;  %1927 = vrot.lane.b32.xlu0 %v1924_v3, %s5078_s8  ;;  %v1979_v36 = vmul.f32 %v5853_v2, %v1978_v34  ;;  %v1980_v3 = vmul.f32 %v5856_v5, %v1978_v34  ;;  %v1968_v34 = vsel %vm585_vm11, %v1965_v40, %v1967_v30 }
 0x1d1   : > { %v1966_v43 = vsel %vm585_vm11, %v1964_v50, %v1965_v40  ;;  %v2002_v50 = vmul.f32 %v5751_v9, %v1999_v8  ;;  %v2023_v17 = vmul.f32 %v5866_v33, %v2020_v14 }
 0x1d2   : > { %v6052_v60 = vpop.permute.xlu1 %1348  ;;  %v6054_v61 = vpop.permute.xlu0 %1367  ;;  %v1985_v4 = vrot.slane %v1979_v36, 4  ;;  %v1986_v0 = vrot.slane %v1980_v3, 4 }
 0x1d3   : > { %8504 = vst [vmem:[#allocation83_spill] sm:$0xff] %v6052_v60  ;;  %8505 = vst [vmem:[#allocation84_spill] sm:$0xff] %v6054_v61  ;;  %v2009_v30 = vrot.slane %v2002_v50, 5 }
 0x1d4   : > { %1929 = vrot.lane.b32.xlu1 %v1926_v13, %s5078_s8  ;;  %1948 = vrot.lane.b32.xlu0 %v1945_v47, %s5078_s8  ;;  %v2001_v13 = vmul.f32 %v5766_v11, %v1999_v8  ;;  %v2000_v47 = vmul.f32 %v5743_v29, %v1999_v8  ;;  %v1987_v36 = vsel %vm585_vm11, %v1985_v4, %v1986_v0  ;;  %v2041_v8 = vstv %s4606_s14  ;;  %s4617_s14 = sld [smem:[#allocation6 + $0x53]] }
 0x1d5   : > { %v1989_v40 = vsel %vm585_vm11, %v1986_v0, %v1988_v6  ;;  %v2043_v38 = vmul.f32 %v5766_v11, %v2041_v8  ;;  %v2030_v6 = vrot.slane %v2023_v17, 5 }
 0x1d6   : > { %v6063_v60 = vpop.permute.xlu1 %1369  ;;  %v6065_v61 = vpop.permute.xlu0 %1388  ;;  %v2007_v3 = vrot.slane %v2001_v13, 5 }
 0x1d7   : > { %8506 = vst [vmem:[#allocation85_spill] sm:$0xff] %v6063_v60  ;;  %8507 = vst [vmem:[#allocation86_spill] sm:$0xff] %v6065_v61  ;;  %v2006_v61 = vrot.slane %v2000_v47, 5  ;;  %v2062_v47 = vstv %s4607_s22  ;;  %s4618_s22 = sld [smem:[#allocation6 + $0x29]] }
 0x1d8   : > { %1950 = vrot.lane.b32.xlu1 %v1947_v49, %s5078_s8  ;;  %1969 = vrot.lane.b32.xlu0 %v1966_v43, %s5078_s8  ;;  %v2021_v49 = vmul.f32 %v5853_v2, %v2020_v14  ;;  %v2022_v43 = vmul.f32 %v5856_v5, %v2020_v14  ;;  %v2010_v14 = vsel %vm620_vm12, %v2007_v3, %v2009_v30 }
 0x1d9   : > { %v2008_v4 = vsel %vm620_vm12, %v2006_v61, %v2007_v3  ;;  %v2044_v61 = vmul.f32 %v5751_v9, %v2041_v8 }
 0x1da   : > { %v6074_v51 = vpop.permute.xlu1 %1390  ;;  %v6076_v32 = vpop.permute.xlu0 %1409  ;;  %v2027_v13 = vrot.slane %v2021_v49, 5  ;;  %v2028_v60 = vrot.slane %v2022_v43, 5  ;;  %v2049_v49 = vrot.slane %v2043_v38, 6  ;;  %v2063_v43 = vmul.f32 %v5853_v2, %v2062_v47 }
 0x1db   : > { %8508 = vst [vmem:[#allocation87_spill] sm:$0xff] %v6074_v51  ;;  %8509 = vst [vmem:[#allocation88_spill] sm:$0xff] %v6076_v32  ;;  %v2051_v17 = vrot.slane %v2044_v61, 6 }
 0x1dc   : > { %1971 = vrot.lane.b32.xlu1 %v1968_v34, %s5078_s8  ;;  %1990 = vrot.lane.b32.xlu0 %v1987_v36, %s5078_s8  ;;  %v2042_v34 = vmul.f32 %v5743_v29, %v2041_v8  ;;  %v2029_v50 = vsel %vm620_vm12, %v2027_v13, %v2028_v60  ;;  %v2031_v30 = vsel %vm620_vm12, %v2028_v60, %v2030_v6  ;;  %v2069_v8 = vrot.slane %v2063_v43, 6 }
 0x1de   : > { %v6085_v51 = vpop.permute.xlu1 %1411  ;;  %v6087_v32 = vpop.permute.xlu0 %1430 }
 0x1df   : > { %8510 = vst [vmem:[#allocation89_spill] sm:$0xff] %v6085_v51  ;;  %8511 = vst [vmem:[#allocation90_spill] sm:$0xff] %v6087_v32 }
 0x1e0   : > { %1992 = vrot.lane.b32.xlu1 %v1989_v40, %s5078_s8  ;;  %2011 = vrot.lane.b32.xlu0 %v2008_v4, %s5078_s8  ;;  %v2064_v40 = vmul.f32 %v5856_v5, %v2062_v47  ;;  %v2048_v4 = vrot.slane %v2042_v34, 6 }
 0x1e2   : > { %v6096_v36 = vpop.permute.xlu1 %1432  ;;  %v6098_v0 = vpop.permute.xlu0 %1451  ;;  %v2050_v38 = vsel %vm655_vm13, %v2048_v4, %v2049_v49  ;;  %v2070_v13 = vrot.slane %v2064_v40, 6  ;;  %v2111_v4 = vstv %s4610_s25  ;;  %s4620_s25 = sld [smem:[#allocation6 + $0x30]] }
 0x1e3   : > { %8512 = vst [vmem:[#allocation91_spill] sm:$0xff] %v6096_v36  ;;  %8513 = vst [vmem:[#allocation92_spill] sm:$0xff] %v6098_v0  ;;  %v2065_v36 = vmul.f32 %v5866_v33, %v2062_v47 }
 0x1e4   : > { %2013 = vrot.lane.b32.xlu1 %v2010_v14, %s5078_s8  ;;  %2032 = vrot.lane.b32.xlu0 %v2029_v50, %s5078_s8  ;;  %v2052_v14 = vsel %vm655_vm13, %v2049_v49, %v2051_v17  ;;  %v2071_v6 = vsel %vm655_vm13, %v2069_v8, %v2070_v13  ;;  %v2083_v50 = vstv %s6105_s24  ;;  %v2113_v49 = vmul.f32 %v5766_v11, %v2111_v4  ;;  %s6205_s24 = sld [smem:[#allocation6 + $0x5a]] }
 0x1e5   : > { %v2072_v61 = vrot.slane %v2065_v36, 6  ;;  %v2084_v40 = vmul.f32 %v5743_v29, %v2083_v50  ;;  %v2132_v36 = vstv %s4611_s10  ;;  %v2112_v17 = vmul.f32 %v5743_v29, %v2111_v4  ;;  %s6251_s10 = sld [smem:[#allocation6 + $0x81]] }
 0x1e6   : > { %v6109_v0 = vpop.permute.xlu1 %1453  ;;  %v6111_v3 = vpop.permute.xlu0 %1472 }
 0x1e7   : > { %8514 = vst [vmem:[#allocation93_spill] sm:$0xff] %v6109_v0  ;;  %8515 = vst [vmem:[#allocation94_spill] sm:$0xff] %v6111_v3 }
 0x1e8   : > { %2034 = vrot.lane.b32.xlu1 %v2031_v30, %s5078_s8  ;;  %2053 = vrot.lane.b32.xlu0 %v2050_v38, %s5078_s8  ;;  %v2073_v30 = vsel %vm655_vm13, %v2070_v13, %v2072_v61  ;;  %v2097_v38 = vstv %s6116_s30  ;;  %v2114_v61 = vmul.f32 %v5751_v9, %v2111_v4  ;;  %v2153_v4 = vstv %s4612_s11  ;;  %s4621_s30 = sld [smem:[#allocation6 + $0x61]]  ;;  %s6256_s11 = sld [smem:[#allocation6 + $0x88]] }
 0x1e9   : > { %v2098_v13 = vmul.f32 %v5853_v2, %v2097_v38 }
 0x1ea   : > { %v6120_v34 = vpop.permute.xlu1 %1474  ;;  %v6122_v60 = vpop.permute.xlu0 %1493 }
 0x1eb   : > { %8516 = vst [vmem:[#allocation95_spill] sm:$0xff] %v6120_v34  ;;  %8517 = vst [vmem:[#allocation96_spill] sm:$0xff] %v6122_v60  ;;  %v2135_v34 = vmul.f32 %v5866_v33, %v2132_v36 }
 0x1ec   : > { %2055 = vrot.lane.b32.xlu1 %v2052_v14, %s5078_s8  ;;  %2074 = vrot.lane.b32.xlu0 %v2071_v6, %s5078_s8  ;;  %v2085_v6 = vmul.f32 %v5766_v11, %v2083_v50  ;;  %v2099_v50 = vmul.f32 %v5856_v5, %v2097_v38 }
 0x1ee   : > { %v6129_v47 = vpop.permute.xlu1 %1495  ;;  %v6131_v43 = vpop.permute.xlu0 %1514 }
 0x1ef   : > { %8518 = vst [vmem:[#allocation97_spill] sm:$0xff] %v6129_v47  ;;  %8519 = vst [vmem:[#allocation98_spill] sm:$0xff] %v6131_v43  ;;  %v2119_v43 = vrot.slane %v2113_v49, 1  ;;  %v2134_v47 = vmul.f32 %v5856_v5, %v2132_v36 }
 0x1f0   : > { %2076 = vrot.lane.b32.xlu1 %v2073_v30, %s5078_s8  ;;  %2088 = vrot.lane.b32.xlu0 %v2084_v40, %s8422_s13  ;;  %v2133_v30 = vmul.f32 %v5853_v2, %v2132_v36  ;;  %v2118_v40 = vrot.slane %v2112_v17, 1  ;;  %v2174_v17 = vstv %s4613_s17  ;;  %s6265_s17 = sld [smem:[#allocation6 + $0xb9]] }
 0x1f1   : > { %v2140_v0 = vrot.slane %v2134_v47, 1 }
 0x1f2   : > { %v6140_v8 = vpop.permute.xlu1 %1516  ;;  %v6142_v14 = vpop.permute.xlu0 %1528  ;;  %v2120_v49 = vsel %vm480_vm8, %v2118_v40, %v2119_v43  ;;  %v2139_v3 = vrot.slane %v2133_v30, 1  ;;  %v2156_v30 = vmul.f32 %v5751_v9, %v2153_v4 }
 0x1f3   : > { %8520 = vst [vmem:[#allocation99_spill] sm:$0xff] %v6140_v8  ;;  %8521 = vst [vmem:[#allocation100_spill] sm:$0xff] %v6142_v14  ;;  %v2121_v14 = vrot.slane %v2114_v61, 1 }
 0x1f4   : > { %2090 = vrot.lane.b32.xlu1 %v2085_v6, %s8422_s13  ;;  %2102 = vrot.lane.b32.xlu0 %v2098_v13, %s8422_s13  ;;  %v2155_v6 = vmul.f32 %v5766_v11, %v2153_v4  ;;  %v2154_v13 = vmul.f32 %v5743_v29, %v2153_v4  ;;  %v2141_v47 = vsel %vm480_vm8, %v2139_v3, %v2140_v0  ;;  %v2195_v3 = vstv %s4614_s18  ;;  %s6269_s18 = sld [smem:[#allocation6 + $0xb2]] }
 0x1f5   : > { %v2122_v36 = vsel %vm480_vm8, %v2119_v43, %v2121_v14  ;;  %v2163_v43 = vrot.slane %v2156_v30, 2  ;;  %v2177_v14 = vmul.f32 %v5866_v33, %v2174_v17 }
 0x1f6   : > { %v6151_v60 = vpop.permute.xlu1 %1530  ;;  %v6153_v8 = vpop.permute.xlu0 %1542  ;;  %v2161_v40 = vrot.slane %v2155_v6, 2 }
 0x1f7   : > { %8522 = vst [vmem:[#allocation101_spill] sm:$0xff] %v6151_v60  ;;  %8523 = vst [vmem:[#allocation102_spill] sm:$0xff] %v6153_v8  ;;  %v2142_v8 = vrot.slane %v2135_v34, 1  ;;  %v2160_v60 = vrot.slane %v2154_v13, 2  ;;  %v2216_v13 = vstv %s4615_s19  ;;  %v2184_v30 = vrot.slane %v2177_v14, 2  ;;  %s6271_s19 = sld [smem:[#allocation6 + $0x8f]] }
 0x1f8   : > { %2104 = vrot.lane.b32.xlu1 %v2099_v50, %s8422_s13  ;;  %2123 = vrot.lane.b32.xlu0 %v2120_v49, %s8422_s13  ;;  %v2175_v50 = vmul.f32 %v5853_v2, %v2174_v17  ;;  %v2176_v49 = vmul.f32 %v5856_v5, %v2174_v17  ;;  %v2164_v17 = vsel %vm515_vm9, %v2161_v40, %v2163_v43  ;;  %v2237_v14 = vstv %s4616_s23  ;;  %s6280_s23 = sld [smem:[#allocation6 + $0xc0]] }
 0x1f9   : > { %v2143_v34 = vsel %vm480_vm8, %v2140_v0, %v2142_v8  ;;  %v2162_v4 = vsel %vm515_vm9, %v2160_v60, %v2161_v40  ;;  %v2198_v60 = vmul.f32 %v5751_v9, %v2195_v3  ;;  %v2219_v9 = vmul.f32 %v5866_v33, %v2216_v13 }
 0x1fa   : > { %v6162_v38 = vpop.permute.xlu1 %1544  ;;  %v6164_v61 = vpop.permute.xlu0 %1563  ;;  %v2181_v6 = vrot.slane %v2175_v50, 2  ;;  %v2182_v32 = vrot.slane %v2176_v49, 2 }
 0x1fb   : > { %8524 = vst [vmem:[#allocation103_spill] sm:$0xff] %v6162_v38  ;;  %8525 = vst [vmem:[#allocation104_spill] sm:$0xff] %v6164_v61  ;;  %v2205_v43 = vrot.slane %v2198_v60, 3 }
 0x1fc   : > { %2125 = vrot.lane.b32.xlu1 %v2122_v36, %s8422_s13  ;;  %2144 = vrot.lane.b32.xlu0 %v2141_v47, %s8422_s13  ;;  %v2197_v36 = vmul.f32 %v5766_v11, %v2195_v3  ;;  %v2196_v47 = vmul.f32 %v5743_v29, %v2195_v3  ;;  %v2183_v50 = vsel %vm515_vm9, %v2181_v6, %v2182_v32 }
 0x1fd   : > { %v2185_v40 = vsel %vm515_vm9, %v2182_v32, %v2184_v30 }
 0x1fe   : > { %v6173_v38 = vpop.permute.xlu1 %1565  ;;  %v6175_v61 = vpop.permute.xlu0 %1584  ;;  %v2203_v49 = vrot.slane %v2197_v36, 3  ;;  %v2202_v29 = vrot.slane %v2196_v47, 3  ;;  %v2258_v47 = vstv %s4617_s14  ;;  %s6285_s14 = sld [smem:[#allocation6 + $0x96]] }
 0x1ff   : > { %8526 = vst [vmem:[#allocation105_spill] sm:$0xff] %v6173_v38  ;;  %8527 = vst [vmem:[#allocation106_spill] sm:$0xff] %v6175_v61 }
 0x200   : > { %2146 = vrot.lane.b32.xlu1 %v2143_v34, %s8422_s13  ;;  %2165 = vrot.lane.b32.xlu0 %v2162_v4, %s8422_s13  ;;  %v2217_v34 = vmul.f32 %v5853_v2, %v2216_v13  ;;  %v2218_v4 = vmul.f32 %v5856_v5, %v2216_v13  ;;  %v2204_v3 = vsel %vm550_vm10, %v2202_v29, %v2203_v49  ;;  %v2226_v29 = vrot.slane %v2219_v9, 3 }
 0x201   : > { %v2206_v60 = vsel %vm550_vm10, %v2203_v49, %v2205_v43  ;;  %v2261_v9 = vmul.f32 %v5866_v33, %v2258_v47 }
 0x202   : > { %v6184_v0 = vpop.permute.xlu1 %1586  ;;  %v6186_v8 = vpop.permute.xlu0 %1605  ;;  %v2223_v6 = vrot.slane %v2217_v34, 3  ;;  %v2224_v36 = vrot.slane %v2218_v4, 3  ;;  %v4915_v34 = vld [vmem:[#allocation2 + $0x10] sm:$0x3f] }
 0x203   : > { %8528 = vst [vmem:[#allocation107_spill] sm:$0xff] %v6184_v0  ;;  %8529 = vst [vmem:[#allocation108_spill] sm:$0xff] %v6186_v8  ;;  %v2240_v4 = vmul.f32 %v4915_v34, %v2237_v14 }
 0x204   : > { %2167 = vrot.lane.b32.xlu1 %v2164_v17, %s8422_s13  ;;  %2186 = vrot.lane.b32.xlu0 %v2183_v50, %s8422_s13  ;;  %v2239_v17 = vmul.f32 %v5766_v11, %v2237_v14  ;;  %v4914_v50 = vld [vmem:[#allocation2] sm:$0xff]  ;;  %v2225_v11 = vsel %vm550_vm10, %v2223_v6, %v2224_v36  ;;  %v2227_v49 = vsel %vm550_vm10, %v2224_v36, %v2226_v29  ;;  %v2268_v29 = vrot.slane %v2261_v9, 4 }
 0x205   : > { %v2238_v32 = vmul.f32 %v4914_v50, %v2237_v14  ;;  %v2247_v43 = vrot.slane %v2240_v4, 4  ;;  %v2279_v14 = vstv %s4618_s22  ;;  %s6298_s22 = sld [smem:[#allocation6 + $0xc7]] }
 0x206   : > { %v6195_v0 = vpop.permute.xlu1 %1607  ;;  %v6197_v8 = vpop.permute.xlu0 %1626  ;;  %v2282_v4 = vmul.f32 %v4915_v34, %v2279_v14 }
 0x207   : > { %8530 = vst [vmem:[#allocation109_spill] sm:$0xff] %v6195_v0  ;;  %8531 = vst [vmem:[#allocation110_spill] sm:$0xff] %v6197_v8  ;;  %v2245_v8 = vrot.slane %v2239_v17, 4 }
 0x208   : > { %2188 = vrot.lane.b32.xlu1 %v2185_v40, %s8422_s13  ;;  %2207 = vrot.lane.b32.xlu0 %v2204_v3, %s8422_s13  ;;  %v2259_v40 = vmul.f32 %v5853_v2, %v2258_v47  ;;  %v2260_v3 = vmul.f32 %v5856_v5, %v2258_v47 }
 0x209   : > { %v2248_v47 = vsel %vm585_vm11, %v2245_v8, %v2247_v43  ;;  %v2289_v43 = vrot.slane %v2282_v4, 5 }
 0x20a   : > { %v6207_v30 = vpop.permute.xlu1 %1628  ;;  %v6209_v13 = vpop.permute.xlu0 %1647  ;;  %v2265_v17 = vrot.slane %v2259_v40, 4  ;;  %v2266_v61 = vrot.slane %v2260_v3, 4 }
 0x20b   : > { %8532 = vst [vmem:[#allocation111_spill] sm:$0xff] %v6207_v30  ;;  %8533 = vst [vmem:[#allocation112_spill] sm:$0xff] %v6209_v13  ;;  %v2244_v30 = vrot.slane %v2238_v32, 4  ;;  %v2300_v32 = vstv %s6205_s24  ;;  %s6300_s24 = sld [smem:[#allocation6 + $0x9d]] }
 0x20c   : > { %2209 = vrot.lane.b32.xlu1 %v2206_v60, %s8422_s13  ;;  %2228 = vrot.lane.b32.xlu0 %v2225_v11, %s8422_s13  ;;  %v4916_v60 = vld [vmem:[#allocation2 + $0x8] sm:$0xff]  ;;  %v2280_v11 = vmul.f32 %v4914_v50, %v2279_v14  ;;  %v2301_v3 = vmul.f32 %v5853_v2, %v2300_v32  ;;  %v2303_v9 = vmul.f32 %v5866_v33, %v2300_v32 }
 0x20d   : > { %v2246_v6 = vsel %vm585_vm11, %v2244_v30, %v2245_v8  ;;  %v2281_v38 = vmul.f32 %v4916_v60, %v2279_v14  ;;  %v2267_v30 = vsel %vm585_vm11, %v2265_v17, %v2266_v61  ;;  %v2269_v8 = vsel %vm585_vm11, %v2266_v61, %v2268_v29 }
 0x20e   : > { %v6217_v0 = vpop.permute.xlu1 %1649  ;;  %v6219_v13 = vpop.permute.xlu0 %1668  ;;  %v2321_v14 = vstv %s4620_s25  ;;  %v2307_v17 = vrot.slane %v2301_v3, 5  ;;  %v2310_v29 = vrot.slane %v2303_v9, 5  ;;  %s6305_s25 = sld [smem:[#allocation6 + $0xa4]] }
 0x20f   : > { %8534 = vst [vmem:[#allocation113_spill] sm:$0xff] %v6217_v0  ;;  %8535 = vst [vmem:[#allocation114_spill] sm:$0xff] %v6219_v13  ;;  %v2287_v40 = vrot.slane %v2281_v38, 5  ;;  %v2323_v51 = vmul.f32 %v4916_v60, %v2321_v14 }
 0x210   : > { %2230 = vrot.lane.b32.xlu1 %v2227_v49, %s8422_s13  ;;  %2249 = vrot.lane.b32.xlu0 %v2246_v6, %s8422_s13  ;;  %v2302_v49 = vmul.f32 %v5856_v5, %v2300_v32  ;;  %v2286_v6 = vrot.slane %v2280_v11, 5  ;;  %v2342_v11 = vstv %s4621_s30  ;;  %v2324_v32 = vmul.f32 %v4915_v34, %v2321_v14  ;;  %s6319_s30 = sld [smem:[#allocation6 + $0xce]] }
 0x211   : > { %v2290_v61 = vsel %vm620_vm12, %v2287_v40, %v2289_v43  ;;  %v2329_v3 = vrot.slane %v2323_v51, 6  ;;  %v2343_v60 = vmul.f32 %v5853_v2, %v2342_v11  ;;  %v2345_v43 = vmul.f32 %v5866_v33, %v2342_v11 }
 0x212   : > { %v6227_v13 = vpop.permute.xlu1 %1670  ;;  %v6229_v36 = vpop.permute.xlu0 %1689  ;;  %v2288_v38 = vsel %vm620_vm12, %v2286_v6, %v2287_v40 }
 0x213   : > { %8536 = vst [vmem:[#allocation115_spill] sm:$0xff] %v6227_v13  ;;  %8537 = vst [vmem:[#allocation116_spill] sm:$0xff] %v6229_v36  ;;  %v2308_v36 = vrot.slane %v2302_v49, 5  ;;  %v2344_v49 = vmul.f32 %v5856_v5, %v2342_v11  ;;  %v2349_v5 = vrot.slane %v2343_v60, 6  ;;  %v2507_v11 = vstv %s6256_s11  ;;  %s6326_s11 = sld [smem:[#allocation6 + $0xab]] }
 0x214   : > { %2251 = vrot.lane.b32.xlu1 %v2248_v47, %s8422_s13  ;;  %2270 = vrot.lane.b32.xlu0 %v2267_v30, %s8422_s13  ;;  %v2322_v47 = vmul.f32 %v4914_v50, %v2321_v14  ;;  %v2491_v14 = vstv %s6251_s10  ;;  %s6322_s10 = sld [smem:[#allocation6 + $0xd5]] }
 0x215   : > { %v2309_v4 = vsel %vm620_vm12, %v2307_v17, %v2308_v36  ;;  %v2311_v6 = vsel %vm620_vm12, %v2308_v36, %v2310_v29  ;;  %v2350_v51 = vrot.slane %v2344_v49, 6  ;;  %v2352_v17 = vrot.slane %v2345_v43, 6 }
 0x216   : > { %v6237_v0 = vpop.permute.xlu1 %1691  ;;  %v6239_v13 = vpop.permute.xlu0 %1710  ;;  %v2328_v50 = vrot.slane %v2322_v47, 6  ;;  %v6289_v47 = vld [vmem:[#allocation3] sm:$0xff]  ;;  %v2499_v49 = vstv %s6269_s18  ;;  %s6365_s18 = sld [smem:[#allocation6 + $0x82]] }
 0x217   : > { %8538 = vst [vmem:[#allocation117_spill] sm:$0xff] %v6237_v0  ;;  %8539 = vst [vmem:[#allocation118_spill] sm:$0xff] %v6239_v13  ;;  %v2351_v33 = vsel %vm655_vm13, %v2349_v5, %v2350_v51  ;;  %v2353_v60 = vsel %vm655_vm13, %v2350_v51, %v2352_v17 }
 0x218   : > { %2272 = vrot.lane.b32.xlu1 %v2269_v8, %s8422_s13  ;;  %2291 = vrot.lane.b32.xlu0 %v2288_v38, %s8422_s13  ;;  %v2331_v8 = vrot.slane %v2324_v32, 6  ;;  %v2330_v2 = vsel %vm655_vm13, %v2328_v50, %v2329_v3  ;;  %v2492_v32 = vmul.f32 %v2491_v14, %v6289_v47  ;;  %v2525_v50 = vstv %s6271_s19  ;;  %s6377_s19 = sld [smem:[#allocation6 + $0xb3]] }
 0x219   : > { %v2526_v14 = vmul.f32 %v2525_v50, %v6289_v47  ;;  %v2561_v50 = vstv %s6300_s24  ;;  %s6396_s24 = sld [smem:[#allocation6 + $0x139]] }
 0x21a   : > { %v6246_v30 = vpop.permute.xlu1 %1712  ;;  %v6248_v13 = vpop.permute.xlu0 %1731  ;;  %v2332_v38 = vsel %vm655_vm13, %v2329_v3, %v2331_v8  ;;  %v2516_v3 = vstv %s6265_s17  ;;  %s6339_s17 = sld [smem:[#allocation6 + $0xdc]] }
 0x21b   : > { %8540 = vst [vmem:[#allocation119_spill] sm:$0xff] %v6246_v30  ;;  %8541 = vst [vmem:[#allocation120_spill] sm:$0xff] %v6248_v13 }
 0x21c   : > { %2293 = vrot.lane.b32.xlu1 %v2290_v61, %s8422_s13  ;;  %2312 = vrot.lane.b32.xlu0 %v2309_v4, %s8422_s13  ;;  %v2508_v4 = vmul.f32 %v2507_v11, %v6289_v47 }
 0x21e   : > { %v6260_v40 = vpop.permute.xlu1 %1733  ;;  %v6262_v34 = vpop.permute.xlu0 %1752  ;;  %v2510_v51 = vrot.slane %v2508_v4, 1 }
 0x21f   : > { %8542 = vst [vmem:[#allocation121_spill] sm:$0xff] %v6260_v40  ;;  %8543 = vst [vmem:[#allocation122_spill] sm:$0xff] %v6262_v34 }
 0x220   : > { %2314 = vrot.lane.b32.xlu1 %v2311_v6, %s8422_s13  ;;  %2333 = vrot.lane.b32.xlu0 %v2330_v2, %s8422_s13  ;;  %v6307_v6 = vld [vmem:[#allocation3 + $0x10] sm:$0xff] }
 0x221   : > { %v2517_v8 = vmul.f32 %v2516_v3, %v6307_v6  ;;  %v2500_v43 = vmul.f32 %v2499_v49, %v6307_v6  ;;  %v2528_v3 = vrot.slane %v2526_v14, 2  ;;  %v2552_v49 = vstv %s6298_s22  ;;  %s6392_s22 = sld [smem:[#allocation6 + $0x138]] }
 0x222   : > { %v6275_v9 = vpop.permute.xlu1 %1754  ;;  %v6277_v36 = vpop.permute.xlu0 %1773 }
 0x223   : > { %8544 = vst [vmem:[#allocation123_spill] sm:$0xff] %v6275_v9  ;;  %8545 = vst [vmem:[#allocation124_spill] sm:$0xff] %v6277_v36  ;;  %v2519_v17 = vrot.slane %v2517_v8, 1 }
 0x224   : > { %2335 = vrot.lane.b32.xlu1 %v2332_v38, %s8422_s13  ;;  %2354 = vrot.lane.b32.xlu0 %v2351_v33, %s8422_s13  ;;  %v2534_v38 = vstv %s6280_s23  ;;  %v2543_v33 = vstv %s6285_s14  ;;  %s6381_s23 = sld [smem:[#allocation6 + $0x107]]  ;;  %s6383_s14 = sld [smem:[#allocation6 + $0x108]] }
 0x225   : > { %v2535_v11 = vmul.f32 %v2534_v38, %v6307_v6  ;;  %v6343_v38 = vld [vmem:[#allocation3 + $0x8] sm:$0x3] }
 0x226   : > { %v6291_v61 = vpop.permute.xlu1 %1775  ;;  %v6293_v29 = vpop.permute.xlu0 %1794 }
 0x227   : > { %8546 = vst [vmem:[#allocation125_spill] sm:$0xff] %v6291_v61  ;;  %8547 = vst [vmem:[#allocation126_spill] sm:$0xff] %v6293_v29  ;;  %v2537_v8 = vrot.slane %v2535_v11, 2  ;;  %v2605_v11 = vstv %s6326_s11  ;;  %s6419_s11 = sld [smem:[#allocation6 + $0x13b]] }
 0x228   : > { %2356 = vrot.lane.b32.xlu1 %v2353_v60, %s8422_s13  ;;  %2494 = vrot.lane.b32.xlu0 %v2492_v32, %s5074_s28  ;;  %v2544_v60 = vmul.f32 %v2543_v33, %v6289_v47  ;;  %s6808_s13 = sld [smem:[#allocation6 + $0x8e]] }
 0x22a   : > { %v6312_v2 = vpop.permute.xlu1 %1796  ;;  %v6314_v5 = vpop.permute.xlu0 %1808 }
 0x22b   : > { %8548 = vst [vmem:[#allocation127_spill] sm:$0xff] %v6312_v2  ;;  %8549 = vst [vmem:[#allocation128_spill] sm:$0xff] %v6314_v5  ;;  %v2579_v5 = vstv %s6305_s25  ;;  %s6398_s25 = sld [smem:[#allocation6 + $0x109]] }
 0x22c   : > { %2502 = vrot.lane.b32.xlu1 %v2500_v43, %s5074_s28  ;;  %2511 = vrot.lane.b32.xlu0 %v2510_v51, %s5074_s28  ;;  %v2553_v43 = vmul.f32 %v2552_v49, %v6307_v6  ;;  %v2562_v51 = vmul.f32 %v2561_v50, %v6289_v47  ;;  %v2581_v2 = vmul.f32 %v2579_v5, %v6343_v38 }
 0x22e   : > { %v6329_v32 = vpop.permute.xlu1 %1810  ;;  %v6331_v4 = vpop.permute.xlu0 %1822  ;;  %v2555_v49 = vrot.slane %v2553_v43, 3  ;;  %v2564_v50 = vrot.slane %v2562_v51, 4  ;;  %v2585_v36 = vrot.slane %v2581_v2, 5  ;;  %v2607_v43 = vmul.f32 %v2605_v11, %v6343_v38 }
 0x22f   : > { %8550 = vst [vmem:[#allocation129_spill] sm:$0xff] %v6329_v32  ;;  %8551 = vst [vmem:[#allocation130_spill] sm:$0xff] %v6331_v4  ;;  %v2546_v4 = vrot.slane %v2544_v60, 3  ;;  %v2570_v32 = vstv %s6319_s30  ;;  %s6407_s30 = sld [smem:[#allocation6 + $0x13a]] }
 0x230   : > { %2520 = vrot.lane.b32.xlu1 %v2519_v17, %s5074_s28  ;;  %2529 = vrot.lane.b32.xlu0 %v2528_v3, %s5074_s28  ;;  %v2580_v17 = vmul.f32 %v2579_v5, %v6289_v47  ;;  %v2592_v3 = vstv %s6322_s10  ;;  %v2571_v29 = vmul.f32 %v2570_v32, %v6307_v6  ;;  %v2618_v32 = vstv %s6339_s17  ;;  %s6415_s10 = sld [smem:[#allocation6 + $0x10a]]  ;;  %s6429_s17 = sld [smem:[#allocation6 + $0x10b]] }
 0x231   : > { %v2593_v5 = vmul.f32 %v2592_v3, %v6307_v6  ;;  %v2611_v34 = vrot.slane %v2607_v43, 6 }
 0x232   : > { %v6345_v14 = vpop.permute.xlu1 %1824  ;;  %v6347_v33 = vpop.permute.xlu0 %1843  ;;  %v2584_v61 = vrot.slane %v2580_v17, 5  ;;  %v2573_v2 = vrot.slane %v2571_v29, 4 }
 0x233   : > { %8552 = vst [vmem:[#allocation131_spill] sm:$0xff] %v6345_v14  ;;  %8553 = vst [vmem:[#allocation132_spill] sm:$0xff] %v6347_v33  ;;  %v6357_v14 = vld [vmem:[#allocation3 + $0x18] sm:$0x3] }
 0x234   : > { %2538 = vrot.lane.b32.xlu1 %v2537_v8, %s5074_s28  ;;  %2547 = vrot.lane.b32.xlu0 %v2546_v4, %s5074_s28  ;;  %v2594_v8 = vmul.f32 %v2592_v3, %v6357_v14  ;;  %v2606_v4 = vmul.f32 %v2605_v11, %v6289_v47  ;;  %v2586_v17 = vsel %vm620_vm12, %v2584_v61, %v2585_v36  ;;  %v2597_v3 = vrot.slane %v2593_v5, 5 }
 0x235   : > { %v2619_v11 = vmul.f32 %v2618_v32, %v6307_v6  ;;  %v2631_v61 = vstv %s6365_s18  ;;  %s6433_s18 = sld [smem:[#allocation6 + $0x10c]] }
 0x236   : > { %v6359_v33 = vpop.permute.xlu1 %1845  ;;  %v6361_v60 = vpop.permute.xlu0 %1864  ;;  %v2610_v9 = vrot.slane %v2606_v4, 6 }
 0x237   : > { %8554 = vst [vmem:[#allocation133_spill] sm:$0xff] %v6359_v33  ;;  %8555 = vst [vmem:[#allocation134_spill] sm:$0xff] %v6361_v60  ;;  %v2598_v33 = vrot.slane %v2594_v8, 5  ;;  %v2623_v8 = vrot.slane %v2619_v11, 6 }
 0x238   : > { %2556 = vrot.lane.b32.xlu1 %v2555_v49, %s5074_s28  ;;  %2565 = vrot.lane.b32.xlu0 %v2564_v50, %s5074_s28  ;;  %v2620_v49 = vmul.f32 %v2618_v32, %v6357_v14  ;;  %v2612_v5 = vsel %vm655_vm13, %v2610_v9, %v2611_v34  ;;  %v6409_v34 = vld [vmem:[#allocation4] sm:$0xff] }
 0x239   : > { %v2599_v50 = vsel %vm620_vm12, %v2597_v3, %v2598_v33  ;;  %v2632_v33 = vmul.f32 %v2631_v61, %v6289_v47  ;;  %v3468_v3 = vstv %s6383_s14  ;;  %s6454_s14 = sld [smem:[#allocation6 + $0x10d]] }
 0x23a   : > { %v6372_v51 = vpop.permute.xlu1 %1866  ;;  %v6374_v60 = vpop.permute.xlu0 %1885  ;;  %v2624_v4 = vrot.slane %v2620_v49, 6 }
 0x23b   : > { %8556 = vst [vmem:[#allocation135_spill] sm:$0xff] %v6372_v51  ;;  %8557 = vst [vmem:[#allocation136_spill] sm:$0xff] %v6374_v60  ;;  %v6480_v51 = vld [vmem:[#allocation4 + $0x18] sm:$0x3] }
 0x23c   : > { %2574 = vrot.lane.b32.xlu1 %v2573_v2, %s5074_s28  ;;  %2587 = vrot.lane.b32.xlu0 %v2586_v17, %s5074_s28  ;;  %v2625_v9 = vsel %vm655_vm13, %v2623_v8, %v2624_v4  ;;  %v2639_v2 = vstv %s6377_s19  ;;  %v3452_v17 = vstv %s6381_s23  ;;  %v3469_v8 = vmul.f32 %v3468_v3, %v6409_v34  ;;  %s6447_s19 = sld [smem:[#allocation6 + $0x13c]]  ;;  %s6450_s23 = sld [smem:[#allocation6 + $0x13d]] }
 0x23d   : > { %v2640_v61 = vmul.f32 %v2639_v2, %v6307_v6  ;;  %v3477_v4 = vstv %s6396_s24  ;;  %s6493_s24 = sld [smem:[#allocation6 + $0x10e]] }
 0x23e   : > { %v6387_v29 = vpop.permute.xlu1 %1887  ;;  %v6389_v36 = vpop.permute.xlu0 %1906  ;;  %v3471_v3 = vrot.slane %v3469_v8, 1 }
 0x23f   : > { %8558 = vst [vmem:[#allocation137_spill] sm:$0xff] %v6387_v29  ;;  %8559 = vst [vmem:[#allocation138_spill] sm:$0xff] %v6389_v36  ;;  %v3522_v36 = vstv %s6429_s17  ;;  %v6464_v29 = vld [vmem:[#allocation4 + $0x8] sm:$0x3]  ;;  %s6523_s17 = sld [smem:[#allocation6 + $0x141]] }
 0x240   : > { %2600 = vrot.lane.b32.xlu1 %v2599_v50, %s5074_s28  ;;  %2613 = vrot.lane.b32.xlu0 %v2612_v5, %s5074_s28  ;;  %v3453_v50 = vmul.f32 %v3452_v17, %v6409_v34  ;;  %v3460_v5 = vstv %s6392_s22  ;;  %s6469_s22 = sld [smem:[#allocation6 + $0x13e]] }
 0x242   : > { %v6402_v43 = vpop.permute.xlu1 %1908  ;;  %v6404_v32 = vpop.permute.xlu0 %1927 }
 0x243   : > { %8560 = vst [vmem:[#allocation139_spill] sm:$0xff] %v6402_v43  ;;  %8561 = vst [vmem:[#allocation140_spill] sm:$0xff] %v6404_v32  ;;  %v3495_v43 = vstv %s6407_s30  ;;  %s6507_s30 = sld [smem:[#allocation6 + $0x140]] }
 0x244   : > { %2626 = vrot.lane.b32.xlu1 %v2625_v9, %s5074_s28  ;;  %2634 = vrot.lane.b32.xlu0 %v2632_v33, %s5075_s4  ;;  %v3486_v9 = vstv %s6398_s25  ;;  %v6435_v33 = vld [vmem:[#allocation4 + $0x10] sm:$0xff]  ;;  %s6497_s25 = sld [smem:[#allocation6 + $0x10f]] }
 0x245   : > { %v3461_v2 = vmul.f32 %v3460_v5, %v6435_v33  ;;  %v3487_v32 = vmul.f32 %v3486_v9, %v6409_v34  ;;  %v3513_v5 = vstv %s6419_s11  ;;  %s6513_s11 = sld [smem:[#allocation6 + $0x110]] }
 0x246   : > { %v6421_v11 = vpop.permute.xlu1 %1929  ;;  %v6423_v49 = vpop.permute.xlu0 %1948 }
 0x247   : > { %8562 = vst [vmem:[#allocation141_spill] sm:$0xff] %v6421_v11  ;;  %8563 = vst [vmem:[#allocation142_spill] sm:$0xff] %v6423_v49  ;;  %v3478_v11 = vmul.f32 %v3477_v4, %v6435_v33 }
 0x248   : > { %2642 = vrot.lane.b32.xlu1 %v2640_v61, %s5075_s4  ;;  %3455 = vrot.lane.b32.xlu0 %v3453_v50, %s5074_s28  ;;  %v3504_v61 = vstv %s6415_s10  ;;  %v3496_v50 = vmul.f32 %v3495_v43, %v6435_v33  ;;  %s6511_s10 = sld [smem:[#allocation6 + $0x13f]] }
 0x249   : > { %v3480_v9 = vrot.slane %v3478_v11, 1  ;;  %v3523_v11 = vmul.f32 %v3522_v36, %v6409_v34 }
 0x24a   : > { %v6440_v17 = vpop.permute.xlu1 %1950  ;;  %v6442_v49 = vpop.permute.xlu0 %1969  ;;  %v3498_v43 = vrot.slane %v3496_v50, 2  ;;  %v3566_v50 = vstv %s6454_s14  ;;  %s6547_s14 = sld [smem:[#allocation6 + $0x113]] }
 0x24b   : > { %8564 = vst [vmem:[#allocation143_spill] sm:$0xff] %v6440_v17  ;;  %8565 = vst [vmem:[#allocation144_spill] sm:$0xff] %v6442_v49  ;;  %v3489_v49 = vrot.slane %v3487_v32, 2  ;;  %v3505_v17 = vmul.f32 %v3504_v61, %v6409_v34 }
 0x24c   : > { %3463 = vrot.lane.b32.xlu1 %v3461_v2, %s5074_s28  ;;  %3472 = vrot.lane.b32.xlu0 %v3471_v3, %s5074_s28  ;;  %v3540_v2 = vstv %s6433_s18  ;;  %v3514_v3 = vmul.f32 %v3513_v5, %v6435_v33  ;;  %v3525_v5 = vrot.slane %v3523_v11, 4  ;;  %s6527_s18 = sld [smem:[#allocation6 + $0x111]] }
 0x24d   : > { %v3541_v60 = vmul.f32 %v3540_v2, %v6409_v34 }
 0x24e   : > { %v6458_v8 = vpop.permute.xlu1 %1971  ;;  %v6460_v4 = vpop.permute.xlu0 %1990  ;;  %v3516_v36 = vrot.slane %v3514_v3, 3 }
 0x24f   : > { %8566 = vst [vmem:[#allocation145_spill] sm:$0xff] %v6458_v8  ;;  %8567 = vst [vmem:[#allocation146_spill] sm:$0xff] %v6460_v4  ;;  %v3507_v4 = vrot.slane %v3505_v17, 3  ;;  %v3531_v8 = vstv %s6447_s19  ;;  %v3545_v40 = vrot.slane %v3541_v60, 5  ;;  %s6538_s19 = sld [smem:[#allocation6 + $0x142]] }
 0x250   : > { %3481 = vrot.lane.b32.xlu1 %v3480_v9, %s5074_s28  ;;  %3490 = vrot.lane.b32.xlu0 %v3489_v49, %s5074_s28  ;;  %v3542_v9 = vmul.f32 %v3540_v2, %v6464_v29  ;;  %v3553_v49 = vstv %s6450_s23  ;;  %s6540_s23 = sld [smem:[#allocation6 + $0x112]] }
 0x251   : > { %v3554_v2 = vmul.f32 %v3553_v49, %v6435_v33  ;;  %v3555_v30 = vmul.f32 %v3553_v49, %v6480_v51 }
 0x252   : > { %v6473_v32 = vpop.permute.xlu1 %1992  ;;  %v6475_v61 = vpop.permute.xlu0 %2011  ;;  %v3546_v13 = vrot.slane %v3542_v9, 5 }
 0x253   : > { %8568 = vst [vmem:[#allocation147_spill] sm:$0xff] %v6473_v32  ;;  %8569 = vst [vmem:[#allocation148_spill] sm:$0xff] %v6475_v61  ;;  %v3532_v32 = vmul.f32 %v3531_v8, %v6435_v33  ;;  %v3579_v8 = vstv %s6469_s22  ;;  %v3558_v49 = vrot.slane %v3554_v2, 5  ;;  %s6557_s22 = sld [smem:[#allocation6 + $0x143]] }
 0x254   : > { %3499 = vrot.lane.b32.xlu1 %v3498_v43, %s5074_s28  ;;  %3508 = vrot.lane.b32.xlu0 %v3507_v4, %s5074_s28  ;;  %v3567_v4 = vmul.f32 %v3566_v50, %v6409_v34  ;;  %v3568_v43 = vmul.f32 %v3566_v50, %v6464_v29  ;;  %v3547_v9 = vsel %vm620_vm12, %v3545_v40, %v3546_v13 }
 0x255   : > { %v3534_v11 = vrot.slane %v3532_v32, 4  ;;  %v3592_v32 = vstv %s6493_s24  ;;  %s6562_s24 = sld [smem:[#allocation6 + $0x114]] }
 0x256   : > { %v6487_v61 = vpop.permute.xlu1 %2013  ;;  %v6489_v17 = vpop.permute.xlu0 %2032  ;;  %v3571_v50 = vrot.slane %v3567_v4, 6 }
 0x257   : > { %8570 = vst [vmem:[#allocation149_spill] sm:$0xff] %v6487_v61  ;;  %8571 = vst [vmem:[#allocation150_spill] sm:$0xff] %v6489_v17  ;;  %v3559_v17 = vrot.slane %v3555_v30, 5  ;;  %v3572_v61 = vrot.slane %v3568_v43, 6 }
 0x258   : > { %3517 = vrot.lane.b32.xlu1 %v3516_v36, %s5074_s28  ;;  %3526 = vrot.lane.b32.xlu0 %v3525_v5, %s5074_s28  ;;  %v3580_v36 = vmul.f32 %v3579_v8, %v6435_v33  ;;  %v3581_v5 = vmul.f32 %v3579_v8, %v6480_v51  ;;  %v3608_v8 = vstv %s6497_s25  ;;  %s6577_s25 = sld [smem:[#allocation6 + $0x145]] }
 0x259   : > { %v3560_v40 = vsel %vm620_vm12, %v3558_v49, %v3559_v17  ;;  %v3573_v2 = vsel %vm655_vm13, %v3571_v50, %v3572_v61  ;;  %v3593_v17 = vmul.f32 %v3592_v32, %v6409_v34  ;;  %v3609_v49 = vmul.f32 %v3608_v8, %v6409_v34 }
 0x25a   : > { %v6502_v3 = vpop.permute.xlu1 %2034  ;;  %v6504_v60 = vpop.permute.xlu0 %2053  ;;  %v3584_v4 = vrot.slane %v3580_v36, 6  ;;  %v3585_v43 = vrot.slane %v3581_v5, 6  ;;  %v3617_v61 = vstv %s6507_s30  ;;  %v3600_v36 = vstv %s6511_s10  ;;  %s6600_s30 = sld [smem:[#allocation6 + $0x115]]  ;;  %s6603_s10 = sld [smem:[#allocation6 + $0x116]] }
 0x25b   : > { %8572 = vst [vmem:[#allocation151_spill] sm:$0xff] %v6502_v3  ;;  %8573 = vst [vmem:[#allocation152_spill] sm:$0xff] %v6504_v60  ;;  %v3626_v5 = vstv %s6513_s11  ;;  %v3601_v8 = vmul.f32 %v3600_v36, %v6435_v33  ;;  %s6612_s11 = sld [smem:[#allocation6 + $0x146]] }
 0x25c   : > { %3535 = vrot.lane.b32.xlu1 %v3534_v11, %s5074_s28  ;;  %3548 = vrot.lane.b32.xlu0 %v3547_v9, %s5074_s28  ;;  %v3586_v50 = vsel %vm655_vm13, %v3584_v4, %v3585_v43  ;;  %v3627_v4 = vmul.f32 %v3626_v5, %v6409_v34  ;;  %v3635_v43 = vstv %s6523_s17  ;;  %s6617_s17 = sld [smem:[#allocation6 + $0x147]] }
 0x25e   : > { %v6517_v13 = vpop.permute.xlu1 %2055  ;;  %v6519_v30 = vpop.permute.xlu0 %2074  ;;  %v3629_v5 = vrot.slane %v3627_v4, 2 }
 0x25f   : > { %8574 = vst [vmem:[#allocation153_spill] sm:$0xff] %v6517_v13  ;;  %8575 = vst [vmem:[#allocation154_spill] sm:$0xff] %v6519_v30 }
 0x260   : > { %3561 = vrot.lane.b32.xlu1 %v3560_v40, %s5074_s28  ;;  %3574 = vrot.lane.b32.xlu0 %v3573_v2, %s5074_s28  ;;  %v3618_v40 = vmul.f32 %v3617_v61, %v6435_v33 }
 0x262   : > { %v6531_v11 = vpop.permute.xlu1 %2076  ;;  %v6533_v9 = vpop.permute.xlu0 %2088  ;;  %v3620_v61 = vrot.slane %v3618_v40, 1 }
 0x263   : > { %8576 = vst [vmem:[#allocation155_spill] sm:$0xff] %v6531_v11  ;;  %8577 = vst [vmem:[#allocation156_spill] sm:$0xff] %v6533_v9  ;;  %v3611_v9 = vrot.slane %v3609_v49, 1  ;;  %v3662_v11 = vstv %s6540_s23  ;;  %s6633_s23 = sld [smem:[#allocation6 + $0x118]] }
 0x264   : > { %3587 = vrot.lane.b32.xlu1 %v3586_v50, %s5074_s28  ;;  %3595 = vrot.lane.b32.xlu0 %v3593_v17, %s5075_s4  ;;  %v3644_v17 = vstv %s6527_s18  ;;  %s6560_s28 = sld [smem:[#allocation6 + $0x144]]  ;;  %v3636_v50 = vmul.f32 %v3635_v43, %v6435_v33  ;;  %s6619_s18 = sld [smem:[#allocation6 + $0x117]] }
 0x266   : > { %v6550_v32 = vpop.permute.xlu1 %2090  ;;  %v6552_v2 = vpop.permute.xlu0 %2102 }
 0x267   : > { %8578 = vst [vmem:[#allocation157_spill] sm:$0xff] %v6550_v32  ;;  %8579 = vst [vmem:[#allocation158_spill] sm:$0xff] %v6552_v2  ;;  %v3645_v2 = vmul.f32 %v3644_v17, %v6409_v34  ;;  %v3653_v32 = vstv %s6538_s19  ;;  %v3638_v17 = vrot.slane %v3636_v50, 2  ;;  %s6629_s19 = sld [smem:[#allocation6 + $0x148]] }
 0x268   : > { %3603 = vrot.lane.b32.xlu1 %v3601_v8, %s5075_s4  ;;  %3612 = vrot.lane.b32.xlu0 %v3611_v9, %s5075_s4  ;;  %v3680_v9 = vstv %s6547_s14  ;;  %v3654_v40 = vmul.f32 %v3653_v32, %v6435_v33  ;;  %v3663_v8 = vmul.f32 %v3662_v11, %v6409_v34  ;;  %s6647_s14 = sld [smem:[#allocation6 + $0x149]] }
 0x269   : > { %v3681_v30 = vmul.f32 %v3680_v9, %v6409_v34 }
 0x26a   : > { %v6567_v49 = vpop.permute.xlu1 %2104  ;;  %v6569_v36 = vpop.permute.xlu0 %2123  ;;  %v3693_v13 = vstv %s6560_s28  ;;  %v3656_v32 = vrot.slane %v3654_v40, 3  ;;  %v3665_v11 = vrot.slane %v3663_v8, 4  ;;  %v3719_v40 = vstv %s6577_s25  ;;  %s6653_s28 = sld [smem:[#allocation6 + $0x11a]]  ;;  %s6665_s25 = sld [smem:[#allocation6 + $0x14b]] }
 0x26b   : > { %8580 = vst [vmem:[#allocation159_spill] sm:$0xff] %v6567_v49  ;;  %8581 = vst [vmem:[#allocation160_spill] sm:$0xff] %v6569_v36  ;;  %v3647_v36 = vrot.slane %v3645_v2, 3  ;;  %v3671_v49 = vstv %s6557_s22  ;;  %v3694_v50 = vmul.f32 %v3693_v13, %v6435_v33  ;;  %s6649_s22 = sld [smem:[#allocation6 + $0x119]] }
 0x26c   : > { %3621 = vrot.lane.b32.xlu1 %v3620_v61, %s5075_s4  ;;  %3630 = vrot.lane.b32.xlu0 %v3629_v5, %s5075_s4  ;;  %v3682_v61 = vmul.f32 %v3680_v9, %v6464_v29  ;;  %v3706_v5 = vstv %s6562_s24  ;;  %v3672_v2 = vmul.f32 %v3671_v49, %v6435_v33  ;;  %s6656_s24 = sld [smem:[#allocation6 + $0x14a]] }
 0x26d   : > { %v3707_v9 = vmul.f32 %v3706_v5, %v6409_v34 }
 0x26e   : > { %v6581_v43 = vpop.permute.xlu1 %2125  ;;  %v6583_v4 = vpop.permute.xlu0 %2144  ;;  %v3686_v3 = vrot.slane %v3682_v61, 5 }
 0x26f   : > { %8582 = vst [vmem:[#allocation161_spill] sm:$0xff] %v6581_v43  ;;  %8583 = vst [vmem:[#allocation162_spill] sm:$0xff] %v6583_v4  ;;  %v3695_v4 = vmul.f32 %v3693_v13, %v6480_v51  ;;  %v3674_v13 = vrot.slane %v3672_v2, 4  ;;  %v3711_v0 = vrot.slane %v3707_v9, 6  ;;  %v3732_v2 = vstv %s6600_s30  ;;  %s6676_s30 = sld [smem:[#allocation6 + $0x89]] }
 0x270   : > { %3639 = vrot.lane.b32.xlu1 %v3638_v17, %s5075_s4  ;;  %3648 = vrot.lane.b32.xlu0 %v3647_v36, %s5075_s4  ;;  %v3685_v17 = vrot.slane %v3681_v30, 5  ;;  %v3708_v36 = vmul.f32 %v3706_v5, %v6464_v29  ;;  %v3720_v5 = vmul.f32 %v3719_v40, %v6435_v33 }
 0x272   : > { %v6592_v60 = vpop.permute.xlu1 %2146  ;;  %v6594_v43 = vpop.permute.xlu0 %2165  ;;  %v3687_v30 = vsel %vm620_vm12, %v3685_v17, %v3686_v3  ;;  %v3712_v61 = vrot.slane %v3708_v36, 6  ;;  %v3724_v9 = vrot.slane %v3720_v5, 6  ;;  %v3748_v36 = vstv %s6603_s10  ;;  %s6680_s10 = sld [smem:[#allocation6 + $0x11b]] }
 0x273   : > { %8584 = vst [vmem:[#allocation163_spill] sm:$0xff] %v6592_v60  ;;  %8585 = vst [vmem:[#allocation164_spill] sm:$0xff] %v6594_v43  ;;  %v3698_v43 = vrot.slane %v3694_v50, 5  ;;  %v3699_v60 = vrot.slane %v3695_v4, 5  ;;  %v3766_v5 = vstv %s6619_s18  ;;  %s6690_s18 = sld [smem:[#allocation6 + $0x101]] }
 0x274   : > { %3657 = vrot.lane.b32.xlu1 %v3656_v32, %s5075_s4  ;;  %3666 = vrot.lane.b32.xlu0 %v3665_v11, %s5075_s4  ;;  %v3721_v32 = vmul.f32 %v3719_v40, %v6480_v51  ;;  %v3713_v50 = vsel %vm655_vm13, %v3711_v0, %v3712_v61  ;;  %v3757_v61 = vstv %s6617_s17  ;;  %s6688_s17 = sld [smem:[#allocation6 + $0x100]] }
 0x275   : > { %v3700_v3 = vsel %vm620_vm12, %v3698_v43, %v3699_v60  ;;  %v3733_v60 = vmul.f32 %v3732_v2, %v6409_v34  ;;  %v3740_v43 = vstv %s6612_s11  ;;  %s6682_s11 = sld [smem:[#allocation6 + $0x131]] }
 0x276   : > { %v6608_v49 = vpop.permute.xlu1 %2167  ;;  %v6610_v8 = vpop.permute.xlu0 %2186  ;;  %v3725_v17 = vrot.slane %v3721_v32, 6  ;;  %v3741_v32 = vmul.f32 %v3740_v43, %v6435_v33 }
 0x277   : > { %8586 = vst [vmem:[#allocation165_spill] sm:$0xff] %v6608_v49  ;;  %8587 = vst [vmem:[#allocation166_spill] sm:$0xff] %v6610_v8 }
 0x278   : > { %3675 = vrot.lane.b32.xlu1 %v3674_v13, %s5075_s4  ;;  %3688 = vrot.lane.b32.xlu0 %v3687_v30, %s5075_s4  ;;  %v3749_v30 = vmul.f32 %v3748_v36, %v6409_v34  ;;  %v3726_v0 = vsel %vm655_vm13, %v3724_v9, %v3725_v17  ;;  %v3758_v9 = vmul.f32 %v3757_v61, %v6435_v33  ;;  %v3775_v36 = vstv %s6629_s19  ;;  %s6699_s19 = sld [smem:[#allocation6 + $0xba]] }
 0x279   : > { %v3767_v17 = vmul.f32 %v3766_v5, %v6409_v34  ;;  %v3776_v43 = vmul.f32 %v3775_v36, %v6435_v33  ;;  %v3811_v36 = vstv %s6656_s24  ;;  %s6734_s24 = sld [smem:[#allocation6 + $0xc1]] }
 0x27a   : > { %v6623_v4 = vpop.permute.xlu1 %2188  ;;  %v6625_v11 = vpop.permute.xlu0 %2207 }
 0x27b   : > { %8588 = vst [vmem:[#allocation167_spill] sm:$0xff] %v6623_v4  ;;  %8589 = vst [vmem:[#allocation168_spill] sm:$0xff] %v6625_v11  ;;  %v3769_v61 = vrot.slane %v3767_v17, 2  ;;  %v2647_v11 = vstv %s6676_s30  ;;  %s6753_s30 = sld [smem:[#allocation6 + $0x11c]] }
 0x27c   : > { %3701 = vrot.lane.b32.xlu1 %v3700_v3, %s5075_s4  ;;  %3714 = vrot.lane.b32.xlu0 %v3713_v50, %s5075_s4  ;;  %v3751_v50 = vrot.slane %v3749_v30, 1 }
 0x27e   : > { %v6637_v40 = vpop.permute.xlu1 %2209  ;;  %v6639_v13 = vpop.permute.xlu0 %2228 }
 0x27f   : > { %8590 = vst [vmem:[#allocation169_spill] sm:$0xff] %v6637_v40  ;;  %8591 = vst [vmem:[#allocation170_spill] sm:$0xff] %v6639_v13  ;;  %v3802_v13 = vstv %s6649_s22  ;;  %s6718_s22 = sld [smem:[#allocation6 + $0x90]] }
 0x280   : > { %3727 = vrot.lane.b32.xlu1 %v3726_v0, %s5075_s4  ;;  %3735 = vrot.lane.b32.xlu0 %v3733_v60, %s5076_s26  ;;  %v3784_v60 = vstv %s6633_s23  ;;  %s6703_s23 = sld [smem:[#allocation6 + $0x132]] }
 0x281   : > { %v3785_v5 = vmul.f32 %v3784_v60, %v6409_v34 }
 0x282   : > { %v6658_v3 = vpop.permute.xlu1 %2230  ;;  %v6660_v2 = vpop.permute.xlu0 %2249 }
 0x283   : > { %8592 = vst [vmem:[#allocation171_spill] sm:$0xff] %v6658_v3  ;;  %8593 = vst [vmem:[#allocation172_spill] sm:$0xff] %v6660_v2  ;;  %v3760_v2 = vrot.slane %v3758_v9, 1  ;;  %v3793_v3 = vstv %s6647_s14  ;;  %v3787_v60 = vrot.slane %v3785_v5, 3  ;;  %s6708_s14 = sld [smem:[#allocation6 + $0x14c]] }
 0x284   : > { %3743 = vrot.lane.b32.xlu1 %v3741_v32, %s5076_s26  ;;  %3752 = vrot.lane.b32.xlu0 %v3751_v50, %s5076_s26  ;;  %v3820_v32 = vstv %s6653_s28  ;;  %v3778_v50 = vrot.slane %v3776_v43, 2  ;;  %s6726_s28 = sld [smem:[#allocation6 + $0x102]] }
 0x285   : > { %v3821_v43 = vmul.f32 %v3820_v32, %v6409_v34 }
 0x286   : > { %v6671_v0 = vpop.permute.xlu1 %2251  ;;  %v6673_v30 = vpop.permute.xlu0 %2270 }
 0x287   : > { %8594 = vst [vmem:[#allocation173_spill] sm:$0xff] %v6671_v0  ;;  %8595 = vst [vmem:[#allocation174_spill] sm:$0xff] %v6673_v30  ;;  %v3794_v30 = vmul.f32 %v3793_v3, %v6435_v33  ;;  %v3803_v0 = vmul.f32 %v3802_v13, %v6409_v34  ;;  %v3812_v3 = vmul.f32 %v3811_v36, %v6435_v33  ;;  %v3348_v36 = vstv %s6682_s11  ;;  %s6763_s11 = sld [smem:[#allocation6 + $0x80]] }
 0x288   : > { %3761 = vrot.lane.b32.xlu1 %v3760_v2, %s5076_s26  ;;  %3770 = vrot.lane.b32.xlu0 %v3769_v61, %s5076_s26  ;;  %v3833_v2 = vstv %s6665_s25  ;;  %v3822_v61 = vmul.f32 %v3820_v32, %v6464_v29  ;;  %s6740_s25 = sld [smem:[#allocation6 + $0x133]] }
 0x289   : > { %v3834_v13 = vmul.f32 %v3833_v2, %v6435_v33  ;;  %v3796_v32 = vrot.slane %v3794_v30, 3  ;;  %v3835_v40 = vmul.f32 %v3833_v2, %v6480_v51  ;;  %v2648_v30 = vmul.f32 %v2647_v11, %v6289_v47 }
 0x28a   : > { %v6692_v9 = vpop.permute.xlu1 %2272  ;;  %v6694_v17 = vpop.permute.xlu0 %2291  ;;  %v3826_v4 = vrot.slane %v3822_v61, 5  ;;  %v3352_v2 = vstv %s6690_s18  ;;  %s6767_s18 = sld [smem:[#allocation6 + $0x14d]] }
 0x28b   : > { %8596 = vst [vmem:[#allocation175_spill] sm:$0xff] %v6692_v9  ;;  %8597 = vst [vmem:[#allocation176_spill] sm:$0xff] %v6694_v17  ;;  %v3805_v9 = vrot.slane %v3803_v0, 4  ;;  %v3344_v0 = vstv %s6688_s17  ;;  %v3839_v8 = vrot.slane %v3835_v40, 5  ;;  %v3859_v40 = vstv %s6708_s14  ;;  %s6765_s17 = sld [smem:[#allocation6 + $0xb1]]  ;;  %s6781_s14 = sld [smem:[#allocation6 + $0xc8]] }
 0x28c   : > { %3779 = vrot.lane.b32.xlu1 %v3778_v50, %s5076_s26  ;;  %3788 = vrot.lane.b32.xlu0 %v3787_v60, %s5076_s26  ;;  %v3825_v50 = vrot.slane %v3821_v43, 5  ;;  %v3846_v60 = vstv %s6680_s10  ;;  %v2650_v55 = vrot.slane %v2648_v30, 1  ;;  %v3861_v30 = vmul.f32 %v3859_v40, %v6480_v51  ;;  %s6759_s10 = sld [smem:[#allocation6 + $0x97]] }
 0x28d   : > { %v3847_v49 = vmul.f32 %v3846_v60, %v6409_v34  ;;  %v3848_v11 = vmul.f32 %v3846_v60, %v6464_v29 }
 0x28e   : > { %v6711_v5 = vpop.permute.xlu1 %2293  ;;  %v6713_v17 = vpop.permute.xlu0 %2312 }
 0x28f   : > { %8598 = vst [vmem:[#allocation177_spill] sm:$0xff] %v6711_v5  ;;  %8599 = vst [vmem:[#allocation178_spill] sm:$0xff] %v6713_v17  ;;  %v3814_v5 = vrot.slane %v3812_v3, 4  ;;  %v3838_v17 = vrot.slane %v3834_v13, 5  ;;  %v3827_v3 = vsel %vm620_vm12, %v3825_v50, %v3826_v4  ;;  %v3359_v13 = vstv %s6703_s23  ;;  %s6778_s23 = sld [smem:[#allocation6 + $0x11d]] }
 0x290   : > { %3797 = vrot.lane.b32.xlu1 %v3796_v32, %s5076_s26  ;;  %3806 = vrot.lane.b32.xlu0 %v3805_v9, %s5076_s26  ;;  %v2656_v32 = vstv %s6699_s19  ;;  %v3349_v9 = vmul.f32 %v3348_v36, %v6435_v33  ;;  %v3851_v60 = vrot.slane %v3847_v49, 6  ;;  %v3852_v19 = vrot.slane %v3848_v11, 6  ;;  %s6770_s19 = sld [smem:[#allocation6 + $0x103]] }
 0x291   : > { %v2657_v36 = vmul.f32 %v2656_v32, %v6307_v6  ;;  %v3840_v50 = vsel %vm620_vm12, %v3838_v17, %v3839_v8  ;;  %v3366_v17 = vstv %s6726_s28  ;;  %v2674_v11 = vstv %s6734_s24  ;;  %s6790_s28 = sld [smem:[#allocation6 + $0x134]]  ;;  %s6797_s24 = sld [smem:[#allocation6 + $0x14e]] }
 0x292   : > { %v6728_v43 = vpop.permute.xlu1 %2314  ;;  %v6730_v61 = vpop.permute.xlu0 %2333 }
 0x293   : > { %8600 = vst [vmem:[#allocation179_spill] sm:$0xff] %v6728_v43  ;;  %8601 = vst [vmem:[#allocation180_spill] sm:$0xff] %v6730_v61  ;;  %v3345_v61 = vmul.f32 %v3344_v0, %v6409_v34  ;;  %v3353_v43 = vmul.f32 %v3352_v2, %v6409_v34  ;;  %v3860_v0 = vmul.f32 %v3859_v40, %v6435_v33  ;;  %v2665_v2 = vstv %s6718_s22  ;;  %s6787_s22 = sld [smem:[#allocation6 + $0x87]] }
 0x294   : > { %3815 = vrot.lane.b32.xlu1 %v3814_v5, %s5076_s26  ;;  %3828 = vrot.lane.b32.xlu0 %v3827_v3, %s5076_s26  ;;  %v3360_v3 = vmul.f32 %v3359_v13, %v6435_v33  ;;  %v2659_v8 = vrot.slane %v2657_v36, 1  ;;  %v3865_v36 = vrot.slane %v3861_v30, 6 }
 0x295   : > { %v3350_v5 = vadd.f32 %v3349_v9, %v3345_v61  ;;  %v3355_v49 = vrot.slane %v3353_v43, 1  ;;  %v2666_v9 = vmul.f32 %v2665_v2, %v6289_v47  ;;  %v3853_v43 = vsel %vm655_vm13, %v3851_v60, %v3852_v19 }
 0x296   : > { %v6748_v54 = vpop.permute.xlu1 %2335  ;;  %v6750_v4 = vpop.permute.xlu0 %2354  ;;  %v3362_v13 = vrot.slane %v3360_v3, 1  ;;  %v3864_v40 = vrot.slane %v3860_v0, 6  ;;  %v3367_v2 = vmul.f32 %v3366_v17, %v6409_v34  ;;  %v3872_v0 = vstv %s6753_s30  ;;  %s6815_s30 = sld [smem:[#allocation6 + $0x104]] }
 0x297   : > { %8602 = vst [vmem:[#allocation181_spill] sm:$0xff] %v6748_v54  ;;  %8603 = vst [vmem:[#allocation182_spill] sm:$0xff] %v6750_v4  ;;  %v2668_v3 = vrot.slane %v2666_v9, 2  ;;  %v2683_v17 = vstv %s6759_s10  ;;  %v3888_v54 = vstv %s6778_s23  ;;  %s6823_s10 = sld [smem:[#allocation6 + $0x11e]]  ;;  %s6843_s23 = sld [smem:[#allocation6 + $0x135]]  ;;  %v3897_v18 = vstv %s6797_s24 }
 0x298   : > { %3841 = vrot.lane.b32.xlu1 %v3840_v50, %s5076_s26  ;;  %2651 = vrot.lane.b32.xlu0 %v2650_v55, %s5075_s4  ;;  %v3357_v55 = vadd.f32 %v3355_v49, %v3350_v5  ;;  %v3373_v50 = vstv %s6740_s25  ;;  %v2675_v5 = vmul.f32 %v2674_v11, %v6307_v6  ;;  %s6800_s25 = sld [smem:[#allocation6 + $0xb8]]  ;;  %v2383_v11 = vstv %s6763_s11  ;;  %s6825_s11 = sld [smem:[#allocation6 + $0xbf]] }
 0x299   : > { %v3374_v49 = vmul.f32 %v3373_v50, %v6435_v33  ;;  %v3369_v9 = vrot.slane %v3367_v2, 2  ;;  %v3880_v50 = vstv %s6767_s18  ;;  %v2684_v4 = vmul.f32 %v2683_v17, %v6289_v47  ;;  %s6834_s18 = sld [smem:[#allocation6 + $0x14f]]  ;;  %s6896_s24 = sld [smem:[#allocation6 + $0x106]] }
 0x29a   : > { %v6772_v61 = vpop.permute.xlu1 %2356  ;;  %v6774_v32 = vpop.permute.xlu0 %2494  ;;  %v3364_v30 = vadd.f32 %v3362_v13, %v3357_v55  ;;  %v3873_v55 = vmul.f32 %v3872_v0, %v6409_v34  ;;  %v2677_v13 = vrot.slane %v2675_v5, 2  ;;  %v2692_v5 = vstv %s6781_s14  ;;  %s6851_s14 = sld [smem:[#allocation6 + $0x105]] }
 0x29b   : > { %8604 = vst [vmem:[#allocation183_spill] sm:$0xff] %v6772_v61  ;;  %v3380_v61 = vstv %s6770_s19  ;;  %v3376_v2 = vrot.slane %v3374_v49, 2  ;;  %v2384_v0 = vmul.f32 %v2383_v11, %v6289_v47  ;;  %s6836_s19 = sld [smem:[#allocation6 + $0xa5]]  ;;  %v2391_v49 = vstv %s6787_s22  ;;  %s6855_s22 = sld [smem:[#allocation6 + $0xd6]] }
 0x29c   : > { %3854 = vrot.lane.b32.xlu1 %v3853_v43, %s5076_s26  ;;  %2660 = vrot.lane.b32.xlu0 %v2659_v8, %s5075_s4  ;;  %v3866_v8 = vsel %vm655_vm13, %v3864_v40, %v3865_v36  ;;  %v2387_v43 = vstv %s6765_s17  ;;  %s6828_s17 = sld [smem:[#allocation6 + $0xcf]]  ;;  %v3881_v17 = vmul.f32 %v3880_v50, %v6435_v33  ;;  %v3889_v11 = vmul.f32 %v3888_v54, %v6409_v34 }
 0x29d   : > { %v2693_v16 = vmul.f32 %v2692_v5, %v6307_v6  ;;  %v2405_v50 = vstv %s6808_s13  ;;  %v3898_v20 = vmul.f32 %v3897_v18, %v6435_v33  ;;  %v3394_v44 = vstv %s6815_s30  ;;  %s6884_s13 = sld [smem:[#allocation6 + $0x11f]]  ;;  %s6921_s30 = sld [smem:[#allocation6 + $0xdd]] }
 0x29e   : > { %v6792_v19 = vpop.permute.xlu1 %2502  ;;  %v6794_v60 = vpop.permute.xlu0 %2511  ;;  %v6880_v18 = vmul.f32 %v2405_v50, %v6289_v47  ;;  %v3401_v50 = vstv %s6843_s23  ;;  %s6961_s23 = sld [smem:[#allocation6 + $0xc6]] }
 0x29f   : > { %v3430_v62 = vstv %s6896_s24  ;;  %s7008_s24 = sld [smem:[#allocation6 + $0xcd]] }
 0x2a0   : > { %3867 = vrot.lane.b32.xlu1 %v3866_v8, %s5076_s26  ;;  %2669 = vrot.lane.b32.xlu0 %v2668_v3, %s5075_s4  ;;  %v3371_v3 = vadd.f32 %v3369_v9, %v3364_v30  ;;  %v2388_v8 = vmul.f32 %v2387_v43, %v6307_v6  ;;  %v3381_v30 = vmul.f32 %v3380_v61, %v6409_v34  ;;  %v3387_v9 = vstv %s6790_s28  ;;  %s6891_s28 = sld [smem:[#allocation6 + $0xac]] }
 0x2a1   : > { %v2398_v61 = vstv %s6800_s25  ;;  %v3388_v5 = vmul.f32 %v3387_v9, %v6435_v33  ;;  %v2719_v15 = vstv %s6836_s19  ;;  %s6898_s25 = sld [smem:[#allocation6 + $0x150]]  ;;  %v2732_v39 = vstv %s6855_s22  ;;  %s6959_s19 = sld [smem:[#allocation6 + $0x121]] }
 0x2a2   : > { %v6817_v40 = vpop.permute.xlu1 %2520  ;;  %v6819_v36 = vpop.permute.xlu0 %2529  ;;  %v3378_v42 = vadd.f32 %v3376_v2, %v3371_v3  ;;  %v6857_v54 = vadd.f32 %v2388_v8, %v2384_v0  ;;  %v6864_v3 = vmul.f32 %v2391_v49, %v6289_v47  ;;  %v3891_v2 = vrot.slane %v3889_v11, 1  ;;  %s6983_s22 = sld [smem:[#allocation6 + $0x152]] }
 0x2a3   : > { %v6877_v49 = vmul.f32 %v2398_v61, %v6307_v6  ;;  %v2412_v11 = vstv %s6825_s11  ;;  %v2710_v37 = vstv %s6828_s17  ;;  %v2721_v10 = vmul.f32 %v2719_v15, %v6343_v38  ;;  %s6934_s11 = sld [smem:[#allocation6 + $0x120]]  ;;  %s6937_s17 = sld [smem:[#allocation6 + $0x95]] }
 0x2a4   : > { %3875 = vrot.lane.b32.xlu1 %v3873_v55, %s5077_s29  ;;  %2678 = vrot.lane.b32.xlu0 %v2677_v13, %s5075_s4  ;;  %v2686_v13 = vrot.slane %v2684_v4, 3  ;;  %v3383_v4 = vrot.slane %v3381_v30, 3  ;;  %v2702_v30 = vmul.f32 %v2701_v12, %v6289_v47  ;;  %v3390_v12 = vrot.slane %v3388_v5, 3 }
 0x2a5   : > { %v2394_v6 = vrot.slane %v6864_v3, 1  ;;  %v3900_v47 = vrot.slane %v3898_v20, 1  ;;  %v3408_v3 = vstv %s6851_s14  ;;  %v3419_v38 = vstv %s6868_s21  ;;  %s6977_s14 = sld [smem:[#allocation6 + $0x83]]  ;;  %s6989_s21 = sld [smem:[#allocation6 + $0x9c]] }
 0x2a6   : > { %v6845_v43 = vpop.permute.xlu1 %2538  ;;  %v6847_v55 = vpop.permute.xlu0 %2547  ;;  %v3385_v9 = vadd.f32 %v3383_v4, %v3378_v42  ;;  %v3395_v42 = vmul.f32 %v3394_v44, %v6409_v34  ;;  %v2704_v5 = vrot.slane %v2702_v30, 4  ;;  %v2725_v46 = vrot.slane %v2721_v10, 5 }
 0x2a7   : > { %v3924_v35 = vstv %s6884_s13  ;;  %v2745_v7 = vstv %s6891_s28  ;;  %v3933_v24 = vstv %s6898_s25  ;;  %s6996_s13 = sld [smem:[#allocation6 + $0xb4]]  ;;  %s7006_s28 = sld [smem:[#allocation6 + $0x8a]] }
 0x2a8   : > { %3883 = vrot.lane.b32.xlu1 %v3881_v17, %s5077_s29  ;;  %2687 = vrot.lane.b32.xlu0 %v2686_v13, %s5075_s4  ;;  %v2695_v17 = vrot.slane %v2693_v16, 3  ;;  %v3906_v13 = vstv %s6823_s10  ;;  %v3915_v16 = vstv %s6834_s18  ;;  %v3392_v45 = vadd.f32 %v3390_v12, %v3385_v9  ;;  %s6926_s10 = sld [smem:[#allocation6 + $0x137]]  ;;  %s6951_s18 = sld [smem:[#allocation6 + $0x151]] }
 0x2a9   : > { %v3907_v61 = vmul.f32 %v3906_v13, %v6409_v34  ;;  %v3916_v20 = vmul.f32 %v3915_v16, %v6435_v33  ;;  %v6909_v13 = vld [vmem:[#allocation3] sm:$0xff]  ;;  %v3402_v9 = vmul.f32 %v3401_v50, %v6435_v33  ;;  %v3409_v12 = vmul.f32 %v3408_v3, %v6409_v34  ;;  %s7015_s25 = sld [smem:[#allocation6 + $0xa3]] }
 0x2aa   : > { %v6870_v0 = vpop.permute.xlu1 %2556  ;;  %v6872_v8 = vpop.permute.xlu0 %2565  ;;  %v2720_v31 = vmul.f32 %v6909_v13, %v2719_v15  ;;  %v3410_v15 = vmul.f32 %v3408_v3, %v6464_v29  ;;  %v3925_v56 = vmul.f32 %v3924_v35, %v6409_v34 }
 0x2ab   : > { %v3909_v16 = vrot.slane %v3907_v61, 2  ;;  %v3918_v61 = vrot.slane %v3916_v20, 2 }
 0x2ac   : > { %3892 = vrot.lane.b32.xlu1 %v3891_v2, %s5077_s29  ;;  %2696 = vrot.lane.b32.xlu0 %v2695_v17, %s5075_s4  ;;  %v6904_v17 = vld [vmem:[#allocation3 + $0x10] sm:$0xff]  ;;  %v2724_v3 = vrot.slane %v2720_v31, 5 }
 0x2ad   : > { %v2711_v44 = vmul.f32 %v6904_v17, %v2710_v37  ;;  %v6916_v30 = vmul.f32 %v6904_v17, %v2412_v11  ;;  %v3397_v37 = vrot.slane %v3395_v42, 4  ;;  %v2733_v50 = vmul.f32 %v6904_v17, %v2732_v39 }
 0x2ae   : > { %v6900_v4 = vpop.permute.xlu1 %2574  ;;  %v6902_v2 = vpop.permute.xlu0 %2587 }
 0x2af   : > { %v3399_v42 = vadd.f32 %v3397_v37, %v3392_v45  ;;  %v3420_v45 = vmul.f32 %v3419_v38, %v6435_v33  ;;  %v3421_v37 = vmul.f32 %v3419_v38, %v6480_v51  ;;  %v6956_v38 = vld [vmem:[#allocation3 + $0x8] sm:$0x3] }
 0x2b0   : > { %3901 = vrot.lane.b32.xlu1 %v3900_v47, %s5077_s29  ;;  %2705 = vrot.lane.b32.xlu0 %v2704_v5, %s5075_s4  ;;  %v2713_v47 = vrot.slane %v2711_v44, 4  ;;  %v2734_v5 = vmul.f32 %v2732_v39, %v6357_v14  ;;  %v3404_v44 = vrot.slane %v3402_v9, 4  ;;  %v3413_v39 = vrot.slane %v3409_v12, 5 }
 0x2b1   : > { %v3414_v14 = vrot.slane %v3410_v15, 5  ;;  %v2396_v9 = vadd.f32 %v2394_v6, %v6857_v54  ;;  %v2726_v12 = vsel %vm620_vm12, %v2724_v3, %v2725_v46  ;;  %v2746_v15 = vmul.f32 %v6909_v13, %v2745_v7 }
 0x2b2   : > { %v6928_v11 = vpop.permute.xlu1 %2600  ;;  %v6930_v23 = vpop.permute.xlu0 %2613  ;;  %v3406_v10 = vadd.f32 %v3404_v44, %v3399_v42  ;;  %v2747_v25 = vmul.f32 %v6956_v38, %v2745_v7  ;;  %v3424_v35 = vrot.slane %v3420_v45, 5  ;;  %v3425_v42 = vrot.slane %v3421_v37, 5 }
 0x2b3   : > { %v3431_v54 = vmul.f32 %v3430_v62, %v6409_v34  ;;  %v2758_v46 = vstv %s6921_s30  ;;  %v3415_v6 = vsel %vm620_vm12, %v3413_v39, %v3414_v14  ;;  %v3934_v7 = vmul.f32 %v3933_v24, %v6435_v33  ;;  %s7019_s30 = sld [smem:[#allocation6 + $0x122]] }
 0x2b4   : > { %3910 = vrot.lane.b32.xlu1 %v3909_v16, %s5077_s29  ;;  %2714 = vrot.lane.b32.xlu0 %v2713_v47, %s5075_s4  ;;  %v2737_v16 = vrot.slane %v2733_v50, 5  ;;  %v2738_v47 = vrot.slane %v2734_v5, 5  ;;  %v3432_v50 = vmul.f32 %v3430_v62, %v6464_v29  ;;  %v3441_v5 = vstv %s6926_s10  ;;  %v6980_v62 = vld [vmem:[#allocation3 + $0x18] sm:$0x3]  ;;  %s7032_s10 = sld [smem:[#allocation6 + $0xbb]] }
 0x2b5   : > { %v3417_v44 = vadd.f32 %v3415_v6, %v3406_v10  ;;  %v3942_v37 = vstv %s6934_s11  ;;  %v2750_v34 = vrot.slane %v2746_v15, 6  ;;  %v2759_v39 = vmul.f32 %v6904_v17, %v2758_v46  ;;  %s7034_s11 = sld [smem:[#allocation6 + $0x153]] }
 0x2b6   : > { %v6946_v20 = vpop.permute.xlu1 %2626  ;;  %v6948_v31 = vpop.permute.xlu0 %2634  ;;  %v2739_v45 = vsel %vm620_vm12, %v2737_v16, %v2738_v47  ;;  %v2760_v24 = vmul.f32 %v6980_v62, %v2758_v46  ;;  %v8605_v14 = vrot.slane %v6877_v49, 1  ;;  %v2419_v6 = vstv %s6937_s17  ;;  %s7040_s17 = sld [smem:[#allocation6 + $0xd4]] }
 0x2b7   : > { %v3435_v16 = vrot.slane %v3431_v54, 6  ;;  %v3436_v47 = vrot.slane %v3432_v50, 6  ;;  %v3442_v15 = vmul.f32 %v3441_v5, %v6435_v33  ;;  %v3443_v49 = vmul.f32 %v3441_v5, %v6480_v51 }
 0x2b8   : > { %3919 = vrot.lane.b32.xlu1 %v3918_v61, %s5077_s29  ;;  %2727 = vrot.lane.b32.xlu0 %v2726_v12, %s5075_s4  ;;  %v3927_v61 = vrot.slane %v3925_v56, 3  ;;  %v2751_v12 = vrot.slane %v2747_v25, 6  ;;  %v2403_v10 = vadd.f32 %v8605_v14, %v2396_v9  ;;  %v2408_v56 = vrot.slane %v6880_v18, 2 }
 0x2b9   : > { %v3426_v25 = vsel %vm620_vm12, %v3424_v35, %v3425_v42  ;;  %v3936_v54 = vrot.slane %v3934_v7, 3  ;;  %v3951_v35 = vstv %s6951_s18  ;;  %v2763_v42 = vrot.slane %v2759_v39, 6  ;;  %v7022_v39 = vld [vmem:[#allocation4 + $0x10] sm:$0xff]  ;;  %s7053_s18 = sld [smem:[#allocation6 + $0x91]] }
 0x2ba   : > { %v6971_v3 = vpop.permute.xlu1 %2642  ;;  %v6973_v26 = vpop.permute.xlu0 %3455  ;;  %v3428_v18 = vadd.f32 %v3426_v25, %v3417_v44  ;;  %v2752_v33 = vsel %vm655_vm13, %v2750_v34, %v2751_v12  ;;  %v2764_v50 = vrot.slane %v2760_v24, 6  ;;  %v3960_v5 = vstv %s6959_s19  ;;  %s7079_s19 = sld [smem:[#allocation6 + $0xc2]] }
 0x2bb   : > { %v2410_v44 = vadd.f32 %v2408_v56, %v2403_v10  ;;  %v2415_v14 = vrot.slane %v6916_v30, 2  ;;  %v2420_v7 = vmul.f32 %v6909_v13, %v2419_v6  ;;  %v2426_v25 = vstv %s6961_s23  ;;  %s7099_s23 = sld [smem:[#allocation6 + $0x123]] }
 0x2bc   : > { %3928 = vrot.lane.b32.xlu1 %v3927_v61, %s5077_s29  ;;  %2740 = vrot.lane.b32.xlu0 %v2739_v45, %s5075_s4  ;;  %v7002_v61 = vld [vmem:[#allocation4] sm:$0xff]  ;;  %v3446_v34 = vrot.slane %v3442_v15, 6  ;;  %v3447_v12 = vrot.slane %v3443_v49, 6  ;;  %v3952_v30 = vmul.f32 %v7022_v39, %v3951_v35  ;;  %v2771_v6 = vstv %s6977_s14  ;;  %s7101_s14 = sld [smem:[#allocation6 + $0x98]] }
 0x2bd   : > { %v3943_v45 = vmul.f32 %v7002_v61, %v3942_v37  ;;  %v3437_v37 = vsel %vm655_vm13, %v3435_v16, %v3436_v47  ;;  %v2765_v47 = vsel %vm655_vm13, %v2763_v42, %v2764_v50  ;;  %v3973_v15 = vstv %s6983_s22  ;;  %s7108_s22 = sld [smem:[#allocation6 + $0xdb]] }
 0x2be   : > { %v6998_v9 = vpop.permute.xlu1 %3463  ;;  %v7000_v46 = vpop.permute.xlu0 %3472  ;;  %v3439_v16 = vadd.f32 %v3437_v37, %v3428_v18  ;;  %v2417_v49 = vadd.f32 %v2415_v14, %v2410_v44  ;;  %v2422_v35 = vrot.slane %v2420_v7, 3  ;;  %v2427_v63 = vmul.f32 %v6904_v17, %v2426_v25 }
 0x2bf   : > { %v3945_v56 = vrot.slane %v3943_v45, 4  ;;  %v2433_v45 = vstv %s6989_s21  ;;  %v3954_v18 = vrot.slane %v3952_v30, 4  ;;  %v2772_v42 = vmul.f32 %v6909_v13, %v2771_v6  ;;  %s7115_s21 = sld [smem:[#allocation6 + $0xc9]] }
 0x2c0   : > { %3937 = vrot.lane.b32.xlu1 %v3936_v54, %s5077_s29  ;;  %2753 = vrot.lane.b32.xlu0 %v2752_v33, %s5075_s4  ;;  %v3961_v54 = vmul.f32 %v7002_v61, %v3960_v5  ;;  %v3962_v33 = vmul.f32 %v3960_v5, %v6464_v29  ;;  %v3448_v29 = vsel %vm655_vm13, %v3446_v34, %v3447_v12  ;;  %v2779_v50 = vstv %s6996_s13  ;;  %s7120_s13 = sld [smem:[#allocation6 + $0x154]] }
 0x2c1   : > { %v3974_v25 = vmul.f32 %v7022_v39, %v3973_v15  ;;  %v2787_v37 = vstv %s7006_s28  ;;  %v3975_v34 = vmul.f32 %v3973_v15, %v6480_v51  ;;  %v2429_v12 = vrot.slane %v2427_v63, 3  ;;  %s7122_s28 = sld [smem:[#allocation6 + $0x124]] }
 0x2c2   : > { %v7025_v24 = vpop.permute.xlu1 %3481  ;;  %v7027_v10 = vpop.permute.xlu0 %3490  ;;  %v3965_v14 = vrot.slane %v3961_v54, 5  ;;  %v3966_v7 = vrot.slane %v3962_v33, 5  ;;  %v2434_v30 = vmul.f32 %v6909_v13, %v2433_v45  ;;  %v2447_v6 = vstv %s7015_s25  ;;  %s7140_s25 = sld [smem:[#allocation6 + $0x9f]] }
 0x2c3   : > { %v3986_v54 = vstv %s7019_s30  ;;  %v2424_v33 = vadd.f32 %v2422_v35, %v2417_v49  ;;  %v2788_v51 = vmul.f32 %v6909_v13, %v2787_v37  ;;  %v2796_v28 = vstv %s7032_s10  ;;  %s7145_s30 = sld [smem:[#allocation6 + $0x125]]  ;;  %s7147_s10 = sld [smem:[#allocation6 + $0xd0]] }
 0x2c4   : > { %3946 = vrot.lane.b32.xlu1 %v3945_v56, %s5077_s29  ;;  %2766 = vrot.lane.b32.xlu0 %v2765_v47, %s5075_s4  ;;  %v2440_v56 = vstv %s7008_s24  ;;  %v3450_v47 = vadd.f32 %v3448_v29, %v3439_v16  ;;  %s7059_s4 = sld [smem:[#allocation6 + $0xaa]]  ;;  %v2780_v16 = vmul.f32 %v6904_v17, %v2779_v50  ;;  %v3967_v45 = vsel %vm620_vm12, %v3965_v14, %v3966_v7  ;;  %s7138_s24 = sld [smem:[#allocation6 + $0x155]] }
 0x2c5   : > { %v3978_v29 = vrot.slane %v3974_v25, 5  ;;  %v3979_v52 = vrot.slane %v3975_v34, 5  ;;  %v3987_v49 = vmul.f32 %v7002_v61, %v3986_v54  ;;  %v2436_v50 = vrot.slane %v2434_v30, 4 }
 0x2c6   : > { %v7047_v5 = vpop.permute.xlu1 %3499  ;;  %v7049_v44 = vpop.permute.xlu0 %3508  ;;  %v3458_v48 = vadd.f32 %v6973_v26, %v3450_v47  ;;  %v7076_v26 = vld [vmem:[#allocation4 + $0x8] sm:$0x3]  ;;  %v2441_v37 = vmul.f32 %v6904_v17, %v2440_v56  ;;  %v2458_v47 = vstv %s7040_s17  ;;  %v2431_v14 = vadd.f32 %v2429_v12, %v2424_v33  ;;  %s7174_s17 = sld [smem:[#allocation6 + $0x156]] }
 0x2c7   : > { %v3988_v35 = vmul.f32 %v7076_v26, %v3986_v54  ;;  %v2790_v7 = vrot.slane %v2788_v51, 1  ;;  %v2797_v30 = vmul.f32 %v6904_v17, %v2796_v28  ;;  %v7093_v54 = vld [vmem:[#allocation4 + $0x18] sm:$0x3]  ;;  %v3980_v33 = vsel %vm620_vm12, %v3978_v29, %v3979_v52 }
 0x2c8   : > { %3955 = vrot.lane.b32.xlu1 %v3954_v18, %s5077_s29  ;;  %2774 = vrot.lane.b32.xlu0 %v2772_v42, %s5076_s26  ;;  %v3999_v18 = vstv %s7034_s11  ;;  %v3466_v42 = vadd.f32 %v6998_v9, %v3458_v48  ;;  %v2448_v48 = vmul.f32 %v6909_v13, %v2447_v6  ;;  %v2449_v9 = vmul.f32 %v6956_v38, %v2447_v6  ;;  %s7160_s11 = sld [smem:[#allocation6 + $0xa6]] }
 0x2c9   : > { %v4000_v56 = vmul.f32 %v7022_v39, %v3999_v18  ;;  %v3991_v6 = vrot.slane %v3987_v49, 6  ;;  %v3992_v27 = vrot.slane %v3988_v35, 6  ;;  %v2443_v51 = vrot.slane %v2441_v37, 4 }
 0x2ca   : > { %v7067_v63 = vpop.permute.xlu1 %3517  ;;  %v7069_v15 = vpop.permute.xlu0 %3526  ;;  %v3475_v12 = vadd.f32 %v7000_v46, %v3466_v42  ;;  %v2469_v22 = vstv %s7059_s4  ;;  %v2438_v28 = vadd.f32 %v2436_v50, %v2431_v14  ;;  %v2459_v59 = vmul.f32 %v6904_v17, %v2458_v47  ;;  %s7191_s4 = sld [smem:[#allocation6 + $0x126]] }
 0x2cb   : > { %v2460_v46 = vmul.f32 %v6980_v62, %v2458_v47  ;;  %v2453_v52 = vrot.slane %v2449_v9, 5  ;;  %v2799_v49 = vrot.slane %v2797_v30, 1  ;;  %v4004_v35 = vrot.slane %v4000_v56, 6 }
 0x2cc   : > { %3968 = vrot.lane.b32.xlu1 %v3967_v45, %s5077_s29  ;;  %2782 = vrot.lane.b32.xlu0 %v2780_v16, %s5076_s26  ;;  %v4001_v45 = vmul.f32 %v7093_v54, %v3999_v18  ;;  %v2805_v16 = vstv %s7053_s18  ;;  %v2452_v18 = vrot.slane %v2448_v48, 5  ;;  %v3484_v50 = vadd.f32 %v7025_v24, %v3475_v12  ;;  %s7179_s18 = sld [smem:[#allocation6 + $0xd7]] }
 0x2cd   : > { %v2806_v37 = vmul.f32 %v6909_v13, %v2805_v16  ;;  %v3993_v14 = vsel %vm655_vm13, %v3991_v6, %v3992_v27  ;;  %v2445_v47 = vadd.f32 %v2443_v51, %v2438_v28  ;;  %v2463_v9 = vrot.slane %v2459_v59, 5 }
 0x2ce   : > { %v7087_v25 = vpop.permute.xlu1 %3535  ;;  %v7089_v34 = vpop.permute.xlu0 %3548  ;;  %v4005_v48 = vrot.slane %v4001_v45, 6  ;;  %v2470_v30 = vmul.f32 %v6909_v13, %v2469_v22  ;;  %v2471_v24 = vmul.f32 %v6956_v38, %v2469_v22  ;;  %v2454_v27 = vsel %vm620_vm12, %v2452_v18, %v2453_v52 }
 0x2cf   : > { %v2464_v56 = vrot.slane %v2460_v46, 5  ;;  %v2808_v12 = vrot.slane %v2806_v37, 2  ;;  %v3493_v6 = vadd.f32 %v7027_v10, %v3484_v50  ;;  %v4012_v59 = vstv %s7099_s23  ;;  %s7202_s23 = sld [smem:[#allocation6 + $0x157]] }
 0x2d0   : > { %3981 = vrot.lane.b32.xlu1 %v3980_v33, %s5077_s29  ;;  %2791 = vrot.lane.b32.xlu0 %v2790_v7, %s5076_s26  ;;  %v2814_v7 = vstv %s7079_s19  ;;  %v4006_v51 = vsel %vm655_vm13, %v4004_v35, %v4005_v48  ;;  %v2823_v28 = vstv %s7101_s14  ;;  %v2456_v22 = vadd.f32 %v2454_v27, %v2445_v47  ;;  %s7195_s19 = sld [smem:[#allocation6 + $0xad]]  ;;  %s7216_s14 = sld [smem:[#allocation6 + $0xde]] }
 0x2d1   : > { %v2815_v33 = vmul.f32 %v6904_v17, %v2814_v7  ;;  %v2474_v18 = vrot.slane %v2470_v30, 6  ;;  %v2475_v46 = vrot.slane %v2471_v24, 6  ;;  %v2480_v52 = vstv %s7108_s22  ;;  %s7227_s22 = sld [smem:[#allocation6 + $0x127]] }
 0x2d2   : > { %v7110_v29 = vpop.permute.xlu1 %3561  ;;  %v7112_v42 = vpop.permute.xlu0 %3574  ;;  %v2465_v10 = vsel %vm620_vm12, %v2463_v9, %v2464_v56  ;;  %v4013_v37 = vmul.f32 %v7002_v61, %v4012_v59  ;;  %v3502_v48 = vadd.f32 %v7047_v5, %v3493_v6  ;;  %v4020_v7 = vstv %s7120_s13  ;;  %s7243_s13 = sld [smem:[#allocation6 + $0x128]] }
 0x2d3   : > { %v2817_v50 = vrot.slane %v2815_v33, 2  ;;  %v4028_v47 = vstv %s7122_s28  ;;  %v2832_v30 = vstv %s7115_s21  ;;  %v2481_v9 = vmul.f32 %v6904_v17, %v2480_v52  ;;  %s7241_s21 = sld [smem:[#allocation6 + $0x158]]  ;;  %s7259_s28 = sld [smem:[#allocation6 + $0x159]] }
 0x2d4   : > { %3994 = vrot.lane.b32.xlu1 %v3993_v14, %s5077_s29  ;;  %2800 = vrot.lane.b32.xlu0 %v2799_v49, %s5076_s26  ;;  %v2824_v14 = vmul.f32 %v6909_v13, %v2823_v28  ;;  %v2482_v24 = vmul.f32 %v6980_v62, %v2480_v52  ;;  %v2467_v27 = vadd.f32 %v2465_v10, %v2456_v22  ;;  %v4037_v22 = vstv %s7138_s24  ;;  %s7264_s24 = sld [smem:[#allocation6 + $0x84]] }
 0x2d5   : > { %v2476_v56 = vsel %vm655_vm13, %v2474_v18, %v2475_v46  ;;  %v4021_v33 = vmul.f32 %v7022_v39, %v4020_v7  ;;  %v2833_v59 = vmul.f32 %v6904_v17, %v2832_v30  ;;  %v3511_v28 = vadd.f32 %v7049_v44, %v3502_v48 }
 0x2d6   : > { %v7129_v45 = vpop.permute.xlu1 %3587  ;;  %v7131_v16 = vpop.permute.xlu0 %3595  ;;  %v2826_v6 = vrot.slane %v2824_v14, 3  ;;  %v2841_v52 = vstv %s7140_s25  ;;  %v2485_v18 = vrot.slane %v2481_v9, 6  ;;  %v2486_v46 = vrot.slane %v2482_v24, 6  ;;  %s7268_s25 = sld [smem:[#allocation6]] }
 0x2d7   : > { %v2478_v10 = vadd.f32 %v2476_v56, %v2467_v27  ;;  %v2835_v44 = vrot.slane %v2833_v59, 3  ;;  %v4038_v48 = vmul.f32 %v7022_v39, %v4037_v22  ;;  %v2842_v30 = vmul.f32 %v6909_v13, %v2841_v52 }
 0x2d8   : > { %4007 = vrot.lane.b32.xlu1 %v4006_v51, %s5077_s29  ;;  %2809 = vrot.lane.b32.xlu0 %v2808_v12, %s5076_s26  ;;  %v4029_v51 = vmul.f32 %v7002_v61, %v4028_v47  ;;  %v3520_v9 = vadd.f32 %v7067_v63, %v3511_v28  ;;  %v2859_v24 = vstv %s7160_s11  ;;  %v2487_v27 = vsel %vm655_vm13, %v2485_v18, %v2486_v46  ;;  %s7284_s11 = sld [smem:[#allocation6 + $0x129]] }
 0x2d9   : > { %v2489_v56 = vadd.f32 %v2487_v27, %v2478_v10  ;;  %v4040_v59 = vrot.slane %v4038_v48, 1  ;;  %v2844_v28 = vrot.slane %v2842_v30, 4  ;;  %v4055_v22 = vstv %s7174_s17  ;;  %s7286_s17 = sld [smem:[#allocation6 + $0x7]] }
 0x2da   : > { %v7150_v49 = vpop.permute.xlu1 %3603  ;;  %v7152_v35 = vpop.permute.xlu0 %3612  ;;  %v4031_v47 = vrot.slane %v4029_v51, 1  ;;  %v2860_v52 = vmul.f32 %v6909_v13, %v2859_v24  ;;  %v3529_v46 = vadd.f32 %v7069_v15, %v3520_v9  ;;  %v2861_v10 = vmul.f32 %v6956_v38, %v2859_v24 }
 0x2db   : > { %v2497_v18 = vadd.f32 %v6774_v32, %v2489_v56  ;;  %v4064_v30 = vstv %s7191_s4  ;;  %s7292_s4 = sld [smem:[#allocation6 + $0x15]] }
 0x2dc   : > { %4015 = vrot.lane.b32.xlu1 %v4013_v37, %s5078_s8  ;;  %2818 = vrot.lane.b32.xlu0 %v2817_v50, %s5076_s26  ;;  %v4046_v37 = vstv %s7145_s30  ;;  %v2850_v50 = vstv %s7147_s10  ;;  %v3538_v27 = vadd.f32 %v7087_v25, %v3529_v46  ;;  %v2864_v56 = vrot.slane %v2860_v52, 5  ;;  %s7278_s30 = sld [smem:[#allocation6 + $0xb5]]  ;;  %s7282_s10 = sld [smem:[#allocation6 + $0x8b]] }
 0x2de   : > { %v7167_v12 = vpop.permute.xlu1 %3621  ;;  %v7169_v5 = vpop.permute.xlu0 %3630 }
 0x2e0   : > { %4023 = vrot.lane.b32.xlu1 %v4021_v33, %s5078_s8  ;;  %2827 = vrot.lane.b32.xlu0 %v2826_v6, %s5076_s26  ;;  %v4047_v33 = vmul.f32 %v7002_v61, %v4046_v37  ;;  %v2851_v6 = vmul.f32 %v6904_v17, %v2850_v50  ;;  %v2872_v37 = vstv %s7179_s18  ;;  %v2505_v50 = vadd.f32 %v6792_v19, %v2497_v18  ;;  %s7288_s18 = sld [smem:[#allocation6 + $0xe]] }
 0x2e1   : > { %v2873_v9 = vmul.f32 %v6904_v17, %v2872_v37  ;;  %v2874_v24 = vmul.f32 %v6980_v62, %v2872_v37  ;;  %v2865_v19 = vrot.slane %v2861_v10, 5  ;;  %v4065_v37 = vmul.f32 %v7002_v61, %v4064_v30 }
 0x2e2   : > { %v7185_v14 = vpop.permute.xlu1 %3639  ;;  %v7187_v7 = vpop.permute.xlu0 %3648  ;;  %v2853_v15 = vrot.slane %v2851_v6, 4 }
 0x2e3   : > { %v2877_v41 = vrot.slane %v2873_v9, 5  ;;  %v2878_v25 = vrot.slane %v2874_v24, 5  ;;  %v2866_v46 = vsel %vm620_vm12, %v2864_v56, %v2865_v19  ;;  %v4067_v9 = vrot.slane %v4065_v37, 3 }
 0x2e4   : > { %4032 = vrot.lane.b32.xlu1 %v4031_v47, %s5078_s8  ;;  %2836 = vrot.lane.b32.xlu0 %v2835_v44, %s5076_s26  ;;  %v4049_v47 = vrot.slane %v4047_v33, 2  ;;  %v4056_v44 = vmul.f32 %v7022_v39, %v4055_v22  ;;  %v2885_v33 = vstv %s7195_s19  ;;  %v4100_v37 = vstv %s7243_s13  ;;  %s7302_s19 = sld [smem:[#allocation6 + $0x1c]]  ;;  %s7319_s13 = sld [smem:[#allocation6 + $0x3f]] }
 0x2e5   : > { %v2886_v52 = vmul.f32 %v6909_v13, %v2885_v33  ;;  %v2887_v10 = vmul.f32 %v6956_v38, %v2885_v33 }
 0x2e6   : > { %v7204_v51 = vpop.permute.xlu1 %3657  ;;  %v7206_v63 = vpop.permute.xlu0 %3666  ;;  %v4058_v6 = vrot.slane %v4056_v44, 2 }
 0x2e7   : > { %v2890_v24 = vrot.slane %v2886_v52, 6  ;;  %v2891_v56 = vrot.slane %v2887_v10, 6 }
 0x2e8   : > { %4041 = vrot.lane.b32.xlu1 %v4040_v59, %s5078_s8  ;;  %2845 = vrot.lane.b32.xlu0 %v2844_v28, %s5076_s26  ;;  %v2514_v59 = vadd.f32 %v6794_v60, %v2505_v50  ;;  %v4073_v28 = vstv %s7202_s23  ;;  %v3551_v60 = vadd.f32 %v7089_v34, %v3538_v27  ;;  %v2898_v50 = vstv %s7216_s14  ;;  %s7308_s23 = sld [smem:[#allocation6 + $0xbc]]  ;;  %s7310_s14 = sld [smem:[#allocation6 + $0x31]] }
 0x2e9   : > { %v4074_v44 = vmul.f32 %v7022_v39, %v4073_v28  ;;  %v2879_v34 = vsel %vm620_vm12, %v2877_v41, %v2878_v25  ;;  %v4082_v27 = vstv %s7227_s22  ;;  %v2900_v19 = vmul.f32 %v6980_v62, %v2898_v50  ;;  %s7314_s22 = sld [smem:[#allocation6 + $0x15a]] }
 0x2ea   : > { %v7220_v48 = vpop.permute.xlu1 %3675  ;;  %v7222_v32 = vpop.permute.xlu0 %3688  ;;  %v3564_v38 = vadd.f32 %v7110_v29, %v3551_v60  ;;  %v4091_v28 = vstv %s7241_s21  ;;  %v2892_v25 = vsel %vm655_vm13, %v2890_v24, %v2891_v56  ;;  %v2911_v24 = vstv %s7264_s24  ;;  %s7317_s21 = sld [smem:[#allocation6 + $0x38]]  ;;  %s7343_s24 = sld [smem:[#allocation6 + $0x4d]] }
 0x2eb   : > { %v4076_v29 = vrot.slane %v4074_v44, 3  ;;  %v2904_v60 = vrot.slane %v2900_v19, 6  ;;  %v4113_v44 = vstv %s7259_s28  ;;  %s7341_s28 = sld [smem:[#allocation6 + $0x46]] }
 0x2ec   : > { %4050 = vrot.lane.b32.xlu1 %v4049_v47, %s5078_s8  ;;  %2854 = vrot.lane.b32.xlu0 %v2853_v15, %s5076_s26  ;;  %v2523_v47 = vadd.f32 %v6817_v40, %v2514_v59  ;;  %v2899_v40 = vmul.f32 %v6904_v17, %v2898_v50  ;;  %v3577_v62 = vadd.f32 %v7112_v42, %v3564_v38 }
 0x2ed   : > { %v4092_v50 = vmul.f32 %v7022_v39, %v4091_v28  ;;  %v4114_v38 = vmul.f32 %v7022_v39, %v4113_v44  ;;  %v4115_v56 = vmul.f32 %v7093_v54, %v4113_v44  ;;  %v2919_v28 = vstv %s7278_s30  ;;  %s7365_s30 = sld [smem:[#allocation6 + $0xc3]] }
 0x2ee   : > { %v7235_v22 = vpop.permute.xlu1 %3701  ;;  %v7237_v18 = vpop.permute.xlu0 %3714  ;;  %v2532_v41 = vadd.f32 %v6819_v36, %v2523_v47  ;;  %v2903_v52 = vrot.slane %v2899_v40, 6  ;;  %v4101_v47 = vmul.f32 %v7002_v61, %v4100_v37 }
 0x2f0   : > { %4059 = vrot.lane.b32.xlu1 %v4058_v6, %s5078_s8  ;;  %2867 = vrot.lane.b32.xlu0 %v2866_v46, %s5076_s26  ;;  %v4083_v6 = vmul.f32 %v7002_v61, %v4082_v27  ;;  %v2541_v36 = vadd.f32 %v6845_v43, %v2532_v41  ;;  %v4102_v43 = vmul.f32 %v7076_v26, %v4100_v37  ;;  %v4094_v41 = vrot.slane %v4092_v50, 4 }
 0x2f1   : > { %v4119_v50 = vrot.slane %v4115_v56, 5 }
 0x2f2   : > { %v7253_v15 = vpop.permute.xlu1 %3727  ;;  %v7255_v30 = vpop.permute.xlu0 %3735  ;;  %v4085_v10 = vrot.slane %v4083_v6, 4  ;;  %v4105_v6 = vrot.slane %v4101_v47, 5 }
 0x2f3   : > { %v2954_v57 = vstv %s7365_s30  ;;  %s7549_s30 = sld [smem:[#allocation6 + $0x15d]] }
 0x2f4   : > { %4068 = vrot.lane.b32.xlu1 %v4067_v9, %s5078_s8  ;;  %2880 = vrot.lane.b32.xlu0 %v2879_v34, %s5076_s26  ;;  %v3590_v9 = vadd.f32 %v7129_v45, %v3577_v62  ;;  %v2905_v34 = vsel %vm655_vm13, %v2903_v52, %v2904_v60  ;;  %v2550_v45 = vadd.f32 %v6847_v55, %v2541_v36  ;;  %v4106_v62 = vrot.slane %v4102_v43, 5 }
 0x2f5   : > { %v4126_v52 = vstv %s7284_s11  ;;  %v7336_v55 = vstv %s7286_s17  ;;  %v7339_v60 = vstv %s7288_s18  ;;  %s7370_s11 = sld [smem:[#allocation6 + $0x5b]]  ;;  %s7392_s17 = sld [smem:[#allocation6 + $0x12a]] }
 0x2f6   : > { %v7271_v33 = vpop.permute.xlu1 %3743  ;;  %v7273_v59 = vpop.permute.xlu0 %3752  ;;  %v3598_v37 = vadd.f32 %v7131_v16, %v3590_v9  ;;  %v7348_v16 = vstv %s7292_s4  ;;  %v2559_v36 = vadd.f32 %v6870_v0, %v2550_v45  ;;  %v2920_v9 = vmul.f32 %v6904_v17, %v2919_v28  ;;  %s7394_s18 = sld [smem:[#allocation6 + $0x99]]  ;;  %s7427_s4 = sld [smem:[#allocation6 + $0x15b]] }
 0x2f7   : > { %8606 = vst [vmem:[#allocation184_spill] sm:$0xff] %v7273_v59  ;;  %v4128_v43 = vmul.f32 %v7076_v26, %v4126_v52  ;;  %v4107_v45 = vsel %vm620_vm12, %v4105_v6, %v4106_v62  ;;  %v4139_v26 = vstv %s7314_s22  ;;  %s7460_s22 = sld [smem:[#allocation6 + $0x15c]]  ;;  %v7545_v59 = vld [vmem:[#allocation3 + $0x10] sm:$0xff] }
 0x2f8   : > { %4077 = vrot.lane.b32.xlu1 %v4076_v29, %s5078_s8  ;;  %2893 = vrot.lane.b32.xlu0 %v2892_v25, %s5076_s26  ;;  %v2912_v29 = vmul.f32 %v6909_v13, %v2911_v24  ;;  %v2927_v25 = vstv %s7282_s10  ;;  %v4127_v24 = vmul.f32 %v7002_v61, %v4126_v52  ;;  %v3606_v0 = vadd.f32 %v7150_v49, %v3598_v37  ;;  %s7368_s10 = sld [smem:[#allocation6 + $0x54]] }
 0x2f9   : > { %v7379_v49 = vstv %s7319_s13  ;;  %v2568_v6 = vadd.f32 %v6872_v8, %v2559_v36  ;;  %v4140_v27 = vmul.f32 %v7022_v39, %v4139_v26  ;;  %v4141_v58 = vmul.f32 %v7093_v54, %v4139_v26  ;;  %v7408_v54 = vld [vmem:[#allocation2 + $0x20] sm:$0xff]  ;;  %s7507_s13 = sld [smem:[#allocation6 + $0x12c]] }
 0x2fa   : > { %v7295_v42 = vpop.permute.xlu1 %3761  ;;  %v7297_v46 = vpop.permute.xlu0 %3770  ;;  %v4131_v52 = vrot.slane %v4127_v24, 6  ;;  %v3615_v56 = vadd.f32 %v7152_v35, %v3606_v0  ;;  %v7397_v8 = vstv %s7341_s28  ;;  %v7400_v36 = vstv %s7343_s24  ;;  %s7519_s28 = sld [smem:[#allocation6 + $0xa7]]  ;;  %s8626_s24 = smov 122  }
 0x2fb   : > { %8607 = vst [vmem:[#allocation185_spill] sm:$0xff] %v7295_v42  ;;  %8608 = vst [vmem:[#allocation186_spill] sm:$0xff] %v7297_v46  ;;  %v2577_v24 = vadd.f32 %v6900_v4, %v2568_v6  ;;  %v4144_v4 = vrot.slane %v4140_v27, 6  ;;  %v4145_v6 = vrot.slane %v4141_v58, 6  ;;  %v7479_v1 = vmul.f32 %v7408_v54, %v7397_v8 }
 0x2fc   : > { %4086 = vrot.lane.b32.xlu1 %v4085_v10, %s5078_s8  ;;  %2906 = vrot.lane.b32.xlu0 %v2905_v34, %s5076_s26  ;;  %s7333_s26 = sld [smem:[#allocation6 + $0x92]]  ;;  %v4118_v10 = vrot.slane %v4114_v38, 5  ;;  %v2928_v34 = vmul.f32 %v6909_v13, %v2927_v25  ;;  %v2936_v38 = vstv %s7308_s23  ;;  %8615 = vst [vmem:[#allocation193_spill] sm:$0xff] %v7400_v36  ;;  %v3624_v21 = vadd.f32 %v7167_v12, %v3615_v56 }
 0x2fd   : > { %s7433_s23 = sld [smem:[#allocation6 + $0xca]] }
 0x2fe   : > { %v7324_v40 = vpop.permute.xlu1 %3779  ;;  %v7326_v19 = vpop.permute.xlu0 %3788  ;;  %v4120_v28 = vsel %vm620_vm12, %v4118_v10, %v4119_v50  ;;  %v2930_v25 = vrot.slane %v2928_v34, 1  ;;  %v7404_v10 = vld [vmem:[#allocation2 + $0x18] sm:$0xff]  ;;  %v3633_v27 = vadd.f32 %v7169_v5, %v3624_v21 }
 0x2ff   : > { %8609 = vst [vmem:[#allocation187_spill] sm:$0xff] %v7324_v40  ;;  %8610 = vst [vmem:[#allocation188_spill] sm:$0xff] %v7326_v19  ;;  %v527_v34 = vmul.f32 %v7404_v10, %v7379_v49  ;;  %v597_v5 = vmul.f32 %v7404_v10, %v7400_v36  ;;  %v4177_v40 = vstv %s7460_s22  ;;  %s7665_s22 = sld [smem:[#allocation6 + $0x2a]] }
 0x300   : > { %4095 = vrot.lane.b32.xlu1 %v4094_v41, %s5078_s8  ;;  %2914 = vrot.lane.b32.xlu0 %v2912_v29, %s5077_s29  ;;  %v7360_v41 = vstv %s7302_s19  ;;  %v7376_v29 = vstv %s7317_s21  ;;  %s7431_s19 = sld [smem:[#allocation6 + $0x12b]]  ;;  %s7468_s21 = sld [smem:[#allocation6 + $0xa0]] }
 0x301   : > { %v492_v35 = vmul.f32 %v7404_v10, %v7376_v29  ;;  %v7412_v50 = vmul.f32 %v7408_v54, %v7376_v29 }
 0x302   : > { %v7351_v47 = vpop.permute.xlu1 %3797  ;;  %v7353_v44 = vpop.permute.xlu0 %3806  ;;  %v2945_v53 = vstv %s7333_s26  ;;  %s7517_s26 = sld [smem:[#allocation6 + $0xd1]] }
 0x303   : > { %8611 = vst [vmem:[#allocation189_spill] sm:$0xff] %v7351_v47  ;;  %8612 = vst [vmem:[#allocation190_spill] sm:$0xff] %v7353_v44  ;;  %v498_v58 = vrot.slane %v492_v35, 1  ;;  %v2955_v35 = vmul.f32 %v6904_v17, %v2954_v57  ;;  %v4146_v44 = vsel %vm655_vm13, %v4144_v4, %v4145_v6  ;;  %v4152_v47 = vstv %s7392_s17  ;;  %s7593_s17 = sld [smem:[#allocation6 + $0xae]] }
 0x304   : > { %4108 = vrot.lane.b32.xlu1 %v4107_v45, %s5078_s8  ;;  %2922 = vrot.lane.b32.xlu0 %v2920_v9, %s5077_s29  ;;  %v4132_v45 = vrot.slane %v4128_v43, 6  ;;  %v2937_v9 = vmul.f32 %v6904_v17, %v2936_v38  ;;  %v7419_v43 = vmul.f32 %v7408_v54, %v7379_v49  ;;  %v8622_v21 = vrot.slane %v7412_v50, 1 }
 0x306   : > { %v7383_v37 = vpop.permute.xlu1 %3815  ;;  %v7385_v62 = vpop.permute.xlu0 %3828  ;;  %v4133_v26 = vsel %vm655_vm13, %v4131_v52, %v4132_v45  ;;  %v7443_v52 = vstv %s7370_s11  ;;  %v8619_v45 = vstv %s7268_s25  ;;  %v7491_v17 = vsel %vm480_vm8, %v498_v58, %v8622_v21  ;;  %s7577_s11 = sld [smem:[#allocation6 + $0x12d]] }
 0x307   : > { %8613 = vst [vmem:[#allocation191_spill] sm:$0xff] %v7383_v37  ;;  %8614 = vst [vmem:[#allocation192_spill] sm:$0xff] %v7385_v62  ;;  %v7440_v62 = vstv %s7368_s10  ;;  %v8624_v21 = vrot.slane %v7419_v43, 2  ;;  %s7557_s10 = sld [smem:[#allocation6 + $0xd8]] }
 0x308   : > { %4121 = vrot.lane.b32.xlu1 %v4120_v28, %s5078_s8  ;;  %2931 = vrot.lane.b32.xlu0 %v2930_v25, %s5077_s29  ;;  %v2939_v28 = vrot.slane %v2937_v9, 1  ;;  %v2946_v25 = vmul.f32 %v6909_v13, %v2945_v53  ;;  %8617 = vst [vmem:[#allocation195_spill] sm:$0xff] %v7440_v62  ;;  %8618 = vst [vmem:[#allocation196_spill] sm:$0xff] %v7443_v52  ;;  %v7445_v53 = vld [vmem:[#allocation2] sm:$0xff]  ;;  %v2590_v9 = vadd.f32 %v6902_v2, %v2577_v24 }
 0x309   : > { %v7450_v12 = vmul.f32 %v7445_v53, %v8619_v45  ;;  %v7457_v56 = vmul.f32 %v7445_v53, %v7336_v55  ;;  %v533_v45 = vrot.slane %v527_v34, 2  ;;  %v2963_v2 = vstv %s7394_s18  ;;  %s7612_s18 = sld [smem:[#allocation6 + $0x15e]] }
 0x30a   : > { %v7421_v0 = vpop.permute.xlu1 %3841  ;;  %v7423_v38 = vpop.permute.xlu0 %2651  ;;  %v8621_v24 = vstv %s7310_s14  ;;  %v7484_v57 = vmul.f32 %v7445_v53, %v7339_v60  ;;  %v2603_v4 = vadd.f32 %v6928_v11, %v2590_v9  ;;  %v2964_v58 = vmul.f32 %v6909_v13, %v2963_v2 }
 0x30b   : > { %8616 = vst [vmem:[#allocation194_spill] sm:$0xff] %v7421_v0  ;;  %v7437_v0 = vmul.f32 %v7404_v10, %v7397_v8  ;;  %v468_v34 = vmul.f32 %v7404_v10, %v8621_v24  ;;  %v2957_v24 = vrot.slane %v2955_v35, 2  ;;  %v7512_v19 = vsel %vm515_vm9, %v533_v45, %v8624_v21  ;;  %v7527_v35 = vld [vmem:[#allocation2 + $0x8] sm:$0xff] }
 0x30c   : > { %4134 = vrot.lane.b32.xlu1 %v4133_v26, %s5078_s8  ;;  %2940 = vrot.lane.b32.xlu0 %v2939_v28, %s5077_s29  ;;  %v2948_v28 = vrot.slane %v2946_v25, 2  ;;  %v3642_v11 = vadd.f32 %v7185_v14, %v3633_v27  ;;  %v4168_v9 = vstv %s7431_s19  ;;  %v7525_v13 = vmul.f32 %v7408_v54, %v7440_v62  ;;  %s7636_s19 = sld [smem:[#allocation6 + $0x23]] }
 0x30d   : > { %v568_v25 = vrot.slane %v7437_v0, 3  ;;  %v7497_v0 = vmul.f32 %v7408_v54, %v7400_v36  ;;  %v7531_v45 = vmul.f32 %v7527_v35, %v7336_v55  ;;  %v481_v14 = vrot.slane %v7457_v56, 1 }
 0x30e   : > { %v7463_v26 = vpop.permute.xlu1 %3854  ;;  %v7465_v37 = vpop.permute.xlu0 %2660  ;;  %8625 = vst [vmem:[#allocation199_spill] sm:$0xff] %v7525_v13  ;;  %v8426_v27 = vrot.slane %v7479_v1, 3  ;;  %v2616_v2 = vadd.f32 %v6930_v23, %v2603_v4  ;;  %v2966_v42 = vrot.slane %v2964_v58, 3  ;;  %v4169_v36 = vmul.f32 %v7002_v61, %v4168_v9 }
 0x30f   : > { %8620 = vst [vmem:[#allocation197_spill] sm:$0xff] %v7463_v26  ;;  %v4160_v26 = vstv %s7427_s4  ;;  %v3651_v4 = vadd.f32 %v7187_v7, %v3642_v11  ;;  %v4178_v11 = vmul.f32 %v7022_v39, %v4177_v40  ;;  %s7634_s4 = sld [smem:[#allocation6 + $0xdf]] }
 0x310   : > { %4147 = vrot.lane.b32.xlu1 %v4146_v44, %s5078_s8  ;;  %2949 = vrot.lane.b32.xlu0 %v2948_v28, %s5077_s29  ;;  %v4153_v28 = vmul.f32 %v7002_v61, %v4152_v47  ;;  %v632_v47 = vmul.f32 %v7404_v10, %v7440_v62  ;;  %v4161_v21 = vmul.f32 %v7022_v39, %v4160_v26  ;;  %v4171_v23 = vrot.slane %v4169_v36, 1 }
 0x311   : > { %v7554_v26 = vmul.f32 %v7404_v10, %v7443_v52  ;;  %v7570_v7 = vsel %vm550_vm10, %v568_v25, %v8426_v27  ;;  %v2629_v10 = vadd.f32 %v6946_v20, %v2616_v2  ;;  %v4186_v25 = vstv %s7507_s13  ;;  %s7694_s13 = sld [smem:[#allocation6 + $0x12f]] }
 0x312   : > { %v7500_v6 = vpop.permute.xlu1 %3867  ;;  %v7502_v44 = vpop.permute.xlu0 %2669  ;;  %v638_v58 = vrot.slane %v632_v47, 5  ;;  %v7574_v47 = vld [vmem:[#allocation3] sm:$0xff]  ;;  %v8631_v27 = vrot.slane %v7497_v0, 4  ;;  %v3660_v40 = vadd.f32 %v7204_v51, %v3651_v4  ;;  %v2990_v2 = vstv %s7517_s26  ;;  %s7740_s26 = sld [smem:[#allocation6 + $0xb6]] }
 0x313   : > { %8623 = vst [vmem:[#allocation198_spill] sm:$0xff] %v7500_v6  ;;  %v2972_v6 = vstv %s7433_s23  ;;  %8628 = vst [vmem:[#allocation201_spill] sm:$0xff] %v7554_v26  ;;  %v8635_v36 = vrot.slane %v7531_v45, 1  ;;  %v516_v51 = vrot.slane %v7484_v57, 2  ;;  %v4180_v4 = vrot.slane %v4178_v11, 1  ;;  %s7657_s23 = sld [smem:[#allocation6 + $0x12e]] }
 0x314   : > { %4155 = vrot.lane.b32.xlu1 %v4153_v28, %s8626_s24  ;;  %2958 = vrot.lane.b32.xlu0 %v2957_v24, %s5077_s29  ;;  %v2973_v56 = vmul.f32 %v7545_v59, %v2972_v6  ;;  %v2981_v28 = vstv %s7468_s21  ;;  %v603_v24 = vrot.slane %v597_v5, 4  ;;  %v7562_v6 = vmul.f32 %v7408_v54, %v7443_v52  ;;  %v7621_v52 = vld [vmem:[#allocation3 + $0x8] sm:$0x3]  ;;  %s7689_s21 = sld [smem:[#allocation6 + $0x15f]] }
 0x315   : > { %v2982_v9 = vmul.f32 %v7574_v47, %v2981_v28  ;;  %v2999_v28 = vstv %s7519_s28  ;;  %v4195_v57 = vstv %s7549_s30  ;;  %8637 = vst [vmem:[#allocation207_spill] sm:$0xff] %v7621_v52  ;;  %s7747_s28 = sld [smem:[#allocation6 + $0x8c]]  ;;  %s7752_s30 = sld [smem:[#allocation6 + $0x130]] }
 0x316   : > { %v7540_v62 = vpop.permute.xlu1 %3875  ;;  %v7542_v46 = vpop.permute.xlu0 %2678  ;;  %8629 = vst [vmem:[#allocation202_spill] sm:$0xff] %v7562_v6  ;;  %v7588_v20 = vsel %vm585_vm11, %v603_v24, %v8631_v27  ;;  %v7605_v27 = vmul.f32 %v7527_v35, %v7339_v60  ;;  %v2637_v24 = vadd.f32 %v6948_v31, %v2629_v10  ;;  %v7626_v31 = vmul.f32 %v7445_v53, %v7348_v16 }
 0x317   : > { %8627 = vst [vmem:[#allocation200_spill] sm:$0xff] %v7540_v62  ;;  %v2975_v62 = vrot.slane %v2973_v56, 3  ;;  %8632 = vst [vmem:[#allocation204_spill] sm:$0xff] %v7588_v20  ;;  %v483_v56 = vsel %vm480_vm8, %v481_v14, %v8635_v36  ;;  %v3012_v10 = vstv %s7557_s10  ;;  %s7777_s10 = sld [smem:[#allocation6 + $0xbd]] }
 0x318   : > { %4163 = vrot.lane.b32.xlu1 %v4161_v21, %s8626_s24  ;;  %2967 = vrot.lane.b32.xlu0 %v2966_v42, %s5077_s29  ;;  %v470_v21 = vadd.f32 %v468_v34, %v7450_v12  ;;  %v8633_v12 = vrot.slane %v7525_v13, 5  ;;  %v3013_v13 = vmul.f32 %v7545_v59, %v3012_v10 }
 0x31a   : > { %v7580_v5 = vpop.permute.xlu1 %3883  ;;  %v7582_v42 = vpop.permute.xlu0 %2687  ;;  %v7598_v34 = vsel %vm620_vm12, %v638_v58, %v8633_v12  ;;  %v2984_v58 = vrot.slane %v2982_v9, 4  ;;  %v4187_v12 = vmul.f32 %v7002_v61, %v4186_v25  ;;  %v7630_v61 = vmul.f32 %v7527_v35, %v7348_v16 }
 0x31b   : > { %8630 = vst [vmem:[#allocation203_spill] sm:$0xff] %v7580_v5  ;;  %8634 = vst [vmem:[#allocation205_spill] sm:$0xff] %v7598_v34  ;;  %v2991_v5 = vmul.f32 %v7545_v59, %v2990_v2  ;;  %v3669_v9 = vadd.f32 %v7206_v63, %v3660_v40  ;;  %v488_v11 = vadd.f32 %v483_v56, %v470_v21  ;;  %v4204_v56 = vstv %s7577_s11  ;;  %s7782_s11 = sld [smem:[#allocation6 + $0x161]] }
 0x31c   : > { %4172 = vrot.lane.b32.xlu1 %v4171_v23, %s8626_s24  ;;  %2976 = vrot.lane.b32.xlu0 %v2975_v62, %s5077_s29  ;;  %v3000_v23 = vmul.f32 %v7574_v47, %v2999_v28  ;;  %v3001_v62 = vmul.f32 %v7621_v52, %v2999_v28  ;;  %v7641_v2 = vmul.f32 %v7445_v53, %v7360_v41  ;;  %v4189_v40 = vrot.slane %v4187_v12, 2 }
 0x31d   : > { %v7645_v28 = vmul.f32 %v7527_v35, %v7360_v41  ;;  %v2645_v63 = vadd.f32 %v6971_v3, %v2637_v24  ;;  %v4196_v21 = vmul.f32 %v7022_v39, %v4195_v57  ;;  %v2993_v6 = vrot.slane %v2991_v5, 4  ;;  %v7661_v24 = vld [vmem:[#allocation3 + $0x18] sm:$0x3] }
 0x31e   : > { %v7614_v14 = vpop.permute.xlu1 %3892  ;;  %v7616_v36 = vpop.permute.xlu0 %2696  ;;  %v3004_v34 = vrot.slane %v3000_v23, 5  ;;  %v3005_v26 = vrot.slane %v3001_v62, 5  ;;  %v3014_v39 = vmul.f32 %v7661_v24, %v3012_v10  ;;  %v505_v5 = vadd.f32 %v7491_v17, %v488_v11  ;;  %v7671_v23 = vld [vmem:[#allocation2 + $0x10] sm:$0x3f] }
 0x31f   : > { %8636 = vst [vmem:[#allocation206_spill] sm:$0xff] %v7614_v14  ;;  %v2654_v3 = vadd.f32 %v7423_v38, %v2645_v63  ;;  %v8639_v12 = vrot.slane %v7605_v27, 2  ;;  %v4198_v62 = vrot.slane %v4196_v21, 2  ;;  %v3017_v63 = vrot.slane %v3013_v13, 5 }
 0x320   : > { %4181 = vrot.lane.b32.xlu1 %v4180_v4, %s8626_s24  ;;  %2985 = vrot.lane.b32.xlu0 %v2984_v58, %s5077_s29  ;;  %v3678_v4 = vadd.f32 %v7220_v48, %v3669_v9  ;;  %v3025_v58 = vstv %s7593_s17  ;;  %v476_v48 = vmul.f32 %v7671_v23, %v7336_v55  ;;  %v7678_v9 = vld [vmem:[#allocation4] sm:$0xff]  ;;  %v3006_v55 = vsel %vm620_vm12, %v3004_v34, %v3005_v26  ;;  %s7810_s17 = sld [smem:[#allocation6 + $0xc4]] }
 0x321   : > { %v518_v57 = vsel %vm515_vm9, %v516_v51, %v8639_v12  ;;  %v2663_v38 = vadd.f32 %v7465_v37, %v2654_v3  ;;  %v4205_v17 = vmul.f32 %v7678_v9, %v4204_v56  ;;  %v4213_v51 = vstv %s7612_s18  ;;  %s7817_s18 = sld [smem:[#allocation6 + $0x9a]] }
 0x322   : > { %v7652_v25 = vpop.permute.xlu1 %3901  ;;  %v7654_v14 = vpop.permute.xlu0 %2705  ;;  %v3027_v37 = vmul.f32 %v7621_v52, %v3025_v58  ;;  %v3018_v56 = vrot.slane %v3014_v39, 5  ;;  %v3038_v3 = vstv %s7634_s4  ;;  %v7697_v12 = vstv %s7636_s19  ;;  %s7836_s4 = sld [smem:[#allocation6 + $0xcb]]  ;;  %s7841_s19 = sld [smem:[#allocation6 + $0xa1]] }
 0x323   : > { %8638 = vst [vmem:[#allocation208_spill] sm:$0xff] %v7652_v25  ;;  %v2672_v21 = vadd.f32 %v7502_v44, %v2663_v38  ;;  %v8642_v26 = vstv %s7310_s14  ;;  %v484_v44 = vrot.slane %v476_v48, 1  ;;  %v4207_v39 = vrot.slane %v4205_v17, 3  ;;  %v7712_v38 = vld [vmem:[#allocation4 + $0x10] sm:$0xff]  ;;  %s7725_s14 = sld [smem:[#allocation6 + $0x160]] }
 0x324   : > { %4190 = vrot.lane.b32.xlu1 %v4189_v40, %s8626_s24  ;;  %2994 = vrot.lane.b32.xlu0 %v2993_v6, %s5077_s29  ;;  %v3026_v6 = vmul.f32 %v7574_v47, %v3025_v58  ;;  %v3691_v40 = vadd.f32 %v7222_v32, %v3678_v4  ;;  %v469_v34 = vmul.f32 %v7408_v54, %v8642_v26  ;;  %v7705_v58 = vld [vmem:[#allocation2 + $0x28] sm:$0x3f]  ;;  %v3031_v20 = vrot.slane %v3027_v37, 6 }
 0x325   : > { %v494_v32 = vmul.f32 %v7705_v58, %v7376_v29  ;;  %v2681_v4 = vadd.f32 %v7542_v46, %v2672_v21  ;;  %v4222_v52 = vstv %s7657_s23  ;;  %v3039_v29 = vmul.f32 %v7545_v59, %v3038_v3  ;;  %s7843_s23 = sld [smem:[#allocation6 + $0xa8]] }
 0x326   : > { %v7682_v10 = vpop.permute.xlu1 %3910  ;;  %v7684_v11 = vpop.permute.xlu0 %2714  ;;  %v3030_v26 = vrot.slane %v3026_v6, 6  ;;  %v3704_v48 = vadd.f32 %v7235_v22, %v3691_v40  ;;  %v3040_v17 = vmul.f32 %v7661_v24, %v3038_v3  ;;  %v7732_v6 = vmul.f32 %v7445_v53, %v7697_v12 }
 0x327   : > { %8640 = vst [vmem:[#allocation209_spill] sm:$0xff] %v7682_v10  ;;  %v8641_v10 = vstv %s7268_s25  ;;  %s7719_s25 = sld [smem:[#allocation6 + $0x85]]  ;;  %v2690_v46 = vadd.f32 %v7582_v42, %v2681_v4  ;;  %v8643_v22 = vrot.slane %v7531_v45, 1  ;;  %v4223_v3 = vmul.f32 %v7678_v9, %v4222_v52 }
 0x328   : > { %v463_v13 = vmul.f32 %v7527_v35, %v8641_v10  ;;  %4199 = vrot.lane.b32.xlu1 %v4198_v62, %s8626_s24  ;;  %3007 = vrot.lane.b32.xlu0 %v3006_v55, %s5077_s29  ;;  %v4214_v10 = vmul.f32 %v7712_v38, %v4213_v51  ;;  %v3019_v62 = vsel %vm620_vm12, %v3017_v63, %v3018_v56  ;;  %v7728_v51 = vstv %s7665_s22  ;;  %s7858_s22 = sld [smem:[#allocation6 + $0xd2]] }
 0x329   : > { %v523_v55 = vadd.f32 %v518_v57, %v505_v5  ;;  %v485_v42 = vsel %vm480_vm8, %v8643_v22, %v484_v44  ;;  %v501_v63 = vrot.slane %v494_v32, 1  ;;  %v2699_v40 = vadd.f32 %v7616_v36, %v2690_v46 }
 0x32a   : > { %v7715_v25 = vpop.permute.xlu1 %3919  ;;  %v2728_v54 = vpop.permute.xlu0 %2727  ;;  %v471_v37 = vadd.f32 %v469_v34, %v463_v13  ;;  %v4216_v21 = vrot.slane %v4214_v10, 3  ;;  %v3032_v56 = vsel %vm655_vm13, %v3030_v26, %v3031_v20  ;;  %v3043_v13 = vrot.slane %v3039_v29, 6 }
 0x32b   : > { %v4231_v34 = vstv %s7689_s21  ;;  %v3717_v45 = vadd.f32 %v7237_v18, %v3704_v48  ;;  %v2708_v32 = vadd.f32 %v7654_v14, %v2699_v40  ;;  %v3044_v44 = vrot.slane %v3040_v17, 6  ;;  %v4937_v17 = vld [vmem:[#allocation4 + $0x8] sm:$0x3]  ;;  %s7867_s21 = sld [smem:[#allocation6 + $0xd9]] }
 0x32c   : > { %4208 = vrot.lane.b32.xlu1 %v4207_v39, %s8626_s24  ;;  %3020 = vrot.lane.b32.xlu0 %v3019_v62, %s5077_s29  ;;  %v4240_v36 = vstv %s7694_s13  ;;  %v551_v4 = vrot.slane %v7626_v31, 3  ;;  %v489_v39 = vadd.f32 %v485_v42, %v471_v37  ;;  %v511_v20 = vmul.f32 %v7671_v23, %v7339_v60  ;;  %s7871_s13 = sld [smem:[#allocation6 + $0xaf]] }
 0x32d   : > { %v529_v52 = vmul.f32 %v7705_v58, %v7379_v49  ;;  %v8644_v18 = vrot.slane %v7412_v50, 1  ;;  %v7766_v10 = vmul.f32 %v7671_v23, %v7348_v16  ;;  %v2717_v26 = vadd.f32 %v7684_v11, %v2708_v32 }
 0x32e   : > { %v7742_v5 = vpop.permute.xlu1 %3928  ;;  %v2741_v57 = vpop.permute.xlu0 %2740  ;;  %v4232_v60 = vmul.f32 %v7712_v38, %v4231_v34  ;;  %v4225_v48 = vrot.slane %v4223_v3, 4  ;;  %v3051_v46 = vstv %s7719_s25  ;;  %v4241_v62 = vmul.f32 %v7678_v9, %v4240_v36  ;;  %s7894_s25 = sld [smem:[#allocation6 + $0xe0]] }
 0x32f   : > { %v502_v14 = vsel %vm480_vm8, %v8644_v18, %v501_v63  ;;  %v4242_v37 = vmul.f32 %v4937_v17, %v4240_v36  ;;  %v3730_v50 = vadd.f32 %v7253_v15, %v3717_v45  ;;  %v2730_v22 = vadd.f32 %v2728_v54, %v2717_v26  ;;  %v4938_v45 = vld [vmem:[#allocation4 + $0x18] sm:$0x3] }
 0x330   : > { %4217 = vrot.lane.b32.xlu1 %v4216_v21, %s8626_s24  ;;  %3033 = vrot.lane.b32.xlu0 %v3032_v56, %s5077_s29  ;;  %v3045_v16 = vsel %vm655_vm13, %v3043_v13, %v3044_v44  ;;  %v4253_v42 = vstv %s7725_s14  ;;  %v540_v11 = vadd.f32 %v7512_v19, %v523_v55  ;;  %v506_v63 = vadd.f32 %v502_v14, %v489_v39  ;;  %s7933_s14 = sld [smem:[#allocation6 + $0x86]] }
 0x331   : > { %v519_v40 = vrot.slane %v511_v20, 2  ;;  %v536_v21 = vrot.slane %v529_v52, 2  ;;  %v2743_v15 = vadd.f32 %v2741_v57, %v2730_v22  ;;  %v4234_v54 = vrot.slane %v4232_v60, 4 }
 0x332   : > { %v7770_v29 = vpop.permute.xlu1 %3937  ;;  %v2754_v49 = vpop.permute.xlu0 %2753  ;;  %v3052_v56 = vmul.f32 %v7574_v47, %v3051_v46  ;;  %v3059_v3 = vstv %s7740_s26  ;;  %v4245_v19 = vrot.slane %v4241_v62, 5  ;;  %v4254_v55 = vmul.f32 %v7712_v38, %v4253_v42  ;;  %s7938_s26 = sld [smem:[#allocation6 + $0x8d]] }
 0x333   : > { %v4255_v32 = vmul.f32 %v4938_v45, %v4253_v42  ;;  %v3067_v44 = vstv %s7747_s28  ;;  %v3738_v36 = vadd.f32 %v7255_v30, %v3730_v50  ;;  %v2756_v39 = vadd.f32 %v2754_v49, %v2743_v15  ;;  %s7955_s28 = sld [smem:[#allocation6 + $0xbe]] }
 0x334   : > { %4226 = vrot.lane.b32.xlu1 %v4225_v48, %s8626_s24  ;;  %3046 = vrot.lane.b32.xlu0 %v3045_v16, %s5077_s29  ;;  %v4246_v20 = vrot.slane %v4242_v37, 5  ;;  %v4266_v52 = vstv %s7752_s30  ;;  %s7792_s29 = sld [smem:[#allocation6 + $0x93]]  ;;  %v552_v57 = vrot.slane %v7630_v61, 3  ;;  %v8645_v18 = vrot.slane %v7605_v27, 2  ;;  %s7960_s30 = sld [smem:[#allocation6 + $0xb7]] }
 0x335   : > { %v8646_v26 = vrot.slane %v7419_v43, 2  ;;  %v564_v48 = vmul.f32 %v7705_v58, %v7397_v8  ;;  %v3060_v61 = vmul.f32 %v7545_v59, %v3059_v3  ;;  %v3068_v27 = vmul.f32 %v7574_v47, %v3067_v44 }
 0x336   : > { %v7786_v13 = vpop.permute.xlu1 %3946  ;;  %v2767_v34 = vpop.permute.xlu0 %2766  ;;  %v520_v14 = vsel %vm515_vm9, %v8645_v18, %v519_v40  ;;  %v4258_v43 = vrot.slane %v4254_v55, 5  ;;  %v4259_v37 = vrot.slane %v4255_v32, 5  ;;  %v4267_v50 = vmul.f32 %v7678_v9, %v4266_v52  ;;  %v8647_v55 = vld [vmem:[#allocation184_spill] sm:$0xff]  ;;  %v8648_v18 = vld [vmem:[#allocation193_spill] sm:$0xff] }
 0x337   : > { %v537_v60 = vsel %vm515_vm9, %v8646_v26, %v536_v21  ;;  %v524_v30 = vadd.f32 %v520_v14, %v506_v63  ;;  %v2769_v49 = vadd.f32 %v2767_v34, %v2756_v39  ;;  %v4268_v8 = vmul.f32 %v4937_v17, %v4266_v52 }
 0x338   : > { %4235 = vrot.lane.b32.xlu1 %v4234_v54, %s8626_s24  ;;  %3054 = vrot.lane.b32.xlu0 %v3052_v56, %s5078_s8  ;;  %v3746_v22 = vadd.f32 %v7271_v33, %v3738_v36  ;;  %v4247_v42 = vsel %vm620_vm12, %v4245_v19, %v4246_v20  ;;  %v3076_v63 = vstv %s7777_s10  ;;  %v553_v40 = vsel %vm550_vm10, %v551_v4, %v552_v57  ;;  %s7962_s10 = sld [smem:[#allocation6 + $0x94]] }
 0x339   : > { %v7824_v21 = vmul.f32 %v7527_v35, %v7697_v12  ;;  %v554_v9 = vrot.slane %v7766_v10, 3  ;;  %v4279_v33 = vstv %s7782_s11  ;;  %v558_v17 = vadd.f32 %v553_v40, %v540_v11  ;;  %s7981_s11 = sld [smem:[#allocation6 + $0xc5]] }
 0x33a   : > { %v7807_v46 = vpop.permute.xlu1 %3955  ;;  %v2775_v62 = vpop.permute.xlu0 %2774  ;;  %v541_v15 = vadd.f32 %v537_v60, %v524_v30  ;;  %v571_v54 = vrot.slane %v564_v48, 3  ;;  %v3070_v56 = vrot.slane %v3068_v27, 1  ;;  %v4260_v4 = vsel %vm620_vm12, %v4258_v43, %v4259_v37 }
 0x33b   : > { %v7813_v16 = vadd.f32 %v2775_v62, %v2769_v49  ;;  %v4271_v34 = vrot.slane %v4267_v50, 6  ;;  %v4272_v19 = vrot.slane %v4268_v8, 6  ;;  %v3077_v10 = vmul.f32 %v7545_v59, %v3076_v63 }
 0x33c   : > { %4248 = vrot.lane.b32.xlu1 %v4247_v42, %s8626_s24  ;;  %3062 = vrot.lane.b32.xlu0 %v3060_v61, %s5078_s8  ;;  %v3755_v32 = vadd.f32 %v8647_v55, %v3746_v22  ;;  %v4280_v44 = vmul.f32 %v7712_v38, %v4279_v33  ;;  %v4281_v11 = vmul.f32 %v4938_v45, %v4279_v33  ;;  %v3085_v36 = vstv %s7792_s29  ;;  %s7983_s29 = sld [smem:[#allocation6 + $0x9b]] }
 0x33d   : > { %v586_v39 = vrot.slane %v7641_v2, 4  ;;  %v555_v20 = vsel %vm550_vm10, %v552_v57, %v554_v9  ;;  %v581_v52 = vmul.f32 %v7671_v23, %v7360_v41  ;;  %v599_v14 = vmul.f32 %v7705_v58, %v8648_v18 }
 0x33e   : > { %v7830_v3 = vpop.permute.xlu1 %3968  ;;  %v7832_v31 = vpop.permute.xlu0 %2782  ;;  %v575_v38 = vadd.f32 %v7570_v7, %v558_v17  ;;  %v587_v45 = vrot.slane %v7645_v28, 4  ;;  %v559_v26 = vadd.f32 %v555_v20, %v541_v15  ;;  %v8649_v2 = vrot.slane %v7479_v1, 3  ;;  %v8650_v7 = vld [vmem:[#allocation185_spill] sm:$0xff] }
 0x33f   : > { %v4273_v48 = vsel %vm655_vm13, %v4271_v34, %v4272_v19  ;;  %v3079_v30 = vrot.slane %v3077_v10, 1  ;;  %v3086_v49 = vmul.f32 %v7574_v47, %v3085_v36  ;;  %v3094_v61 = vstv %s7810_s17  ;;  %s7989_s17 = sld [smem:[#allocation6 + $0xcc]] }
 0x340   : > { %4261 = vrot.lane.b32.xlu1 %v4260_v4, %s8626_s24  ;;  %3071 = vrot.lane.b32.xlu0 %v3070_v56, %s5078_s8  ;;  %v572_v57 = vsel %vm550_vm10, %v8649_v2, %v571_v54  ;;  %v3764_v28 = vadd.f32 %v8650_v7, %v3755_v32  ;;  %v4284_v27 = vrot.slane %v4280_v44, 6  ;;  %v4285_v1 = vrot.slane %v4281_v11, 6  ;;  %v8651_v54 = vld [vmem:[#allocation186_spill] sm:$0xff]  ;;  %v8653_v44 = vld [vmem:[#allocation195_spill] sm:$0xff] }
 0x341   : > { %v3103_v62 = vstv %s7817_s18  ;;  %v621_v43 = vrot.slane %v7732_v6, 5  ;;  %v7876_v37 = vmul.f32 %v7445_v53, %v7728_v51  ;;  %v589_v50 = vrot.slane %v581_v52, 4  ;;  %v8654_v2 = vld [vmem:[#allocation187_spill] sm:$0xff]  ;;  %s7998_s18 = sld [smem:[#allocation6 + $0xa2]] }
 0x342   : > { %v7860_v41 = vpop.permute.xlu1 %3981  ;;  %v7862_v60 = vpop.permute.xlu0 %2791  ;;  %v606_v8 = vrot.slane %v599_v14, 4  ;;  %v588_v22 = vsel %vm585_vm11, %v586_v39, %v587_v45  ;;  %v576_v42 = vadd.f32 %v572_v57, %v559_v26  ;;  %v616_v63 = vmul.f32 %v7671_v23, %v7697_v12 }
 0x343   : > { %v3095_v6 = vmul.f32 %v7545_v59, %v3094_v61  ;;  %v593_v40 = vadd.f32 %v588_v22, %v575_v38  ;;  %v3088_v33 = vrot.slane %v3086_v49, 2  ;;  %v3104_v17 = vmul.f32 %v7574_v47, %v3103_v62  ;;  %v8656_v61 = vld [vmem:[#allocation204_spill] sm:$0xff] }
 0x344   : > { %4274 = vrot.lane.b32.xlu1 %v4273_v48, %s8626_s24  ;;  %3080 = vrot.lane.b32.xlu0 %v3079_v30, %s5078_s8  ;;  %v3112_v15 = vstv %s7836_s4  ;;  %v3773_v56 = vadd.f32 %v8651_v54, %v3764_v28  ;;  %v4286_v4 = vsel %vm655_vm13, %v4284_v27, %v4285_v1  ;;  %v3121_v34 = vstv %s7841_s19  ;;  %v8655_v48 = vld [vmem:[#allocation207_spill] sm:$0xff]  ;;  %s8004_s4 = sld [smem:[#allocation6 + $0xa9]]  ;;  %s8010_s19 = sld [smem:[#allocation6 + $0xd3]] }
 0x345   : > { %v3139_v19 = vstv %s7843_s23  ;;  %v622_v12 = vrot.slane %v7824_v21, 5  ;;  %v590_v10 = vsel %vm585_vm11, %v587_v45, %v589_v50  ;;  %v8652_v55 = vrot.slane %v7497_v0, 4  ;;  %s8027_s23 = sld [smem:[#allocation6 + $0xb0]] }
 0x346   : > { %v7884_v9 = vpop.permute.xlu1 %3994  ;;  %v7886_v53 = vpop.permute.xlu0 %2800  ;;  %v634_v11 = vmul.f32 %v7705_v58, %v8653_v44  ;;  %v594_v36 = vadd.f32 %v590_v10, %v576_v42  ;;  %v3097_v39 = vrot.slane %v3095_v6, 2  ;;  %v3113_v20 = vmul.f32 %v7545_v59, %v3112_v15 }
 0x347   : > { %v607_v32 = vsel %vm585_vm11, %v8652_v55, %v606_v8  ;;  %v3130_v52 = vstv %s7858_s22  ;;  %v3106_v0 = vrot.slane %v3104_v17, 3  ;;  %v3122_v14 = vmul.f32 %v7574_v47, %v3121_v34  ;;  %s8040_s22 = sld [smem:[#allocation6 + $0xe1]] }
 0x348   : > { %4287 = vrot.lane.b32.xlu1 %v4286_v4, %s8626_s24  ;;  %3089 = vrot.lane.b32.xlu0 %v3088_v33, %s5078_s8  ;;  %v3140_v38 = vmul.f32 %v7574_v47, %v3139_v19  ;;  %v3152_v45 = vstv %s7867_s21  ;;  %v7916_v26 = vmul.f32 %v7527_v35, %v7728_v51  ;;  %v3782_v57 = vadd.f32 %v8654_v2, %v3773_v56  ;;  %v8657_v33 = vld [vmem:[#allocation188_spill] sm:$0xff]  ;;  %s4722_s21 = sld [smem:[#allocation7 + $0x1]] }
 0x349   : > { %v3141_v30 = vmul.f32 %v8655_v48, %v3139_v19  ;;  %v3165_v49 = vstv %s7871_s13  ;;  %v610_v7 = vadd.f32 %v8656_v61, %v593_v40  ;;  %v623_v28 = vsel %vm620_vm12, %v621_v43, %v622_v12  ;;  %v8663_v61 = vld [vmem:[#allocation202_spill] sm:$0xff]  ;;  %s2362_s13 = sld [smem:[#allocation7]] }
 0x34a   : > { %v7907_v21 = vpop.permute.xlu1 %4007  ;;  %v7909_v18 = vpop.permute.xlu0 %2809  ;;  %v624_v27 = vrot.slane %v616_v63, 5  ;;  %v641_v1 = vrot.slane %v634_v11, 5  ;;  %v611_v62 = vadd.f32 %v607_v32, %v594_v36  ;;  %v3115_v50 = vrot.slane %v3113_v20, 3  ;;  %v8658_v32 = vld [vmem:[#allocation199_spill] sm:$0xff] }
 0x34b   : > { %v3131_v35 = vmul.f32 %v7545_v59, %v3130_v52  ;;  %v3153_v8 = vmul.f32 %v7545_v59, %v3152_v45  ;;  %v3124_v6 = vrot.slane %v3122_v14, 4  ;;  %v3144_v40 = vrot.slane %v3140_v38, 5  ;;  %v8660_v38 = vld [vmem:[#allocation189_spill] sm:$0xff] }
 0x34c   : > { %3098 = vrot.lane.b32.xlu1 %v3097_v39, %s5078_s8  ;;  %3107 = vrot.lane.b32.xlu0 %v3106_v0, %s5078_s8  ;;  %v3154_v43 = vmul.f32 %v7661_v24, %v3152_v45  ;;  %v3166_v63 = vmul.f32 %v7574_v47, %v3165_v49  ;;  %v3791_v17 = vadd.f32 %v8657_v33, %v3782_v57  ;;  %v3145_v15 = vrot.slane %v3141_v30, 5  ;;  %v8662_v30 = vld [vmem:[#allocation205_spill] sm:$0xff] }
 0x34d   : > { %v3167_v54 = vmul.f32 %v8655_v48, %v3165_v49  ;;  %v3178_v56 = vstv %s7894_s25  ;;  %v628_v4 = vadd.f32 %v623_v28, %v610_v7  ;;  %v656_v34 = vrot.slane %v7876_v37, 6  ;;  %s8845_s25 = sshll.u32 %s5232_s20, 6 }
 0x34e   : > { %v7927_v22 = vpop.permute.xlu1 %4015  ;;  %v7929_v42 = vpop.permute.xlu0 %2818  ;;  %v657_v19 = vrot.slane %v7916_v26, 6  ;;  %v625_v10 = vsel %vm620_vm12, %v622_v12, %v624_v27  ;;  %v8659_v44 = vrot.slane %v8658_v32, 5  ;;  %v651_v36 = vmul.f32 %v7671_v23, %v7728_v51  ;;  %v8661_v23 = vld [vmem:[#allocation201_spill] sm:$0xff] }
 0x34f   : > { %v629_v55 = vadd.f32 %v625_v10, %v611_v62  ;;  %v3133_v39 = vrot.slane %v3131_v35, 4  ;;  %v3157_v52 = vrot.slane %v3153_v8, 5  ;;  %v3158_v0 = vrot.slane %v3154_v43, 5 }
 0x350   : > { %3116 = vrot.lane.b32.xlu1 %v3115_v50, %s5078_s8  ;;  %3125 = vrot.lane.b32.xlu0 %v3124_v6, %s5078_s8  ;;  %v642_v11 = vsel %vm620_vm12, %v8659_v44, %v641_v1  ;;  %v3170_v12 = vrot.slane %v3166_v63, 6  ;;  %v3179_v14 = vmul.f32 %v7545_v59, %v3178_v56  ;;  %v3800_v45 = vadd.f32 %v8660_v38, %v3791_v17  ;;  %v8664_v1 = vld [vmem:[#allocation196_spill] sm:$0xff]  ;;  %v8665_v63 = vld [vmem:[#allocation190_spill] sm:$0xff] }
 0x351   : > { %v3146_v26 = vsel %vm620_vm12, %v3144_v40, %v3145_v15  ;;  %v3171_v2 = vrot.slane %v3167_v54, 6  ;;  %v3180_v57 = vmul.f32 %v7661_v24, %v3178_v56  ;;  %v673_v51 = vrot.slane %v8661_v23, 6 }
 0x352   : > { %v7950_v20 = vpop.permute.xlu1 %4023  ;;  %v7952_v37 = vpop.permute.xlu0 %2827  ;;  %v645_v49 = vadd.f32 %v8662_v30, %v628_v4  ;;  %v674_v7 = vrot.slane %v8663_v61, 6  ;;  %v658_v28 = vsel %vm655_vm13, %v656_v34, %v657_v19  ;;  %v659_v27 = vrot.slane %v651_v36, 6 }
 0x353   : > { %v669_v62 = vmul.f32 %v7705_v58, %v8664_v1  ;;  %v646_v50 = vadd.f32 %v642_v11, %v629_v55  ;;  %v3159_v6 = vsel %vm620_vm12, %v3157_v52, %v3158_v0  ;;  %v3183_v40 = vrot.slane %v3179_v14, 6 }
 0x354   : > { %3134 = vrot.lane.b32.xlu1 %v3133_v39, %s5078_s8  ;;  %3147 = vrot.lane.b32.xlu0 %v3146_v26, %s5078_s8  ;;  %v3191_v43 = vstv %s7933_s14  ;;  %v3809_v33 = vadd.f32 %v8665_v63, %v3800_v45  ;;  %v3172_v17 = vsel %vm655_vm13, %v3170_v12, %v3171_v2  ;;  %v3184_v15 = vrot.slane %v3180_v57, 6  ;;  %v8666_v39 = vld [vmem:[#allocation191_spill] sm:$0xff]  ;;  %v8667_v26 = vld [vmem:[#allocation16_spill] sm:$0xff]  ;;  %s8335_s14 = scalar_lea.vmem [#allocation11], %s8845_s25 }
 0x355   : > { %v3207_v54 = vstv %s7938_s26  ;;  %v663_v58 = vadd.f32 %v658_v28, %v645_v49  ;;  %v675_v56 = vsel %vm655_vm13, %v673_v51, %v674_v7  ;;  %v660_v4 = vsel %vm655_vm13, %v657_v19, %v659_v27  ;;  %v8668_v28 = vld [vmem:[#allocation192_spill] sm:$0xff]  ;;  %s4830_s26 = sshll.u32 %s5149_s1, 10  ;;  %s4430_s1 = scalar_lea.sflag [#allocation10], %s5232_s20 }
 0x356   : > { %v7972_v35 = vpop.permute.xlu1 %4032  ;;  %v7974_v8 = vpop.permute.xlu0 %2836  ;;  %v676_v34 = vrot.slane %v669_v62, 6  ;;  %v664_v10 = vadd.f32 %v660_v4, %v646_v50  ;;  %v3192_v44 = vmul.f32 %v7574_v47, %v3191_v43  ;;  %v3208_v11 = vmul.f32 %v7574_v47, %v3207_v54  ;;  %v8669_v62 = vld [vmem:[#allocation31_spill] sm:$0xff]  ;;  %v8671_v4 = vld [vmem:[#allocation194_spill] sm:$0xff] }
 0x357   : > { %v3216_v36 = vstv %s7955_s28  ;;  %v3818_v52 = vadd.f32 %v8666_v39, %v3809_v33  ;;  %v3185_v0 = vsel %vm655_vm13, %v3183_v40, %v3184_v15  ;;  %v3199_v19 = vstv %s7960_s30  ;;  %s4443_s28 = sshll.u32 %s8335_s14, 4  ;;  %s8364_s28 = int_to_ptr.vmem [resolvable:$true] %s4443_s28 }
 0x358   : > { %3160 = vrot.lane.b32.xlu1 %v3159_v6, %s5078_s8  ;;  %3173 = vrot.lane.b32.xlu0 %v3172_v17, %s5078_s8  ;;  %v3225_v12 = vstv %s7962_s10  ;;  %v680_v14 = vadd.f32 %v675_v56, %v663_v58  ;;  %v677_v38 = vsel %vm655_vm13, %v674_v7, %v676_v34  ;;  %v3217_v45 = vmul.f32 %v7545_v59, %v3216_v36  ;;  %v8670_v6 = vld [vmem:[#allocation18_spill] sm:$0xff]  ;;  %v8673_v36 = vld [vmem:[#allocation33_spill] sm:$0xff] }
 0x359   : > { %v3200_v51 = vmul.f32 %v7545_v59, %v3199_v19  ;;  %v3210_v30 = vrot.slane %v3208_v11, 1  ;;  %v3226_v49 = vmul.f32 %v7574_v47, %v3225_v12  ;;  %v681_v61 = vadd.f32 %v677_v38, %v664_v10 }
 0x35a   : > { %v7991_v55 = vpop.permute.xlu1 %4041  ;;  %v7993_v32 = vpop.permute.xlu0 %2845  ;;  %v694_v2 = vadd.f32 %v8667_v26, %v680_v14  ;;  %v3831_v27 = vadd.f32 %v8668_v28, %v3818_v52  ;;  %v3234_v7 = vstv %s7981_s11  ;;  %v3243_v1 = vstv %s7983_s29  ;;  %v8674_v52 = vld [vmem:[#allocation197_spill] sm:$0xff]  ;;  %s8362_s11 = scalar_lea.hbm %s8416_s3, %s4830_s26  ;;  %s4997_s29 = scalar_lea.vmem %s8364_s28, 1024 }
 0x35b   : > { %v695_v40 = vadd.f32 %v8670_v6, %v681_v61  ;;  %v3219_v43 = vrot.slane %v3217_v45, 1  ;;  %v3252_v63 = vstv %s7989_s17  ;;  %v3228_v15 = vrot.slane %v3226_v49, 2  ;;  %v8675_v49 = vld [vmem:[#allocation198_spill] sm:$0xff]  ;;  %v8678_v6 = vld [vmem:[#allocation200_spill] sm:$0xff]  ;;  %p4998_p12 = scmp.ne.s32.totalorder %s8364_s28, %s4997_s29  ;;  %s5081_s17 = smov [#allocation11]  }
 0x35c   : > { %3186 = vrot.lane.b32.xlu1 %v3185_v0, %s5078_s8  ;;  %3194 = vrot.lane.b32.xlu0 %v3192_v44, %s8626_s24  ;;  %s8022_s8 = sld [smem:[#allocation6 + $0xda]]  ;;  %v708_v50 = vadd.f32 %v8669_v62, %v694_v2  ;;  %v3235_v54 = vmul.f32 %v7545_v59, %v3234_v7  ;;  %v3244_v58 = vmul.f32 %v7574_v47, %v3243_v1  ;;  %v3261_v56 = vstv %s7998_s18  ;;  %v8672_v44 = vld [vmem:[#allocation22_spill] sm:$0xff]  ;;  %s5001_s18 = sshll.u32 %s5081_s17, 4  ;;  %s5002_s18 = int_to_ptr.vmem [resolvable:$false] %s5001_s18 }
 0x35d   : > { %v3844_v34 = vadd.f32 %v8671_v4, %v3831_v27  ;;  %v3279_v10 = vstv %s8004_s4  ;;  %v709_v39 = vadd.f32 %v8673_v36, %v695_v40  ;;  %v3253_v19 = vmul.f32 %v7545_v59, %v3252_v63  ;;  %v8676_v27 = vld [vmem:[#allocation19_spill] sm:$0xff]  ;;  %v8677_v1 = vld [vmem:[#allocation34_spill] sm:$0xff]  ;;  %p4999_p4 = pnand %p4998_p12, %p8846_p3  ;;  %s5003_s4 = scalar_lea.vmem %s5002_s18, 2048 }
 0x35e   : > { %v8013_v57 = vpop.permute.xlu1 %4050  ;;  %v8015_v23 = vpop.permute.xlu0 %2854  ;;  %v729_v11 = vadd.f32 %v8672_v44, %v708_v50  ;;  %v3262_v12 = vmul.f32 %v7574_v47, %v3261_v56  ;;  %v3270_v14 = vstv %s8010_s19  ;;  %v3237_v26 = vrot.slane %v3235_v54, 2  ;;  %v8679_v44 = vld [vmem:[#allocation203_spill] sm:$0xff]  ;;  %p5004_p0 = scmp.lt.s32.totalorder %s8364_s28, %s5002_s18  ;;  %p5005_p2 = scmp.lt.s32.totalorder %s5003_s4, %s4997_s29 }
 0x35f   : > { %v3857_v0 = vadd.f32 %v8674_v52, %v3844_v34  ;;  %v3246_v2 = vrot.slane %v3244_v58, 3  ;;  %v730_v7 = vadd.f32 %v8676_v27, %v709_v39  ;;  %v3305_v50 = vstv %s8027_s23  ;;  %v8683_v27 = vld [vmem:[#allocation208_spill] sm:$0xff]  ;;  %p5000_p5 = pneg %p4999_p4 }
 0x360   : > { %3202 = vrot.lane.b32.xlu1 %v3200_v51, %s8626_s24  ;;  %3211 = vrot.lane.b32.xlu0 %v3210_v30, %s8626_s24  ;;  %v3280_v51 = vmul.f32 %v7574_v47, %v3279_v10  ;;  %v3281_v30 = vmul.f32 %v8655_v48, %v3279_v10  ;;  %v750_v62 = vadd.f32 %v8677_v1, %v729_v11  ;;  %v3264_v63 = vrot.slane %v3262_v12, 4  ;;  %v8681_v12 = vld [vmem:[#allocation24_spill] sm:$0xff]  ;;  %p5006_p6 = por %p5005_p2, %p5004_p0 }
 0x361   : > { %v3870_v61 = vadd.f32 %v8675_v49, %v3857_v0  ;;  %v3306_v36 = vmul.f32 %v7574_v47, %v3305_v50  ;;  %v3307_v39 = vmul.f32 %v8655_v48, %v3305_v50  ;;  %v3318_v52 = vstv %s8040_s22  ;;  %v8680_v0 = vld [vmem:[#allocation35_spill] sm:$0xff] }
 0x362   : > { %v8031_v33 = vpop.permute.xlu1 %4059  ;;  %v8033_v17 = vpop.permute.xlu0 %2867  ;;  %v3292_v28 = vstv %s8022_s8  ;;  %v3284_v56 = vrot.slane %v3280_v51, 5  ;;  %v3285_v4 = vrot.slane %v3281_v30, 5  ;;  %p5007_p8 = pnand %p5006_p6, %p5000_p5 }
 0x363   : > { %v3878_v40 = vadd.f32 %v8678_v6, %v3870_v61  ;;  %v3293_v34 = vmul.f32 %v7545_v59, %v3292_v28  ;;  %v3294_v10 = vmul.f32 %v7661_v24, %v3292_v28  ;;  %v3319_v28 = vmul.f32 %v7545_v59, %v3318_v52 }
 0x364   : > { %3220 = vrot.lane.b32.xlu1 %v3219_v43, %s8626_s24  ;;  %3229 = vrot.lane.b32.xlu0 %v3228_v15, %s8626_s24  ;;  %v3255_v43 = vrot.slane %v3253_v19, 3  ;;  %v3271_v15 = vmul.f32 %v7545_v59, %v3270_v14  ;;  %v751_v19 = vadd.f32 %v8680_v0, %v730_v7  ;;  %v771_v14 = vadd.f32 %v8681_v12, %v750_v62  ;;  %v8684_v62 = vld [vmem:[#allocation21_spill] sm:$0xff]  ;;  %v8688_v12 = vld [vmem:[#allocation26_spill] sm:$0xff] }
 0x365   : > { %v3886_v11 = vadd.f32 %v8679_v44, %v3878_v40  ;;  %v3286_v47 = vsel %vm620_vm12, %v3284_v56, %v3285_v4  ;;  %v3297_v61 = vrot.slane %v3293_v34, 5  ;;  %v3298_v48 = vrot.slane %v3294_v10, 5 }
 0x366   : > { %v8050_v38 = vpop.permute.xlu1 %4068  ;;  %v8052_v45 = vpop.permute.xlu0 %2880  ;;  %v3273_v51 = vrot.slane %v3271_v15, 4  ;;  %v3310_v1 = vrot.slane %v3306_v36, 6  ;;  %v3311_v50 = vrot.slane %v3307_v39, 6  ;;  %v3320_v6 = vmul.f32 %v7661_v24, %v3318_v52  ;;  %v8686_v15 = vld [vmem:[#allocation36_spill] sm:$0xff]  ;;  %v8687_v36 = vld [vmem:[#allocation37_spill] sm:$0xff] }
 0x367   : > { %v772_v40 = vadd.f32 %v8684_v62, %v751_v19  ;;  %v792_v56 = vadd.f32 %v8686_v15, %v771_v14  ;;  %v3299_v59 = vsel %vm620_vm12, %v3297_v61, %v3298_v48  ;;  %v3323_v44 = vrot.slane %v3319_v28, 6  ;;  %v8692_v62 = vld [vmem:[#allocation28_spill] sm:$0xff] }
 0x368   : > { %3238 = vrot.lane.b32.xlu1 %v3237_v26, %s8626_s24  ;;  %3247 = vrot.lane.b32.xlu0 %v3246_v2, %s8626_s24  ;;  %v8682_v26 = vld [vmem:[#allocation206_spill] sm:$0xff]  ;;  %v3312_v24 = vsel %vm655_vm13, %v3310_v1, %v3311_v50 }
 0x369   : > { %v3895_v2 = vadd.f32 %v8682_v26, %v3886_v11  ;;  %v3324_v11 = vrot.slane %v3320_v6, 6  ;;  %v793_v39 = vadd.f32 %v8687_v36, %v772_v40  ;;  %v813_v14 = vadd.f32 %v8688_v12, %v792_v56  ;;  %v8695_v36 = vld [vmem:[#allocation41_spill] sm:$0xff] }
 0x36a   : > { %v8065_v54 = vpop.permute.xlu1 %4077  ;;  %v8067_v58 = vpop.permute.xlu0 %2893 }
 0x36b   : > { %v3904_v7 = vadd.f32 %v8683_v27, %v3895_v2  ;;  %v3325_v26 = vsel %vm655_vm13, %v3323_v44, %v3324_v11  ;;  %v8689_v2 = vld [vmem:[#allocation23_spill] sm:$0xff] }
 0x36c   : > { %3256 = vrot.lane.b32.xlu1 %v3255_v43, %s8626_s24  ;;  %3265 = vrot.lane.b32.xlu0 %v3264_v63, %s8626_s24  ;;  %v8685_v43 = vld [vmem:[#allocation209_spill] sm:$0xff] }
 0x36d   : > { %v3913_v63 = vadd.f32 %v8685_v43, %v3904_v7  ;;  %v8691_v7 = vld [vmem:[#allocation39_spill] sm:$0xff] }
 0x36e   : > { %v8080_v30 = vpop.permute.xlu1 %4086  ;;  %v8082_v49 = vpop.permute.xlu0 %2906 }
 0x36f   : > { %v3922_v10 = vadd.f32 %v7715_v25, %v3913_v63  ;;  %v8693_v63 = vld [vmem:[#allocation25_spill] sm:$0xff] }
 0x370   : > { %3274 = vrot.lane.b32.xlu1 %v3273_v51, %s8626_s24  ;;  %3287 = vrot.lane.b32.xlu0 %v3286_v47, %s8626_s24  ;;  %v814_v51 = vadd.f32 %v8689_v2, %v793_v39 }
 0x371   : > { %v3931_v52 = vadd.f32 %v7742_v5, %v3922_v10  ;;  %v8690_v5 = vld [vmem:[#allocation38_spill] sm:$0xff] }
 0x372   : > { %v8093_v4 = vpop.permute.xlu1 %4095  ;;  %v8095_v34 = vpop.permute.xlu0 %2914  ;;  %v834_v28 = vadd.f32 %v8690_v5, %v813_v14  ;;  %v835_v1 = vadd.f32 %v8691_v7, %v814_v51 }
 0x373   : > { %v3940_v25 = vadd.f32 %v7770_v29, %v3931_v52 }
 0x374   : > { %3300 = vrot.lane.b32.xlu1 %v3299_v59, %s8626_s24  ;;  %3313 = vrot.lane.b32.xlu0 %v3312_v24, %s8626_s24  ;;  %v855_v40 = vadd.f32 %v8692_v62, %v834_v28  ;;  %v856_v15 = vadd.f32 %v8693_v63, %v835_v1  ;;  %v8699_v28 = vld [vmem:[#allocation43_spill] sm:$0xff] }
 0x375   : > { %v3949_v47 = vadd.f32 %v7786_v13, %v3940_v25  ;;  %v2785_v13 = vadd.f32 %v7832_v31, %v7813_v16  ;;  %v8697_v25 = vld [vmem:[#allocation27_spill] sm:$0xff] }
 0x376   : > { %v8104_v0 = vpop.permute.xlu1 %4108  ;;  %v8106_v19 = vpop.permute.xlu0 %2922  ;;  %v877_v39 = vadd.f32 %v8695_v36, %v856_v15  ;;  %v8702_v15 = vld [vmem:[#allocation44_spill] sm:$0xff] }
 0x377   : > { %v3958_v27 = vadd.f32 %v7807_v46, %v3949_v47  ;;  %v2794_v56 = vadd.f32 %v7862_v60, %v2785_v13  ;;  %v8696_v60 = vld [vmem:[#allocation30_spill] sm:$0xff] }
 0x378   : > { %3326 = vrot.lane.b32.xlu1 %v3325_v26, %s8626_s24  ;;  %v898_v26 = vadd.f32 %v8697_v25, %v877_v39  ;;  %v8698_v47 = vld [vmem:[#allocation42_spill] sm:$0xff]  ;;  %v8705_v39 = vld [vmem:[#allocation17_spill] sm:$0xff]  ;;  %s4822_s24 = sld [smem:[#allocation7 + $0x2]] }
 0x379   : > { %v3971_v29 = vadd.f32 %v7830_v3, %v3958_v27  ;;  %v8694_v3 = vld [vmem:[#allocation40_spill] sm:$0xff]  ;;  %v2803_v44 = vadd.f32 %v7886_v53, %v2794_v56 }
 0x37a   : > { %v8114_v61 = vpop.permute.xlu1 %4121  ;;  %v8116_v48 = vpop.permute.xlu0 %2931  ;;  %v876_v24 = vadd.f32 %v8694_v3, %v855_v40  ;;  %v919_v27 = vadd.f32 %v8699_v28, %v898_v26  ;;  %v8701_v40 = vld [vmem:[#allocation29_spill] sm:$0xff]  ;;  %v8708_v26 = vld [vmem:[#allocation48_spill] sm:$0xff] }
 0x37b   : > { %v3984_v43 = vadd.f32 %v7860_v41, %v3971_v29  ;;  %v2812_v16 = vadd.f32 %v7909_v18, %v2803_v44  ;;  %v8700_v29 = vld [vmem:[#allocation32_spill] sm:$0xff] }
 0x37c   : > { %v897_v12 = vadd.f32 %v8696_v60, %v876_v24  ;;  %v940_v13 = vadd.f32 %v8701_v40, %v919_v27 }
 0x37d   : > { %v3997_v46 = vadd.f32 %v7884_v9, %v3984_v43  ;;  %v2821_v9 = vadd.f32 %v7929_v42, %v2812_v16 }
 0x37e   : > { %v8122_v50 = vpop.permute.xlu1 %4134  ;;  %v8124_v6 = vpop.permute.xlu0 %2940  ;;  %v918_v18 = vadd.f32 %v8698_v47, %v897_v12  ;;  %v8706_v12 = vld [vmem:[#allocation46_spill] sm:$0xff] }
 0x37f   : > { %v4010_v11 = vadd.f32 %v7907_v21, %v3997_v46  ;;  %v2830_v53 = vadd.f32 %v7952_v37, %v2821_v9  ;;  %v8703_v46 = vld [vmem:[#allocation45_spill] sm:$0xff] }
 0x380   : > { %v939_v37 = vadd.f32 %v8700_v29, %v918_v18  ;;  %v961_v3 = vadd.f32 %v8703_v46, %v940_v13  ;;  %v8710_v18 = vld [vmem:[#allocation50_spill] sm:$0xff] }
 0x381   : > { %v4018_v31 = vadd.f32 %v7927_v22, %v4010_v11  ;;  %v2839_v22 = vadd.f32 %v7974_v8, %v2830_v53  ;;  %v8704_v11 = vld [vmem:[#allocation20_spill] sm:$0xff] }
 0x382   : > { %v4148_v59 = vpop.permute.xlu1 %4147  ;;  %v8133_v10 = vpop.permute.xlu0 %2949  ;;  %v975_v16 = vadd.f32 %v8705_v39, %v961_v3 }
 0x383   : > { %v4026_v14 = vadd.f32 %v7950_v20, %v4018_v31  ;;  %v2848_v42 = vadd.f32 %v7993_v32, %v2839_v22  ;;  %v960_v32 = vadd.f32 %v8702_v15, %v939_v37  ;;  %v8713_v37 = vld [vmem:[#allocation53_spill] sm:$0xff] }
 0x385   : > { %v4035_v21 = vadd.f32 %v7972_v35, %v4026_v14  ;;  %v2857_v35 = vadd.f32 %v8015_v23, %v2848_v42  ;;  %v8707_v14 = vld [vmem:[#allocation47_spill] sm:$0xff] }
 0x386   : > { %v4156_v41 = vpop.permute.xlu1 %4155  ;;  %v2959_v52 = vpop.permute.xlu0 %2958  ;;  %v989_v25 = vadd.f32 %v8707_v14, %v975_v16  ;;  %v8721_v16 = vld [vmem:[#allocation61_spill] sm:$0xff] }
 0x387   : > { %v4044_v5 = vadd.f32 %v7991_v55, %v4035_v21  ;;  %v2870_v8 = vadd.f32 %v8033_v17, %v2857_v35  ;;  %v974_v17 = vadd.f32 %v8704_v11, %v960_v32  ;;  %v8709_v21 = vld [vmem:[#allocation49_spill] sm:$0xff]  ;;  %v8716_v32 = vld [vmem:[#allocation56_spill] sm:$0xff] }
 0x389   : > { %v4053_v20 = vadd.f32 %v8013_v57, %v4044_v5  ;;  %v2883_v57 = vadd.f32 %v8052_v45, %v2870_v8 }
 0x38a   : > { %v4164_v2 = vpop.permute.xlu1 %4163  ;;  %v2968_v51 = vpop.permute.xlu0 %2967 }
 0x38b   : > { %v4062_v62 = vadd.f32 %v8031_v33, %v4053_v20  ;;  %v2896_v23 = vadd.f32 %v8067_v58, %v2883_v57  ;;  %v988_v58 = vadd.f32 %v8706_v12, %v974_v17  ;;  %v8719_v17 = vld [vmem:[#allocation59_spill] sm:$0xff] }
 0x38d   : > { %v4071_v55 = vadd.f32 %v8050_v38, %v4062_v62  ;;  %v2909_v38 = vadd.f32 %v8082_v49, %v2896_v23  ;;  %v1009_v49 = vadd.f32 %v8708_v26, %v988_v58  ;;  %v8714_v62 = vld [vmem:[#allocation54_spill] sm:$0xff] }
 0x38e   : > { %v4173_v7 = vpop.permute.xlu1 %4172  ;;  %v2977_v1 = vpop.permute.xlu0 %2976 }
 0x38f   : > { %v4080_v56 = vadd.f32 %v8065_v54, %v4071_v55  ;;  %v2917_v45 = vadd.f32 %v8095_v34, %v2909_v38  ;;  %v1010_v34 = vadd.f32 %v8709_v21, %v989_v25  ;;  %v1030_v22 = vadd.f32 %v8710_v18, %v1009_v49  ;;  %v8715_v55 = vld [vmem:[#allocation55_spill] sm:$0xff]  ;;  %v8724_v25 = vld [vmem:[#allocation64_spill] sm:$0xff]  ;;  %v8725_v49 = vld [vmem:[#allocation65_spill] sm:$0xff] }
 0x391   : > { %v4089_v33 = vadd.f32 %v8080_v30, %v4080_v56  ;;  %v2925_v30 = vadd.f32 %v8106_v19, %v2917_v45  ;;  %v8711_v19 = vld [vmem:[#allocation51_spill] sm:$0xff]  ;;  %v8717_v56 = vld [vmem:[#allocation57_spill] sm:$0xff] }
 0x392   : > { %v4182_v43 = vpop.permute.xlu1 %4181  ;;  %v2986_v63 = vpop.permute.xlu0 %2985  ;;  %v1031_v27 = vadd.f32 %v8711_v19, %v1010_v34 }
 0x393   : > { %v4098_v36 = vadd.f32 %v8093_v4, %v4089_v33  ;;  %v2934_v4 = vadd.f32 %v8116_v48, %v2925_v30 }
 0x394   : > { %v1052_v48 = vadd.f32 %v8713_v37, %v1031_v27  ;;  %v8729_v27 = vld [vmem:[#allocation69_spill] sm:$0xff] }
 0x395   : > { %v4111_v54 = vadd.f32 %v8104_v0, %v4098_v36  ;;  %v2943_v5 = vadd.f32 %v8124_v6, %v2934_v4  ;;  %v8720_v36 = vld [vmem:[#allocation60_spill] sm:$0xff] }
 0x396   : > { %v4191_v24 = vpop.permute.xlu1 %4190  ;;  %v2995_v44 = vpop.permute.xlu0 %2994  ;;  %v1073_v15 = vadd.f32 %v8715_v55, %v1052_v48  ;;  %v8731_v48 = vld [vmem:[#allocation71_spill] sm:$0xff] }
 0x397   : > { %v4124_v9 = vadd.f32 %v8114_v61, %v4111_v54  ;;  %v8712_v61 = vld [vmem:[#allocation52_spill] sm:$0xff]  ;;  %v2952_v20 = vadd.f32 %v8133_v10, %v2943_v5  ;;  %v8718_v10 = vld [vmem:[#allocation58_spill] sm:$0xff] }
 0x398   : > { %v1051_v42 = vadd.f32 %v8712_v61, %v1030_v22  ;;  %v1094_v46 = vadd.f32 %v8717_v56, %v1073_v15  ;;  %v8727_v22 = vld [vmem:[#allocation67_spill] sm:$0xff] }
 0x399   : > { %v4137_v53 = vadd.f32 %v8122_v50, %v4124_v9  ;;  %v2961_v13 = vadd.f32 %v2959_v52, %v2952_v20  ;;  %v8723_v9 = vld [vmem:[#allocation63_spill] sm:$0xff] }
 0x39a   : > { %v4200_v31 = vpop.permute.xlu1 %4199  ;;  %v3008_v60 = vpop.permute.xlu0 %3007  ;;  %v1072_v40 = vadd.f32 %v8714_v62, %v1051_v42  ;;  %v1115_v38 = vadd.f32 %v8719_v17, %v1094_v46  ;;  %v8735_v56 = vld [vmem:[#allocation75_spill] sm:$0xff]  ;;  %v4292_v17 = vstv %s4822_s24 }
 0x39b   : > { %v4150_v28 = vadd.f32 %v4148_v59, %v4137_v53  ;;  %v2970_v59 = vadd.f32 %v2968_v51, %v2961_v13  ;;  %v8722_v51 = vld [vmem:[#allocation62_spill] sm:$0xff] }
 0x39c   : > { %v1093_v6 = vadd.f32 %v8716_v32, %v1072_v40  ;;  %v1136_v45 = vadd.f32 %v8721_v16, %v1115_v38  ;;  %v8732_v40 = vld [vmem:[#allocation72_spill] sm:$0xff]  ;;  %v8734_v32 = vld [vmem:[#allocation74_spill] sm:$0xff] }
 0x39d   : > { %v4158_v29 = vadd.f32 %v4156_v41, %v4150_v28  ;;  %v2979_v33 = vadd.f32 %v2977_v1, %v2970_v59  ;;  %v8728_v28 = vld [vmem:[#allocation68_spill] sm:$0xff] }
 0x39e   : > { %v4209_v47 = vpop.permute.xlu1 %4208  ;;  %v3021_v0 = vpop.permute.xlu0 %3020  ;;  %v1114_v41 = vadd.f32 %v8718_v10, %v1093_v6  ;;  %v1157_v14 = vadd.f32 %v8723_v9, %v1136_v45  ;;  %v8739_v45 = vld [vmem:[#allocation79_spill] sm:$0xff] }
 0x39f   : > { %v4166_v8 = vadd.f32 %v4164_v2, %v4158_v29  ;;  %v2988_v52 = vadd.f32 %v2986_v63, %v2979_v33  ;;  %v8726_v63 = vld [vmem:[#allocation66_spill] sm:$0xff]  ;;  %v8737_v33 = vld [vmem:[#allocation77_spill] sm:$0xff] }
 0x3a0   : > { %v1135_v39 = vadd.f32 %v8720_v36, %v1114_v41  ;;  %v1178_v4 = vadd.f32 %v8725_v49, %v1157_v14 }
 0x3a1   : > { %v4175_v57 = vadd.f32 %v4173_v7, %v4166_v8  ;;  %v2997_v58 = vadd.f32 %v2995_v44, %v2988_v52  ;;  %v8733_v8 = vld [vmem:[#allocation73_spill] sm:$0xff] }
 0x3a2   : > { %v4218_v35 = vpop.permute.xlu1 %4217  ;;  %v3034_v50 = vpop.permute.xlu0 %3033  ;;  %v1156_v7 = vadd.f32 %v8722_v51, %v1135_v39  ;;  %v1199_v5 = vadd.f32 %v8727_v22, %v1178_v4  ;;  %v8738_v39 = vld [vmem:[#allocation78_spill] sm:$0xff]  ;;  %v8743_v4 = vld [vmem:[#allocation83_spill] sm:$0xff] }
 0x3a3   : > { %v4184_v11 = vadd.f32 %v4182_v43, %v4175_v57  ;;  %v3010_v1 = vadd.f32 %v3008_v60, %v2997_v58  ;;  %v8730_v60 = vld [vmem:[#allocation70_spill] sm:$0xff] }
 0x3a4   : > { %v1177_v26 = vadd.f32 %v8724_v25, %v1156_v7  ;;  %v1220_v61 = vadd.f32 %v8729_v27, %v1199_v5 }
 0x3a5   : > { %v4193_v2 = vadd.f32 %v4191_v24, %v4184_v11  ;;  %v3023_v34 = vadd.f32 %v3021_v0, %v3010_v1 }
 0x3a6   : > { %v4227_v3 = vpop.permute.xlu1 %4226  ;;  %v3047_v23 = vpop.permute.xlu0 %3046  ;;  %v1198_v24 = vadd.f32 %v8726_v63, %v1177_v26  ;;  %v1241_v62 = vadd.f32 %v8731_v48, %v1220_v61  ;;  %v8742_v26 = vld [vmem:[#allocation82_spill] sm:$0xff]  ;;  %v8748_v61 = vld [vmem:[#allocation88_spill] sm:$0xff] }
 0x3a7   : > { %v4202_v30 = vadd.f32 %v4200_v31, %v4193_v2  ;;  %v3036_v44 = vadd.f32 %v3034_v50, %v3023_v34  ;;  %v8745_v34 = vld [vmem:[#allocation85_spill] sm:$0xff]  ;;  %v8750_v48 = vld [vmem:[#allocation90_spill] sm:$0xff] }
 0x3a8   : > { %v1219_v19 = vadd.f32 %v8728_v28, %v1198_v24  ;;  %v1255_v55 = vadd.f32 %v8733_v8, %v1241_v62  ;;  %v8746_v28 = vld [vmem:[#allocation86_spill] sm:$0xff] }
 0x3a9   : > { %v4211_v43 = vadd.f32 %v4209_v47, %v4202_v30  ;;  %v3049_v29 = vadd.f32 %v3047_v23, %v3036_v44  ;;  %v8741_v30 = vld [vmem:[#allocation81_spill] sm:$0xff] }
 0x3aa   : > { %v4236_v54 = vpop.permute.xlu1 %4235  ;;  %v3055_v12 = vpop.permute.xlu0 %3054  ;;  %v1240_v47 = vadd.f32 %v8730_v60, %v1219_v19  ;;  %v1269_v46 = vadd.f32 %v8735_v56, %v1255_v55  ;;  %v8749_v60 = vld [vmem:[#allocation89_spill] sm:$0xff] }
 0x3ab   : > { %v4220_v18 = vadd.f32 %v4218_v35, %v4211_v43  ;;  %v3057_v35 = vadd.f32 %v3055_v12, %v3049_v29  ;;  %v8740_v12 = vld [vmem:[#allocation80_spill] sm:$0xff] }
 0x3ac   : > { %v1254_v0 = vadd.f32 %v8732_v40, %v1240_v47  ;;  %v1290_v11 = vadd.f32 %v8737_v33, %v1269_v46 }
 0x3ad   : > { %v4229_v31 = vadd.f32 %v4227_v3, %v4220_v18  ;;  %v8736_v3 = vld [vmem:[#allocation76_spill] sm:$0xff] }
 0x3ae   : > { %v4249_v53 = vpop.permute.xlu1 %4248  ;;  %v3063_v21 = vpop.permute.xlu0 %3062  ;;  %v1268_v6 = vadd.f32 %v8734_v32, %v1254_v0  ;;  %v8751_v0 = vld [vmem:[#allocation91_spill] sm:$0xff] }
 0x3af   : > { %v4238_v37 = vadd.f32 %v4236_v54, %v4229_v31  ;;  %v3065_v59 = vadd.f32 %v3063_v21, %v3057_v35  ;;  %v1311_v54 = vadd.f32 %v8739_v45, %v1290_v11  ;;  %v8744_v21 = vld [vmem:[#allocation84_spill] sm:$0xff]  ;;  %v8747_v31 = vld [vmem:[#allocation87_spill] sm:$0xff] }
 0x3b0   : > { %v1289_v10 = vadd.f32 %v8736_v3, %v1268_v6  ;;  %v8755_v3 = vld [vmem:[#allocation95_spill] sm:$0xff] }
 0x3b1   : > { %v4251_v13 = vadd.f32 %v4249_v53, %v4238_v37  ;;  %v1332_v9 = vadd.f32 %v8741_v30, %v1311_v54  ;;  %v8759_v45 = vld [vmem:[#allocation99_spill] sm:$0xff] }
 0x3b2   : > { %v4262_v42 = vpop.permute.xlu1 %4261  ;;  %v3072_v20 = vpop.permute.xlu0 %3071  ;;  %v1310_v52 = vadd.f32 %v8738_v39, %v1289_v10 }
 0x3b3   : > { %v4264_v57 = vadd.f32 %v4262_v42, %v4251_v13  ;;  %v3074_v23 = vadd.f32 %v3072_v20, %v3065_v59  ;;  %v1353_v53 = vadd.f32 %v8743_v4, %v1332_v9  ;;  %v8752_v13 = vld [vmem:[#allocation92_spill] sm:$0xff] }
 0x3b4   : > { %v1331_v51 = vadd.f32 %v8740_v12, %v1310_v52  ;;  %v8758_v52 = vld [vmem:[#allocation98_spill] sm:$0xff]  ;;  %v8760_v12 = vld [vmem:[#allocation100_spill] sm:$0xff] }
 0x3b5   : > { %v1374_v18 = vadd.f32 %v8745_v34, %v1353_v53  ;;  %v8764_v4 = vld [vmem:[#allocation104_spill] sm:$0xff]  ;;  %v8766_v34 = vld [vmem:[#allocation105_spill] sm:$0xff] }
 0x3b6   : > { %v4275_v15 = vpop.permute.xlu1 %4274  ;;  %v3081_v50 = vpop.permute.xlu0 %3080  ;;  %v1352_v1 = vadd.f32 %v8742_v26, %v1331_v51 }
 0x3b7   : > { %v4277_v41 = vadd.f32 %v4275_v15, %v4264_v57  ;;  %v3083_v2 = vadd.f32 %v3081_v50, %v3074_v23  ;;  %v1395_v27 = vadd.f32 %v8747_v31, %v1374_v18  ;;  %v8753_v15 = vld [vmem:[#allocation93_spill] sm:$0xff]  ;;  %v8754_v57 = vld [vmem:[#allocation94_spill] sm:$0xff] }
 0x3b8   : > { %v1373_v63 = vadd.f32 %v8744_v21, %v1352_v1 }
 0x3b9   : > { %v1416_v47 = vadd.f32 %v8749_v60, %v1395_v27  ;;  %v8768_v27 = vld [vmem:[#allocation107_spill] sm:$0xff] }
 0x3ba   : > { %v4288_v38 = vpop.permute.xlu1 %4287  ;;  %v3090_v36 = vpop.permute.xlu0 %3089  ;;  %v1394_v19 = vadd.f32 %v8746_v28, %v1373_v63  ;;  %v8765_v63 = vld [vmem:[#allocation15_spill] sm:$0xff]  ;;  %v8767_v28 = vld [vmem:[#allocation106_spill] sm:$0xff] }
 0x3bb   : > { %v4290_v16 = vadd.f32 %v4288_v38, %v4277_v41  ;;  %v3092_v58 = vadd.f32 %v3090_v36, %v3083_v2  ;;  %v1437_v35 = vadd.f32 %v8751_v0, %v1416_v47  ;;  %v8756_v41 = vld [vmem:[#allocation96_spill] sm:$0xff]  ;;  %v8771_v0 = vld [vmem:[#allocation110_spill] sm:$0xff] }
 0x3bc   : > { %v1415_v42 = vadd.f32 %v8748_v61, %v1394_v19 }
 0x3bd   : > { %v4293_v7 = vadd.f32 %v4292_v17, %v4290_v16  ;;  %v1458_v50 = vadd.f32 %v8753_v15, %v1437_v35  ;;  %v8757_v17 = vld [vmem:[#allocation97_spill] sm:$0xff]  ;;  %v8773_v15 = vld [vmem:[#allocation112_spill] sm:$0xff] }
 0x3be   : > { %v3099_v14 = vpop.permute.xlu1 %3098  ;;  %v3108_v25 = vpop.permute.xlu0 %3107  ;;  %v1436_v62 = vadd.f32 %v8750_v48, %v1415_v42  ;;  %v8769_v42 = vld [vmem:[#allocation108_spill] sm:$0xff] }
 0x3bf   : > { %v4823_v43 = vmul.f32 -1.442695, %v4293_v7  ;;  %v3101_v49 = vadd.f32 %v3099_v14, %v3092_v58  ;;  %v1479_v10 = vadd.f32 %v8755_v3, %v1458_v50  ;;  %v8761_v58 = vld [vmem:[#allocation101_spill] sm:$0xff] }
 0x3c0   : > { %v1457_v8 = vadd.f32 %v8752_v13, %v1436_v62 }
 0x3c1   : > { %4892 = vpow2.f32 %v4823_v43  ;;  %v3110_v24 = vadd.f32 %v3108_v25, %v3101_v49  ;;  %v1500_v38 = vadd.f32 %v8757_v17, %v1479_v10  ;;  %v8762_v25 = vld [vmem:[#allocation102_spill] sm:$0xff]  ;;  %v8763_v43 = vld [vmem:[#allocation103_spill] sm:$0xff]  ;;  %v8777_v17 = vld [vmem:[#allocation116_spill] sm:$0xff] }
 0x3c2   : > { %v3117_v22 = vpop.permute.xlu1 %3116  ;;  %v3126_v5 = vpop.permute.xlu0 %3125  ;;  %v1478_v56 = vadd.f32 %v8754_v57, %v1457_v8  ;;  %v8772_v8 = vld [vmem:[#allocation111_spill] sm:$0xff]  ;;  %v8774_v57 = vld [vmem:[#allocation113_spill] sm:$0xff]  ;;  %v8775_v10 = vld [vmem:[#allocation114_spill] sm:$0xff] }
 0x3c3   : > { %v3119_v44 = vadd.f32 %v3117_v22, %v3110_v24  ;;  %v1521_v54 = vadd.f32 %v8759_v45, %v1500_v38  ;;  %v8237_v24 = vsub.s32 0, %v8765_v63 }
 0x3c4   : > { %v1499_v33 = vadd.f32 %v8756_v41, %v1478_v56 }
 0x3c5   : > { %v3128_v20 = vadd.f32 %v3126_v5, %v3119_v44  ;;  %v1535_v30 = vadd.f32 %v8761_v58, %v1521_v54  ;;  %v8780_v58 = vld [vmem:[#allocation119_spill] sm:$0xff] }
 0x3c6   : > { %v3135_v29 = vpop.permute.xlu1 %3134  ;;  %v3148_v37 = vpop.permute.xlu0 %3147  ;;  %v1520_v2 = vadd.f32 %v8758_v52, %v1499_v33  ;;  %v8776_v33 = vld [vmem:[#allocation115_spill] sm:$0xff]  ;;  %v4388_v52 = vsub.s32 3, %v8765_v63 }
 0x3c7   : > { %v3137_v40 = vadd.f32 %v3135_v29, %v3128_v20  ;;  %v1549_v49 = vadd.f32 %v8763_v43, %v1535_v30  ;;  %v4366_v29 = vsub.s32 1, %v8765_v63 }
 0x3c8   : > { %v1534_v51 = vadd.f32 %v8760_v12, %v1520_v2  ;;  %v8778_v2 = vld [vmem:[#allocation117_spill] sm:$0xff]  ;;  %v8779_v12 = vld [vmem:[#allocation118_spill] sm:$0xff] }
 0x3c9   : > { %v3150_v55 = vadd.f32 %v3148_v37, %v3137_v40  ;;  %v1570_v18 = vadd.f32 %v8766_v34, %v1549_v49  ;;  %v8770_v37 = vld [vmem:[#allocation109_spill] sm:$0xff]  ;;  %v8784_v34 = vld [vmem:[#allocation123_spill] sm:$0xff] }
 0x3ca   : > { %v3161_v32 = vpop.permute.xlu1 %3160  ;;  %v3174_v6 = vpop.permute.xlu0 %3173  ;;  %v1548_v26 = vadd.f32 %v8762_v25, %v1534_v51 }
 0x3cb   : > { %v4893_v59 = vpop.eup %4892  ;;  %v3163_v46 = vadd.f32 %v3161_v32, %v3150_v55  ;;  %v1591_v61 = vadd.f32 %v8768_v27, %v1570_v18 }
 0x3cc   : > { %v4297_v23 = vadd.f32 1.0, %v4893_v59  ;;  %v1569_v53 = vadd.f32 %v8764_v4, %v1548_v26  ;;  %v4377_v59 = vsub.s32 2, %v8765_v63  ;;  %v8783_v4 = vld [vmem:[#allocation122_spill] sm:$0xff] }
 0x3cd   : > { %v3176_v11 = vadd.f32 %v3174_v6, %v3163_v46  ;;  %v1612_v48 = vadd.f32 %v8770_v37, %v1591_v61  ;;  %v3331_v61 = vstv %s4722_s21  ;;  %v8789_v37 = vld [vmem:[#allocation128_spill] sm:$0xff] }
 0x3ce   : > { %4894 = vrcp.f32 %v4297_v23  ;;  %v3187_v36 = vpop.permute.xlu1 %3186  ;;  %v3195_v39 = vpop.permute.xlu0 %3194  ;;  %v1590_v19 = vadd.f32 %v8767_v28, %v1569_v53 }
 0x3cf   : > { %v3189_v16 = vadd.f32 %v3187_v36, %v3176_v11  ;;  %v1633_v55 = vadd.f32 %v8772_v8, %v1612_v48 }
 0x3d0   : > { %v1611_v20 = vadd.f32 %v8769_v42, %v1590_v19 }
 0x3d1   : > { %v3197_v7 = vadd.f32 %v3195_v39, %v3189_v16  ;;  %v1654_v56 = vadd.f32 %v8774_v57, %v1633_v55  ;;  %v8792_v55 = vld [vmem:[#allocation131_spill] sm:$0xff]  ;;  %v8795_v57 = vld [vmem:[#allocation134_spill] sm:$0xff] }
 0x3d2   : > { %v3203_v9 = vpop.permute.xlu1 %3202  ;;  %v3212_v14 = vpop.permute.xlu0 %3211  ;;  %v1632_v35 = vadd.f32 %v8771_v0, %v1611_v20  ;;  %v8787_v20 = vld [vmem:[#allocation126_spill] sm:$0xff] }
 0x3d3   : > { %v3205_v1 = vadd.f32 %v3203_v9, %v3197_v7  ;;  %v1675_v11 = vadd.f32 %v8776_v33, %v1654_v56  ;;  %v8781_v9 = vld [vmem:[#allocation120_spill] sm:$0xff] }
 0x3d4   : > { %v1653_v50 = vadd.f32 %v8773_v15, %v1632_v35  ;;  %v8791_v35 = vld [vmem:[#allocation130_spill] sm:$0xff] }
 0x3d5   : > { %v3214_v21 = vadd.f32 %v3212_v14, %v3205_v1  ;;  %v1696_v16 = vadd.f32 %v8778_v2, %v1675_v11  ;;  %v8782_v1 = vld [vmem:[#allocation121_spill] sm:$0xff]  ;;  %v8799_v11 = vld [vmem:[#allocation138_spill] sm:$0xff] }
 0x3d6   : > { %v3221_v22 = vpop.permute.xlu1 %3220  ;;  %v3230_v5 = vpop.permute.xlu0 %3229  ;;  %v1674_v23 = vadd.f32 %v8775_v10, %v1653_v50  ;;  %v8793_v50 = vld [vmem:[#allocation132_spill] sm:$0xff]  ;;  %v8802_v2 = vld [vmem:[#allocation141_spill] sm:$0xff] }
 0x3d7   : > { %v3223_v44 = vadd.f32 %v3221_v22, %v3214_v21  ;;  %v1717_v30 = vadd.f32 %v8780_v58, %v1696_v16  ;;  %v8797_v10 = vld [vmem:[#allocation136_spill] sm:$0xff] }
 0x3d8   : > { %v4895_v31 = vpop.eup %4894  ;;  %v1695_v38 = vadd.f32 %v8777_v17, %v1674_v23 }
 0x3d9   : > { %v3232_v60 = vadd.f32 %v3230_v5, %v3223_v44  ;;  %v4356_v47 = vrot.slane %v4895_v31, %v8237_v24  ;;  %v4367_v6 = vrot.slane %v4895_v31, %v4366_v29  ;;  %v4378_v39 = vrot.slane %v4895_v31, %v4377_v59  ;;  %v8785_v5 = vld [vmem:[#allocation124_spill] sm:$0xff]  ;;  %v8786_v44 = vld [vmem:[#allocation125_spill] sm:$0xff] }
 0x3da   : > { %v3239_v62 = vpop.permute.xlu1 %3238  ;;  %v3248_v40 = vpop.permute.xlu0 %3247  ;;  %v1716_v51 = vadd.f32 %v8779_v12, %v1695_v38  ;;  %v4389_v26 = vrot.slane %v4895_v31, %v4388_v52  ;;  %v1738_v43 = vadd.f32 %v8782_v1, %v1717_v30  ;;  %v8800_v38 = vld [vmem:[#allocation139_spill] sm:$0xff]  ;;  %v8805_v30 = vld [vmem:[#allocation144_spill] sm:$0xff] }
 0x3db   : > { %v3241_v13 = vadd.f32 %v3239_v62, %v3232_v60  ;;  %4362 = vbcast.lane.b32.xlu1 %v4356_v47, 264  ;;  %4358 = vbcast.lane.b32.xlu0 %v4356_v47, 256  ;;  %v8788_v47 = vld [vmem:[#allocation127_spill] sm:$0xff] }
 0x3dc   : > { %v1737_v14 = vadd.f32 %v8781_v9, %v1716_v51  ;;  %v1759_v18 = vadd.f32 %v8784_v34, %v1738_v43  ;;  %v8804_v51 = vld [vmem:[#allocation143_spill] sm:$0xff]  ;;  %v8807_v43 = vld [vmem:[#allocation146_spill] sm:$0xff] }
 0x3dd   : > { %v3250_v32 = vadd.f32 %v3248_v40, %v3241_v13  ;;  %v8790_v40 = vld [vmem:[#allocation129_spill] sm:$0xff] }
 0x3de   : > { %v3257_v46 = vpop.permute.xlu1 %3256  ;;  %v3266_v3 = vpop.permute.xlu0 %3265  ;;  %v1758_v53 = vadd.f32 %v8783_v4, %v1737_v14  ;;  %v1780_v27 = vadd.f32 %v8786_v44, %v1759_v18  ;;  %v5080_v14 = vmov 1966171168   ;;  %v8808_v4 = vld [vmem:[#allocation147_spill] sm:$0xff] }
 0x3df   : > { %v3259_v41 = vadd.f32 %v3257_v46, %v3250_v32  ;;  %4373 = vbcast.lane.b32.xlu1 %v4367_v6, 264  ;;  %4369 = vbcast.lane.b32.xlu0 %v4367_v6, 256  ;;  %v8794_v6 = vld [vmem:[#allocation133_spill] sm:$0xff]  ;;  %v8796_v46 = vld [vmem:[#allocation135_spill] sm:$0xff] }
 0x3e0   : > { %v1779_v28 = vadd.f32 %v8785_v5, %v1758_v53  ;;  %v1801_v29 = vadd.f32 %v8788_v47, %v1780_v27  ;;  %v8812_v44 = vld [vmem:[#allocation151_spill] sm:$0xff]  ;;  %v8815_v47 = vld [vmem:[#allocation154_spill] sm:$0xff] }
 0x3e1   : > { %v3268_v36 = vadd.f32 %v3266_v3, %v3259_v41  ;;  %v8798_v41 = vld [vmem:[#allocation137_spill] sm:$0xff] }
 0x3e2   : > { %v3275_v45 = vpop.permute.xlu1 %3274  ;;  %v3288_v54 = vpop.permute.xlu0 %3287  ;;  %v1800_v31 = vadd.f32 %v8787_v20, %v1779_v28  ;;  %v1815_v0 = vadd.f32 %v8790_v40, %v1801_v29  ;;  %v8811_v28 = vld [vmem:[#allocation150_spill] sm:$0xff]  ;;  %v8817_v40 = vld [vmem:[#allocation156_spill] sm:$0xff] }
 0x3e3   : > { %v3277_v7 = vadd.f32 %v3275_v45, %v3268_v36  ;;  %4384 = vbcast.lane.b32.xlu1 %v4378_v39, 264  ;;  %4380 = vbcast.lane.b32.xlu0 %v4378_v39, 256  ;;  %v8801_v39 = vld [vmem:[#allocation140_spill] sm:$0xff] }
 0x3e4   : > { %v1814_v48 = vadd.f32 %v8789_v37, %v1800_v31  ;;  %v1829_v15 = vadd.f32 %v8792_v55, %v1815_v0  ;;  %v8814_v31 = vld [vmem:[#allocation153_spill] sm:$0xff]  ;;  %v8819_v55 = vld [vmem:[#allocation158_spill] sm:$0xff] }
 0x3e5   : > { %v3290_v25 = vadd.f32 %v3288_v54, %v3277_v7  ;;  %v8803_v54 = vld [vmem:[#allocation142_spill] sm:$0xff] }
 0x3e6   : > { %v3301_v49 = vpop.permute.xlu1 %3300  ;;  %v3314_v22 = vpop.permute.xlu0 %3313  ;;  %v1828_v13 = vadd.f32 %v8791_v35, %v1814_v48  ;;  %v1850_v59 = vadd.f32 %v8794_v6, %v1829_v15  ;;  %v8816_v48 = vld [vmem:[#allocation155_spill] sm:$0xff] }
 0x3e7   : > { %v3303_v21 = vadd.f32 %v3301_v49, %v3290_v25  ;;  %4395 = vbcast.lane.b32.xlu1 %v4389_v26, 264  ;;  %4391 = vbcast.lane.b32.xlu0 %v4389_v26, 256  ;;  %v4302_v25 = vunpack.c.l.s4 %v5080_v14  ;;  %v8806_v26 = vld [vmem:[#allocation145_spill] sm:$0xff]  ;;  %v8820_v6 = vld [vmem:[#allocation159_spill] sm:$0xff] }
 0x3e8   : > { %v1849_v32 = vadd.f32 %v8793_v50, %v1828_v13  ;;  %v1871_v3 = vadd.f32 %v8796_v46, %v1850_v59  ;;  %v8818_v13 = vld [vmem:[#allocation157_spill] sm:$0xff] }
 0x3e9   : > { %v3316_v19 = vadd.f32 %v3314_v22, %v3303_v21  ;;  %v8809_v21 = vld [vmem:[#allocation148_spill] sm:$0xff]  ;;  %v4303_v18 = vunpack.c.0.s8 %v4302_v25  ;;  %v8810_v22 = vld [vmem:[#allocation149_spill] sm:$0xff] }
 0x3ea   : > { %v3327_v42 = vpop.permute.xlu1 %3326  ;;  %v1870_v56 = vadd.f32 %v8795_v57, %v1849_v32  ;;  %v1892_v33 = vadd.f32 %v8798_v41, %v1871_v3  ;;  %v8821_v57 = vld [vmem:[#allocation160_spill] sm:$0xff]  ;;  %v8823_v41 = vld [vmem:[#allocation162_spill] sm:$0xff]  ;;  %v8830_v14 = vld [vmem:[#allocation169_spill] sm:$0xff] }
 0x3eb   : > { %v3329_v60 = vadd.f32 %v3327_v42, %v3316_v19  ;;  %v4306_v20 = vsub.s32 %v4303_v18, %v8765_v63  ;;  %v8835_v18 = vld [vmem:[#allocation174_spill] sm:$0xff] }
 0x3ec   : > { %v1891_v23 = vadd.f32 %v8797_v10, %v1870_v56  ;;  %v1913_v36 = vadd.f32 %v8800_v38, %v1892_v33  ;;  %v8822_v10 = vld [vmem:[#allocation161_spill] sm:$0xff]  ;;  %v8824_v38 = vld [vmem:[#allocation163_spill] sm:$0xff] }
 0x3ed   : > { %v3332_v62 = vadd.f32 %v3331_v61, %v3329_v60  ;;  %v8813_v61 = vld [vmem:[#allocation152_spill] sm:$0xff] }
 0x3ee   : > { %v1912_v17 = vadd.f32 %v8799_v11, %v1891_v23  ;;  %v1934_v16 = vadd.f32 %v8802_v2, %v1913_v36 }
 0x3ef   : > { %v4723_v8 = vmul.f32 -1.442695, %v3332_v62 }
 0x3f0   : > { %v1933_v52 = vadd.f32 %v8801_v39, %v1912_v17  ;;  %v1955_v7 = vadd.f32 %v8804_v51, %v1934_v16  ;;  %v8826_v16 = vld [vmem:[#allocation165_spill] sm:$0xff] }
 0x3f1   : > { %4896 = vpow2.f32 %v4723_v8 }
 0x3f2   : > { %v1954_v12 = vadd.f32 %v8803_v54, %v1933_v52  ;;  %v1976_v1 = vadd.f32 %v8806_v26, %v1955_v7  ;;  %v8825_v52 = vld [vmem:[#allocation164_spill] sm:$0xff]  ;;  %v8828_v7 = vld [vmem:[#allocation167_spill] sm:$0xff]  ;;  %v8831_v26 = vld [vmem:[#allocation170_spill] sm:$0xff] }
 0x3f4   : > { %v1975_v9 = vadd.f32 %v8805_v30, %v1954_v12  ;;  %v1997_v53 = vadd.f32 %v8808_v4, %v1976_v1  ;;  %v8827_v12 = vld [vmem:[#allocation166_spill] sm:$0xff]  ;;  %v8829_v30 = vld [vmem:[#allocation168_spill] sm:$0xff] }
 0x3f5   : > { %v8833_v4 = vld [vmem:[#allocation172_spill] sm:$0xff] }
 0x3f6   : > { %v1996_v49 = vadd.f32 %v8807_v43, %v1975_v9  ;;  %v2018_v5 = vadd.f32 %v8810_v22, %v1997_v53  ;;  %v8832_v43 = vld [vmem:[#allocation171_spill] sm:$0xff] }
 0x3f8   : > { %v2017_v34 = vadd.f32 %v8809_v21, %v1996_v49  ;;  %v2039_v27 = vadd.f32 %v8812_v44, %v2018_v5  ;;  %v8834_v21 = vld [vmem:[#allocation173_spill] sm:$0xff] }
 0x3f9   : > { %v8838_v44 = vld [vmem:[#allocation177_spill] sm:$0xff] }
 0x3fa   : > { %v2038_v19 = vadd.f32 %v8811_v28, %v2017_v34  ;;  %v2060_v60 = vadd.f32 %v8814_v31, %v2039_v27  ;;  %v8837_v28 = vld [vmem:[#allocation176_spill] sm:$0xff] }
 0x3fb   : > { %v4897_v45 = vpop.eup %4896 }
 0x3fc   : > { %v3336_v58 = vadd.f32 1.0, %v4897_v45  ;;  %v2059_v42 = vadd.f32 %v8813_v61, %v2038_v19  ;;  %v2081_v62 = vadd.f32 %v8816_v48, %v2060_v60  ;;  %v8839_v61 = vld [vmem:[#allocation178_spill] sm:$0xff]  ;;  %v8841_v60 = vld [vmem:[#allocation180_spill] sm:$0xff] }
 0x3fd   : > { %v8843_v48 = vld [vmem:[#allocation182_spill] sm:$0xff] }
 0x3fe   : > { %4898 = vrcp.f32 %v3336_v58  ;;  %v2080_v29 = vadd.f32 %v8815_v47, %v2059_v42  ;;  %v2095_v8 = vadd.f32 %v8818_v13, %v2081_v62 }
 0x400   : > { %v2094_v0 = vadd.f32 %v8817_v40, %v2080_v29  ;;  %v2109_v59 = vadd.f32 %v8820_v6, %v2095_v8  ;;  %v8842_v29 = vld [vmem:[#allocation181_spill] sm:$0xff]  ;;  %v2363_v40 = vstv %s2362_s13 }
 0x402   : > { %v2108_v15 = vadd.f32 %v8819_v55, %v2094_v0  ;;  %v2130_v23 = vadd.f32 %v8822_v10, %v2109_v59  ;;  %v8844_v0 = vld [vmem:[#allocation183_spill] sm:$0xff] }
 0x404   : > { %v2129_v63 = vadd.f32 %v8821_v57, %v2108_v15  ;;  %v2151_v36 = vadd.f32 %v8824_v38, %v2130_v23 }
 0x406   : > { %v2150_v33 = vadd.f32 %v8823_v41, %v2129_v63  ;;  %v2172_v45 = vadd.f32 %v8826_v16, %v2151_v36 }
 0x408   : > { %v4899_v37 = vpop.eup %4898  ;;  %v2171_v2 = vadd.f32 %v8825_v52, %v2150_v33  ;;  %v2193_v58 = vadd.f32 %v8828_v7, %v2172_v45  ;;  %v4939_v45 = vld [vmem:[%s5238_s27 + $0x8] sm:$0xff] }
 0x409   : > { %v4307_v35 = vrot.slane %v4899_v37, %v4306_v20 }
 0x40a   : > { %v2192_v51 = vadd.f32 %v8827_v12, %v2171_v2  ;;  %v2214_v25 = vadd.f32 %v8830_v14, %v2193_v58 }
 0x40b   : > { %v4315_v50 = vrot.slane %v4307_v35, %v4306_v20  ;;  %v4308_v32 = vcombine.high %v4307_v35, %v4307_v35 }
 0x40c   : > { %v2213_v9 = vadd.f32 %v8829_v30, %v2192_v51  ;;  %v2235_v49 = vadd.f32 %v8832_v43, %v2214_v25  ;;  %v4940_v51 = vld [vmem:[%s5238_s27] sm:$0xff] }
 0x40d   : > { %v4328_v56 = vrot.slane %v4315_v50, %v8237_v24  ;;  %v4322_v46 = vrot.slane %v4308_v32, %v4306_v20  ;;  %v4323_v3 = vcombine.high %v4315_v50, %v4315_v50  ;;  %v8840_v20 = vld [vmem:[#allocation179_spill] sm:$0xff] }
 0x40e   : > { %v2234_v1 = vadd.f32 %v8831_v26, %v2213_v9  ;;  %v2256_v34 = vadd.f32 %v8834_v21, %v2235_v49  ;;  %v4942_v49 = vld [vmem:[%s5238_s27 + $0x10] sm:$0xff] }
 0x40f   : > { %v4332_v11 = vrot.slane %v4322_v46, %v8237_v24  ;;  %v8305_v17 = vrot.slane %v4323_v3, %v8237_v24  ;;  %v4324_v39 = vcombine.high %v4322_v46, %v4322_v46 }
 0x410   : > { %v2255_v53 = vadd.f32 %v8833_v4, %v2234_v1  ;;  %v4941_v1 = vld [vmem:[%s5238_s27 + $0x18] sm:$0xff] }
 0x411   : > { %v8311_v54 = vrot.slane %v4324_v39, %v8237_v24  ;;  %v8836_v24 = vld [vmem:[#allocation175_spill] sm:$0xff] }
 0x412   : > { %v2276_v22 = vadd.f32 %v8835_v18, %v2255_v53  ;;  %v2277_v5 = vadd.f32 %v8836_v24, %v2256_v34 }
 0x414   : > { %v2297_v19 = vadd.f32 %v8837_v28, %v2276_v22  ;;  %v2298_v27 = vadd.f32 %v8838_v44, %v2277_v5  ;;  %v4943_v28 = vld [vmem:[%s5238_s27 + $0x28] sm:$0xff]  ;;  %v4944_v44 = vld [vmem:[%s5238_s27 + $0x20] sm:$0xff] }
 0x416   : > { %v2318_v42 = vadd.f32 %v8839_v61, %v2297_v19  ;;  %v2319_v31 = vadd.f32 %v8840_v20, %v2298_v27 }
 0x418   : > { %v2339_v47 = vadd.f32 %v8841_v60, %v2318_v42  ;;  %v2340_v37 = vadd.f32 %v8842_v29, %v2319_v31  ;;  %v4945_v31 = vld [vmem:[%s5238_s27 + $0x38] sm:$0xff] }
 0x41a   : > { %v2360_v62 = vadd.f32 %v8843_v48, %v2339_v47  ;;  %v2361_v35 = vadd.f32 %v8844_v0, %v2340_v37  ;;  %v4946_v47 = vld [vmem:[%s5238_s27 + $0x30] sm:$0xff] }
 0x41c   : > { %v2364_v13 = vadd.f32 %v2363_v40, %v2360_v62  ;;  %v2365_v8 = vadd.f32 %v2363_v40, %v2361_v35 }
 0x41e   : > { %v4622_v55 = vmul.f32 -1.442695, %v2364_v13  ;;  %v4623_v15 = vmul.f32 -1.442695, %v2365_v8 }
 0x420   : > { %4900 = vpow2.f32 %v4622_v55 }
 0x421   : > { %4902 = vpow2.f32 %v4623_v15 }
 0x42a   : > { %v4901_v50 = vpop.eup %4900 }
 0x42b   : > { %v4903_v32 = vpop.eup %4902  ;;  %v2372_v6 = vadd.f32 1.0, %v4901_v50 }
 0x42c   : > { %v2373_v59 = vadd.f32 1.0, %v4903_v32 }
 0x42d   : > { %4904 = vrcp.f32 %v2372_v6 }
 0x42e   : > { %4906 = vrcp.f32 %v2373_v59 }
 0x437   : > { %v4905_v57 = vpop.eup %4904 }
 0x438   : > { %v4907_v63 = vpop.eup %4906  ;;  %v4345_v3 = vadd.f32 %v4905_v57, %v4328_v56  ;;  %v4347_v52 = vadd.f32 %v4905_v57, %v4332_v11  ;;  %v4349_v14 = vadd.f32 %v4905_v57, %v8305_v17  ;;  %v4351_v22 = vadd.f32 %v4905_v57, %v8311_v54 }
 0x439   : > { %v4346_v46 = vadd.f32 %v4907_v63, %v4328_v56  ;;  %v4348_v39 = vadd.f32 %v4907_v63, %v4332_v11  ;;  %v4350_v9 = vadd.f32 %v4907_v63, %v8305_v17  ;;  %v4352_v18 = vadd.f32 %v4907_v63, %v8311_v54 }
 0x44d   : > { %v4363_v10 = vpop.permute.xlu1 %4362  ;;  %v4359_v23 = vpop.permute.xlu0 %4358 }
 0x44e   : > { %v4398_v41 = vadd.f32 %v4363_v10, %v4346_v46  ;;  %v4397_v33 = vadd.f32 %v4359_v23, %v4345_v3 }
 0x450   : > { %v4406_v38 = vmul.f32 0.33333334, %v4398_v41  ;;  %v4405_v36 = vmul.f32 0.33333334, %v4397_v33 }
 0x451   : > { %v4374_v2 = vpop.permute.xlu1 %4373  ;;  %v4370_v16 = vpop.permute.xlu0 %4369 }
 0x452   : > { %v4414_v12 = vmul.f32 %v4939_v45, %v4406_v38  ;;  %v4413_v7 = vmul.f32 %v4940_v51, %v4405_v36  ;;  %v4400_v58 = vadd.f32 %v4374_v2, %v4348_v39  ;;  %v4399_v30 = vadd.f32 %v4370_v16, %v4347_v52 }
 0x454   : > { %4422 = vst.msk [vmem:[%s8335_s14 + $0x8] sm:$0xff] %vm168_vm1, %v4414_v12  ;;  %4421 = vst.msk [vmem:[%s8335_s14] sm:$0xff] %vm168_vm1, %v4413_v7  ;;  %v4408_v56 = vmul.f32 0.33333334, %v4400_v58  ;;  %v4407_v11 = vmul.f32 0.33333334, %v4399_v30 }
 0x455   : > { %v4385_v25 = vpop.permute.xlu1 %4384  ;;  %v4381_v26 = vpop.permute.xlu0 %4380 }
 0x456   : > { %v4416_v43 = vmul.f32 %v4941_v1, %v4408_v56  ;;  %v4415_v4 = vmul.f32 %v4942_v49, %v4407_v11  ;;  %v4402_v53 = vadd.f32 %v4385_v25, %v4350_v9  ;;  %v4401_v21 = vadd.f32 %v4381_v26, %v4349_v14 }
 0x458   : > { %4424 = vst.msk [vmem:[%s8335_s14 + $0x18] sm:$0xff] %vm168_vm1, %v4416_v43  ;;  %4423 = vst.msk [vmem:[%s8335_s14 + $0x10] sm:$0xff] %vm168_vm1, %v4415_v4  ;;  %v4410_v34 = vmul.f32 0.33333334, %v4402_v53  ;;  %v4409_v17 = vmul.f32 0.33333334, %v4401_v21 }
 0x459   : > { %v4396_v24 = vpop.permute.xlu1 %4395  ;;  %v4392_v5 = vpop.permute.xlu0 %4391 }
 0x45a   : > { %v4418_v19 = vmul.f32 %v4943_v28, %v4410_v34  ;;  %v4417_v27 = vmul.f32 %v4944_v44, %v4409_v17  ;;  %v4404_v61 = vadd.f32 %v4396_v24, %v4352_v18  ;;  %v4403_v42 = vadd.f32 %v4392_v5, %v4351_v22 }
 0x45c   : > { %4426 = vst.msk [vmem:[%s8335_s14 + $0x28] sm:$0xff] %vm168_vm1, %v4418_v19  ;;  %4425 = vst.msk [vmem:[%s8335_s14 + $0x20] sm:$0xff] %vm168_vm1, %v4417_v27  ;;  %v4412_v54 = vmul.f32 0.33333334, %v4404_v61  ;;  %v4411_v20 = vmul.f32 0.33333334, %v4403_v42 }
 0x45e   : > { %v4420_v60 = vmul.f32 %v4945_v31, %v4412_v54  ;;  %v4419_v29 = vmul.f32 %v4946_v47, %v4411_v20 }
 0x460   : > { %4428 = vst.msk [vmem:[%s8335_s14 + $0x38] sm:$0xff] %vm168_vm1, %v4420_v60  ;;  %4427 = vst.msk [vmem:[%s8335_s14 + $0x30] sm:$0xff] %vm168_vm1, %v4419_v29 }
 0x461   : > { %5010 = shalt.err (!%p5007_p8)
}
 0x462   : > { %s5011_s27 = scalar_lea.hbm %s8362_s11, 1024  ;;  %s5015_s23 = scalar_lea.hbm %s8416_s3, 2048 }
 0x463   : > { %p5012_p10 = scmp.ne.s32.totalorder %s8362_s11, %s5011_s27  ;;  %p5016_p1 = scmp.lt.u32.totalorder %s8362_s11, %s8416_s3 }
 0x464   : > { %p5017_p7 = scmp.lt.u32.totalorder %s5015_s23, %s5011_s27  ;;  %p5019_p12 = scmp.lt.u32.totalorder %s5011_s27, %s8362_s11 }
 0x465   : > { %p5013_p11 = pnand %p5012_p10, %p8846_p3 }
 0x466   : > { %p5018_p9 = por %p5017_p7, %p5016_p1 }
 0x467   : > { %p5014_p13 = pneg %p5013_p11 }
 0x468   : > { %p5020_p4 = por %p5019_p12, %p5018_p9 }
 0x46a   : > { %p5021_p5 = pnand %p5020_p4, %p5014_p13 }
 0x46c   : > { %5024 = shalt.err (!%p5021_p5)
}
 0x46d   : > { %s5082_s21 = smov 128   ;;  %s5083_s13 = smov 8  }
 0x46e   : > { %4833 = dma.vmem_to_hbm [thread:$0]  (%p8846_p3), %s8364_s28, 1024, %s8362_s11, %s4430_s1, %s5082_s21, %s5082_s21, %s5083_s13  }
 0x46f PF: > { %s4458_s25 = sand.u32 1, %s5053_s0   ;;  %p8847_p0 = scmp.ne.s32.totalorder %s8434_s16, 0 }
 0x470   : > { %p8848_p2 = scmp.ge.s32.totalorder %s5065_s7, 2  ;;  %s4459_s14 = scalar_lea.sflag [#allocation10], %s4458_s25 }
 0x472   : > { %p4840_p6 = pnand %p8848_p2, %p8847_p0 }
 0x474   : > { %5048 = dma.done.wait (!%p4840_p6), %s4459_s14, 1024  }
 0x475   : > { %5050 = vsyncadd (!%p4840_p6), %s4459_s14, 4294966272  ;;  %p22_p8 = scmp.ge.s32.totalorder %s5153_s9, 4   ;;  %s8849_s0 = smov %s5057_s5 }
 0x476   : > { %s8850_s5 = smov %s5061_s6  ;;  %s8851_s6 = smov %s5165_s12 }
 0x477   : > { %s8852_s7 = smov %s5153_s9  ;;  %24 = sbr.rel (!%p22_p8) target bundleno = 24 (0x18), region = 72 }
 0x47e   :  { %4464 = vsyncpa [#allocation9], 1 }
 0x47f   :  { %4466 = vsyncpa [#allocation9 + $0x1], 1 }
 0x480   :  { %4467 = vsyncpa [#allocation10], 1 }
 0x481   :  { %4469 = vsyncpa [#allocation10 + $0x1], 1 }

</bundles_post_ra>
